<compile_context>
chip_gen: v7x
topology: tpu7x:2x2x1
jax: 0.10.0
libtpu: 0.0.40
codegen_flags: <defaults>
</compile_context>

<pallas_src>
import math
import numpy as np
import jax
import jax.numpy as jnp
from jax import lax
from jax.experimental import pallas as pl
from jax.experimental.pallas import tpu as pltpu

# ----------------------------------------------------------------------------
# Small, TPU-friendly configuration (scaled down from the original experiment)
# ----------------------------------------------------------------------------
SR          = 22050.0
BATCH       = 2
N_SAMPLES   = 2048            # original: 2**15
MODEL_DIM   = 32              # original: 128
LATENT_DIM  = MODEL_DIM       # event_latent_dim
KERNEL_SIZE = 64              # filterbank kernel (original: 512)
WINDOW_SIZE = 128
STEP_SIZE   = 64
N_FRAMES    = N_SAMPLES // STEP_SIZE      # 32
N_EVENTS    = 4               # original: 16
POS_FREQS   = 16              # -> 33 positional channels
POS_CH      = 2 * POS_FREQS + 1           # 33
POS_PAD     = 40              # padded (sublane aligned) positional channels
N_BANDS     = 32              # scale.n_bands (original: 128)
RESOLUTION  = 8               # original: 32
DILATIONS   = [1, 3, 9, 27, 1]
LEAKY_SLOPE = 0.2
NPAD        = N_SAMPLES + 128             # lane-aligned padded signal length
BEV         = BATCH * N_EVENTS            # events per forward


# ----------------------------------------------------------------------------
# Generic Pallas matmul kernel (bf16 operands, f32 accumulation)
# ----------------------------------------------------------------------------
def _mm_bias_kernel(x_ref, w_ref, b_ref, o_ref):
    o_ref[...] = (jnp.dot(x_ref[...], w_ref[...],
                          preferred_element_type=jnp.float32) + b_ref[...])


def pallas_linear(x, w, b):
    """(M, K) @ (K, N) + b[1, N] with bf16 MXU operands."""
    M, K = x.shape
    N = w.shape[1]
    return pl.pallas_call(
        _mm_bias_kernel,
        grid=(1,),
        in_specs=[
            pl.BlockSpec((M, K), lambda i: (0, 0)),
            pl.BlockSpec((K, N), lambda i: (0, 0)),
            pl.BlockSpec((1, N), lambda i: (0, 0)),
        ],
        out_specs=pl.BlockSpec((M, N), lambda i: (0, 0)),
        out_shape=jax.ShapeDtypeStruct((M, N), jnp.float32),
    )(x.astype(jnp.bfloat16), w.astype(jnp.bfloat16),
      b.reshape(1, N).astype(jnp.float32))


# ----------------------------------------------------------------------------
# Fused filterbank conv + |.| + temporal pooling.
# Phase decomposition: y[c,n] = sum_q sum_r w[c,8q+r] * x[n + 8q + r - K/2];
# the 8 pre-shifted signal rows turn every tap group into one aligned (8, N)
# slab read + one accumulating bf16 MXU dot.  Pooling is a single matmul.
# ----------------------------------------------------------------------------
def _fb_pool_kernel(xp8_ref, w_ref, pool_ref, o_ref):
    acc = jnp.dot(w_ref[0], xp8_ref[0, :, pl.ds(0, N_SAMPLES)],
                  preferred_element_type=jnp.float32)
    for q in range(1, KERNEL_SIZE // 8):
        blk = xp8_ref[0, :, pl.ds(8 * q, N_SAMPLES)]            # (8, N) bf16
        acc = acc + jnp.dot(w_ref[q], blk, preferred_element_type=jnp.float32)
    pooled = jnp.dot(jnp.abs(acc).astype(jnp.bfloat16), pool_ref[...],
                     preferred_element_type=jnp.float32)         # (C, N_FRAMES)
    o_ref[0] = pooled


def fb_pool_forward(xp8, fb_w8, pool_m):
    B = xp8.shape[0]
    return pl.pallas_call(
        _fb_pool_kernel,
        grid=(B,),
        in_specs=[
            pl.BlockSpec((1, 8, NPAD), lambda b: (b, 0, 0)),
            pl.BlockSpec((KERNEL_SIZE // 8, MODEL_DIM, 8), lambda b: (0, 0, 0)),
            pl.BlockSpec((N_SAMPLES, N_FRAMES), lambda b: (0, 0)),
        ],
        out_specs=pl.BlockSpec((1, MODEL_DIM, N_FRAMES), lambda b: (b, 0, 0)),
        out_shape=jax.ShapeDtypeStruct((B, MODEL_DIM, N_FRAMES), jnp.float32),
        compiler_params=pltpu.CompilerParams(dimension_semantics=("parallel",)),
    )(xp8, fb_w8, pool_m)


def make_xp8(x):
    """8 pre-shifted bf16 copies of the (pad K/2 left, zeros right) signal so
    the fb kernel reads aligned (8, N) slabs per tap phase.  ~70 KB total."""
    pad_l = KERNEL_SIZE // 2
    xpad = jnp.pad(x.astype(jnp.bfloat16),
                   ((0, 0), (pad_l, NPAD + 8 - N_SAMPLES - pad_l)))
    rows = [xpad[:, i:i + NPAD] for i in range(8)]
    return jnp.stack(rows, axis=1)                               # (B, 8, NPAD)


def make_pool_matrix():
    """|.|-avg-pool (window=128, step=64, SAME) expressed as a (N, N_FRAMES) matmul."""
    n = np.arange(N_SAMPLES)[:, None]
    f = np.arange(N_FRAMES)[None, :]
    start = f * STEP_SIZE - (WINDOW_SIZE - STEP_SIZE) // 2
    m = ((n >= start) & (n < start + WINDOW_SIZE)).astype(np.float32) / WINDOW_SIZE
    return jnp.asarray(m, dtype=jnp.bfloat16)


def pos_encoded(n_frames, n_freqs, pad_to):
    pos = jnp.linspace(-1.0, 1.0, n_frames)
    feats = [pos[None, :]]
    for i in range(n_freqs):
        feats.append(jnp.sin(pos * (2.0 ** i) * math.pi)[None, :])
        feats.append(jnp.cos(pos * (2.0 ** i) * math.pi)[None, :])
    enc = jnp.concatenate(feats, axis=0)                         # (33, n_frames)
    enc = jnp.pad(enc, ((0, pad_to - enc.shape[0]), (0, 0)))
    return enc.astype(jnp.bfloat16)                              # shared across batch


# ----------------------------------------------------------------------------
# Fused encoder kernel: ExampleNorm -> reduce(1x1 conv) -> DilatedStack -> ExampleNorm
# Dilated taps built with shift-matrix matmuls (no padded scratch, no masked stores).
# ----------------------------------------------------------------------------
def _encoder_kernel(pooled_ref, pos_ref, wf_ref, wp_ref, rb_ref,
                    cw_ref, cb_ref, o_ref):
    f = pooled_ref[0]                                            # (C, NF) f32
    mean = jnp.mean(f)
    f = f / (jnp.sqrt(jnp.mean((f - mean) ** 2)) + 1e-8)

    # reduce: Conv1d(model_dim + 33, model_dim, 1) split over [feat | pos]
    x = (jnp.dot(wf_ref[...], f.astype(jnp.bfloat16), preferred_element_type=jnp.float32)
         + jnp.dot(wp_ref[...], pos_ref[...], preferred_element_type=jnp.float32)
         + rb_ref[...])

    r_iota = lax.broadcasted_iota(jnp.int32, (N_FRAMES, N_FRAMES), 0)
    c_iota = lax.broadcasted_iota(jnp.int32, (N_FRAMES, N_FRAMES), 1)
    for i, d in enumerate(DILATIONS):
        sm = (c_iota - r_iota == d).astype(jnp.bfloat16)         # x @ sm -> x[:, t - d]
        sp = (r_iota - c_iota == d).astype(jnp.bfloat16)         # x @ sp -> x[:, t + d]
        xb = x.astype(jnp.bfloat16)
        left = jnp.dot(xb, sm, preferred_element_type=jnp.float32).astype(jnp.bfloat16)
        right = jnp.dot(xb, sp, preferred_element_type=jnp.float32).astype(jnp.bfloat16)
        out = (jnp.dot(cw_ref[3 * i + 0], left, preferred_element_type=jnp.float32)
               + jnp.dot(cw_ref[3 * i + 1], xb, preferred_element_type=jnp.float32)
               + jnp.dot(cw_ref[3 * i + 2], right, preferred_element_type=jnp.float32)
               + cb_ref[i])
        out = jnp.where(out > 0, out, LEAKY_SLOPE * out)
        x = x + out

    mean2 = jnp.mean(x)
    x = x / (jnp.sqrt(jnp.mean((x - mean2) ** 2)) + 1e-8)
    o_ref[0] = x


def encoder(pooled, pos, params):
    B = pooled.shape[0]
    nl = len(DILATIONS)
    return pl.pallas_call(
        _encoder_kernel,
        grid=(B,),
        in_specs=[
            pl.BlockSpec((1, MODEL_DIM, N_FRAMES), lambda b: (b, 0, 0)),
            pl.BlockSpec((POS_PAD, N_FRAMES), lambda b: (0, 0)),
            pl.BlockSpec((MODEL_DIM, MODEL_DIM), lambda b: (0, 0)),
            pl.BlockSpec((MODEL_DIM, POS_PAD), lambda b: (0, 0)),
            pl.BlockSpec((MODEL_DIM, 1), lambda b: (0, 0)),
            pl.BlockSpec((nl * 3, MODEL_DIM, MODEL_DIM), lambda b: (0, 0, 0)),
            pl.BlockSpec((nl, MODEL_DIM, 1), lambda b: (0, 0, 0)),
        ],
        out_specs=pl.BlockSpec((1, MODEL_DIM, N_FRAMES), lambda b: (b, 0, 0)),
        out_shape=jax.ShapeDtypeStruct((B, MODEL_DIM, N_FRAMES), jnp.float32),
        compiler_params=pltpu.CompilerParams(dimension_semantics=("parallel",)),
    )(pooled, pos, params["reduce_wf"], params["reduce_wp"], params["reduce_b"],
      params["ctx_w"], params["ctx_b"])


# ----------------------------------------------------------------------------
# Resonance-bank synthesis: hard gumbel one-hot selection as a single
# VMEM-resident bf16 matmul (bank is only 1 MiB at these shapes).
# ----------------------------------------------------------------------------
def _event_synth_kernel(sel_ref, bank_ref, o_ref):
    o_ref[...] = jnp.dot(sel_ref[...], bank_ref[...],
                         preferred_element_type=jnp.float32)


def event_synth(sel, bank):
    """sel: (bev, N_BANDS*RES) bf16 one-hot selection, bank: (N_BANDS*RES, N) bf16."""
    bev = sel.shape[0]
    rows = bank.shape[0]
    return pl.pallas_call(
        _event_synth_kernel,
        grid=(1,),
        in_specs=[
            pl.BlockSpec((bev, rows), lambda i: (0, 0)),
            pl.BlockSpec((rows, N_SAMPLES), lambda i: (0, 0)),
        ],
        out_specs=pl.BlockSpec((bev, N_SAMPLES), lambda i: (0, 0)),
        out_shape=jax.ShapeDtypeStruct((bev, N_SAMPLES), jnp.float32),
    )(sel, bank)


# ----------------------------------------------------------------------------
# Fused ConvUpsample: whole (upsample x2 + k3 conv + leaky) stack in ONE kernel.
# Per-layer op out = sum_j W_j @ (h @ M_j), with M_j the precomputed per-tap
# block-diagonal "nearest-x2-upsample + shift" time operator (bev examples are
# lane blocks, so no cross-example bleed).
# ----------------------------------------------------------------------------
def _make_upsample_kernel(n_layers):
    def kernel(h0_ref, *refs):
        o_ref = refs[-1]
        h = h0_ref[...]                                          # (C, bev*T) bf16
        acc = None
        for i in range(n_layers):
            w_ref, b_ref, m_ref = refs[3 * i], refs[3 * i + 1], refs[3 * i + 2]
            acc = b_ref[...]                                     # (Cout, 1)
            for j in range(3):
                hr = jnp.dot(h, m_ref[j], preferred_element_type=jnp.float32)
                acc = acc + jnp.dot(w_ref[j], hr.astype(jnp.bfloat16),
                                    preferred_element_type=jnp.float32)
            if i < n_layers - 1:
                acc = jnp.where(acc > 0, acc, LEAKY_SLOPE * acc)
            h = acc.astype(jnp.bfloat16)
        o_ref[...] = acc
    return kernel


def conv_upsample_fused(latent, p, channels, start, end, out_channels):
    bev = latent.shape[0]
    n_layers = int(np.log2(end // start))
    # TODO(synk): initial projection + (bev, C, T)->(C, bev*T) layout transpose
    # stays in plain XLA (tiny (bev, C*start) matmul); everything after is one
    # fused Pallas kernel with h resident in VMEM.
    h0 = latent.astype(jnp.float32) @ p["proj_w"] + p["proj_b"]
    h0 = h0.reshape(bev, channels, start).transpose(1, 0, 2).reshape(channels, bev * start)
    h0 = h0.astype(jnp.bfloat16)

    operands = [h0]
    in_specs = [pl.BlockSpec((channels, bev * start), lambda i: (0, 0))]
    for li in range(n_layers):
        w, b, m = p[f"w{li}"], p[f"b{li}"], p[f"m{li}"]
        operands += [w, b, m]
        in_specs += [
            pl.BlockSpec(w.shape, lambda i: (0, 0, 0)),
            pl.BlockSpec(b.shape, lambda i: (0, 0)),
            pl.BlockSpec(m.shape, lambda i: (0, 0, 0)),
        ]
    return pl.pallas_call(
        _make_upsample_kernel(n_layers),
        grid=(1,),
        in_specs=in_specs,
        out_specs=pl.BlockSpec((out_channels, bev * end), lambda i: (0, 0)),
        out_shape=jax.ShapeDtypeStruct((out_channels, bev * end), jnp.float32),
    )(*operands)


def make_upconv_mats(t_in, bev):
    """Per-tap combined nearest-x2 upsample + k3/pad1 shift operator, block-diag over bev."""
    t_out = 2 * t_in
    tap = np.zeros((3, t_in, t_out), np.float32)
    for j in range(3):
        for m in range(t_out):
            p = m + j - 1                      # position in upsampled signal feeding tap j
            if 0 <= p < t_out:
                tap[j, p // 2, m] = 1.0
    bd = np.zeros((3, bev * t_in, bev * t_out), np.float32)
    for j in range(3):
        for e in range(bev):
            bd[j, e * t_in:(e + 1) * t_in, e * t_out:(e + 1) * t_out] = tap[j]
    return bd


# ----------------------------------------------------------------------------
# Plain-JAX helpers (no clean Pallas equivalent)
# ----------------------------------------------------------------------------
def linear_interp(x, out_size):
    """F.interpolate(mode='linear', align_corners=False) along last axis."""
    T = x.shape[-1]
    pos = (jnp.arange(out_size) + 0.5) * (T / out_size) - 0.5
    lo = jnp.clip(jnp.floor(pos), 0, T - 1).astype(jnp.int32)
    hi = jnp.clip(lo + 1, 0, T - 1)
    w = jnp.clip(pos - lo.astype(jnp.float32), 0.0, 1.0)
    return x[..., lo] * (1.0 - w) + x[..., hi] * w


def gumbel_argmax(logits, key, tau=1.0):
    # Forward value of F.gumbel_softmax(hard=True) == one-hot at this argmax.
    u = jax.random.uniform(key, logits.shape, minval=1e-6, maxval=1.0 - 1e-6)
    g = -jnp.log(-jnp.log(u))
    return jnp.argmax((logits + g) / tau, axis=-1).astype(jnp.int32)


def fft_convolve(env, tf, n_samples):
    # TODO(synk): rfft/irfft have no Pallas TPU primitive; plain JAX FFT here.
    env = jnp.pad(env, ((0, 0), (0, 0), (0, env.shape[-1])))
    tf = jnp.pad(tf, ((0, 0), (0, 0), (0, tf.shape[-1])))
    env_spec = jnp.fft.rfft(env, axis=-1, norm="ortho")
    tf_spec = jnp.fft.rfft(tf, axis=-1, norm="ortho")
    final = jnp.fft.irfft(env_spec * tf_spec, axis=-1, norm="ortho")
    return final[..., :n_samples]


def vectorwise_sparsity(x, keep):
    """VectorwiseSparsity(channels_last=False, dense=False, normalize=True)."""
    # TODO(synk): top-k selection / gather is data-dependent; kept in plain JAX.
    norms = jnp.sqrt(jnp.sum(x * x, axis=1) + 1e-12)             # (B, T)
    _, idx = lax.top_k(norms, keep)                              # (B, keep)
    vecs = jnp.take_along_axis(x.transpose(0, 2, 1), idx[..., None], axis=1)
    vecs = vecs / (jnp.sqrt(jnp.sum(vecs * vecs, axis=-1, keepdims=True)) + 1e-8)
    return vecs, idx


# ----------------------------------------------------------------------------
# Parameter construction (deterministic, synthetic weights)
# ----------------------------------------------------------------------------
def make_resonance_bank():
    freqs = np.geomspace(30.0, SR / 2 * 0.9, N_BANDS)
    t = np.arange(N_SAMPLES) / SR
    decays = np.linspace(0.995, 0.99995, RESOLUTION)
    bank = np.zeros((N_BANDS, RESOLUTION, N_SAMPLES), np.float32)
    for b in range(N_BANDS):
        osc = np.sin(2.0 * np.pi * freqs[b] * t)
        for r in range(RESOLUTION):
            bank[b, r] = osc * (decays[r] ** np.arange(N_SAMPLES))
    return jnp.asarray(bank.reshape(N_BANDS * RESOLUTION, N_SAMPLES),
                       dtype=jnp.bfloat16)


def init_conv_upsample(key, latent, channels, start, end, out_channels, bev, scale=0.1):
    n_layers = int(np.log2(end // start))
    ks = jax.random.split(key, n_layers + 1)
    p = {
        "proj_w": (jax.random.normal(ks[0], (latent, channels * start)) * scale).astype(jnp.float32),
        "proj_b": jnp.zeros((channels * start,), jnp.float32),
    }
    t = start
    for i in range(n_layers):
        cout = out_channels if i == n_layers - 1 else channels
        w = jax.random.normal(ks[i + 1], (cout, channels, 3)) * scale
        p[f"w{i}"] = jnp.transpose(w, (2, 0, 1)).astype(jnp.bfloat16)   # (3, cout, cin)
        p[f"b{i}"] = jnp.zeros((cout, 1), jnp.float32)
        p[f"m{i}"] = jnp.asarray(make_upconv_mats(t, bev), dtype=jnp.bfloat16)
        t *= 2
    return p


def init_params(key):
    ks = jax.random.split(key, 8)
    scale = 0.1  # weight_init

    # deterministic morlet-like filterbank (stand-in for zounds mel filterbank)
    t = np.arange(KERNEL_SIZE)
    freqs = np.geomspace(30.0, SR / 2 * 0.9, MODEL_DIM)
    window = np.hanning(KERNEL_SIZE)
    fb = np.stack([np.sin(2.0 * np.pi * f * t / SR) * window for f in freqs]).astype(np.float32)
    # tap-phase-major layout for the fused fb kernel: (K//8, MODEL_DIM, 8)
    fb_w8 = fb.reshape(MODEL_DIM, KERNEL_SIZE // 8, 8).transpose(1, 0, 2)

    reduce_full = jax.random.normal(ks[0], (MODEL_DIM, MODEL_DIM + POS_CH)) * scale
    wf = reduce_full[:, :MODEL_DIM]
    wp = jnp.zeros((MODEL_DIM, POS_PAD), jnp.float32).at[:, :POS_CH].set(
        reduce_full[:, MODEL_DIM:])

    nl = len(DILATIONS)
    params = {
        "fb_w8": jnp.asarray(fb_w8, dtype=jnp.bfloat16),
        "pool_m": make_pool_matrix(),
        "reduce_wf": wf.astype(jnp.bfloat16),
        "reduce_wp": wp.astype(jnp.bfloat16),
        "reduce_b": jnp.zeros((MODEL_DIM, 1), jnp.float32),
        # dilated stack weights stacked as (layer*3 + tap, Cout, Cin)
        "ctx_w": (jax.random.normal(ks[1], (nl * 3, MODEL_DIM, MODEL_DIM)) * scale).astype(jnp.bfloat16),
        "ctx_b": jnp.zeros((nl, MODEL_DIM, 1), jnp.float32),
        # to_time / to_transfer fused into one matmul
        "tt_w": (jax.random.normal(ks[2], (MODEL_DIM, 2 * LATENT_DIM)) * scale).astype(jnp.float32),
        "tt_b": jnp.zeros((2 * LATENT_DIM,), jnp.float32),
    }
    params["decode"] = {
        "env": init_conv_upsample(ks[3], LATENT_DIM, MODEL_DIM, 4, N_FRAMES * 2, 1, BEV, scale),
        "transfer": init_conv_upsample(ks[4], MODEL_DIM, MODEL_DIM, 8, N_BANDS, RESOLUTION, BEV, scale),
        "bank": make_resonance_bank(),
    }
    return params


# ----------------------------------------------------------------------------
# SegmentGenerator + Summarizer forward
# ----------------------------------------------------------------------------
def segment_generator(p, time, transfer, rng):
    bev = time.shape[0]
    noise_key, gumbel_key = jax.random.split(rng)

    # envelope branch (fused upsample/conv kernel, channel-major lane-dense output)
    env_cm = conv_upsample_fused(time, p["env"], MODEL_DIM, 4, N_FRAMES * 2, 1)   # (1, bev*2NF)
    env = env_cm.reshape(1, bev, N_FRAMES * 2).transpose(1, 0, 2) ** 2            # (bev, 1, 2NF)
    orig_env = env
    env_u = linear_interp(env, N_SAMPLES)                                         # (bev, 1, N)
    noise = jax.random.uniform(noise_key, (1, 1, N_SAMPLES), minval=-1.0, maxval=1.0)
    env_u = env_u * noise

    # transfer-function branch
    tf_cm = conv_upsample_fused(transfer, p["transfer"], MODEL_DIM, 8, N_BANDS, RESOLUTION)  # (RES, bev*bands)
    logits = tf_cm.reshape(RESOLUTION, bev, N_BANDS).transpose(1, 2, 0)            # (bev, bands, res)
    idx = gumbel_argmax(logits, gumbel_key)                                        # (bev, bands)
    # hard gumbel one-hot -> VMEM-resident resonance-bank selection matmul
    sel = jax.nn.one_hot(idx, RESOLUTION, dtype=jnp.bfloat16).reshape(bev, N_BANDS * RESOLUTION)
    tf_sig = event_synth(sel, p["bank"]).reshape(bev, 1, N_SAMPLES)

    final = fft_convolve(env_u, tf_sig, N_SAMPLES)
    final = jnp.mean(final, axis=1, keepdims=True)
    return final, orig_env, 0.0, None


def summarizer_forward(params, x, rng):
    batch = x.shape[0]
    x = x.reshape(-1, N_SAMPLES)

    # fused filterbank conv + |.| + temporal pooling (Pallas)
    xp8 = make_xp8(x)                                                   # (B, 8, NPAD) bf16
    feat = fb_pool_forward(xp8, params["fb_w8"], params["pool_m"])      # (B, MODEL_DIM, n_frames)

    pos = pos_encoded(N_FRAMES, POS_FREQS, POS_PAD)                     # (POS_PAD, n_frames), unbatched

    # fused: ExampleNorm -> reduce(1x1) -> DilatedStack -> ExampleNorm (Pallas)
    feat = encoder(feat, pos, params)                                   # (B, MODEL_DIM, n_frames)

    vecs, indices = vectorwise_sparsity(feat, N_EVENTS)                 # (B, n_events, MODEL_DIM)
    encoded = vecs
    flat = vecs.reshape(-1, MODEL_DIM)                                  # (B*n_events, MODEL_DIM)

    # to_time / to_transfer (LinearOutputStack depth=1) fused into one matmul (Pallas)
    tt = pallas_linear(flat, params["tt_w"], params["tt_b"])            # (B*n_events, 2*LATENT)
    time = tt[:, :LATENT_DIM]
    transfer = tt[:, LATENT_DIM:]
    # time_vq / transfer_vq have passthrough=True -> identity, loss 0
    t_loss, tf_loss = 0.0, 0.0

    final, env, _, tf = segment_generator(params["decode"], time, transfer, rng)

    xev = final.reshape(batch, N_EVENTS, N_SAMPLES)
    output = jnp.sum(xev, axis=1, keepdims=True)                        # (batch, 1, n_samples)
    loss = t_loss + tf_loss
    return output, indices, encoded, env.reshape(batch, N_EVENTS, -1), loss, tf, time, transfer


# ----------------------------------------------------------------------------
if __name__ == "__main__":
    key = jax.random.PRNGKey(0)
    k_param, k_data, k_fwd = jax.random.split(key, 3)

    params = init_params(k_param)
    x = jax.random.normal(k_data, (BATCH, N_SAMPLES), dtype=jnp.float32)

    fwd = jax.jit(summarizer_forward)
    output, indices, encoded, env, loss, tf, time, transfer = fwd(params, x, k_fwd)
    jax.block_until_ready(output)
    jax.block_until_ready(encoded)
    jax.block_until_ready(time)

    assert output.shape == (BATCH, 1, N_SAMPLES)
    assert indices.shape == (BATCH, N_EVENTS)
    assert encoded.shape == (BATCH, N_EVENTS, MODEL_DIM)
    assert env.shape == (BATCH, N_EVENTS, 2 * N_FRAMES)
    assert time.shape == (BATCH * N_EVENTS, LATENT_DIM)
    assert transfer.shape == (BATCH * N_EVENTS, LATENT_DIM)
    print("KERNEL_OK")
</pallas_src>

<mosaic_0001>
module attributes {stable_mosaic.version = 11 : i64} {
  func.func @_fb_pool_kernel(%arg0: i32, %arg1: memref<1x8x2176xbf16, #tpu.memory_space<vmem>>, %arg2: memref<8x32x8xbf16, #tpu.memory_space<vmem>>, %arg3: memref<2048x32xbf16, #tpu.memory_space<vmem>>, %arg4: memref<1x32x32xf32, #tpu.memory_space<vmem>>) attributes {dimension_semantics = [#tpu.dimension_semantics<parallel>], iteration_bounds = array<i64: 2>, scalar_prefetch = 0 : i64, scratch_operands = 0 : i64, tpu.core_type = #tpu.core_type<tc>, window_params = [{transform_indices = @transform_0, window_bounds = array<i64: 1, 8, 2176>}, {pipeline_mode = #tpu.pipeline_mode<synchronous>, transform_indices = @transform_1, window_bounds = array<i64: 8, 32, 8>}, {pipeline_mode = #tpu.pipeline_mode<synchronous>, transform_indices = @transform_2, window_bounds = array<i64: 2048, 32>}, {transform_indices = @transform_3, window_bounds = array<i64: 1, 32, 32>}]} {
    %c0 = arith.constant 0 : index
    %c0_0 = arith.constant 0 : index
    %c0_1 = arith.constant 0 : index
    %0 = vector.load %arg2[%c0, %c0_0, %c0_1] : memref<8x32x8xbf16, #tpu.memory_space<vmem>>, vector<1x32x8xbf16>
    %1 = vector.shape_cast %0 : vector<1x32x8xbf16> to vector<32x8xbf16>
    %c0_2 = arith.constant 0 : index
    %c0_3 = arith.constant 0 : index
    %c0_4 = arith.constant 0 : index
    %2 = vector.load %arg1[%c0_2, %c0_3, %c0_4] : memref<1x8x2176xbf16, #tpu.memory_space<vmem>>, vector<1x8x2048xbf16>
    %3 = vector.shape_cast %2 : vector<1x8x2048xbf16> to vector<8x2048xbf16>
    %cst = arith.constant dense<0.000000e+00> : vector<32x2048xf32>
    %4 = tpu.matmul %1, %3, %cst {dimension_numbers = #tpu.dot_dimension_numbers<[1], [0], [0], [1], [0, 0, 1, 1], [], []>} : vector<32x8xbf16>, vector<8x2048xbf16>, vector<32x2048xf32> -> vector<32x2048xf32>
    %c0_5 = arith.constant 0 : index
    %c0_6 = arith.constant 0 : index
    %c8 = arith.constant 8 : index
    %5 = vector.load %arg1[%c0_5, %c0_6, %c8] : memref<1x8x2176xbf16, #tpu.memory_space<vmem>>, vector<1x8x2048xbf16>
    %6 = vector.shape_cast %5 : vector<1x8x2048xbf16> to vector<8x2048xbf16>
    %c1 = arith.constant 1 : index
    %c0_7 = arith.constant 0 : index
    %c0_8 = arith.constant 0 : index
    %7 = vector.load %arg2[%c1, %c0_7, %c0_8] : memref<8x32x8xbf16, #tpu.memory_space<vmem>>, vector<1x32x8xbf16>
    %8 = vector.shape_cast %7 : vector<1x32x8xbf16> to vector<32x8xbf16>
    %cst_9 = arith.constant dense<0.000000e+00> : vector<32x2048xf32>
    %9 = tpu.matmul %8, %6, %cst_9 {dimension_numbers = #tpu.dot_dimension_numbers<[1], [0], [0], [1], [0, 0, 1, 1], [], []>} : vector<32x8xbf16>, vector<8x2048xbf16>, vector<32x2048xf32> -> vector<32x2048xf32>
    %10 = arith.addf %4, %9 : vector<32x2048xf32>
    %c0_10 = arith.constant 0 : index
    %c0_11 = arith.constant 0 : index
    %c16 = arith.constant 16 : index
    %11 = vector.load %arg1[%c0_10, %c0_11, %c16] : memref<1x8x2176xbf16, #tpu.memory_space<vmem>>, vector<1x8x2048xbf16>
    %12 = vector.shape_cast %11 : vector<1x8x2048xbf16> to vector<8x2048xbf16>
    %c2 = arith.constant 2 : index
    %c0_12 = arith.constant 0 : index
    %c0_13 = arith.constant 0 : index
    %13 = vector.load %arg2[%c2, %c0_12, %c0_13] : memref<8x32x8xbf16, #tpu.memory_space<vmem>>, vector<1x32x8xbf16>
    %14 = vector.shape_cast %13 : vector<1x32x8xbf16> to vector<32x8xbf16>
    %cst_14 = arith.constant dense<0.000000e+00> : vector<32x2048xf32>
    %15 = tpu.matmul %14, %12, %cst_14 {dimension_numbers = #tpu.dot_dimension_numbers<[1], [0], [0], [1], [0, 0, 1, 1], [], []>} : vector<32x8xbf16>, vector<8x2048xbf16>, vector<32x2048xf32> -> vector<32x2048xf32>
    %16 = arith.addf %10, %15 : vector<32x2048xf32>
    %c0_15 = arith.constant 0 : index
    %c0_16 = arith.constant 0 : index
    %c24 = arith.constant 24 : index
    %17 = vector.load %arg1[%c0_15, %c0_16, %c24] : memref<1x8x2176xbf16, #tpu.memory_space<vmem>>, vector<1x8x2048xbf16>
    %18 = vector.shape_cast %17 : vector<1x8x2048xbf16> to vector<8x2048xbf16>
    %c3 = arith.constant 3 : index
    %c0_17 = arith.constant 0 : index
    %c0_18 = arith.constant 0 : index
    %19 = vector.load %arg2[%c3, %c0_17, %c0_18] : memref<8x32x8xbf16, #tpu.memory_space<vmem>>, vector<1x32x8xbf16>
    %20 = vector.shape_cast %19 : vector<1x32x8xbf16> to vector<32x8xbf16>
    %cst_19 = arith.constant dense<0.000000e+00> : vector<32x2048xf32>
    %21 = tpu.matmul %20, %18, %cst_19 {dimension_numbers = #tpu.dot_dimension_numbers<[1], [0], [0], [1], [0, 0, 1, 1], [], []>} : vector<32x8xbf16>, vector<8x2048xbf16>, vector<32x2048xf32> -> vector<32x2048xf32>
    %22 = arith.addf %16, %21 : vector<32x2048xf32>
    %c0_20 = arith.constant 0 : index
    %c0_21 = arith.constant 0 : index
    %c32 = arith.constant 32 : index
    %23 = vector.load %arg1[%c0_20, %c0_21, %c32] : memref<1x8x2176xbf16, #tpu.memory_space<vmem>>, vector<1x8x2048xbf16>
    %24 = vector.shape_cast %23 : vector<1x8x2048xbf16> to vector<8x2048xbf16>
    %c4 = arith.constant 4 : index
    %c0_22 = arith.constant 0 : index
    %c0_23 = arith.constant 0 : index
    %25 = vector.load %arg2[%c4, %c0_22, %c0_23] : memref<8x32x8xbf16, #tpu.memory_space<vmem>>, vector<1x32x8xbf16>
    %26 = vector.shape_cast %25 : vector<1x32x8xbf16> to vector<32x8xbf16>
    %cst_24 = arith.constant dense<0.000000e+00> : vector<32x2048xf32>
    %27 = tpu.matmul %26, %24, %cst_24 {dimension_numbers = #tpu.dot_dimension_numbers<[1], [0], [0], [1], [0, 0, 1, 1], [], []>} : vector<32x8xbf16>, vector<8x2048xbf16>, vector<32x2048xf32> -> vector<32x2048xf32>
    %28 = arith.addf %22, %27 : vector<32x2048xf32>
    %c0_25 = arith.constant 0 : index
    %c0_26 = arith.constant 0 : index
    %c40 = arith.constant 40 : index
    %29 = vector.load %arg1[%c0_25, %c0_26, %c40] : memref<1x8x2176xbf16, #tpu.memory_space<vmem>>, vector<1x8x2048xbf16>
    %30 = vector.shape_cast %29 : vector<1x8x2048xbf16> to vector<8x2048xbf16>
    %c5 = arith.constant 5 : index
    %c0_27 = arith.constant 0 : index
    %c0_28 = arith.constant 0 : index
    %31 = vector.load %arg2[%c5, %c0_27, %c0_28] : memref<8x32x8xbf16, #tpu.memory_space<vmem>>, vector<1x32x8xbf16>
    %32 = vector.shape_cast %31 : vector<1x32x8xbf16> to vector<32x8xbf16>
    %cst_29 = arith.constant dense<0.000000e+00> : vector<32x2048xf32>
    %33 = tpu.matmul %32, %30, %cst_29 {dimension_numbers = #tpu.dot_dimension_numbers<[1], [0], [0], [1], [0, 0, 1, 1], [], []>} : vector<32x8xbf16>, vector<8x2048xbf16>, vector<32x2048xf32> -> vector<32x2048xf32>
    %34 = arith.addf %28, %33 : vector<32x2048xf32>
    %c0_30 = arith.constant 0 : index
    %c0_31 = arith.constant 0 : index
    %c48 = arith.constant 48 : index
    %35 = vector.load %arg1[%c0_30, %c0_31, %c48] : memref<1x8x2176xbf16, #tpu.memory_space<vmem>>, vector<1x8x2048xbf16>
    %36 = vector.shape_cast %35 : vector<1x8x2048xbf16> to vector<8x2048xbf16>
    %c6 = arith.constant 6 : index
    %c0_32 = arith.constant 0 : index
    %c0_33 = arith.constant 0 : index
    %37 = vector.load %arg2[%c6, %c0_32, %c0_33] : memref<8x32x8xbf16, #tpu.memory_space<vmem>>, vector<1x32x8xbf16>
    %38 = vector.shape_cast %37 : vector<1x32x8xbf16> to vector<32x8xbf16>
    %cst_34 = arith.constant dense<0.000000e+00> : vector<32x2048xf32>
    %39 = tpu.matmul %38, %36, %cst_34 {dimension_numbers = #tpu.dot_dimension_numbers<[1], [0], [0], [1], [0, 0, 1, 1], [], []>} : vector<32x8xbf16>, vector<8x2048xbf16>, vector<32x2048xf32> -> vector<32x2048xf32>
    %40 = arith.addf %34, %39 : vector<32x2048xf32>
    %c0_35 = arith.constant 0 : index
    %c0_36 = arith.constant 0 : index
    %c56 = arith.constant 56 : index
    %41 = vector.load %arg1[%c0_35, %c0_36, %c56] : memref<1x8x2176xbf16, #tpu.memory_space<vmem>>, vector<1x8x2048xbf16>
    %42 = vector.shape_cast %41 : vector<1x8x2048xbf16> to vector<8x2048xbf16>
    %c7 = arith.constant 7 : index
    %c0_37 = arith.constant 0 : index
    %c0_38 = arith.constant 0 : index
    %43 = vector.load %arg2[%c7, %c0_37, %c0_38] : memref<8x32x8xbf16, #tpu.memory_space<vmem>>, vector<1x32x8xbf16>
    %44 = vector.shape_cast %43 : vector<1x32x8xbf16> to vector<32x8xbf16>
    %cst_39 = arith.constant dense<0.000000e+00> : vector<32x2048xf32>
    %45 = tpu.matmul %44, %42, %cst_39 {dimension_numbers = #tpu.dot_dimension_numbers<[1], [0], [0], [1], [0, 0, 1, 1], [], []>} : vector<32x8xbf16>, vector<8x2048xbf16>, vector<32x2048xf32> -> vector<32x2048xf32>
    %46 = arith.addf %40, %45 : vector<32x2048xf32>
    %47 = math.absf %46 : vector<32x2048xf32>
    %48 = arith.truncf %47 : vector<32x2048xf32> to vector<32x2048xbf16>
    %c0_40 = arith.constant 0 : index
    %c0_41 = arith.constant 0 : index
    %49 = vector.load %arg3[%c0_40, %c0_41] : memref<2048x32xbf16, #tpu.memory_space<vmem>>, vector<2048x32xbf16>
    %cst_42 = arith.constant dense<0.000000e+00> : vector<32x32xf32>
    %50 = tpu.matmul %48, %49, %cst_42 {dimension_numbers = #tpu.dot_dimension_numbers<[1], [0], [0], [1], [0, 0, 1, 1], [], []>} : vector<32x2048xbf16>, vector<2048x32xbf16>, vector<32x32xf32> -> vector<32x32xf32>
    %c0_43 = arith.constant 0 : index
    %c0_44 = arith.constant 0 : index
    %c0_45 = arith.constant 0 : index
    %51 = vector.load %arg4[%c0_43, %c0_44, %c0_45] : memref<1x32x32xf32, #tpu.memory_space<vmem>>, vector<1x32x32xf32>
    %52 = vector.shape_cast %51 : vector<1x32x32xf32> to vector<32x32xf32>
    %53 = vector.shape_cast %50 : vector<32x32xf32> to vector<1x32x32xf32>
    tpu.vector_store %arg4[%c0_43, %c0_44, %c0_45], %53 {strides = array<i32>} : memref<1x32x32xf32, #tpu.memory_space<vmem>>, vector<1x32x32xf32>,
    return
  }
  func.func @transform_0(%arg0: i32) -> (i32, i32, i32) {
    %c0_i32 = arith.constant 0 : i32
    %c0_i32_0 = arith.constant 0 : i32
    %c0_i32_1 = arith.constant 0 : i32
    return %arg0, %c0_i32, %c0_i32_0 : i32, i32, i32
  }
  func.func @transform_1(%arg0: i32) -> (i32, i32, i32) {
    %c0_i32 = arith.constant 0 : i32
    %c0_i32_0 = arith.constant 0 : i32
    %c0_i32_1 = arith.constant 0 : i32
    %c0_i32_2 = arith.constant 0 : i32
    return %c0_i32, %c0_i32_0, %c0_i32_1 : i32, i32, i32
  }
  func.func @transform_2(%arg0: i32) -> (i32, i32) {
    %c0_i32 = arith.constant 0 : i32
    %c0_i32_0 = arith.constant 0 : i32
    %c0_i32_1 = arith.constant 0 : i32
    return %c0_i32, %c0_i32_0 : i32, i32
  }
  func.func @transform_3(%arg0: i32) -> (i32, i32, i32) {
    %c0_i32 = arith.constant 0 : i32
    %c0_i32_0 = arith.constant 0 : i32
    %c0_i32_1 = arith.constant 0 : i32
    return %arg0, %c0_i32, %c0_i32_0 : i32, i32, i32
  }
}

module attributes {stable_mosaic.version = 11 : i64} {
  func.func @_encoder_kernel(%arg0: i32, %arg1: memref<1x32x32xf32, #tpu.memory_space<vmem>>, %arg2: memref<40x32xbf16, #tpu.memory_space<vmem>>, %arg3: memref<32x32xbf16, #tpu.memory_space<vmem>>, %arg4: memref<32x40xbf16, #tpu.memory_space<vmem>>, %arg5: memref<32x1xf32, #tpu.memory_space<vmem>>, %arg6: memref<15x32x32xbf16, #tpu.memory_space<vmem>>, %arg7: memref<5x32x1xf32, #tpu.memory_space<vmem>>, %arg8: memref<1x32x32xf32, #tpu.memory_space<vmem>>) attributes {dimension_semantics = [#tpu.dimension_semantics<parallel>], iteration_bounds = array<i64: 2>, scalar_prefetch = 0 : i64, scratch_operands = 0 : i64, tpu.core_type = #tpu.core_type<tc>, window_params = [{transform_indices = @transform_0, window_bounds = array<i64: 1, 32, 32>}, {pipeline_mode = #tpu.pipeline_mode<synchronous>, transform_indices = @transform_1, window_bounds = array<i64: 40, 32>}, {pipeline_mode = #tpu.pipeline_mode<synchronous>, transform_indices = @transform_2, window_bounds = array<i64: 32, 32>}, {pipeline_mode = #tpu.pipeline_mode<synchronous>, transform_indices = @transform_3, window_bounds = array<i64: 32, 40>}, {pipeline_mode = #tpu.pipeline_mode<synchronous>, transform_indices = @transform_4, window_bounds = array<i64: 32, 1>}, {pipeline_mode = #tpu.pipeline_mode<synchronous>, transform_indices = @transform_5, window_bounds = array<i64: 15, 32, 32>}, {pipeline_mode = #tpu.pipeline_mode<synchronous>, transform_indices = @transform_6, window_bounds = array<i64: 5, 32, 1>}, {transform_indices = @transform_7, window_bounds = array<i64: 1, 32, 32>}]} {
    %c0 = arith.constant 0 : index
    %c0_0 = arith.constant 0 : index
    %c0_1 = arith.constant 0 : index
    %0 = vector.load %arg1[%c0, %c0_0, %c0_1] : memref<1x32x32xf32, #tpu.memory_space<vmem>>, vector<1x32x32xf32>
    %1 = vector.shape_cast %0 : vector<1x32x32xf32> to vector<32x32xf32>
    %2 = vector.shape_cast %1 : vector<32x32xf32> to vector<1x32x32xf32>
    %cst = arith.constant dense<0.000000e+00> : vector<1xf32>
    %3 = vector.multi_reduction <add>, %2, %cst [1, 2] : vector<1x32x32xf32> to vector<1xf32>
    %4 = vector.shape_cast %3 : vector<1xf32> to vector<1x1x1xf32>
    %5 = vector.extract %4[0, 0, 0] : f32 from vector<1x1x1xf32>
    %cst_2 = arith.constant 1.024000e+03 : f32
    %6 = arith.divf %5, %cst_2 : f32
    %7 = vector.broadcast %6 : f32 to vector<32x32xf32>
    %8 = arith.subf %1, %7 : vector<32x32xf32>
    %9 = arith.mulf %8, %8 : vector<32x32xf32>
    %10 = vector.shape_cast %9 : vector<32x32xf32> to vector<1x32x32xf32>
    %cst_3 = arith.constant dense<0.000000e+00> : vector<1xf32>
    %11 = vector.multi_reduction <add>, %10, %cst_3 [1, 2] : vector<1x32x32xf32> to vector<1xf32>
    %12 = vector.shape_cast %11 : vector<1xf32> to vector<1x1x1xf32>
    %13 = vector.extract %12[0, 0, 0] : f32 from vector<1x1x1xf32>
    %cst_4 = arith.constant 1.024000e+03 : f32
    %14 = arith.divf %13, %cst_4 : f32
    %15 = math.sqrt %14 : f32
    %cst_5 = arith.constant 9.99999993E-9 : f32
    %16 = arith.addf %15, %cst_5 : f32
    %17 = vector.broadcast %16 : f32 to vector<32x32xf32>
    %18 = arith.divf %1, %17 : vector<32x32xf32>
    %c0_6 = arith.constant 0 : index
    %c0_7 = arith.constant 0 : index
    %19 = vector.load %arg3[%c0_6, %c0_7] : memref<32x32xbf16, #tpu.memory_space<vmem>>, vector<32x32xbf16>
    %20 = arith.truncf %18 : vector<32x32xf32> to vector<32x32xbf16>
    %cst_8 = arith.constant dense<0.000000e+00> : vector<32x32xf32>
    %21 = tpu.matmul %19, %20, %cst_8 {dimension_numbers = #tpu.dot_dimension_numbers<[1], [0], [0], [1], [0, 0, 1, 1], [], []>} : vector<32x32xbf16>, vector<32x32xbf16>, vector<32x32xf32> -> vector<32x32xf32>
    %c0_9 = arith.constant 0 : index
    %c0_10 = arith.constant 0 : index
    %22 = vector.load %arg4[%c0_9, %c0_10] : memref<32x40xbf16, #tpu.memory_space<vmem>>, vector<32x40xbf16>
    %c0_11 = arith.constant 0 : index
    %c0_12 = arith.constant 0 : index
    %23 = vector.load %arg2[%c0_11, %c0_12] : memref<40x32xbf16, #tpu.memory_space<vmem>>, vector<40x32xbf16>
    %cst_13 = arith.constant dense<0.000000e+00> : vector<32x32xf32>
    %24 = tpu.matmul %22, %23, %cst_13 {dimension_numbers = #tpu.dot_dimension_numbers<[1], [0], [0], [1], [0, 0, 1, 1], [], []>} : vector<32x40xbf16>, vector<40x32xbf16>, vector<32x32xf32> -> vector<32x32xf32>
    %25 = arith.addf %21, %24 : vector<32x32xf32>
    %c0_14 = arith.constant 0 : index
    %c0_15 = arith.constant 0 : index
    %26 = vector.load %arg5[%c0_14, %c0_15] : memref<32x1xf32, #tpu.memory_space<vmem>>, vector<32x1xf32>
    %27 = vector.broadcast %26 : vector<32x1xf32> to vector<32x32xf32>
    %28 = arith.addf %25, %27 : vector<32x32xf32>
    %29 = tpu.iota {dimensions = array<i32: 0>} : vector<32x32xi32>
    %30 = tpu.iota {dimensions = array<i32: 1>} : vector<32x32xi32>
    %31 = arith.subi %30, %29 : vector<32x32xi32>
    %c1_i32 = arith.constant 1 : i32
    %32 = vector.broadcast %c1_i32 : i32 to vector<32x32xi32>
    %33 = arith.cmpi eq, %31, %32 : vector<32x32xi32>
    %34 = arith.extui %33 : vector<32x32xi1> to vector<32x32xi32>
    %35 = arith.sitofp %34 : vector<32x32xi32> to vector<32x32xf32>
    %36 = arith.truncf %35 : vector<32x32xf32> to vector<32x32xbf16>
    %37 = arith.subi %29, %30 : vector<32x32xi32>
    %c1_i32_16 = arith.constant 1 : i32
    %38 = vector.broadcast %c1_i32_16 : i32 to vector<32x32xi32>
    %39 = arith.cmpi eq, %37, %38 : vector<32x32xi32>
    %40 = arith.extui %39 : vector<32x32xi1> to vector<32x32xi32>
    %41 = arith.sitofp %40 : vector<32x32xi32> to vector<32x32xf32>
    %42 = arith.truncf %41 : vector<32x32xf32> to vector<32x32xbf16>
    %43 = arith.truncf %28 : vector<32x32xf32> to vector<32x32xbf16>
    %cst_17 = arith.constant dense<0.000000e+00> : vector<32x32xf32>
    %44 = tpu.matmul %43, %36, %cst_17 {dimension_numbers = #tpu.dot_dimension_numbers<[1], [0], [0], [1], [0, 0, 1, 1], [], []>} : vector<32x32xbf16>, vector<32x32xbf16>, vector<32x32xf32> -> vector<32x32xf32>
    %45 = arith.truncf %44 : vector<32x32xf32> to vector<32x32xbf16>
    %cst_18 = arith.constant dense<0.000000e+00> : vector<32x32xf32>
    %46 = tpu.matmul %43, %42, %cst_18 {dimension_numbers = #tpu.dot_dimension_numbers<[1], [0], [0], [1], [0, 0, 1, 1], [], []>} : vector<32x32xbf16>, vector<32x32xbf16>, vector<32x32xf32> -> vector<32x32xf32>
    %47 = arith.truncf %46 : vector<32x32xf32> to vector<32x32xbf16>
    %c0_19 = arith.constant 0 : index
    %c0_20 = arith.constant 0 : index
    %c0_21 = arith.constant 0 : index
    %48 = vector.load %arg6[%c0_19, %c0_20, %c0_21] : memref<15x32x32xbf16, #tpu.memory_space<vmem>>, vector<1x32x32xbf16>
    %49 = vector.shape_cast %48 : vector<1x32x32xbf16> to vector<32x32xbf16>
    %cst_22 = arith.constant dense<0.000000e+00> : vector<32x32xf32>
    %50 = tpu.matmul %49, %45, %cst_22 {dimension_numbers = #tpu.dot_dimension_numbers<[1], [0], [0], [1], [0, 0, 1, 1], [], []>} : vector<32x32xbf16>, vector<32x32xbf16>, vector<32x32xf32> -> vector<32x32xf32>
    %c1 = arith.constant 1 : index
    %c0_23 = arith.constant 0 : index
    %c0_24 = arith.constant 0 : index
    %51 = vector.load %arg6[%c1, %c0_23, %c0_24] : memref<15x32x32xbf16, #tpu.memory_space<vmem>>, vector<1x32x32xbf16>
    %52 = vector.shape_cast %51 : vector<1x32x32xbf16> to vector<32x32xbf16>
    %cst_25 = arith.constant dense<0.000000e+00> : vector<32x32xf32>
    %53 = tpu.matmul %52, %43, %cst_25 {dimension_numbers = #tpu.dot_dimension_numbers<[1], [0], [0], [1], [0, 0, 1, 1], [], []>} : vector<32x32xbf16>, vector<32x32xbf16>, vector<32x32xf32> -> vector<32x32xf32>
    %54 = arith.addf %50, %53 : vector<32x32xf32>
    %c2 = arith.constant 2 : index
    %c0_26 = arith.constant 0 : index
    %c0_27 = arith.constant 0 : index
    %55 = vector.load %arg6[%c2, %c0_26, %c0_27] : memref<15x32x32xbf16, #tpu.memory_space<vmem>>, vector<1x32x32xbf16>
    %56 = vector.shape_cast %55 : vector<1x32x32xbf16> to vector<32x32xbf16>
    %cst_28 = arith.constant dense<0.000000e+00> : vector<32x32xf32>
    %57 = tpu.matmul %56, %47, %cst_28 {dimension_numbers = #tpu.dot_dimension_numbers<[1], [0], [0], [1], [0, 0, 1, 1], [], []>} : vector<32x32xbf16>, vector<32x32xbf16>, vector<32x32xf32> -> vector<32x32xf32>
    %58 = arith.addf %54, %57 : vector<32x32xf32>
    %c0_29 = arith.constant 0 : index
    %c0_30 = arith.constant 0 : index
    %c0_31 = arith.constant 0 : index
    %59 = vector.load %arg7[%c0_29, %c0_30, %c0_31] : memref<5x32x1xf32, #tpu.memory_space<vmem>>, vector<1x32x1xf32>
    %60 = vector.shape_cast %59 : vector<1x32x1xf32> to vector<32x1xf32>
    %61 = vector.broadcast %60 : vector<32x1xf32> to vector<32x32xf32>
    %62 = arith.addf %58, %61 : vector<32x32xf32>
    %cst_32 = arith.constant 0.000000e+00 : f32
    %63 = vector.broadcast %cst_32 : f32 to vector<32x32xf32>
    %64 = arith.cmpf ogt, %62, %63 : vector<32x32xf32>
    %cst_33 = arith.constant 2.000000e-01 : f32
    %65 = vector.broadcast %cst_33 : f32 to vector<32x32xf32>
    %66 = arith.mulf %65, %62 : vector<32x32xf32>
    %67 = arith.select %64, %62, %66 : vector<32x32xi1>, vector<32x32xf32>
    %68 = arith.addf %28, %67 : vector<32x32xf32>
    %69 = arith.subi %30, %29 : vector<32x32xi32>
    %c3_i32 = arith.constant 3 : i32
    %70 = vector.broadcast %c3_i32 : i32 to vector<32x32xi32>
    %71 = arith.cmpi eq, %69, %70 : vector<32x32xi32>
    %72 = arith.extui %71 : vector<32x32xi1> to vector<32x32xi32>
    %73 = arith.sitofp %72 : vector<32x32xi32> to vector<32x32xf32>
    %74 = arith.truncf %73 : vector<32x32xf32> to vector<32x32xbf16>
    %75 = arith.subi %29, %30 : vector<32x32xi32>
    %c3_i32_34 = arith.constant 3 : i32
    %76 = vector.broadcast %c3_i32_34 : i32 to vector<32x32xi32>
    %77 = arith.cmpi eq, %75, %76 : vector<32x32xi32>
    %78 = arith.extui %77 : vector<32x32xi1> to vector<32x32xi32>
    %79 = arith.sitofp %78 : vector<32x32xi32> to vector<32x32xf32>
    %80 = arith.truncf %79 : vector<32x32xf32> to vector<32x32xbf16>
    %81 = arith.truncf %68 : vector<32x32xf32> to vector<32x32xbf16>
    %cst_35 = arith.constant dense<0.000000e+00> : vector<32x32xf32>
    %82 = tpu.matmul %81, %74, %cst_35 {dimension_numbers = #tpu.dot_dimension_numbers<[1], [0], [0], [1], [0, 0, 1, 1], [], []>} : vector<32x32xbf16>, vector<32x32xbf16>, vector<32x32xf32> -> vector<32x32xf32>
    %83 = arith.truncf %82 : vector<32x32xf32> to vector<32x32xbf16>
    %cst_36 = arith.constant dense<0.000000e+00> : vector<32x32xf32>
    %84 = tpu.matmul %81, %80, %cst_36 {dimension_numbers = #tpu.dot_dimension_numbers<[1], [0], [0], [1], [0, 0, 1, 1], [], []>} : vector<32x32xbf16>, vector<32x32xbf16>, vector<32x32xf32> -> vector<32x32xf32>
    %85 = arith.truncf %84 : vector<32x32xf32> to vector<32x32xbf16>
    %c3 = arith.constant 3 : index
    %c0_37 = arith.constant 0 : index
    %c0_38 = arith.constant 0 : index
    %86 = vector.load %arg6[%c3, %c0_37, %c0_38] : memref<15x32x32xbf16, #tpu.memory_space<vmem>>, vector<1x32x32xbf16>
    %87 = vector.shape_cast %86 : vector<1x32x32xbf16> to vector<32x32xbf16>
    %cst_39 = arith.constant dense<0.000000e+00> : vector<32x32xf32>
    %88 = tpu.matmul %87, %83, %cst_39 {dimension_numbers = #tpu.dot_dimension_numbers<[1], [0], [0], [1], [0, 0, 1, 1], [], []>} : vector<32x32xbf16>, vector<32x32xbf16>, vector<32x32xf32> -> vector<32x32xf32>
    %c4 = arith.constant 4 : index
    %c0_40 = arith.constant 0 : index
    %c0_41 = arith.constant 0 : index
    %89 = vector.load %arg6[%c4, %c0_40, %c0_41] : memref<15x32x32xbf16, #tpu.memory_space<vmem>>, vector<1x32x32xbf16>
    %90 = vector.shape_cast %89 : vector<1x32x32xbf16> to vector<32x32xbf16>
    %cst_42 = arith.constant dense<0.000000e+00> : vector<32x32xf32>
    %91 = tpu.matmul %90, %81, %cst_42 {dimension_numbers = #tpu.dot_dimension_numbers<[1], [0], [0], [1], [0, 0, 1, 1], [], []>} : vector<32x32xbf16>, vector<32x32xbf16>, vector<32x32xf32> -> vector<32x32xf32>
    %92 = arith.addf %88, %91 : vector<32x32xf32>
    %c5 = arith.constant 5 : index
    %c0_43 = arith.constant 0 : index
    %c0_44 = arith.constant 0 : index
    %93 = vector.load %arg6[%c5, %c0_43, %c0_44] : memref<15x32x32xbf16, #tpu.memory_space<vmem>>, vector<1x32x32xbf16>
    %94 = vector.shape_cast %93 : vector<1x32x32xbf16> to vector<32x32xbf16>
    %cst_45 = arith.constant dense<0.000000e+00> : vector<32x32xf32>
    %95 = tpu.matmul %94, %85, %cst_45 {dimension_numbers = #tpu.dot_dimension_numbers<[1], [0], [0], [1], [0, 0, 1, 1], [], []>} : vector<32x32xbf16>, vector<32x32xbf16>, vector<32x32xf32> -> vector<32x32xf32>
    %96 = arith.addf %92, %95 : vector<32x32xf32>
    %c1_46 = arith.constant 1 : index
    %c0_47 = arith.constant 0 : index
    %c0_48 = arith.constant 0 : index
    %97 = vector.load %arg7[%c1_46, %c0_47, %c0_48] : memref<5x32x1xf32, #tpu.memory_space<vmem>>, vector<1x32x1xf32>
    %98 = vector.shape_cast %97 : vector<1x32x1xf32> to vector<32x1xf32>
    %99 = vector.broadcast %98 : vector<32x1xf32> to vector<32x32xf32>
    %100 = arith.addf %96, %99 : vector<32x32xf32>
    %cst_49 = arith.constant 0.000000e+00 : f32
    %101 = vector.broadcast %cst_49 : f32 to vector<32x32xf32>
    %102 = arith.cmpf ogt, %100, %101 : vector<32x32xf32>
    %cst_50 = arith.constant 2.000000e-01 : f32
    %103 = vector.broadcast %cst_50 : f32 to vector<32x32xf32>
    %104 = arith.mulf %103, %100 : vector<32x32xf32>
    %105 = arith.select %102, %100, %104 : vector<32x32xi1>, vector<32x32xf32>
    %106 = arith.addf %68, %105 : vector<32x32xf32>
    %107 = arith.subi %30, %29 : vector<32x32xi32>
    %c9_i32 = arith.constant 9 : i32
    %108 = vector.broadcast %c9_i32 : i32 to vector<32x32xi32>
    %109 = arith.cmpi eq, %107, %108 : vector<32x32xi32>
    %110 = arith.extui %109 : vector<32x32xi1> to vector<32x32xi32>
    %111 = arith.sitofp %110 : vector<32x32xi32> to vector<32x32xf32>
    %112 = arith.truncf %111 : vector<32x32xf32> to vector<32x32xbf16>
    %113 = arith.subi %29, %30 : vector<32x32xi32>
    %c9_i32_51 = arith.constant 9 : i32
    %114 = vector.broadcast %c9_i32_51 : i32 to vector<32x32xi32>
    %115 = arith.cmpi eq, %113, %114 : vector<32x32xi32>
    %116 = arith.extui %115 : vector<32x32xi1> to vector<32x32xi32>
    %117 = arith.sitofp %116 : vector<32x32xi32> to vector<32x32xf32>
    %118 = arith.truncf %117 : vector<32x32xf32> to vector<32x32xbf16>
    %119 = arith.truncf %106 : vector<32x32xf32> to vector<32x32xbf16>
    %cst_52 = arith.constant dense<0.000000e+00> : vector<32x32xf32>
    %120 = tpu.matmul %119, %112, %cst_52 {dimension_numbers = #tpu.dot_dimension_numbers<[1], [0], [0], [1], [0, 0, 1, 1], [], []>} : vector<32x32xbf16>, vector<32x32xbf16>, vector<32x32xf32> -> vector<32x32xf32>
    %121 = arith.truncf %120 : vector<32x32xf32> to vector<32x32xbf16>
    %cst_53 = arith.constant dense<0.000000e+00> : vector<32x32xf32>
    %122 = tpu.matmul %119, %118, %cst_53 {dimension_numbers = #tpu.dot_dimension_numbers<[1], [0], [0], [1], [0, 0, 1, 1], [], []>} : vector<32x32xbf16>, vector<32x32xbf16>, vector<32x32xf32> -> vector<32x32xf32>
    %123 = arith.truncf %122 : vector<32x32xf32> to vector<32x32xbf16>
    %c6 = arith.constant 6 : index
    %c0_54 = arith.constant 0 : index
    %c0_55 = arith.constant 0 : index
    %124 = vector.load %arg6[%c6, %c0_54, %c0_55] : memref<15x32x32xbf16, #tpu.memory_space<vmem>>, vector<1x32x32xbf16>
    %125 = vector.shape_cast %124 : vector<1x32x32xbf16> to vector<32x32xbf16>
    %cst_56 = arith.constant dense<0.000000e+00> : vector<32x32xf32>
    %126 = tpu.matmul %125, %121, %cst_56 {dimension_numbers = #tpu.dot_dimension_numbers<[1], [0], [0], [1], [0, 0, 1, 1], [], []>} : vector<32x32xbf16>, vector<32x32xbf16>, vector<32x32xf32> -> vector<32x32xf32>
    %c7 = arith.constant 7 : index
    %c0_57 = arith.constant 0 : index
    %c0_58 = arith.constant 0 : index
    %127 = vector.load %arg6[%c7, %c0_57, %c0_58] : memref<15x32x32xbf16, #tpu.memory_space<vmem>>, vector<1x32x32xbf16>
    %128 = vector.shape_cast %127 : vector<1x32x32xbf16> to vector<32x32xbf16>
    %cst_59 = arith.constant dense<0.000000e+00> : vector<32x32xf32>
    %129 = tpu.matmul %128, %119, %cst_59 {dimension_numbers = #tpu.dot_dimension_numbers<[1], [0], [0], [1], [0, 0, 1, 1], [], []>} : vector<32x32xbf16>, vector<32x32xbf16>, vector<32x32xf32> -> vector<32x32xf32>
    %130 = arith.addf %126, %129 : vector<32x32xf32>
    %c8 = arith.constant 8 : index
    %c0_60 = arith.constant 0 : index
    %c0_61 = arith.constant 0 : index
    %131 = vector.load %arg6[%c8, %c0_60, %c0_61] : memref<15x32x32xbf16, #tpu.memory_space<vmem>>, vector<1x32x32xbf16>
    %132 = vector.shape_cast %131 : vector<1x32x32xbf16> to vector<32x32xbf16>
    %cst_62 = arith.constant dense<0.000000e+00> : vector<32x32xf32>
    %133 = tpu.matmul %132, %123, %cst_62 {dimension_numbers = #tpu.dot_dimension_numbers<[1], [0], [0], [1], [0, 0, 1, 1], [], []>} : vector<32x32xbf16>, vector<32x32xbf16>, vector<32x32xf32> -> vector<32x32xf32>
    %134 = arith.addf %130, %133 : vector<32x32xf32>
    %c2_63 = arith.constant 2 : index
    %c0_64 = arith.constant 0 : index
    %c0_65 = arith.constant 0 : index
    %135 = vector.load %arg7[%c2_63, %c0_64, %c0_65] : memref<5x32x1xf32, #tpu.memory_space<vmem>>, vector<1x32x1xf32>
    %136 = vector.shape_cast %135 : vector<1x32x1xf32> to vector<32x1xf32>
    %137 = vector.broadcast %136 : vector<32x1xf32> to vector<32x32xf32>
    %138 = arith.addf %134, %137 : vector<32x32xf32>
    %cst_66 = arith.constant 0.000000e+00 : f32
    %139 = vector.broadcast %cst_66 : f32 to vector<32x32xf32>
    %140 = arith.cmpf ogt, %138, %139 : vector<32x32xf32>
    %cst_67 = arith.constant 2.000000e-01 : f32
    %141 = vector.broadcast %cst_67 : f32 to vector<32x32xf32>
    %142 = arith.mulf %141, %138 : vector<32x32xf32>
    %143 = arith.select %140, %138, %142 : vector<32x32xi1>, vector<32x32xf32>
    %144 = arith.addf %106, %143 : vector<32x32xf32>
    %145 = arith.subi %30, %29 : vector<32x32xi32>
    %c27_i32 = arith.constant 27 : i32
    %146 = vector.broadcast %c27_i32 : i32 to vector<32x32xi32>
    %147 = arith.cmpi eq, %145, %146 : vector<32x32xi32>
    %148 = arith.extui %147 : vector<32x32xi1> to vector<32x32xi32>
    %149 = arith.sitofp %148 : vector<32x32xi32> to vector<32x32xf32>
    %150 = arith.truncf %149 : vector<32x32xf32> to vector<32x32xbf16>
    %151 = arith.subi %29, %30 : vector<32x32xi32>
    %c27_i32_68 = arith.constant 27 : i32
    %152 = vector.broadcast %c27_i32_68 : i32 to vector<32x32xi32>
    %153 = arith.cmpi eq, %151, %152 : vector<32x32xi32>
    %154 = arith.extui %153 : vector<32x32xi1> to vector<32x32xi32>
    %155 = arith.sitofp %154 : vector<32x32xi32> to vector<32x32xf32>
    %156 = arith.truncf %155 : vector<32x32xf32> to vector<32x32xbf16>
    %157 = arith.truncf %144 : vector<32x32xf32> to vector<32x32xbf16>
    %cst_69 = arith.constant dense<0.000000e+00> : vector<32x32xf32>
    %158 = tpu.matmul %157, %150, %cst_69 {dimension_numbers = #tpu.dot_dimension_numbers<[1], [0], [0], [1], [0, 0, 1, 1], [], []>} : vector<32x32xbf16>, vector<32x32xbf16>, vector<32x32xf32> -> vector<32x32xf32>
    %159 = arith.truncf %158 : vector<32x32xf32> to vector<32x32xbf16>
    %cst_70 = arith.constant dense<0.000000e+00> : vector<32x32xf32>
    %160 = tpu.matmul %157, %156, %cst_70 {dimension_numbers = #tpu.dot_dimension_numbers<[1], [0], [0], [1], [0, 0, 1, 1], [], []>} : vector<32x32xbf16>, vector<32x32xbf16>, vector<32x32xf32> -> vector<32x32xf32>
    %161 = arith.truncf %160 : vector<32x32xf32> to vector<32x32xbf16>
    %c9 = arith.constant 9 : index
    %c0_71 = arith.constant 0 : index
    %c0_72 = arith.constant 0 : index
    %162 = vector.load %arg6[%c9, %c0_71, %c0_72] : memref<15x32x32xbf16, #tpu.memory_space<vmem>>, vector<1x32x32xbf16>
    %163 = vector.shape_cast %162 : vector<1x32x32xbf16> to vector<32x32xbf16>
    %cst_73 = arith.constant dense<0.000000e+00> : vector<32x32xf32>
    %164 = tpu.matmul %163, %159, %cst_73 {dimension_numbers = #tpu.dot_dimension_numbers<[1], [0], [0], [1], [0, 0, 1, 1], [], []>} : vector<32x32xbf16>, vector<32x32xbf16>, vector<32x32xf32> -> vector<32x32xf32>
    %c10 = arith.constant 10 : index
    %c0_74 = arith.constant 0 : index
    %c0_75 = arith.constant 0 : index
    %165 = vector.load %arg6[%c10, %c0_74, %c0_75] : memref<15x32x32xbf16, #tpu.memory_space<vmem>>, vector<1x32x32xbf16>
    %166 = vector.shape_cast %165 : vector<1x32x32xbf16> to vector<32x32xbf16>
    %cst_76 = arith.constant dense<0.000000e+00> : vector<32x32xf32>
    %167 = tpu.matmul %166, %157, %cst_76 {dimension_numbers = #tpu.dot_dimension_numbers<[1], [0], [0], [1], [0, 0, 1, 1], [], []>} : vector<32x32xbf16>, vector<32x32xbf16>, vector<32x32xf32> -> vector<32x32xf32>
    %168 = arith.addf %164, %167 : vector<32x32xf32>
    %c11 = arith.constant 11 : index
    %c0_77 = arith.constant 0 : index
    %c0_78 = arith.constant 0 : index
    %169 = vector.load %arg6[%c11, %c0_77, %c0_78] : memref<15x32x32xbf16, #tpu.memory_space<vmem>>, vector<1x32x32xbf16>
    %170 = vector.shape_cast %169 : vector<1x32x32xbf16> to vector<32x32xbf16>
    %cst_79 = arith.constant dense<0.000000e+00> : vector<32x32xf32>
    %171 = tpu.matmul %170, %161, %cst_79 {dimension_numbers = #tpu.dot_dimension_numbers<[1], [0], [0], [1], [0, 0, 1, 1], [], []>} : vector<32x32xbf16>, vector<32x32xbf16>, vector<32x32xf32> -> vector<32x32xf32>
    %172 = arith.addf %168, %171 : vector<32x32xf32>
    %c3_80 = arith.constant 3 : index
    %c0_81 = arith.constant 0 : index
    %c0_82 = arith.constant 0 : index
    %173 = vector.load %arg7[%c3_80, %c0_81, %c0_82] : memref<5x32x1xf32, #tpu.memory_space<vmem>>, vector<1x32x1xf32>
    %174 = vector.shape_cast %173 : vector<1x32x1xf32> to vector<32x1xf32>
    %175 = vector.broadcast %174 : vector<32x1xf32> to vector<32x32xf32>
    %176 = arith.addf %172, %175 : vector<32x32xf32>
    %cst_83 = arith.constant 0.000000e+00 : f32
    %177 = vector.broadcast %cst_83 : f32 to vector<32x32xf32>
    %178 = arith.cmpf ogt, %176, %177 : vector<32x32xf32>
    %cst_84 = arith.constant 2.000000e-01 : f32
    %179 = vector.broadcast %cst_84 : f32 to vector<32x32xf32>
    %180 = arith.mulf %179, %176 : vector<32x32xf32>
    %181 = arith.select %178, %176, %180 : vector<32x32xi1>, vector<32x32xf32>
    %182 = arith.addf %144, %181 : vector<32x32xf32>
    %183 = arith.subi %30, %29 : vector<32x32xi32>
    %c1_i32_85 = arith.constant 1 : i32
    %184 = vector.broadcast %c1_i32_85 : i32 to vector<32x32xi32>
    %185 = arith.cmpi eq, %183, %184 : vector<32x32xi32>
    %186 = arith.extui %185 : vector<32x32xi1> to vector<32x32xi32>
    %187 = arith.sitofp %186 : vector<32x32xi32> to vector<32x32xf32>
    %188 = arith.truncf %187 : vector<32x32xf32> to vector<32x32xbf16>
    %189 = arith.subi %29, %30 : vector<32x32xi32>
    %c1_i32_86 = arith.constant 1 : i32
    %190 = vector.broadcast %c1_i32_86 : i32 to vector<32x32xi32>
    %191 = arith.cmpi eq, %189, %190 : vector<32x32xi32>
    %192 = arith.extui %191 : vector<32x32xi1> to vector<32x32xi32>
    %193 = arith.sitofp %192 : vector<32x32xi32> to vector<32x32xf32>
    %194 = arith.truncf %193 : vector<32x32xf32> to vector<32x32xbf16>
    %195 = arith.truncf %182 : vector<32x32xf32> to vector<32x32xbf16>
    %cst_87 = arith.constant dense<0.000000e+00> : vector<32x32xf32>
    %196 = tpu.matmul %195, %188, %cst_87 {dimension_numbers = #tpu.dot_dimension_numbers<[1], [0], [0], [1], [0, 0, 1, 1], [], []>} : vector<32x32xbf16>, vector<32x32xbf16>, vector<32x32xf32> -> vector<32x32xf32>
    %197 = arith.truncf %196 : vector<32x32xf32> to vector<32x32xbf16>
    %cst_88 = arith.constant dense<0.000000e+00> : vector<32x32xf32>
    %198 = tpu.matmul %195, %194, %cst_88 {dimension_numbers = #tpu.dot_dimension_numbers<[1], [0], [0], [1], [0, 0, 1, 1], [], []>} : vector<32x32xbf16>, vector<32x32xbf16>, vector<32x32xf32> -> vector<32x32xf32>
    %199 = arith.truncf %198 : vector<32x32xf32> to vector<32x32xbf16>
    %c12 = arith.constant 12 : index
    %c0_89 = arith.constant 0 : index
    %c0_90 = arith.constant 0 : index
    %200 = vector.load %arg6[%c12, %c0_89, %c0_90] : memref<15x32x32xbf16, #tpu.memory_space<vmem>>, vector<1x32x32xbf16>
    %201 = vector.shape_cast %200 : vector<1x32x32xbf16> to vector<32x32xbf16>
    %cst_91 = arith.constant dense<0.000000e+00> : vector<32x32xf32>
    %202 = tpu.matmul %201, %197, %cst_91 {dimension_numbers = #tpu.dot_dimension_numbers<[1], [0], [0], [1], [0, 0, 1, 1], [], []>} : vector<32x32xbf16>, vector<32x32xbf16>, vector<32x32xf32> -> vector<32x32xf32>
    %c13 = arith.constant 13 : index
    %c0_92 = arith.constant 0 : index
    %c0_93 = arith.constant 0 : index
    %203 = vector.load %arg6[%c13, %c0_92, %c0_93] : memref<15x32x32xbf16, #tpu.memory_space<vmem>>, vector<1x32x32xbf16>
    %204 = vector.shape_cast %203 : vector<1x32x32xbf16> to vector<32x32xbf16>
    %cst_94 = arith.constant dense<0.000000e+00> : vector<32x32xf32>
    %205 = tpu.matmul %204, %195, %cst_94 {dimension_numbers = #tpu.dot_dimension_numbers<[1], [0], [0], [1], [0, 0, 1, 1], [], []>} : vector<32x32xbf16>, vector<32x32xbf16>, vector<32x32xf32> -> vector<32x32xf32>
    %206 = arith.addf %202, %205 : vector<32x32xf32>
    %c14 = arith.constant 14 : index
    %c0_95 = arith.constant 0 : index
    %c0_96 = arith.constant 0 : index
    %207 = vector.load %arg6[%c14, %c0_95, %c0_96] : memref<15x32x32xbf16, #tpu.memory_space<vmem>>, vector<1x32x32xbf16>
    %208 = vector.shape_cast %207 : vector<1x32x32xbf16> to vector<32x32xbf16>
    %cst_97 = arith.constant dense<0.000000e+00> : vector<32x32xf32>
    %209 = tpu.matmul %208, %199, %cst_97 {dimension_numbers = #tpu.dot_dimension_numbers<[1], [0], [0], [1], [0, 0, 1, 1], [], []>} : vector<32x32xbf16>, vector<32x32xbf16>, vector<32x32xf32> -> vector<32x32xf32>
    %210 = arith.addf %206, %209 : vector<32x32xf32>
    %c4_98 = arith.constant 4 : index
    %c0_99 = arith.constant 0 : index
    %c0_100 = arith.constant 0 : index
    %211 = vector.load %arg7[%c4_98, %c0_99, %c0_100] : memref<5x32x1xf32, #tpu.memory_space<vmem>>, vector<1x32x1xf32>
    %212 = vector.shape_cast %211 : vector<1x32x1xf32> to vector<32x1xf32>
    %213 = vector.broadcast %212 : vector<32x1xf32> to vector<32x32xf32>
    %214 = arith.addf %210, %213 : vector<32x32xf32>
    %cst_101 = arith.constant 0.000000e+00 : f32
    %215 = vector.broadcast %cst_101 : f32 to vector<32x32xf32>
    %216 = arith.cmpf ogt, %214, %215 : vector<32x32xf32>
    %cst_102 = arith.constant 2.000000e-01 : f32
    %217 = vector.broadcast %cst_102 : f32 to vector<32x32xf32>
    %218 = arith.mulf %217, %214 : vector<32x32xf32>
    %219 = arith.select %216, %214, %218 : vector<32x32xi1>, vector<32x32xf32>
    %220 = arith.addf %182, %219 : vector<32x32xf32>
    %221 = vector.shape_cast %220 : vector<32x32xf32> to vector<1x32x32xf32>
    %cst_103 = arith.constant dense<0.000000e+00> : vector<1xf32>
    %222 = vector.multi_reduction <add>, %221, %cst_103 [1, 2] : vector<1x32x32xf32> to vector<1xf32>
    %223 = vector.shape_cast %222 : vector<1xf32> to vector<1x1x1xf32>
    %224 = vector.extract %223[0, 0, 0] : f32 from vector<1x1x1xf32>
    %cst_104 = arith.constant 1.024000e+03 : f32
    %225 = arith.divf %224, %cst_104 : f32
    %226 = vector.broadcast %225 : f32 to vector<32x32xf32>
    %227 = arith.subf %220, %226 : vector<32x32xf32>
    %228 = arith.mulf %227, %227 : vector<32x32xf32>
    %229 = vector.shape_cast %228 : vector<32x32xf32> to vector<1x32x32xf32>
    %cst_105 = arith.constant dense<0.000000e+00> : vector<1xf32>
    %230 = vector.multi_reduction <add>, %229, %cst_105 [1, 2] : vector<1x32x32xf32> to vector<1xf32>
    %231 = vector.shape_cast %230 : vector<1xf32> to vector<1x1x1xf32>
    %232 = vector.extract %231[0, 0, 0] : f32 from vector<1x1x1xf32>
    %cst_106 = arith.constant 1.024000e+03 : f32
    %233 = arith.divf %232, %cst_106 : f32
    %234 = math.sqrt %233 : f32
    %cst_107 = arith.constant 9.99999993E-9 : f32
    %235 = arith.addf %234, %cst_107 : f32
    %236 = vector.broadcast %235 : f32 to vector<32x32xf32>
    %237 = arith.divf %220, %236 : vector<32x32xf32>
    %c0_108 = arith.constant 0 : index
    %c0_109 = arith.constant 0 : index
    %c0_110 = arith.constant 0 : index
    %238 = vector.load %arg8[%c0_108, %c0_109, %c0_110] : memref<1x32x32xf32, #tpu.memory_space<vmem>>, vector<1x32x32xf32>
    %239 = vector.shape_cast %238 : vector<1x32x32xf32> to vector<32x32xf32>
    %240 = vector.shape_cast %237 : vector<32x32xf32> to vector<1x32x32xf32>
    tpu.vector_store %arg8[%c0_108, %c0_109, %c0_110], %240 {strides = array<i32>} : memref<1x32x32xf32, #tpu.memory_space<vmem>>, vector<1x32x32xf32>,
    return
  }
  func.func @transform_0(%arg0: i32) -> (i32, i32, i32) {
    %c0_i32 = arith.constant 0 : i32
    %c0_i32_0 = arith.constant 0 : i32
    %c0_i32_1 = arith.constant 0 : i32
    return %arg0, %c0_i32, %c0_i32_0 : i32, i32, i32
  }
  func.func @transform_1(%arg0: i32) -> (i32, i32) {
    %c0_i32 = arith.constant 0 : i32
    %c0_i32_0 = arith.constant 0 : i32
    %c0_i32_1 = arith.constant 0 : i32
    return %c0_i32, %c0_i32_0 : i32, i32
  }
  func.func @transform_2(%arg0: i32) -> (i32, i32) {
    %c0_i32 = arith.constant 0 : i32
    %c0_i32_0 = arith.constant 0 : i32
    %c0_i32_1 = arith.constant 0 : i32
    return %c0_i32, %c0_i32_0 : i32, i32
  }
  func.func @transform_3(%arg0: i32) -> (i32, i32) {
    %c0_i32 = arith.constant 0 : i32
    %c0_i32_0 = arith.constant 0 : i32
    %c0_i32_1 = arith.constant 0 : i32
    return %c0_i32, %c0_i32_0 : i32, i32
  }
  func.func @transform_4(%arg0: i32) -> (i32, i32) {
    %c0_i32 = arith.constant 0 : i32
    %c0_i32_0 = arith.constant 0 : i32
    %c0_i32_1 = arith.constant 0 : i32
    return %c0_i32, %c0_i32_0 : i32, i32
  }
  func.func @transform_5(%arg0: i32) -> (i32, i32, i32) {
    %c0_i32 = arith.constant 0 : i32
    %c0_i32_0 = arith.constant 0 : i32
    %c0_i32_1 = arith.constant 0 : i32
    %c0_i32_2 = arith.constant 0 : i32
    return %c0_i32, %c0_i32_0, %c0_i32_1 : i32, i32, i32
  }
  func.func @transform_6(%arg0: i32) -> (i32, i32, i32) {
    %c0_i32 = arith.constant 0 : i32
    %c0_i32_0 = arith.constant 0 : i32
    %c0_i32_1 = arith.constant 0 : i32
    %c0_i32_2 = arith.constant 0 : i32
    return %c0_i32, %c0_i32_0, %c0_i32_1 : i32, i32, i32
  }
  func.func @transform_7(%arg0: i32) -> (i32, i32, i32) {
    %c0_i32 = arith.constant 0 : i32
    %c0_i32_0 = arith.constant 0 : i32
    %c0_i32_1 = arith.constant 0 : i32
    return %arg0, %c0_i32, %c0_i32_0 : i32, i32, i32
  }
}

module attributes {stable_mosaic.version = 11 : i64} {
  func.func @_mm_bias_kernel(%arg0: i32, %arg1: memref<8x32xbf16, #tpu.memory_space<vmem>>, %arg2: memref<32x64xbf16, #tpu.memory_space<vmem>>, %arg3: memref<1x64xf32, #tpu.memory_space<vmem>>, %arg4: memref<8x64xf32, #tpu.memory_space<vmem>>) attributes {dimension_semantics = [#tpu.dimension_semantics<arbitrary>], iteration_bounds = array<i64: 1>, scalar_prefetch = 0 : i64, scratch_operands = 0 : i64, tpu.core_type = #tpu.core_type<tc>, window_params = [{pipeline_mode = #tpu.pipeline_mode<synchronous>, transform_indices = @transform_0, window_bounds = array<i64: 8, 32>}, {pipeline_mode = #tpu.pipeline_mode<synchronous>, transform_indices = @transform_1, window_bounds = array<i64: 32, 64>}, {pipeline_mode = #tpu.pipeline_mode<synchronous>, transform_indices = @transform_2, window_bounds = array<i64: 1, 64>}, {pipeline_mode = #tpu.pipeline_mode<synchronous>, transform_indices = @transform_3, window_bounds = array<i64: 8, 64>}]} {
    %c0 = arith.constant 0 : index
    %c0_0 = arith.constant 0 : index
    %0 = vector.load %arg1[%c0, %c0_0] : memref<8x32xbf16, #tpu.memory_space<vmem>>, vector<8x32xbf16>
    %c0_1 = arith.constant 0 : index
    %c0_2 = arith.constant 0 : index
    %1 = vector.load %arg2[%c0_1, %c0_2] : memref<32x64xbf16, #tpu.memory_space<vmem>>, vector<32x64xbf16>
    %cst = arith.constant dense<0.000000e+00> : vector<8x64xf32>
    %2 = tpu.matmul %0, %1, %cst {dimension_numbers = #tpu.dot_dimension_numbers<[1], [0], [0], [1], [0, 0, 1, 1], [], []>} : vector<8x32xbf16>, vector<32x64xbf16>, vector<8x64xf32> -> vector<8x64xf32>
    %c0_3 = arith.constant 0 : index
    %c0_4 = arith.constant 0 : index
    %3 = vector.load %arg3[%c0_3, %c0_4] : memref<1x64xf32, #tpu.memory_space<vmem>>, vector<1x64xf32>
    %4 = vector.broadcast %3 : vector<1x64xf32> to vector<8x64xf32>
    %5 = arith.addf %2, %4 : vector<8x64xf32>
    %c0_5 = arith.constant 0 : index
    %c0_6 = arith.constant 0 : index
    %6 = vector.load %arg4[%c0_5, %c0_6] : memref<8x64xf32, #tpu.memory_space<vmem>>, vector<8x64xf32>
    tpu.vector_store %arg4[%c0_5, %c0_6], %5 {strides = array<i32>} : memref<8x64xf32, #tpu.memory_space<vmem>>, vector<8x64xf32>,
    return
  }
  func.func @transform_0(%arg0: i32) -> (i32, i32) {
    %c0_i32 = arith.constant 0 : i32
    %c0_i32_0 = arith.constant 0 : i32
    %c0_i32_1 = arith.constant 0 : i32
    return %c0_i32, %c0_i32_0 : i32, i32
  }
  func.func @transform_1(%arg0: i32) -> (i32, i32) {
    %c0_i32 = arith.constant 0 : i32
    %c0_i32_0 = arith.constant 0 : i32
    %c0_i32_1 = arith.constant 0 : i32
    return %c0_i32, %c0_i32_0 : i32, i32
  }
  func.func @transform_2(%arg0: i32) -> (i32, i32) {
    %c0_i32 = arith.constant 0 : i32
    %c0_i32_0 = arith.constant 0 : i32
    %c0_i32_1 = arith.constant 0 : i32
    return %c0_i32, %c0_i32_0 : i32, i32
  }
  func.func @transform_3(%arg0: i32) -> (i32, i32) {
    %c0_i32 = arith.constant 0 : i32
    %c0_i32_0 = arith.constant 0 : i32
    %c0_i32_1 = arith.constant 0 : i32
    return %c0_i32, %c0_i32_0 : i32, i32
  }
}

module attributes {stable_mosaic.version = 11 : i64} {
  func.func @kernel(%arg0: i32, %arg1: memref<32x32xbf16, #tpu.memory_space<vmem>>, %arg2: memref<3x32x32xbf16, #tpu.memory_space<vmem>>, %arg3: memref<32x1xf32, #tpu.memory_space<vmem>>, %arg4: memref<3x32x64xbf16, #tpu.memory_space<vmem>>, %arg5: memref<3x32x32xbf16, #tpu.memory_space<vmem>>, %arg6: memref<32x1xf32, #tpu.memory_space<vmem>>, %arg7: memref<3x64x128xbf16, #tpu.memory_space<vmem>>, %arg8: memref<3x32x32xbf16, #tpu.memory_space<vmem>>, %arg9: memref<32x1xf32, #tpu.memory_space<vmem>>, %arg10: memref<3x128x256xbf16, #tpu.memory_space<vmem>>, %arg11: memref<3x1x32xbf16, #tpu.memory_space<vmem>>, %arg12: memref<1x1xf32, #tpu.memory_space<vmem>>, %arg13: memref<3x256x512xbf16, #tpu.memory_space<vmem>>, %arg14: memref<1x512xf32, #tpu.memory_space<vmem>>) attributes {dimension_semantics = [#tpu.dimension_semantics<arbitrary>], iteration_bounds = array<i64: 1>, scalar_prefetch = 0 : i64, scratch_operands = 0 : i64, tpu.core_type = #tpu.core_type<tc>, window_params = [{pipeline_mode = #tpu.pipeline_mode<synchronous>, transform_indices = @transform_0, window_bounds = array<i64: 32, 32>}, {pipeline_mode = #tpu.pipeline_mode<synchronous>, transform_indices = @transform_1, window_bounds = array<i64: 3, 32, 32>}, {pipeline_mode = #tpu.pipeline_mode<synchronous>, transform_indices = @transform_2, window_bounds = array<i64: 32, 1>}, {pipeline_mode = #tpu.pipeline_mode<synchronous>, transform_indices = @transform_3, window_bounds = array<i64: 3, 32, 64>}, {pipeline_mode = #tpu.pipeline_mode<synchronous>, transform_indices = @transform_4, window_bounds = array<i64: 3, 32, 32>}, {pipeline_mode = #tpu.pipeline_mode<synchronous>, transform_indices = @transform_5, window_bounds = array<i64: 32, 1>}, {pipeline_mode = #tpu.pipeline_mode<synchronous>, transform_indices = @transform_6, window_bounds = array<i64: 3, 64, 128>}, {pipeline_mode = #tpu.pipeline_mode<synchronous>, transform_indices = @transform_7, window_bounds = array<i64: 3, 32, 32>}, {pipeline_mode = #tpu.pipeline_mode<synchronous>, transform_indices = @transform_8, window_bounds = array<i64: 32, 1>}, {pipeline_mode = #tpu.pipeline_mode<synchronous>, transform_indices = @transform_9, window_bounds = array<i64: 3, 128, 256>}, {pipeline_mode = #tpu.pipeline_mode<synchronous>, transform_indices = @transform_10, window_bounds = array<i64: 3, 1, 32>}, {pipeline_mode = #tpu.pipeline_mode<synchronous>, transform_indices = @transform_11, window_bounds = array<i64: 1, 1>}, {pipeline_mode = #tpu.pipeline_mode<synchronous>, transform_indices = @transform_12, window_bounds = array<i64: 3, 256, 512>}, {pipeline_mode = #tpu.pipeline_mode<synchronous>, transform_indices = @transform_13, window_bounds = array<i64: 1, 512>}]} {
    %c0 = arith.constant 0 : index
    %c0_0 = arith.constant 0 : index
    %0 = vector.load %arg1[%c0, %c0_0] : memref<32x32xbf16, #tpu.memory_space<vmem>>, vector<32x32xbf16>
    %c0_1 = arith.constant 0 : index
    %c0_2 = arith.constant 0 : index
    %1 = vector.load %arg3[%c0_1, %c0_2] : memref<32x1xf32, #tpu.memory_space<vmem>>, vector<32x1xf32>
    %c0_3 = arith.constant 0 : index
    %c0_4 = arith.constant 0 : index
    %c0_5 = arith.constant 0 : index
    %2 = vector.load %arg4[%c0_3, %c0_4, %c0_5] : memref<3x32x64xbf16, #tpu.memory_space<vmem>>, vector<1x32x64xbf16>
    %3 = vector.shape_cast %2 : vector<1x32x64xbf16> to vector<32x64xbf16>
    %cst = arith.constant dense<0.000000e+00> : vector<32x64xf32>
    %4 = tpu.matmul %0, %3, %cst {dimension_numbers = #tpu.dot_dimension_numbers<[1], [0], [0], [1], [0, 0, 1, 1], [], []>} : vector<32x32xbf16>, vector<32x64xbf16>, vector<32x64xf32> -> vector<32x64xf32>
    %c0_6 = arith.constant 0 : index
    %c0_7 = arith.constant 0 : index
    %c0_8 = arith.constant 0 : index
    %5 = vector.load %arg2[%c0_6, %c0_7, %c0_8] : memref<3x32x32xbf16, #tpu.memory_space<vmem>>, vector<1x32x32xbf16>
    %6 = vector.shape_cast %5 : vector<1x32x32xbf16> to vector<32x32xbf16>
    %7 = arith.truncf %4 : vector<32x64xf32> to vector<32x64xbf16>
    %cst_9 = arith.constant dense<0.000000e+00> : vector<32x64xf32>
    %8 = tpu.matmul %6, %7, %cst_9 {dimension_numbers = #tpu.dot_dimension_numbers<[1], [0], [0], [1], [0, 0, 1, 1], [], []>} : vector<32x32xbf16>, vector<32x64xbf16>, vector<32x64xf32> -> vector<32x64xf32>
    %9 = vector.broadcast %1 : vector<32x1xf32> to vector<32x64xf32>
    %10 = arith.addf %9, %8 : vector<32x64xf32>
    %c1 = arith.constant 1 : index
    %c0_10 = arith.constant 0 : index
    %c0_11 = arith.constant 0 : index
    %11 = vector.load %arg4[%c1, %c0_10, %c0_11] : memref<3x32x64xbf16, #tpu.memory_space<vmem>>, vector<1x32x64xbf16>
    %12 = vector.shape_cast %11 : vector<1x32x64xbf16> to vector<32x64xbf16>
    %cst_12 = arith.constant dense<0.000000e+00> : vector<32x64xf32>
    %13 = tpu.matmul %0, %12, %cst_12 {dimension_numbers = #tpu.dot_dimension_numbers<[1], [0], [0], [1], [0, 0, 1, 1], [], []>} : vector<32x32xbf16>, vector<32x64xbf16>, vector<32x64xf32> -> vector<32x64xf32>
    %c1_13 = arith.constant 1 : index
    %c0_14 = arith.constant 0 : index
    %c0_15 = arith.constant 0 : index
    %14 = vector.load %arg2[%c1_13, %c0_14, %c0_15] : memref<3x32x32xbf16, #tpu.memory_space<vmem>>, vector<1x32x32xbf16>
    %15 = vector.shape_cast %14 : vector<1x32x32xbf16> to vector<32x32xbf16>
    %16 = arith.truncf %13 : vector<32x64xf32> to vector<32x64xbf16>
    %cst_16 = arith.constant dense<0.000000e+00> : vector<32x64xf32>
    %17 = tpu.matmul %15, %16, %cst_16 {dimension_numbers = #tpu.dot_dimension_numbers<[1], [0], [0], [1], [0, 0, 1, 1], [], []>} : vector<32x32xbf16>, vector<32x64xbf16>, vector<32x64xf32> -> vector<32x64xf32>
    %18 = arith.addf %10, %17 : vector<32x64xf32>
    %c2 = arith.constant 2 : index
    %c0_17 = arith.constant 0 : index
    %c0_18 = arith.constant 0 : index
    %19 = vector.load %arg4[%c2, %c0_17, %c0_18] : memref<3x32x64xbf16, #tpu.memory_space<vmem>>, vector<1x32x64xbf16>
    %20 = vector.shape_cast %19 : vector<1x32x64xbf16> to vector<32x64xbf16>
    %cst_19 = arith.constant dense<0.000000e+00> : vector<32x64xf32>
    %21 = tpu.matmul %0, %20, %cst_19 {dimension_numbers = #tpu.dot_dimension_numbers<[1], [0], [0], [1], [0, 0, 1, 1], [], []>} : vector<32x32xbf16>, vector<32x64xbf16>, vector<32x64xf32> -> vector<32x64xf32>
    %c2_20 = arith.constant 2 : index
    %c0_21 = arith.constant 0 : index
    %c0_22 = arith.constant 0 : index
    %22 = vector.load %arg2[%c2_20, %c0_21, %c0_22] : memref<3x32x32xbf16, #tpu.memory_space<vmem>>, vector<1x32x32xbf16>
    %23 = vector.shape_cast %22 : vector<1x32x32xbf16> to vector<32x32xbf16>
    %24 = arith.truncf %21 : vector<32x64xf32> to vector<32x64xbf16>
    %cst_23 = arith.constant dense<0.000000e+00> : vector<32x64xf32>
    %25 = tpu.matmul %23, %24, %cst_23 {dimension_numbers = #tpu.dot_dimension_numbers<[1], [0], [0], [1], [0, 0, 1, 1], [], []>} : vector<32x32xbf16>, vector<32x64xbf16>, vector<32x64xf32> -> vector<32x64xf32>
    %26 = arith.addf %18, %25 : vector<32x64xf32>
    %cst_24 = arith.constant 0.000000e+00 : f32
    %27 = vector.broadcast %cst_24 : f32 to vector<32x64xf32>
    %28 = arith.cmpf ogt, %26, %27 : vector<32x64xf32>
    %cst_25 = arith.constant 2.000000e-01 : f32
    %29 = vector.broadcast %cst_25 : f32 to vector<32x64xf32>
    %30 = arith.mulf %29, %26 : vector<32x64xf32>
    %31 = arith.select %28, %26, %30 : vector<32x64xi1>, vector<32x64xf32>
    %32 = arith.truncf %31 : vector<32x64xf32> to vector<32x64xbf16>
    %c0_26 = arith.constant 0 : index
    %c0_27 = arith.constant 0 : index
    %33 = vector.load %arg6[%c0_26, %c0_27] : memref<32x1xf32, #tpu.memory_space<vmem>>, vector<32x1xf32>
    %c0_28 = arith.constant 0 : index
    %c0_29 = arith.constant 0 : index
    %c0_30 = arith.constant 0 : index
    %34 = vector.load %arg7[%c0_28, %c0_29, %c0_30] : memref<3x64x128xbf16, #tpu.memory_space<vmem>>, vector<1x64x128xbf16>
    %35 = vector.shape_cast %34 : vector<1x64x128xbf16> to vector<64x128xbf16>
    %cst_31 = arith.constant dense<0.000000e+00> : vector<32x128xf32>
    %36 = tpu.matmul %32, %35, %cst_31 {dimension_numbers = #tpu.dot_dimension_numbers<[1], [0], [0], [1], [0, 0, 1, 1], [], []>} : vector<32x64xbf16>, vector<64x128xbf16>, vector<32x128xf32> -> vector<32x128xf32>
    %c0_32 = arith.constant 0 : index
    %c0_33 = arith.constant 0 : index
    %c0_34 = arith.constant 0 : index
    %37 = vector.load %arg5[%c0_32, %c0_33, %c0_34] : memref<3x32x32xbf16, #tpu.memory_space<vmem>>, vector<1x32x32xbf16>
    %38 = vector.shape_cast %37 : vector<1x32x32xbf16> to vector<32x32xbf16>
    %39 = arith.truncf %36 : vector<32x128xf32> to vector<32x128xbf16>
    %cst_35 = arith.constant dense<0.000000e+00> : vector<32x128xf32>
    %40 = tpu.matmul %38, %39, %cst_35 {dimension_numbers = #tpu.dot_dimension_numbers<[1], [0], [0], [1], [0, 0, 1, 1], [], []>} : vector<32x32xbf16>, vector<32x128xbf16>, vector<32x128xf32> -> vector<32x128xf32>
    %41 = vector.broadcast %33 : vector<32x1xf32> to vector<32x128xf32>
    %42 = arith.addf %41, %40 : vector<32x128xf32>
    %c1_36 = arith.constant 1 : index
    %c0_37 = arith.constant 0 : index
    %c0_38 = arith.constant 0 : index
    %43 = vector.load %arg7[%c1_36, %c0_37, %c0_38] : memref<3x64x128xbf16, #tpu.memory_space<vmem>>, vector<1x64x128xbf16>
    %44 = vector.shape_cast %43 : vector<1x64x128xbf16> to vector<64x128xbf16>
    %cst_39 = arith.constant dense<0.000000e+00> : vector<32x128xf32>
    %45 = tpu.matmul %32, %44, %cst_39 {dimension_numbers = #tpu.dot_dimension_numbers<[1], [0], [0], [1], [0, 0, 1, 1], [], []>} : vector<32x64xbf16>, vector<64x128xbf16>, vector<32x128xf32> -> vector<32x128xf32>
    %c1_40 = arith.constant 1 : index
    %c0_41 = arith.constant 0 : index
    %c0_42 = arith.constant 0 : index
    %46 = vector.load %arg5[%c1_40, %c0_41, %c0_42] : memref<3x32x32xbf16, #tpu.memory_space<vmem>>, vector<1x32x32xbf16>
    %47 = vector.shape_cast %46 : vector<1x32x32xbf16> to vector<32x32xbf16>
    %48 = arith.truncf %45 : vector<32x128xf32> to vector<32x128xbf16>
    %cst_43 = arith.constant dense<0.000000e+00> : vector<32x128xf32>
    %49 = tpu.matmul %47, %48, %cst_43 {dimension_numbers = #tpu.dot_dimension_numbers<[1], [0], [0], [1], [0, 0, 1, 1], [], []>} : vector<32x32xbf16>, vector<32x128xbf16>, vector<32x128xf32> -> vector<32x128xf32>
    %50 = arith.addf %42, %49 : vector<32x128xf32>
    %c2_44 = arith.constant 2 : index
    %c0_45 = arith.constant 0 : index
    %c0_46 = arith.constant 0 : index
    %51 = vector.load %arg7[%c2_44, %c0_45, %c0_46] : memref<3x64x128xbf16, #tpu.memory_space<vmem>>, vector<1x64x128xbf16>
    %52 = vector.shape_cast %51 : vector<1x64x128xbf16> to vector<64x128xbf16>
    %cst_47 = arith.constant dense<0.000000e+00> : vector<32x128xf32>
    %53 = tpu.matmul %32, %52, %cst_47 {dimension_numbers = #tpu.dot_dimension_numbers<[1], [0], [0], [1], [0, 0, 1, 1], [], []>} : vector<32x64xbf16>, vector<64x128xbf16>, vector<32x128xf32> -> vector<32x128xf32>
    %c2_48 = arith.constant 2 : index
    %c0_49 = arith.constant 0 : index
    %c0_50 = arith.constant 0 : index
    %54 = vector.load %arg5[%c2_48, %c0_49, %c0_50] : memref<3x32x32xbf16, #tpu.memory_space<vmem>>, vector<1x32x32xbf16>
    %55 = vector.shape_cast %54 : vector<1x32x32xbf16> to vector<32x32xbf16>
    %56 = arith.truncf %53 : vector<32x128xf32> to vector<32x128xbf16>
    %cst_51 = arith.constant dense<0.000000e+00> : vector<32x128xf32>
    %57 = tpu.matmul %55, %56, %cst_51 {dimension_numbers = #tpu.dot_dimension_numbers<[1], [0], [0], [1], [0, 0, 1, 1], [], []>} : vector<32x32xbf16>, vector<32x128xbf16>, vector<32x128xf32> -> vector<32x128xf32>
    %58 = arith.addf %50, %57 : vector<32x128xf32>
    %cst_52 = arith.constant 0.000000e+00 : f32
    %59 = vector.broadcast %cst_52 : f32 to vector<32x128xf32>
    %60 = arith.cmpf ogt, %58, %59 : vector<32x128xf32>
    %cst_53 = arith.constant 2.000000e-01 : f32
    %61 = vector.broadcast %cst_53 : f32 to vector<32x128xf32>
    %62 = arith.mulf %61, %58 : vector<32x128xf32>
    %63 = arith.select %60, %58, %62 : vector<32x128xi1>, vector<32x128xf32>
    %64 = arith.truncf %63 : vector<32x128xf32> to vector<32x128xbf16>
    %c0_54 = arith.constant 0 : index
    %c0_55 = arith.constant 0 : index
    %65 = vector.load %arg9[%c0_54, %c0_55] : memref<32x1xf32, #tpu.memory_space<vmem>>, vector<32x1xf32>
    %c0_56 = arith.constant 0 : index
    %c0_57 = arith.constant 0 : index
    %c0_58 = arith.constant 0 : index
    %66 = vector.load %arg10[%c0_56, %c0_57, %c0_58] : memref<3x128x256xbf16, #tpu.memory_space<vmem>>, vector<1x128x256xbf16>
    %67 = vector.shape_cast %66 : vector<1x128x256xbf16> to vector<128x256xbf16>
    %cst_59 = arith.constant dense<0.000000e+00> : vector<32x256xf32>
    %68 = tpu.matmul %64, %67, %cst_59 {dimension_numbers = #tpu.dot_dimension_numbers<[1], [0], [0], [1], [0, 0, 1, 1], [], []>} : vector<32x128xbf16>, vector<128x256xbf16>, vector<32x256xf32> -> vector<32x256xf32>
    %c0_60 = arith.constant 0 : index
    %c0_61 = arith.constant 0 : index
    %c0_62 = arith.constant 0 : index
    %69 = vector.load %arg8[%c0_60, %c0_61, %c0_62] : memref<3x32x32xbf16, #tpu.memory_space<vmem>>, vector<1x32x32xbf16>
    %70 = vector.shape_cast %69 : vector<1x32x32xbf16> to vector<32x32xbf16>
    %71 = arith.truncf %68 : vector<32x256xf32> to vector<32x256xbf16>
    %cst_63 = arith.constant dense<0.000000e+00> : vector<32x256xf32>
    %72 = tpu.matmul %70, %71, %cst_63 {dimension_numbers = #tpu.dot_dimension_numbers<[1], [0], [0], [1], [0, 0, 1, 1], [], []>} : vector<32x32xbf16>, vector<32x256xbf16>, vector<32x256xf32> -> vector<32x256xf32>
    %73 = vector.broadcast %65 : vector<32x1xf32> to vector<32x256xf32>
    %74 = arith.addf %73, %72 : vector<32x256xf32>
    %c1_64 = arith.constant 1 : index
    %c0_65 = arith.constant 0 : index
    %c0_66 = arith.constant 0 : index
    %75 = vector.load %arg10[%c1_64, %c0_65, %c0_66] : memref<3x128x256xbf16, #tpu.memory_space<vmem>>, vector<1x128x256xbf16>
    %76 = vector.shape_cast %75 : vector<1x128x256xbf16> to vector<128x256xbf16>
    %cst_67 = arith.constant dense<0.000000e+00> : vector<32x256xf32>
    %77 = tpu.matmul %64, %76, %cst_67 {dimension_numbers = #tpu.dot_dimension_numbers<[1], [0], [0], [1], [0, 0, 1, 1], [], []>} : vector<32x128xbf16>, vector<128x256xbf16>, vector<32x256xf32> -> vector<32x256xf32>
    %c1_68 = arith.constant 1 : index
    %c0_69 = arith.constant 0 : index
    %c0_70 = arith.constant 0 : index
    %78 = vector.load %arg8[%c1_68, %c0_69, %c0_70] : memref<3x32x32xbf16, #tpu.memory_space<vmem>>, vector<1x32x32xbf16>
    %79 = vector.shape_cast %78 : vector<1x32x32xbf16> to vector<32x32xbf16>
    %80 = arith.truncf %77 : vector<32x256xf32> to vector<32x256xbf16>
    %cst_71 = arith.constant dense<0.000000e+00> : vector<32x256xf32>
    %81 = tpu.matmul %79, %80, %cst_71 {dimension_numbers = #tpu.dot_dimension_numbers<[1], [0], [0], [1], [0, 0, 1, 1], [], []>} : vector<32x32xbf16>, vector<32x256xbf16>, vector<32x256xf32> -> vector<32x256xf32>
    %82 = arith.addf %74, %81 : vector<32x256xf32>
    %c2_72 = arith.constant 2 : index
    %c0_73 = arith.constant 0 : index
    %c0_74 = arith.constant 0 : index
    %83 = vector.load %arg10[%c2_72, %c0_73, %c0_74] : memref<3x128x256xbf16, #tpu.memory_space<vmem>>, vector<1x128x256xbf16>
    %84 = vector.shape_cast %83 : vector<1x128x256xbf16> to vector<128x256xbf16>
    %cst_75 = arith.constant dense<0.000000e+00> : vector<32x256xf32>
    %85 = tpu.matmul %64, %84, %cst_75 {dimension_numbers = #tpu.dot_dimension_numbers<[1], [0], [0], [1], [0, 0, 1, 1], [], []>} : vector<32x128xbf16>, vector<128x256xbf16>, vector<32x256xf32> -> vector<32x256xf32>
    %c2_76 = arith.constant 2 : index
    %c0_77 = arith.constant 0 : index
    %c0_78 = arith.constant 0 : index
    %86 = vector.load %arg8[%c2_76, %c0_77, %c0_78] : memref<3x32x32xbf16, #tpu.memory_space<vmem>>, vector<1x32x32xbf16>
    %87 = vector.shape_cast %86 : vector<1x32x32xbf16> to vector<32x32xbf16>
    %88 = arith.truncf %85 : vector<32x256xf32> to vector<32x256xbf16>
    %cst_79 = arith.constant dense<0.000000e+00> : vector<32x256xf32>
    %89 = tpu.matmul %87, %88, %cst_79 {dimension_numbers = #tpu.dot_dimension_numbers<[1], [0], [0], [1], [0, 0, 1, 1], [], []>} : vector<32x32xbf16>, vector<32x256xbf16>, vector<32x256xf32> -> vector<32x256xf32>
    %90 = arith.addf %82, %89 : vector<32x256xf32>
    %cst_80 = arith.constant 0.000000e+00 : f32
    %91 = vector.broadcast %cst_80 : f32 to vector<32x256xf32>
    %92 = arith.cmpf ogt, %90, %91 : vector<32x256xf32>
    %cst_81 = arith.constant 2.000000e-01 : f32
    %93 = vector.broadcast %cst_81 : f32 to vector<32x256xf32>
    %94 = arith.mulf %93, %90 : vector<32x256xf32>
    %95 = arith.select %92, %90, %94 : vector<32x256xi1>, vector<32x256xf32>
    %96 = arith.truncf %95 : vector<32x256xf32> to vector<32x256xbf16>
    %c0_82 = arith.constant 0 : index
    %c0_83 = arith.constant 0 : index
    %97 = vector.load %arg12[%c0_82, %c0_83] : memref<1x1xf32, #tpu.memory_space<vmem>>, vector<1x1xf32>
    %c0_84 = arith.constant 0 : index
    %c0_85 = arith.constant 0 : index
    %c0_86 = arith.constant 0 : index
    %98 = vector.load %arg13[%c0_84, %c0_85, %c0_86] : memref<3x256x512xbf16, #tpu.memory_space<vmem>>, vector<1x256x512xbf16>
    %99 = vector.shape_cast %98 : vector<1x256x512xbf16> to vector<256x512xbf16>
    %cst_87 = arith.constant dense<0.000000e+00> : vector<32x512xf32>
    %100 = tpu.matmul %96, %99, %cst_87 {dimension_numbers = #tpu.dot_dimension_numbers<[1], [0], [0], [1], [0, 0, 1, 1], [], []>} : vector<32x256xbf16>, vector<256x512xbf16>, vector<32x512xf32> -> vector<32x512xf32>
    %c0_88 = arith.constant 0 : index
    %c0_89 = arith.constant 0 : index
    %c0_90 = arith.constant 0 : index
    %101 = vector.load %arg11[%c0_88, %c0_89, %c0_90] : memref<3x1x32xbf16, #tpu.memory_space<vmem>>, vector<1x1x32xbf16>
    %102 = vector.shape_cast %101 : vector<1x1x32xbf16> to vector<1x32xbf16>
    %103 = arith.truncf %100 : vector<32x512xf32> to vector<32x512xbf16>
    %cst_91 = arith.constant dense<0.000000e+00> : vector<1x512xf32>
    %104 = tpu.matmul %102, %103, %cst_91 {dimension_numbers = #tpu.dot_dimension_numbers<[1], [0], [0], [1], [0, 0, 1, 1], [], []>} : vector<1x32xbf16>, vector<32x512xbf16>, vector<1x512xf32> -> vector<1x512xf32>
    %105 = vector.broadcast %97 : vector<1x1xf32> to vector<1x512xf32>
    %106 = arith.addf %105, %104 : vector<1x512xf32>
    %c1_92 = arith.constant 1 : index
    %c0_93 = arith.constant 0 : index
    %c0_94 = arith.constant 0 : index
    %107 = vector.load %arg13[%c1_92, %c0_93, %c0_94] : memref<3x256x512xbf16, #tpu.memory_space<vmem>>, vector<1x256x512xbf16>
    %108 = vector.shape_cast %107 : vector<1x256x512xbf16> to vector<256x512xbf16>
    %cst_95 = arith.constant dense<0.000000e+00> : vector<32x512xf32>
    %109 = tpu.matmul %96, %108, %cst_95 {dimension_numbers = #tpu.dot_dimension_numbers<[1], [0], [0], [1], [0, 0, 1, 1], [], []>} : vector<32x256xbf16>, vector<256x512xbf16>, vector<32x512xf32> -> vector<32x512xf32>
    %c1_96 = arith.constant 1 : index
    %c0_97 = arith.constant 0 : index
    %c0_98 = arith.constant 0 : index
    %110 = vector.load %arg11[%c1_96, %c0_97, %c0_98] : memref<3x1x32xbf16, #tpu.memory_space<vmem>>, vector<1x1x32xbf16>
    %111 = vector.shape_cast %110 : vector<1x1x32xbf16> to vector<1x32xbf16>
    %112 = arith.truncf %109 : vector<32x512xf32> to vector<32x512xbf16>
    %cst_99 = arith.constant dense<0.000000e+00> : vector<1x512xf32>
    %113 = tpu.matmul %111, %112, %cst_99 {dimension_numbers = #tpu.dot_dimension_numbers<[1], [0], [0], [1], [0, 0, 1, 1], [], []>} : vector<1x32xbf16>, vector<32x512xbf16>, vector<1x512xf32> -> vector<1x512xf32>
    %114 = arith.addf %106, %113 : vector<1x512xf32>
    %c2_100 = arith.constant 2 : index
    %c0_101 = arith.constant 0 : index
    %c0_102 = arith.constant 0 : index
    %115 = vector.load %arg13[%c2_100, %c0_101, %c0_102] : memref<3x256x512xbf16, #tpu.memory_space<vmem>>, vector<1x256x512xbf16>
    %116 = vector.shape_cast %115 : vector<1x256x512xbf16> to vector<256x512xbf16>
    %cst_103 = arith.constant dense<0.000000e+00> : vector<32x512xf32>
    %117 = tpu.matmul %96, %116, %cst_103 {dimension_numbers = #tpu.dot_dimension_numbers<[1], [0], [0], [1], [0, 0, 1, 1], [], []>} : vector<32x256xbf16>, vector<256x512xbf16>, vector<32x512xf32> -> vector<32x512xf32>
    %c2_104 = arith.constant 2 : index
    %c0_105 = arith.constant 0 : index
    %c0_106 = arith.constant 0 : index
    %118 = vector.load %arg11[%c2_104, %c0_105, %c0_106] : memref<3x1x32xbf16, #tpu.memory_space<vmem>>, vector<1x1x32xbf16>
    %119 = vector.shape_cast %118 : vector<1x1x32xbf16> to vector<1x32xbf16>
    %120 = arith.truncf %117 : vector<32x512xf32> to vector<32x512xbf16>
    %cst_107 = arith.constant dense<0.000000e+00> : vector<1x512xf32>
    %121 = tpu.matmul %119, %120, %cst_107 {dimension_numbers = #tpu.dot_dimension_numbers<[1], [0], [0], [1], [0, 0, 1, 1], [], []>} : vector<1x32xbf16>, vector<32x512xbf16>, vector<1x512xf32> -> vector<1x512xf32>
    %122 = arith.addf %114, %121 : vector<1x512xf32>
    %c0_108 = arith.constant 0 : index
    %c0_109 = arith.constant 0 : index
    %123 = vector.load %arg14[%c0_108, %c0_109] : memref<1x512xf32, #tpu.memory_space<vmem>>, vector<1x512xf32>
    tpu.vector_store %arg14[%c0_108, %c0_109], %122 {strides = array<i32>} : memref<1x512xf32, #tpu.memory_space<vmem>>, vector<1x512xf32>,
    return
  }
  func.func @transform_0(%arg0: i32) -> (i32, i32) {
    %c0_i32 = arith.constant 0 : i32
    %c0_i32_0 = arith.constant 0 : i32
    %c0_i32_1 = arith.constant 0 : i32
    return %c0_i32, %c0_i32_0 : i32, i32
  }
  func.func @transform_1(%arg0: i32) -> (i32, i32, i32) {
    %c0_i32 = arith.constant 0 : i32
    %c0_i32_0 = arith.constant 0 : i32
    %c0_i32_1 = arith.constant 0 : i32
    %c0_i32_2 = arith.constant 0 : i32
    return %c0_i32, %c0_i32_0, %c0_i32_1 : i32, i32, i32
  }
  func.func @transform_2(%arg0: i32) -> (i32, i32) {
    %c0_i32 = arith.constant 0 : i32
    %c0_i32_0 = arith.constant 0 : i32
    %c0_i32_1 = arith.constant 0 : i32
    return %c0_i32, %c0_i32_0 : i32, i32
  }
  func.func @transform_3(%arg0: i32) -> (i32, i32, i32) {
    %c0_i32 = arith.constant 0 : i32
    %c0_i32_0 = arith.constant 0 : i32
    %c0_i32_1 = arith.constant 0 : i32
    %c0_i32_2 = arith.constant 0 : i32
    return %c0_i32, %c0_i32_0, %c0_i32_1 : i32, i32, i32
  }
  func.func @transform_4(%arg0: i32) -> (i32, i32, i32) {
    %c0_i32 = arith.constant 0 : i32
    %c0_i32_0 = arith.constant 0 : i32
    %c0_i32_1 = arith.constant 0 : i32
    %c0_i32_2 = arith.constant 0 : i32
    return %c0_i32, %c0_i32_0, %c0_i32_1 : i32, i32, i32
  }
  func.func @transform_5(%arg0: i32) -> (i32, i32) {
    %c0_i32 = arith.constant 0 : i32
    %c0_i32_0 = arith.constant 0 : i32
    %c0_i32_1 = arith.constant 0 : i32
    return %c0_i32, %c0_i32_0 : i32, i32
  }
  func.func @transform_6(%arg0: i32) -> (i32, i32, i32) {
    %c0_i32 = arith.constant 0 : i32
    %c0_i32_0 = arith.constant 0 : i32
    %c0_i32_1 = arith.constant 0 : i32
    %c0_i32_2 = arith.constant 0 : i32
    return %c0_i32, %c0_i32_0, %c0_i32_1 : i32, i32, i32
  }
  func.func @transform_7(%arg0: i32) -> (i32, i32, i32) {
    %c0_i32 = arith.constant 0 : i32
    %c0_i32_0 = arith.constant 0 : i32
    %c0_i32_1 = arith.constant 0 : i32
    %c0_i32_2 = arith.constant 0 : i32
    return %c0_i32, %c0_i32_0, %c0_i32_1 : i32, i32, i32
  }
  func.func @transform_8(%arg0: i32) -> (i32, i32) {
    %c0_i32 = arith.constant 0 : i32
    %c0_i32_0 = arith.constant 0 : i32
    %c0_i32_1 = arith.constant 0 : i32
    return %c0_i32, %c0_i32_0 : i32, i32
  }
  func.func @transform_9(%arg0: i32) -> (i32, i32, i32) {
    %c0_i32 = arith.constant 0 : i32
    %c0_i32_0 = arith.constant 0 : i32
    %c0_i32_1 = arith.constant 0 : i32
    %c0_i32_2 = arith.constant 0 : i32
    return %c0_i32, %c0_i32_0, %c0_i32_1 : i32, i32, i32
  }
  func.func @transform_10(%arg0: i32) -> (i32, i32, i32) {
    %c0_i32 = arith.constant 0 : i32
    %c0_i32_0 = arith.constant 0 : i32
    %c0_i32_1 = arith.constant 0 : i32
    %c0_i32_2 = arith.constant 0 : i32
    return %c0_i32, %c0_i32_0, %c0_i32_1 : i32, i32, i32
  }
  func.func @transform_11(%arg0: i32) -> (i32, i32) {
    %c0_i32 = arith.constant 0 : i32
    %c0_i32_0 = arith.constant 0 : i32
    %c0_i32_1 = arith.constant 0 : i32
    return %c0_i32, %c0_i32_0 : i32, i32
  }
  func.func @transform_12(%arg0: i32) -> (i32, i32, i32) {
    %c0_i32 = arith.constant 0 : i32
    %c0_i32_0 = arith.constant 0 : i32
    %c0_i32_1 = arith.constant 0 : i32
    %c0_i32_2 = arith.constant 0 : i32
    return %c0_i32, %c0_i32_0, %c0_i32_1 : i32, i32, i32
  }
  func.func @transform_13(%arg0: i32) -> (i32, i32) {
    %c0_i32 = arith.constant 0 : i32
    %c0_i32_0 = arith.constant 0 : i32
    %c0_i32_1 = arith.constant 0 : i32
    return %c0_i32, %c0_i32_0 : i32, i32
  }
}

module attributes {stable_mosaic.version = 11 : i64} {
  func.func @kernel(%arg0: i32, %arg1: memref<32x64xbf16, #tpu.memory_space<vmem>>, %arg2: memref<3x32x32xbf16, #tpu.memory_space<vmem>>, %arg3: memref<32x1xf32, #tpu.memory_space<vmem>>, %arg4: memref<3x64x128xbf16, #tpu.memory_space<vmem>>, %arg5: memref<3x8x32xbf16, #tpu.memory_space<vmem>>, %arg6: memref<8x1xf32, #tpu.memory_space<vmem>>, %arg7: memref<3x128x256xbf16, #tpu.memory_space<vmem>>, %arg8: memref<8x256xf32, #tpu.memory_space<vmem>>) attributes {dimension_semantics = [#tpu.dimension_semantics<arbitrary>], iteration_bounds = array<i64: 1>, scalar_prefetch = 0 : i64, scratch_operands = 0 : i64, tpu.core_type = #tpu.core_type<tc>, window_params = [{pipeline_mode = #tpu.pipeline_mode<synchronous>, transform_indices = @transform_0, window_bounds = array<i64: 32, 64>}, {pipeline_mode = #tpu.pipeline_mode<synchronous>, transform_indices = @transform_1, window_bounds = array<i64: 3, 32, 32>}, {pipeline_mode = #tpu.pipeline_mode<synchronous>, transform_indices = @transform_2, window_bounds = array<i64: 32, 1>}, {pipeline_mode = #tpu.pipeline_mode<synchronous>, transform_indices = @transform_3, window_bounds = array<i64: 3, 64, 128>}, {pipeline_mode = #tpu.pipeline_mode<synchronous>, transform_indices = @transform_4, window_bounds = array<i64: 3, 8, 32>}, {pipeline_mode = #tpu.pipeline_mode<synchronous>, transform_indices = @transform_5, window_bounds = array<i64: 8, 1>}, {pipeline_mode = #tpu.pipeline_mode<synchronous>, transform_indices = @transform_6, window_bounds = array<i64: 3, 128, 256>}, {pipeline_mode = #tpu.pipeline_mode<synchronous>, transform_indices = @transform_7, window_bounds = array<i64: 8, 256>}]} {
    %c0 = arith.constant 0 : index
    %c0_0 = arith.constant 0 : index
    %0 = vector.load %arg1[%c0, %c0_0] : memref<32x64xbf16, #tpu.memory_space<vmem>>, vector<32x64xbf16>
    %c0_1 = arith.constant 0 : index
    %c0_2 = arith.constant 0 : index
    %1 = vector.load %arg3[%c0_1, %c0_2] : memref<32x1xf32, #tpu.memory_space<vmem>>, vector<32x1xf32>
    %c0_3 = arith.constant 0 : index
    %c0_4 = arith.constant 0 : index
    %c0_5 = arith.constant 0 : index
    %2 = vector.load %arg4[%c0_3, %c0_4, %c0_5] : memref<3x64x128xbf16, #tpu.memory_space<vmem>>, vector<1x64x128xbf16>
    %3 = vector.shape_cast %2 : vector<1x64x128xbf16> to vector<64x128xbf16>
    %cst = arith.constant dense<0.000000e+00> : vector<32x128xf32>
    %4 = tpu.matmul %0, %3, %cst {dimension_numbers = #tpu.dot_dimension_numbers<[1], [0], [0], [1], [0, 0, 1, 1], [], []>} : vector<32x64xbf16>, vector<64x128xbf16>, vector<32x128xf32> -> vector<32x128xf32>
    %c0_6 = arith.constant 0 : index
    %c0_7 = arith.constant 0 : index
    %c0_8 = arith.constant 0 : index
    %5 = vector.load %arg2[%c0_6, %c0_7, %c0_8] : memref<3x32x32xbf16, #tpu.memory_space<vmem>>, vector<1x32x32xbf16>
    %6 = vector.shape_cast %5 : vector<1x32x32xbf16> to vector<32x32xbf16>
    %7 = arith.truncf %4 : vector<32x128xf32> to vector<32x128xbf16>
    %cst_9 = arith.constant dense<0.000000e+00> : vector<32x128xf32>
    %8 = tpu.matmul %6, %7, %cst_9 {dimension_numbers = #tpu.dot_dimension_numbers<[1], [0], [0], [1], [0, 0, 1, 1], [], []>} : vector<32x32xbf16>, vector<32x128xbf16>, vector<32x128xf32> -> vector<32x128xf32>
    %9 = vector.broadcast %1 : vector<32x1xf32> to vector<32x128xf32>
    %10 = arith.addf %9, %8 : vector<32x128xf32>
    %c1 = arith.constant 1 : index
    %c0_10 = arith.constant 0 : index
    %c0_11 = arith.constant 0 : index
    %11 = vector.load %arg4[%c1, %c0_10, %c0_11] : memref<3x64x128xbf16, #tpu.memory_space<vmem>>, vector<1x64x128xbf16>
    %12 = vector.shape_cast %11 : vector<1x64x128xbf16> to vector<64x128xbf16>
    %cst_12 = arith.constant dense<0.000000e+00> : vector<32x128xf32>
    %13 = tpu.matmul %0, %12, %cst_12 {dimension_numbers = #tpu.dot_dimension_numbers<[1], [0], [0], [1], [0, 0, 1, 1], [], []>} : vector<32x64xbf16>, vector<64x128xbf16>, vector<32x128xf32> -> vector<32x128xf32>
    %c1_13 = arith.constant 1 : index
    %c0_14 = arith.constant 0 : index
    %c0_15 = arith.constant 0 : index
    %14 = vector.load %arg2[%c1_13, %c0_14, %c0_15] : memref<3x32x32xbf16, #tpu.memory_space<vmem>>, vector<1x32x32xbf16>
    %15 = vector.shape_cast %14 : vector<1x32x32xbf16> to vector<32x32xbf16>
    %16 = arith.truncf %13 : vector<32x128xf32> to vector<32x128xbf16>
    %cst_16 = arith.constant dense<0.000000e+00> : vector<32x128xf32>
    %17 = tpu.matmul %15, %16, %cst_16 {dimension_numbers = #tpu.dot_dimension_numbers<[1], [0], [0], [1], [0, 0, 1, 1], [], []>} : vector<32x32xbf16>, vector<32x128xbf16>, vector<32x128xf32> -> vector<32x128xf32>
    %18 = arith.addf %10, %17 : vector<32x128xf32>
    %c2 = arith.constant 2 : index
    %c0_17 = arith.constant 0 : index
    %c0_18 = arith.constant 0 : index
    %19 = vector.load %arg4[%c2, %c0_17, %c0_18] : memref<3x64x128xbf16, #tpu.memory_space<vmem>>, vector<1x64x128xbf16>
    %20 = vector.shape_cast %19 : vector<1x64x128xbf16> to vector<64x128xbf16>
    %cst_19 = arith.constant dense<0.000000e+00> : vector<32x128xf32>
    %21 = tpu.matmul %0, %20, %cst_19 {dimension_numbers = #tpu.dot_dimension_numbers<[1], [0], [0], [1], [0, 0, 1, 1], [], []>} : vector<32x64xbf16>, vector<64x128xbf16>, vector<32x128xf32> -> vector<32x128xf32>
    %c2_20 = arith.constant 2 : index
    %c0_21 = arith.constant 0 : index
    %c0_22 = arith.constant 0 : index
    %22 = vector.load %arg2[%c2_20, %c0_21, %c0_22] : memref<3x32x32xbf16, #tpu.memory_space<vmem>>, vector<1x32x32xbf16>
    %23 = vector.shape_cast %22 : vector<1x32x32xbf16> to vector<32x32xbf16>
    %24 = arith.truncf %21 : vector<32x128xf32> to vector<32x128xbf16>
    %cst_23 = arith.constant dense<0.000000e+00> : vector<32x128xf32>
    %25 = tpu.matmul %23, %24, %cst_23 {dimension_numbers = #tpu.dot_dimension_numbers<[1], [0], [0], [1], [0, 0, 1, 1], [], []>} : vector<32x32xbf16>, vector<32x128xbf16>, vector<32x128xf32> -> vector<32x128xf32>
    %26 = arith.addf %18, %25 : vector<32x128xf32>
    %cst_24 = arith.constant 0.000000e+00 : f32
    %27 = vector.broadcast %cst_24 : f32 to vector<32x128xf32>
    %28 = arith.cmpf ogt, %26, %27 : vector<32x128xf32>
    %cst_25 = arith.constant 2.000000e-01 : f32
    %29 = vector.broadcast %cst_25 : f32 to vector<32x128xf32>
    %30 = arith.mulf %29, %26 : vector<32x128xf32>
    %31 = arith.select %28, %26, %30 : vector<32x128xi1>, vector<32x128xf32>
    %32 = arith.truncf %31 : vector<32x128xf32> to vector<32x128xbf16>
    %c0_26 = arith.constant 0 : index
    %c0_27 = arith.constant 0 : index
    %33 = vector.load %arg6[%c0_26, %c0_27] : memref<8x1xf32, #tpu.memory_space<vmem>>, vector<8x1xf32>
    %c0_28 = arith.constant 0 : index
    %c0_29 = arith.constant 0 : index
    %c0_30 = arith.constant 0 : index
    %34 = vector.load %arg7[%c0_28, %c0_29, %c0_30] : memref<3x128x256xbf16, #tpu.memory_space<vmem>>, vector<1x128x256xbf16>
    %35 = vector.shape_cast %34 : vector<1x128x256xbf16> to vector<128x256xbf16>
    %cst_31 = arith.constant dense<0.000000e+00> : vector<32x256xf32>
    %36 = tpu.matmul %32, %35, %cst_31 {dimension_numbers = #tpu.dot_dimension_numbers<[1], [0], [0], [1], [0, 0, 1, 1], [], []>} : vector<32x128xbf16>, vector<128x256xbf16>, vector<32x256xf32> -> vector<32x256xf32>
    %c0_32 = arith.constant 0 : index
    %c0_33 = arith.constant 0 : index
    %c0_34 = arith.constant 0 : index
    %37 = vector.load %arg5[%c0_32, %c0_33, %c0_34] : memref<3x8x32xbf16, #tpu.memory_space<vmem>>, vector<1x8x32xbf16>
    %38 = vector.shape_cast %37 : vector<1x8x32xbf16> to vector<8x32xbf16>
    %39 = arith.truncf %36 : vector<32x256xf32> to vector<32x256xbf16>
    %cst_35 = arith.constant dense<0.000000e+00> : vector<8x256xf32>
    %40 = tpu.matmul %38, %39, %cst_35 {dimension_numbers = #tpu.dot_dimension_numbers<[1], [0], [0], [1], [0, 0, 1, 1], [], []>} : vector<8x32xbf16>, vector<32x256xbf16>, vector<8x256xf32> -> vector<8x256xf32>
    %41 = vector.broadcast %33 : vector<8x1xf32> to vector<8x256xf32>
    %42 = arith.addf %41, %40 : vector<8x256xf32>
    %c1_36 = arith.constant 1 : index
    %c0_37 = arith.constant 0 : index
    %c0_38 = arith.constant 0 : index
    %43 = vector.load %arg7[%c1_36, %c0_37, %c0_38] : memref<3x128x256xbf16, #tpu.memory_space<vmem>>, vector<1x128x256xbf16>
    %44 = vector.shape_cast %43 : vector<1x128x256xbf16> to vector<128x256xbf16>
    %cst_39 = arith.constant dense<0.000000e+00> : vector<32x256xf32>
    %45 = tpu.matmul %32, %44, %cst_39 {dimension_numbers = #tpu.dot_dimension_numbers<[1], [0], [0], [1], [0, 0, 1, 1], [], []>} : vector<32x128xbf16>, vector<128x256xbf16>, vector<32x256xf32> -> vector<32x256xf32>
    %c1_40 = arith.constant 1 : index
    %c0_41 = arith.constant 0 : index
    %c0_42 = arith.constant 0 : index
    %46 = vector.load %arg5[%c1_40, %c0_41, %c0_42] : memref<3x8x32xbf16, #tpu.memory_space<vmem>>, vector<1x8x32xbf16>
    %47 = vector.shape_cast %46 : vector<1x8x32xbf16> to vector<8x32xbf16>
    %48 = arith.truncf %45 : vector<32x256xf32> to vector<32x256xbf16>
    %cst_43 = arith.constant dense<0.000000e+00> : vector<8x256xf32>
    %49 = tpu.matmul %47, %48, %cst_43 {dimension_numbers = #tpu.dot_dimension_numbers<[1], [0], [0], [1], [0, 0, 1, 1], [], []>} : vector<8x32xbf16>, vector<32x256xbf16>, vector<8x256xf32> -> vector<8x256xf32>
    %50 = arith.addf %42, %49 : vector<8x256xf32>
    %c2_44 = arith.constant 2 : index
    %c0_45 = arith.constant 0 : index
    %c0_46 = arith.constant 0 : index
    %51 = vector.load %arg7[%c2_44, %c0_45, %c0_46] : memref<3x128x256xbf16, #tpu.memory_space<vmem>>, vector<1x128x256xbf16>
    %52 = vector.shape_cast %51 : vector<1x128x256xbf16> to vector<128x256xbf16>
    %cst_47 = arith.constant dense<0.000000e+00> : vector<32x256xf32>
    %53 = tpu.matmul %32, %52, %cst_47 {dimension_numbers = #tpu.dot_dimension_numbers<[1], [0], [0], [1], [0, 0, 1, 1], [], []>} : vector<32x128xbf16>, vector<128x256xbf16>, vector<32x256xf32> -> vector<32x256xf32>
    %c2_48 = arith.constant 2 : index
    %c0_49 = arith.constant 0 : index
    %c0_50 = arith.constant 0 : index
    %54 = vector.load %arg5[%c2_48, %c0_49, %c0_50] : memref<3x8x32xbf16, #tpu.memory_space<vmem>>, vector<1x8x32xbf16>
    %55 = vector.shape_cast %54 : vector<1x8x32xbf16> to vector<8x32xbf16>
    %56 = arith.truncf %53 : vector<32x256xf32> to vector<32x256xbf16>
    %cst_51 = arith.constant dense<0.000000e+00> : vector<8x256xf32>
    %57 = tpu.matmul %55, %56, %cst_51 {dimension_numbers = #tpu.dot_dimension_numbers<[1], [0], [0], [1], [0, 0, 1, 1], [], []>} : vector<8x32xbf16>, vector<32x256xbf16>, vector<8x256xf32> -> vector<8x256xf32>
    %58 = arith.addf %50, %57 : vector<8x256xf32>
    %c0_52 = arith.constant 0 : index
    %c0_53 = arith.constant 0 : index
    %59 = vector.load %arg8[%c0_52, %c0_53] : memref<8x256xf32, #tpu.memory_space<vmem>>, vector<8x256xf32>
    tpu.vector_store %arg8[%c0_52, %c0_53], %58 {strides = array<i32>} : memref<8x256xf32, #tpu.memory_space<vmem>>, vector<8x256xf32>,
    return
  }
  func.func @transform_0(%arg0: i32) -> (i32, i32) {
    %c0_i32 = arith.constant 0 : i32
    %c0_i32_0 = arith.constant 0 : i32
    %c0_i32_1 = arith.constant 0 : i32
    return %c0_i32, %c0_i32_0 : i32, i32
  }
  func.func @transform_1(%arg0: i32) -> (i32, i32, i32) {
    %c0_i32 = arith.constant 0 : i32
    %c0_i32_0 = arith.constant 0 : i32
    %c0_i32_1 = arith.constant 0 : i32
    %c0_i32_2 = arith.constant 0 : i32
    return %c0_i32, %c0_i32_0, %c0_i32_1 : i32, i32, i32
  }
  func.func @transform_2(%arg0: i32) -> (i32, i32) {
    %c0_i32 = arith.constant 0 : i32
    %c0_i32_0 = arith.constant 0 : i32
    %c0_i32_1 = arith.constant 0 : i32
    return %c0_i32, %c0_i32_0 : i32, i32
  }
  func.func @transform_3(%arg0: i32) -> (i32, i32, i32) {
    %c0_i32 = arith.constant 0 : i32
    %c0_i32_0 = arith.constant 0 : i32
    %c0_i32_1 = arith.constant 0 : i32
    %c0_i32_2 = arith.constant 0 : i32
    return %c0_i32, %c0_i32_0, %c0_i32_1 : i32, i32, i32
  }
  func.func @transform_4(%arg0: i32) -> (i32, i32, i32) {
    %c0_i32 = arith.constant 0 : i32
    %c0_i32_0 = arith.constant 0 : i32
    %c0_i32_1 = arith.constant 0 : i32
    %c0_i32_2 = arith.constant 0 : i32
    return %c0_i32, %c0_i32_0, %c0_i32_1 : i32, i32, i32
  }
  func.func @transform_5(%arg0: i32) -> (i32, i32) {
    %c0_i32 = arith.constant 0 : i32
    %c0_i32_0 = arith.constant 0 : i32
    %c0_i32_1 = arith.constant 0 : i32
    return %c0_i32, %c0_i32_0 : i32, i32
  }
  func.func @transform_6(%arg0: i32) -> (i32, i32, i32) {
    %c0_i32 = arith.constant 0 : i32
    %c0_i32_0 = arith.constant 0 : i32
    %c0_i32_1 = arith.constant 0 : i32
    %c0_i32_2 = arith.constant 0 : i32
    return %c0_i32, %c0_i32_0, %c0_i32_1 : i32, i32, i32
  }
  func.func @transform_7(%arg0: i32) -> (i32, i32) {
    %c0_i32 = arith.constant 0 : i32
    %c0_i32_0 = arith.constant 0 : i32
    %c0_i32_1 = arith.constant 0 : i32
    return %c0_i32, %c0_i32_0 : i32, i32
  }
}

module attributes {stable_mosaic.version = 11 : i64} {
  func.func @_event_synth_kernel(%arg0: i32, %arg1: memref<8x256xbf16, #tpu.memory_space<vmem>>, %arg2: memref<256x2048xbf16, #tpu.memory_space<vmem>>, %arg3: memref<8x2048xf32, #tpu.memory_space<vmem>>) attributes {dimension_semantics = [#tpu.dimension_semantics<arbitrary>], iteration_bounds = array<i64: 1>, scalar_prefetch = 0 : i64, scratch_operands = 0 : i64, tpu.core_type = #tpu.core_type<tc>, window_params = [{pipeline_mode = #tpu.pipeline_mode<synchronous>, transform_indices = @transform_0, window_bounds = array<i64: 8, 256>}, {pipeline_mode = #tpu.pipeline_mode<synchronous>, transform_indices = @transform_1, window_bounds = array<i64: 256, 2048>}, {pipeline_mode = #tpu.pipeline_mode<synchronous>, transform_indices = @transform_2, window_bounds = array<i64: 8, 2048>}]} {
    %c0 = arith.constant 0 : index
    %c0_0 = arith.constant 0 : index
    %0 = vector.load %arg1[%c0, %c0_0] : memref<8x256xbf16, #tpu.memory_space<vmem>>, vector<8x256xbf16>
    %c0_1 = arith.constant 0 : index
    %c0_2 = arith.constant 0 : index
    %1 = vector.load %arg2[%c0_1, %c0_2] : memref<256x2048xbf16, #tpu.memory_space<vmem>>, vector<256x2048xbf16>
    %cst = arith.constant dense<0.000000e+00> : vector<8x2048xf32>
    %2 = tpu.matmul %0, %1, %cst {dimension_numbers = #tpu.dot_dimension_numbers<[1], [0], [0], [1], [0, 0, 1, 1], [], []>} : vector<8x256xbf16>, vector<256x2048xbf16>, vector<8x2048xf32> -> vector<8x2048xf32>
    %c0_3 = arith.constant 0 : index
    %c0_4 = arith.constant 0 : index
    %3 = vector.load %arg3[%c0_3, %c0_4] : memref<8x2048xf32, #tpu.memory_space<vmem>>, vector<8x2048xf32>
    tpu.vector_store %arg3[%c0_3, %c0_4], %2 {strides = array<i32>} : memref<8x2048xf32, #tpu.memory_space<vmem>>, vector<8x2048xf32>,
    return
  }
  func.func @transform_0(%arg0: i32) -> (i32, i32) {
    %c0_i32 = arith.constant 0 : i32
    %c0_i32_0 = arith.constant 0 : i32
    %c0_i32_1 = arith.constant 0 : i32
    return %c0_i32, %c0_i32_0 : i32, i32
  }
  func.func @transform_1(%arg0: i32) -> (i32, i32) {
    %c0_i32 = arith.constant 0 : i32
    %c0_i32_0 = arith.constant 0 : i32
    %c0_i32_1 = arith.constant 0 : i32
    return %c0_i32, %c0_i32_0 : i32, i32
  }
  func.func @transform_2(%arg0: i32) -> (i32, i32) {
    %c0_i32 = arith.constant 0 : i32
    %c0_i32_0 = arith.constant 0 : i32
    %c0_i32_1 = arith.constant 0 : i32
    return %c0_i32, %c0_i32_0 : i32, i32
  }
}

</mosaic_0001>

<bundles_post_ra>
// kernel: summarizer_forward.8
= control target key start
LH: loop header
LB: loop body
LE: loop exit
PB: predicated region body
PF: predicated region fallthrough
CT: control target
= control target key end

     0   :  { %v108_v0 = vmov 0.0   ;;  %vm109_vm0 = vmmov 0   ;;  %vm39_vm1 = vcmask 261120   ;;  %vm83_vm2 = vcmask 523264   ;;  %s145_s1 = inlined_call_operand.vmem [shape: bf16[32,64], index: 1, kind: input, shape index: {}]   ;;  %s146_s0 = inlined_call_operand.vmem [shape: bf16[8,32], index: 0, kind: input, shape index: {}]   ;;  %s147_s2 = inlined_call_operand.vmem [shape: f32[1,64], index: 2, kind: input, shape index: {}]   ;;  %s148_s3 = inlined_call_operand.vmem [shape: f32[8,64], index: 3, kind: output, shape index: {}]  }
   0x1   :  { %96 = vmatprep.subr.bf16.mxu0 %v108_v0  ;;  %v106_v1 = vld [vmem:[%s145_s1] sm:$0xff]   ;;  %100 = vmatprep.mubr.msk.bf16.mxu0 %vm109_vm0, %v108_v0  ;;  %v107_v2 = vld [vmem:[%s145_s1 + $0x8] sm:$0xff]  }
   0x2   :  { %97 = vmatpush3.bf16.msra.mxu0 %v106_v1  ;;  %v15_v3 = vld [vmem:[%s146_s0] sm:$0xf] }
   0x3   :  { %98 = vmatprep.subr.bf16.mxu0 %v108_v0  ;;  %v89_v4 = vld [vmem:[%s147_s2] ss:$0 sm:$0xff] }
   0x6   :  { %99 = vmatpush3.bf16.msra.mxu0 %v107_v2 }
   0x9   :  { %101 = vmatmul.mubr.msk.bf16.vlgmr.msra.gmra.mrb[0].mxu0 %vm39_vm1, %v15_v3 }
  0xdc   :  { %v77_v5 = vpop.f32.mrb[0].mxu0 }
  0xdd   :  { %v78_v6 = vadd.f32 %v89_v4, %v77_v5  ;;  %v102_v7 = vpop.f32.mrb[1].mxu0 }
  0xde   :  { %v80_v8 = vpop.f32.mrb[2].mxu0 }
  0xdf   :  { %84 = vst.msk [vmem:[%s148_s3] sm:$0xff] %vm83_vm2, %v78_v6  ;;  %v103_v9 = vpop.f32.mrb[3].mxu0 }

// kernel: summarizer_forward.7
= control target key start
LH: loop header
LB: loop body
LE: loop exit
PB: predicated region body
PF: predicated region fallthrough
CT: control target
= control target key end

     0   :  { %s3376_s24 = smov 0   ;;  %s3925_s0 = inlined_call_operand.vmem [shape: f32[2,32,32], index: 0, kind: input, shape index: {}]   ;;  %s3926_s1 = inlined_call_operand.vmem [shape: bf16[40,32], index: 1, kind: input, shape index: {}]   ;;  %s3927_s2 = inlined_call_operand.vmem [shape: bf16[32,32], index: 2, kind: input, shape index: {}]   ;;  %s3928_s3 = inlined_call_operand.vmem [shape: bf16[32,40], index: 3, kind: input, shape index: {}]   ;;  %s3929_s4 = inlined_call_operand.vmem [shape: f32[32,1], index: 4, kind: input, shape index: {}]   ;;  %s3930_s5 = inlined_call_operand.vmem [shape: bf16[15,32,32], index: 5, kind: input, shape index: {}]   ;;  %s3931_s6 = inlined_call_operand.vmem [shape: f32[5,32,1], index: 6, kind: input, shape index: {}]   ;;  %s3932_s7 = inlined_call_operand.vmem [shape: f32[2,32,32], index: 7, kind: output, shape index: {}]  }
   0x1 LB: > { %s2633_s25 = sadd.s32 4294967295, %s3328_s24   ;;  %p2637_p0 = scmp.ge.s32.totalorder %s3328_s24, 1  ;;  %s3328_s24 = sphi %s3376_s24, %s17_s24  }
   0x2   : > { %p237_p1 = scmp.lt.s32.totalorder %s3328_s24, 3 }
   0x4   : > { %p238_p2 = pnand %p2637_p0, %p237_p1 }
   0x5   : > { %p269_p3 = scmp.lt.s32.totalorder (!%p238_p2), %s2633_s25, 1  ;;  %vm284_vm0 = vcmask (!%p238_p2), 261120   ;;  %v3277_v37 = vld [vmem:[%s3926_s1] sm:$0xff] (!%p238_p2)   ;;  %v3278_v39 = vld [vmem:[%s3926_s1 + $0x8] sm:$0xff] (!%p238_p2)   ;;  %vm388_vm1 = vcmask (!%p238_p2), 326656   ;;  %vm395_vm2 = vcmask (!%p238_p2), 1043456  }
   0x6   : > { %241 = sbr.rel (%p238_p2) target bundleno = 3582 (0xdfe), region = 48  ;;  %2986 = vmatprep.subr.bf16.mxu0 (!%p238_p2), %v3277_v37  ;;  %v3280_v40 = vld [vmem:[%s3928_s3] sm:$0xff] (!%p238_p2)   ;;  %v3279_v42 = vld [vmem:[%s3926_s1 + $0x10] ss:$0 sps:$4 sm:$0xff] (!%p238_p2)   ;;  %v3281_v46 = vld [vmem:[%s3928_s3 + $0x8] sm:$0xff] (!%p238_p2)   ;;  %v3330_v49 = vmov (!%p238_p2), 0  }
   0x7   : > { %2987 = vmatpush3.bf16.msra.mxu0 (!%p238_p2), %v3277_v37  ;;  %2992 = vmatprep.mubr.msk.bf16.mxu0 (!%p238_p2), %vm388_vm1, %v3280_v40  ;;  %v397_v45 = vsel (!%p238_p2), %vm395_vm2, %v3279_v42, 0  ;;  %v3282_v47 = vld [vmem:[%s3927_s2] sm:$0xff] (!%p238_p2)   ;;  %v514_v50 = vld [vmem:[%s3929_s4 + $0x8] sm:$0xff] (!%p238_p2)  ;;  %v515_v51 = vld [vmem:[%s3929_s4 + $0x10] sm:$0xff] (!%p238_p2) }
   0x8   : > { %2988 = vmatprep.subr.bf16.mxu0 (!%p238_p2), %v3278_v39  ;;  %v513_v48 = vld [vmem:[%s3929_s4] sm:$0xff] (!%p238_p2)  ;;  %3275 = vset.pattern.permute.xlu1 (!%p238_p2), %v3330_v49  ;;  %v516_v52 = vld [vmem:[%s3929_s4 + $0x18] sm:$0xff] (!%p238_p2)  ;;  %v2787_v53 = vld [vmem:[%s3931_s6 + $0x50] sm:$0xff] (!%p238_p2) }
   0x9   : > { %3276 = vset.pattern.permute.xlu0 (!%p238_p2), %v3330_v49  ;;  %519 = vperm.xlu1 (!%p238_p2), %3275, %v513_v48   ;;  %v907_v54 = vld [vmem:[%s3931_s6] sm:$0xff] (!%p238_p2)  ;;  %v908_v56 = vld [vmem:[%s3931_s6 + $0x8] sm:$0xff] (!%p238_p2)  ;;  %v2831_v57 = vld [vmem:[%s3931_s6 + $0x70] sm:$0xff] (!%p238_p2) }
   0xa   : > { %v2829_v55 = vld [vmem:[%s3931_s6 + $0x60] sm:$0xff] (!%p238_p2)  ;;  %v909_v58 = vld [vmem:[%s3931_s6 + $0x10] sm:$0xff] (!%p238_p2)  ;;  %v910_v60 = vld [vmem:[%s3931_s6 + $0x18] sm:$0xff] (!%p238_p2) }
   0xb   : > { %2989 = vmatpush3.bf16.msra.mxu0 (!%p238_p2), %v3278_v39  ;;  %v2869_v59 = vld [vmem:[%s3931_s6 + $0x80] sm:$0xff] (!%p238_p2)  ;;  %v2871_v61 = vld [vmem:[%s3931_s6 + $0x90] sm:$0xff] (!%p238_p2)  ;;  %v2738_v63 = vld [vmem:[%s3931_s6 + $0x28] sm:$0xff] (!%p238_p2) }
   0xc   : > { %3248 = vmatprep.subr.msk.bf16.mxu0 (!%p238_p2), %vm395_vm2, %v3279_v42  ;;  %v2737_v62 = vld [vmem:[%s3931_s6 + $0x20] sm:$0xff] (!%p238_p2) }
   0xd   : > { %s3946_s25 = smov (!%p269_p3, %s2633_s25), 1  ;;  %524 = vperm.xlu1 %3275, %v514_v50  }
   0xe   : > { %s2875_s26 = sshll.u32 %s3946_s25, 5 }
   0xf   : > { %s273_s29 = scalar_lea.vmem %s3925_s0, %s2875_s26  ;;  %2991 = vmatpush3.bf16.msra.mxu0 %v397_v45  ;;  %s278_s23 = scalar_lea.vmem %s3932_s7, %s2875_s26 }
  0x10   : > { %v3392_v0 = vld [vmem:[%s273_s29] sm:$0xff]  ;;  %v3394_v1 = vld [vmem:[%s273_s29 + $0x8] sm:$0xff]  ;;  %v3396_v2 = vld [vmem:[%s273_s29 + $0x10] sm:$0xff] }
  0x11   : > { %v3398_v3 = vld [vmem:[%s273_s29 + $0x18] sm:$0xff]  ;;  %v285_v4 = vsel %vm284_vm0, %v3392_v0, 0.0  ;;  %v286_v5 = vsel %vm284_vm0, %v3394_v1, 0.0  ;;  %v288_v6 = vsel %vm284_vm0, %v3396_v2, 0.0  ;;  %534 = vperm.xlu1 %3275, %v516_v52  }
  0x12   : > { %v287_v7 = vadd.f32 %v286_v5, %v285_v4  ;;  %v290_v8 = vsel %vm284_vm0, %v3398_v3, 0.0  ;;  %2993 = vmatmul.mubr.msk.bf16.vlgmr.msra.gmra.mrb[0].mxu0 %vm388_vm1, %v3281_v46  ;;  %v2739_v4 = vld [vmem:[%s3931_s6 + $0x30] sm:$0xff] }
  0x13   : > { %3000 = vmatprep.mubr.msk.bf16.mxu0 %vm284_vm0, %v3282_v47 }
  0x14   : > { %v289_v9 = vadd.f32 %v288_v6, %v287_v7  ;;  %v2740_v6 = vld [vmem:[%s3931_s6 + $0x38] sm:$0xff]  ;;  %v2785_v7 = vld [vmem:[%s3931_s6 + $0x40] sm:$0xff] }
  0x15   : > { %913 = vperm.xlu1 %3275, %v907_v54  }
  0x16   : > { %v291_v10 = vadd.f32 %v290_v8, %v289_v9  ;;  %v2786_v9 = vld [vmem:[%s3931_s6 + $0x48] sm:$0xff] }
  0x18   : > { %292 = vadd.xlane.f32.xlu0 %v291_v10 }
  0x19   : > { %918 = vperm.xlu1 %3275, %v908_v56  }
  0x1d   : > { %923 = vperm.xlu1 %3275, %v909_v58   ;;  %v3285_v58 = vld [vmem:[%s3930_s5 + $0x18] sm:$0xff]  }
  0x21   : > { %928 = vperm.xlu1 %3275, %v910_v60  }
  0x25   : > { %1310 = vperm.xlu1 %3275, %v2737_v62  }
  0x29   : > { %1315 = vperm.xlu1 %3275, %v2738_v63  }
  0x2d   : > { %1320 = vperm.xlu1 %3275, %v2739_v4  }
  0x31   : > { %1325 = vperm.xlu1 %3275, %v2740_v6  }
  0x35   : > { %1707 = vperm.xlu1 %3275, %v2785_v7  }
  0x39   : > { %1712 = vperm.xlu1 %3275, %v2786_v9  }
  0xa5   : > { %v293_v11 = vpop.xlane.xlu0 %292 }
  0xa6   : > { %v294_v12 = vrot.slane %v293_v11, 4 }
  0xa8   : > { %v295_v13 = vadd.f32 %v294_v12, %v293_v11 }
  0xaa   : > { %v296_v14 = vrot.slane %v295_v13, 2 }
  0xac   : > { %v297_v15 = vadd.f32 %v296_v14, %v295_v13  ;;  %v2788_v14 = vld [vmem:[%s3931_s6 + $0x58] sm:$0xff] }
  0xad   : > { %1722 = vperm.xlu1 %3275, %v2788_v14   ;;  %v3289_v14 = vld [vmem:[%s3930_s5 + $0x28] sm:$0xff]  }
  0xae   : > { %v298_v16 = vrot.slane %v297_v15, 1 }
  0xb0   : > { %v299_v17 = vadd.f32 %v298_v16, %v297_v15  ;;  %v2830_v15 = vld [vmem:[%s3931_s6 + $0x68] sm:$0xff]  ;;  %v2832_v16 = vld [vmem:[%s3931_s6 + $0x78] sm:$0xff] }
  0xb1   : > { %2109 = vperm.xlu1 %3275, %v2830_v15  }
  0xb2   : > { %3249 = vpush %v299_v17  ;;  %v2870_v17 = vld [vmem:[%s3931_s6 + $0x88] sm:$0xff] }
  0xb5   : > { %2119 = vperm.xlu1 %3275, %v2832_v16  }
  0xb9   : > { %2478 = vperm.xlu1 %3275, %v2870_v17  }
  0xe3   : > { %s3250_s30 = spop %3249 }
  0xe4   : > { %s303_s8 = smul.f32 0.0009765625, %s3250_s30 }
  0xe6   : > { %v304_v18 = vstv %s303_s8 }
  0xe7   : > { %v305_v19 = vsub.f32 %v3392_v0, %v304_v18  ;;  %v306_v20 = vsub.f32 %v3394_v1, %v304_v18  ;;  %v307_v21 = vsub.f32 %v3396_v2, %v304_v18  ;;  %v308_v22 = vsub.f32 %v3398_v3, %v304_v18  ;;  %v2872_v18 = vld [vmem:[%s3931_s6 + $0x98] sm:$0xff] }
  0xe8   : > { %2488 = vperm.xlu1 %3275, %v2872_v18  }
  0xe9   : > { %v309_v23 = vmul.f32 %v305_v19, %v305_v19  ;;  %v310_v24 = vmul.f32 %v306_v20, %v306_v20  ;;  %v311_v25 = vmul.f32 %v307_v21, %v307_v21  ;;  %v312_v26 = vmul.f32 %v308_v22, %v308_v22 }
  0xeb   : > { %v313_v27 = vsel %vm284_vm0, %v309_v23, 0.0  ;;  %v314_v28 = vsel %vm284_vm0, %v310_v24, 0.0  ;;  %v316_v30 = vsel %vm284_vm0, %v311_v25, 0.0  ;;  %v318_v32 = vsel %vm284_vm0, %v312_v26, 0.0 }
  0xec   : > { %v315_v29 = vadd.f32 %v314_v28, %v313_v27  ;;  %v3283_v27 = vld [vmem:[%s3927_s2 + $0x8] sm:$0xff]   ;;  %v541_v28 = vlaneseq }
  0xee   : > { %v317_v31 = vadd.f32 %v316_v30, %v315_v29 }
  0xf0   : > { %v319_v33 = vadd.f32 %v318_v32, %v317_v31 }
  0xf2   : > { %320 = vadd.xlane.f32.xlu0 %v319_v33 }
 0x108   : > { %529 = vperm.xlu0 %3276, %v515_v51  }
 0x10c   : > { %1717 = vperm.xlu0 %3276, %v2787_v53  }
 0x110   : > { %2104 = vperm.xlu0 %3276, %v2829_v55  }
 0x114   : > { %2114 = vperm.xlu0 %3276, %v2831_v57   ;;  %v3284_v57 = vld [vmem:[%s3930_s5 + $0x10] sm:$0xff]  }
 0x118   : > { %2473 = vperm.xlu0 %3276, %v2869_v59   ;;  %v3286_v59 = vld [vmem:[%s3930_s5] sm:$0xff]  }
 0x11c   : > { %2483 = vperm.xlu0 %3276, %v2871_v61  }
 0x17f   : > { %v321_v34 = vpop.xlane.xlu0 %320 }
 0x180   : > { %v322_v35 = vrot.slane %v321_v34, 4 }
 0x182   : > { %v323_v36 = vadd.f32 %v322_v35, %v321_v34  ;;  %v3331_v35 = vmov 1.0|1.0   ;;  %v3308_v34 = vld [vmem:[%s3930_s5 + $0xd0] sm:$0xff]  }
 0x184   : > { %v324_v38 = vrot.slane %v323_v36, 2 }
 0x186   : > { %v325_v41 = vadd.f32 %v324_v38, %v323_v36  ;;  %v3335_v36 = vmov 0.0|0.0  }
 0x187   : > { %v530_v51 = vpop.permute.xlu0 %529 }
 0x188   : > { %v326_v43 = vrot.slane %v325_v41, 1 }
 0x18a   : > { %v327_v44 = vadd.f32 %v326_v43, %v325_v41  ;;  %v520_v43 = vpop.permute.xlu1 %519 }
 0x18c   : > { %3251 = vpush %v327_v44 }
 0x18e   : > { %v525_v44 = vpop.permute.xlu1 %524 }
 0x192   : > { %v535_v47 = vpop.permute.xlu1 %534 }
 0x196   : > { %v914_v16 = vpop.permute.xlu1 %913 }
 0x19a   : > { %v919_v17 = vpop.permute.xlu1 %918 }
 0x19e   : > { %v924_v18 = vpop.permute.xlu1 %923 }
 0x1bd   : > { %s3252_s11 = spop %3251 }
 0x1be   : > { %s331_s12 = smul.f32 0.0009765625, %s3252_s11 }
 0x1c0   : > { %v332_v5 = vstv %s331_s12 }
 0x1c1   : > { %3314 = vrsqrt.f32 %v332_v5  ;;  %vm335_vm3 = vcmp.eq.f32.partialorder %v332_v5, inf  ;;  %v338_v11 = vand.u32 2147483648, %v332_v5  ;;  %vm337_vm4 = vcmp.eq.f32.partialorder %v332_v5, 0.0 }
 0x1cb   : > { %v3315_v8 = vpop.eup %3314 }
 0x1cc   : > { %v334_v10 = vmul.f32 %v3315_v8, %v332_v5 }
 0x1ce   : > { %v336_v12 = vsel %vm335_vm3, %v332_v5, %v334_v10 }
 0x1cf   : > { %v339_v13 = vsel %vm337_vm4, %v338_v11, %v336_v12  ;;  %v3287_v12 = vld [vmem:[%s3930_s5 + $0x8] sm:$0xff]  }
 0x1d0   : > { %3253 = vpush %v339_v13  ;;  %v3288_v13 = vld [vmem:[%s3930_s5 + $0x20] sm:$0xff]  }
 0x201   : > { %s3254_s11 = spop %3253 }
 0x202   : > { %s341_s12 = sadd.f32 1e-08, %s3254_s11 }
 0x204   : > { %v342_v19 = vstv %s341_s12 }
 0x205   : > { %3316 = vrcp.f32 %v342_v19 }
 0x20f   : > { %v3317_v20 = vpop.eup %3316 }
 0x210   : > { %v344_v21 = vmul.f32 %v3317_v20, %v3392_v0  ;;  %v345_v22 = vmul.f32 %v3317_v20, %v3394_v1  ;;  %v346_v23 = vmul.f32 %v3317_v20, %v3396_v2  ;;  %v347_v24 = vmul.f32 %v3317_v20, %v3398_v3 }
 0x211   : > { %v542_v0 = vshrl.u32 %v541_v28, 7  ;;  %v547_v1 = vand.u32 127, %v541_v28 }
 0x212   : > { %v352_v25 = vpack.c.bf16 %v345_v22, %v344_v21  ;;  %v353_v26 = vpack.c.bf16 %v347_v24, %v346_v23  ;;  %v929_v22 = vpop.permute.xlu1 %928 }
 0x213   : > { %v543_v29 = vadd.s32 8, %v542_v0  ;;  %v3515_v30 = vsub.s32 %v542_v0, %v547_v1  ;;  %v3519_v3 = vsub.s32 %v547_v1, %v542_v0  ;;  %v544_v32 = vadd.s32 16, %v542_v0 }
 0x214   : > { %2996 = vmatprep.subr.bf16.mxu0 %v352_v25  ;;  %v545_v33 = vadd.s32 24, %v542_v0 }
 0x215   : > { %2997 = vmatpush3.bf16.msra.mxu0 %v352_v25  ;;  %v3517_v2 = vsub.s32 %v543_v29, %v547_v1  ;;  %v3521_v31 = vsub.s32 %v547_v1, %v543_v29  ;;  %vm570_vm5 = vcmp.eq.s32.totalorder %v3515_v30, 1  ;;  %vm552_vm8 = vcmp.eq.s32.totalorder %v3519_v3, 1 }
 0x216   : > { %2998 = vmatprep.subr.bf16.mxu0 %v353_v26  ;;  %v3538_v37 = vsub.s32 %v544_v32, %v547_v1  ;;  %v3540_v38 = vsub.s32 %v545_v33, %v547_v1  ;;  %v3548_v39 = vsub.s32 %v547_v1, %v544_v32  ;;  %v3550_v40 = vsub.s32 %v547_v1, %v545_v33 }
 0x217   : > { %vm571_vm6 = vcmp.eq.s32.totalorder %v3517_v2, 1  ;;  %vm553_vm9 = vcmp.eq.s32.totalorder %v3521_v31, 1  ;;  %vm951_vm2 = vcmp.eq.s32.totalorder %v3519_v3, 3  ;;  %vm952_vm3 = vcmp.eq.s32.totalorder %v3521_v31, 3 }
 0x218   : > { %vm3525_vm7 = vmpackc.low %vm571_vm6, %vm570_vm5  ;;  %vm572_vm11 = vcmp.eq.s32.totalorder %v3538_v37, 1  ;;  %vm573_vm12 = vcmp.eq.s32.totalorder %v3540_v38, 1  ;;  %vm554_vm14 = vcmp.eq.s32.totalorder %v3548_v39, 1  ;;  %vm555_vm15 = vcmp.eq.s32.totalorder %v3550_v40, 1 }
 0x219   : > { %2999 = vmatpush3.bf16.msra.mxu0 %v353_v26  ;;  %3012 = vmatprep.subr.msk.bf16.mxu1 %vm3525_vm7, %v3331_v35  ;;  %vm3534_vm10 = vmpackc.low %vm553_vm9, %vm552_vm8  ;;  %vm953_vm5 = vcmp.eq.s32.totalorder %v3548_v39, 3  ;;  %vm954_vm6 = vcmp.eq.s32.totalorder %v3550_v40, 3  ;;  %vm965_vm9 = vcmp.eq.s32.totalorder %v3515_v30, 3 }
 0x21a   : > { %3004 = vmatprep.subr.msk.bf16.mxu0 %vm3534_vm10, %v3331_v35  ;;  %3013 = vmatpush3.bf16.msk.msra.mxu1 %vm3525_vm7, %v3331_v35  ;;  %vm3557_vm13 = vmpackc.low %vm573_vm12, %vm572_vm11  ;;  %vm966_vm11 = vcmp.eq.s32.totalorder %v3517_v2, 3 }
 0x21b   : > { %3014 = vmatprep.subr.msk.bf16.mxu1 %vm3557_vm13, %v3331_v35  ;;  %vm3566_vm1 = vmpackc.low %vm555_vm15, %vm554_vm14 }
 0x21c   : > { %3001 = vmatmul.mubr.msk.bf16.vlgmr.msra.gmra.mrb[0].mxu0 %vm284_vm0, %v3283_v27  ;;  %vm2701_vm4 = vmpackc.low %vm952_vm3, %vm951_vm2 }
 0x21d   : > { %3005 = vmatpush3.bf16.msk.msra.mxu0 %vm3534_vm10, %v3331_v35  ;;  %vm2703_vm8 = vmpackc.low %vm954_vm6, %vm953_vm5  ;;  %vm968_vm5 = vcmp.eq.s32.totalorder %v3540_v38, 3 }
 0x21e   : > { %3006 = vmatprep.subr.msk.bf16.mxu0 %vm3566_vm1, %v3331_v35  ;;  %3015 = vmatpush3.bf16.msk.msra.mxu1 %vm3557_vm13, %v3331_v35  ;;  %vm3629_vm12 = vmpackc.low %vm966_vm11, %vm965_vm9  ;;  %vm1349_vm9 = vcmp.eq.s32.totalorder %v3521_v31, 9 }
 0x221   : > { %3007 = vmatpush3.bf16.msk.msra.mxu0 %vm3566_vm1, %v3331_v35 }
 0x222   : > { %3044 = vmatprep.subr.msk.bf16.mxu0 %vm2701_vm4, %v3331_v35 }
 0x2ef   : > { %v3002_v45 = vpop.f32.mrb[0].mxu0 }
 0x2f0   : > { %v498_v46 = vpop.f32.mrb[1].mxu0  ;;  %v3585_v54 = vadd.f32 %v3002_v45, %v530_v51  ;;  %v3291_v51 = vld [vmem:[%s3930_s5 + $0x48] sm:$0xff]  }
 0x2f1   : > { %v3003_v48 = vpop.f32.mrb[2].mxu0  ;;  %v3581_v52 = vadd.f32 %v520_v43, %v498_v46 }
 0x2f2   : > { %v3579_v49 = vadd.f32 %v3003_v48, %v535_v47  ;;  %v501_v50 = vpop.f32.mrb[3].mxu0 }
 0x2f3   : > { %v3583_v53 = vadd.f32 %v525_v44, %v501_v50  ;;  %v3290_v50 = vld [vmem:[%s3930_s5 + $0x40] sm:$0xff]  }
 0x2f4   : > { %v585_v56 = vpack.c.bf16 %v3579_v49, %v3585_v54 }
 0x2f5   : > { %v584_v55 = vpack.c.bf16 %v3583_v53, %v3581_v52 }
 0x2f7   : > { %3008 = vmatprep.mubr.msk.bf16.mxu0 %vm284_vm0, %v584_v55  ;;  %3016 = vmatprep.mubr.msk.bf16.mxu1 %vm284_vm0, %v584_v55 }
 0x2f8   : > { %3020 = vmatprep.subr.bf16.mxu1 %v584_v55  ;;  %3009 = vmatmul.mubr.msk.bf16.vlgmr.msra.gmra.mrb[4].mxu0 %vm284_vm0, %v585_v56 }
 0x2f9   : > { %3017 = vmatmul.mubr.msk.bf16.vlgmr.msra.gmra.mrb[0].mxu1 %vm284_vm0, %v585_v56  ;;  %3045 = vmatpush3.bf16.msk.msra.mxu0 %vm2701_vm4, %v3331_v35  ;;  %vm967_vm4 = vcmp.eq.s32.totalorder %v3538_v37, 3 }
 0x2fa   : > { %3021 = vmatpush3.bf16.msra.mxu1 %v584_v55  ;;  %3024 = vmatprep.mubr.msk.bf16.mxu1 %vm284_vm0, %v3284_v57  ;;  %vm2709_vm6 = vmpackc.low %vm968_vm5, %vm967_vm4 }
 0x2fb   : > { %3022 = vmatprep.subr.bf16.mxu1 %v585_v56  ;;  %3046 = vmatprep.subr.msk.bf16.mxu0 %vm2703_vm8, %v3331_v35 }
 0x2fd   : > { %3047 = vmatpush3.bf16.msk.msra.mxu0 %vm2703_vm8, %v3331_v35  ;;  %vm1348_vm8 = vcmp.eq.s32.totalorder %v3519_v3, 9 }
 0x2fe   : > { %3023 = vmatpush3.bf16.msra.mxu1 %v585_v56  ;;  %3052 = vmatprep.subr.msk.bf16.mxu0 %vm3629_vm12, %v3331_v35  ;;  %vm2748_vm11 = vmpackc.low %vm1349_vm9, %vm1348_vm8 }
 0x301   : > { %3025 = vmatmul.mubr.msk.bf16.vlgmr.msra.gmra.mrb[4].mxu1 %vm284_vm0, %v3285_v58 }
 0x302   : > { %3032 = vmatprep.mubr.msk.bf16.mxu1 %vm284_vm0, %v3286_v59 }
 0x3cb   : > { %v3010_v60 = vpop.f32.mrb[4].mxu0 }
 0x3cc   : > { %v3018_v61 = vpop.f32.mrb[0].mxu1  ;;  %v626_v62 = vpop.f32.mrb[5].mxu0 }
 0x3cd   : > { %v677_v63 = vpop.f32.mrb[1].mxu1  ;;  %v3011_v4 = vpop.f32.mrb[6].mxu0 }
 0x3ce   : > { %v642_v5 = vpack.c.bf16 %v3011_v4, %v3010_v60  ;;  %v3019_v6 = vpop.f32.mrb[2].mxu1  ;;  %v629_v7 = vpop.f32.mrb[7].mxu0 }
 0x3cf   : > { %v693_v8 = vpack.c.bf16 %v3019_v6, %v3018_v61  ;;  %v641_v9 = vpack.c.bf16 %v629_v7, %v626_v62  ;;  %v680_v10 = vpop.f32.mrb[3].mxu1  ;;  %v3293_v62 = vld [vmem:[%s3930_s5 + $0x38] sm:$0xff]  }
 0x3d0   : > { %v692_v11 = vpack.c.bf16 %v680_v10, %v677_v63  ;;  %v3295_v7 = vld [vmem:[%s3930_s5 + $0x58] sm:$0xff]  }
 0x3d1   : > { %3028 = vmatprep.subr.bf16.mxu1 %v641_v9 }
 0x3d2   : > { %3029 = vmatpush3.bf16.msra.mxu1 %v641_v9  ;;  %v3333_v9 = vmov 0.0  }
 0x3d3   : > { %3030 = vmatprep.subr.bf16.mxu1 %v642_v5 }
 0x3d6   : > { %3031 = vmatpush3.bf16.msra.mxu1 %v642_v5  ;;  %v3294_v5 = vld [vmem:[%s3930_s5 + $0x50] sm:$0xff]  }
 0x3d7   : > { %3036 = vmatprep.subr.bf16.mxu1 %v692_v11 }
 0x3d9   : > { %3033 = vmatmul.mubr.msk.bf16.vlgmr.msra.gmra.mrb[4].mxu1 %vm284_vm0, %v3287_v12  ;;  %v1311_v12 = vpop.permute.xlu1 %1310 }
 0x3da   : > { %3037 = vmatpush3.bf16.msra.mxu1 %v692_v11  ;;  %3040 = vmatprep.mubr.msk.bf16.mxu1 %vm284_vm0, %v3288_v13 }
 0x3db   : > { %3038 = vmatprep.subr.bf16.mxu1 %v693_v8 }
 0x3dd   : > { %v1316_v13 = vpop.permute.xlu1 %1315 }
 0x3de   : > { %3039 = vmatpush3.bf16.msra.mxu1 %v693_v8  ;;  %v3332_v8 = vmov 1.0  }
 0x3df   : > { %3084 = vmatprep.subr.msk.bf16.mxu1 %vm2748_vm11, %v3331_v35  ;;  %v3696_v10 = vpack.c.bf16 %v3332_v8, %v3333_v9 }
 0x3e5   : > { %3041 = vmatmul.mubr.msk.bf16.vlgmr.msra.gmra.mrb[4].mxu1 %vm284_vm0, %v3289_v14  ;;  %v1321_v14 = vpop.permute.xlu1 %1320 }
 0x3e6   : > { %3085 = vmatpush3.bf16.msk.msra.mxu1 %vm2748_vm11, %v3331_v35  ;;  %vm1364_vm11 = vcmp.eq.s32.totalorder %v3538_v37, 9  ;;  %v3296_v37 = vld [vmem:[%s3930_s5 + $0x70] sm:$0xff]  }
 0x4b8   : > { %v3042_v19 = vpop.f32.mrb[4].mxu1 }
 0x4b9   : > { %v933_v20 = vadd.f32 %v3042_v19, %v924_v18  ;;  %v888_v21 = vpop.f32.mrb[5].mxu1 }
 0x4ba   : > { %v931_v23 = vadd.f32 %v914_v16, %v888_v21  ;;  %v3043_v24 = vpop.f32.mrb[6].mxu1 }
 0x4bb   : > { %v941_v25 = vmul.f32 0.2, %v933_v20  ;;  %v934_v26 = vadd.f32 %v3043_v24, %v929_v22  ;;  %v891_v27 = vpop.f32.mrb[7].mxu1  ;;  %vm937_vm14 = vcmp.gt.f32.partialorder %v933_v20, 0.0 }
 0x4bc   : > { %vm935_vm15 = vcmp.gt.f32.partialorder %v931_v23, 0.0  ;;  %v939_v28 = vmul.f32 0.2, %v931_v23  ;;  %v932_v0 = vadd.f32 %v919_v17, %v891_v27  ;;  %v1326_v17 = vpop.permute.xlu1 %1325 }
 0x4bd   : > { %vm938_vm2 = vcmp.gt.f32.partialorder %v934_v26, 0.0  ;;  %v942_v29 = vmul.f32 0.2, %v934_v26  ;;  %v945_v32 = vsel %vm937_vm14, %v933_v20, %v941_v25  ;;  %vm1351_vm14 = vcmp.eq.s32.totalorder %v3550_v40, 9 }
 0x4be   : > { %v943_v1 = vsel %vm935_vm15, %v931_v23, %v939_v28  ;;  %vm936_vm3 = vcmp.gt.f32.partialorder %v932_v0, 0.0  ;;  %v940_v30 = vmul.f32 0.2, %v932_v0  ;;  %v3646_v47 = vadd.f32 %v945_v32, %v3585_v54 }
 0x4bf   : > { %v946_v33 = vsel %vm938_vm2, %v934_v26, %v942_v29  ;;  %v3640_v45 = vadd.f32 %v943_v1, %v3581_v52  ;;  %v3292_v52 = vld [vmem:[%s3930_s5 + $0x30] sm:$0xff]   ;;  %vm1363_vm2 = vcmp.eq.s32.totalorder %v3517_v2, 9 }
 0x4c0   : > { %v3637_v43 = vadd.f32 %v946_v33, %v3579_v49  ;;  %v944_v44 = vsel %vm936_vm3, %v932_v0, %v940_v30  ;;  %vm3334_vm3 = vmmov 1   ;;  %v1708_v42 = vpop.permute.xlu1 %1707 }
 0x4c1   : > { %v3643_v46 = vadd.f32 %v944_v44, %v3583_v53  ;;  %vm3699_vm4 = vmpackc.low %vm1363_vm2, %vm3334_vm3  ;;  %vm1746_vm2 = vcmp.eq.s32.totalorder %v3521_v31, 27 }
 0x4c2   : > { %v980_v49 = vpack.c.bf16 %v3637_v43, %v3646_v47 }
 0x4c3   : > { %v979_v48 = vpack.c.bf16 %v3643_v46, %v3640_v45 }
 0x4c5   : > { %3048 = vmatprep.mubr.msk.bf16.mxu0 %vm284_vm0, %v979_v48 }
 0x4c6   : > { %3049 = vmatmul.mubr.msk.bf16.vlgmr.msra.gmra.mrb[8].mxu0 %vm284_vm0, %v980_v49 }
 0x4c7   : > { %3053 = vmatpush3.bf16.msk.msra.mxu0 %vm3629_vm12, %v3331_v35  ;;  %3056 = vmatprep.mubr.msk.bf16.mxu0 %vm284_vm0, %v979_v48  ;;  %vm1350_vm12 = vcmp.eq.s32.totalorder %v3548_v39, 9 }
 0x4c8   : > { %3054 = vmatprep.subr.msk.bf16.mxu0 %vm2709_vm6, %v3331_v35  ;;  %vm2750_vm15 = vmpackc.low %vm1351_vm14, %vm1350_vm12  ;;  %vm1365_vm12 = vcmp.eq.s32.totalorder %v3540_v38, 9 }
 0x4c9   : > { %3086 = vmatprep.subr.msk.bf16.mxu1 %vm2750_vm15, %v3331_v35  ;;  %vm2757_vm14 = vmpackc.low %vm1365_vm12, %vm1364_vm11  ;;  %vm1762_vm12 = vcmp.eq.s32.totalorder %v3540_v38, 27  ;;  %v3302_v38 = vld [vmem:[%s3930_s5 + $0xa0] sm:$0xff]  }
 0x4ca   : > { %3087 = vmatpush3.bf16.msk.msra.mxu1 %vm2750_vm15, %v3331_v35  ;;  %vm1745_vm15 = vcmp.eq.s32.totalorder %v3519_v3, 27  ;;  %v1713_v3 = vpop.permute.xlu1 %1712 }
 0x4cb   : > { %3055 = vmatpush3.bf16.msk.msra.mxu0 %vm2709_vm6, %v3331_v35  ;;  %3092 = vmatprep.subr.msk.bf16.mxu1 %vm3699_vm4, %v3696_v10 }
 0x4cc   : > { %3060 = vmatprep.subr.bf16.mxu0 %v979_v48 }
 0x4ce   : > { %3057 = vmatmul.mubr.msk.bf16.vlgmr.msra.gmra.mrb[12].mxu0 %vm284_vm0, %v980_v49 }
 0x4cf   : > { %3061 = vmatpush3.bf16.msra.mxu0 %v979_v48  ;;  %3064 = vmatprep.mubr.msk.bf16.mxu0 %vm284_vm0, %v3290_v50 }
 0x4d0   : > { %3062 = vmatprep.subr.bf16.mxu0 %v980_v49 }
 0x4d3   : > { %3063 = vmatpush3.bf16.msra.mxu0 %v980_v49 }
 0x4d6   : > { %3065 = vmatmul.mubr.msk.bf16.vlgmr.msra.gmra.mrb[16].mxu0 %vm284_vm0, %v3291_v51 }
 0x4d7   : > { %3072 = vmatprep.mubr.msk.bf16.mxu0 %vm284_vm0, %v3292_v52 }
 0x599   : > { %v3050_v53 = vpop.f32.mrb[8].mxu0 }
 0x59a   : > { %v1021_v54 = vpop.f32.mrb[9].mxu0 }
 0x59b   : > { %v3051_v55 = vpop.f32.mrb[10].mxu0 }
 0x59c   : > { %v1037_v56 = vpack.c.bf16 %v3051_v55, %v3050_v53  ;;  %v1024_v57 = vpop.f32.mrb[11].mxu0 }
 0x59d   : > { %v1036_v58 = vpack.c.bf16 %v1024_v57, %v1021_v54 }
 0x59f   : > { %3068 = vmatprep.subr.bf16.mxu0 %v1036_v58 }
 0x5a0   : > { %3069 = vmatpush3.bf16.msra.mxu0 %v1036_v58 }
 0x5a1   : > { %v3058_v59 = vpop.f32.mrb[12].mxu0  ;;  %3070 = vmatprep.subr.bf16.mxu0 %v1037_v56 }
 0x5a2   : > { %v1072_v60 = vpop.f32.mrb[13].mxu0 }
 0x5a3   : > { %v3059_v61 = vpop.f32.mrb[14].mxu0 }
 0x5a4   : > { %v1088_v63 = vpack.c.bf16 %v3059_v61, %v3058_v59  ;;  %v1075_v4 = vpop.f32.mrb[15].mxu0  ;;  %3071 = vmatpush3.bf16.msra.mxu0 %v1037_v56  ;;  %v3299_v56 = vld [vmem:[%s3930_s5 + $0x68] sm:$0xff]   ;;  %v3300_v59 = vld [vmem:[%s3930_s5 + $0x80] sm:$0xff]  }
 0x5a5   : > { %v1087_v6 = vpack.c.bf16 %v1075_v4, %v1072_v60  ;;  %v3301_v61 = vld [vmem:[%s3930_s5 + $0x88] sm:$0xff]  }
 0x5a7   : > { %3073 = vmatmul.mubr.msk.bf16.vlgmr.msra.gmra.mrb[16].mxu0 %vm284_vm0, %v3293_v62  ;;  %3076 = vmatprep.subr.bf16.mxu0 %v1087_v6  ;;  %v1718_v62 = vpop.permute.xlu0 %1717 }
 0x5a8   : > { %3077 = vmatpush3.bf16.msra.mxu0 %v1087_v6  ;;  %3080 = vmatprep.mubr.msk.bf16.mxu0 %vm284_vm0, %v3294_v5  ;;  %v1723_v5 = vpop.permute.xlu1 %1722 }
 0x5a9   : > { %3078 = vmatprep.subr.bf16.mxu0 %v1088_v63 }
 0x5ac   : > { %3079 = vmatpush3.bf16.msra.mxu0 %v1088_v63 }
 0x5b3   : > { %3081 = vmatmul.mubr.msk.bf16.vlgmr.msra.gmra.mrb[16].mxu0 %vm284_vm0, %v3295_v7 }
 0x686   : > { %v3082_v15 = vpop.f32.mrb[16].mxu0 }
 0x687   : > { %v1330_v16 = vadd.f32 %v3082_v15, %v1321_v14  ;;  %v1284_v2 = vpop.f32.mrb[17].mxu0 }
 0x688   : > { %v1328_v18 = vadd.f32 %v1311_v12, %v1284_v2  ;;  %v3083_v19 = vpop.f32.mrb[18].mxu0 }
 0x689   : > { %v1338_v20 = vmul.f32 0.2, %v1330_v16  ;;  %v1331_v21 = vadd.f32 %v3083_v19, %v1326_v17  ;;  %v1287_v22 = vpop.f32.mrb[19].mxu0  ;;  %vm1334_vm5 = vcmp.gt.f32.partialorder %v1330_v16, 0.0 }
 0x68a   : > { %vm1332_vm6 = vcmp.gt.f32.partialorder %v1328_v18, 0.0  ;;  %v1336_v23 = vmul.f32 0.2, %v1328_v18  ;;  %v1329_v24 = vadd.f32 %v1316_v13, %v1287_v22 }
 0x68b   : > { %vm1335_vm8 = vcmp.gt.f32.partialorder %v1331_v21, 0.0  ;;  %v1339_v25 = vmul.f32 0.2, %v1331_v21  ;;  %v1342_v28 = vsel %vm1334_vm5, %v1330_v16, %v1338_v20  ;;  %vm1748_vm5 = vcmp.eq.s32.totalorder %v3550_v40, 27 }
 0x68c   : > { %v1340_v26 = vsel %vm1332_vm6, %v1328_v18, %v1336_v23  ;;  %vm1333_vm9 = vcmp.gt.f32.partialorder %v1329_v24, 0.0  ;;  %v1337_v27 = vmul.f32 0.2, %v1329_v24  ;;  %v3716_v33 = vadd.f32 %v1342_v28, %v3646_v47  ;;  %v3303_v23 = vld [vmem:[%s3930_s5 + $0xa8] sm:$0xff]  }
 0x68d   : > { %v1343_v0 = vsel %vm1335_vm8, %v1331_v21, %v1339_v25  ;;  %v3710_v30 = vadd.f32 %v1340_v26, %v3640_v45  ;;  %v3297_v45 = vld [vmem:[%s3930_s5 + $0x78] sm:$0xff]  }
 0x68e   : > { %v3707_v29 = vadd.f32 %v1343_v0, %v3637_v43  ;;  %v1341_v1 = vsel %vm1333_vm9, %v1329_v24, %v1337_v27 }
 0x68f   : > { %v3713_v32 = vadd.f32 %v1341_v1, %v3643_v46  ;;  %v3298_v46 = vld [vmem:[%s3930_s5 + $0x60] sm:$0xff]  }
 0x690   : > { %v1377_v43 = vpack.c.bf16 %v3707_v29, %v3716_v33 }
 0x691   : > { %v1376_v44 = vpack.c.bf16 %v3713_v32, %v3710_v30 }
 0x693   : > { %3088 = vmatprep.mubr.msk.bf16.mxu1 %vm284_vm0, %v1376_v44 }
 0x694   : > { %3089 = vmatmul.mubr.msk.bf16.vlgmr.msra.gmra.mrb[8].mxu1 %vm284_vm0, %v1377_v43 }
 0x695   : > { %3093 = vmatpush3.bf16.msk.msra.mxu1 %vm3699_vm4, %v3696_v10  ;;  %3096 = vmatprep.mubr.msk.bf16.mxu1 %vm284_vm0, %v1376_v44  ;;  %vm2794_vm4 = vmpackc.low %vm1746_vm2, %vm1745_vm15 }
 0x696   : > { %3094 = vmatprep.subr.msk.bf16.mxu1 %vm2757_vm14, %v3331_v35  ;;  %3124 = vmatprep.subr.msk.bf16.mxu0 %vm2794_vm4, %v3331_v35 }
 0x697   : > { %3125 = vmatpush3.bf16.msk.msra.mxu0 %vm2794_vm4, %v3331_v35 }
 0x699   : > { %3095 = vmatpush3.bf16.msk.msra.mxu1 %vm2757_vm14, %v3331_v35  ;;  %vm2800_vm14 = vmpackc.low %vm1762_vm12, %vm3334_vm3 }
 0x69a   : > { %3100 = vmatprep.subr.bf16.mxu1 %v1376_v44 }
 0x69c   : > { %3097 = vmatmul.mubr.msk.bf16.vlgmr.msra.gmra.mrb[12].mxu1 %vm284_vm0, %v1377_v43 }
 0x69d   : > { %3101 = vmatpush3.bf16.msra.mxu1 %v1376_v44  ;;  %3104 = vmatprep.mubr.msk.bf16.mxu1 %vm284_vm0, %v3296_v37 }
 0x69e   : > { %3102 = vmatprep.subr.bf16.mxu1 %v1377_v43 }
 0x6a1   : > { %3103 = vmatpush3.bf16.msra.mxu1 %v1377_v43  ;;  %v3306_v43 = vld [vmem:[%s3930_s5 + $0xb0] sm:$0xff]  }
 0x6a4   : > { %3105 = vmatmul.mubr.msk.bf16.vlgmr.msra.gmra.mrb[16].mxu1 %vm284_vm0, %v3297_v45  ;;  %v3307_v45 = vld [vmem:[%s3930_s5 + $0xb8] sm:$0xff]  }
 0x6a5   : > { %3112 = vmatprep.mubr.msk.bf16.mxu1 %vm284_vm0, %v3298_v46  ;;  %v2105_v46 = vpop.permute.xlu0 %2104 }
 0x767   : > { %v3090_v47 = vpop.f32.mrb[8].mxu1 }
 0x768   : > { %v1418_v48 = vpop.f32.mrb[9].mxu1 }
 0x769   : > { %v3091_v49 = vpop.f32.mrb[10].mxu1 }
 0x76a   : > { %v1434_v50 = vpack.c.bf16 %v3091_v49, %v3090_v47  ;;  %v1421_v51 = vpop.f32.mrb[11].mxu1  ;;  %v2110_v47 = vpop.permute.xlu1 %2109 }
 0x76b   : > { %v1433_v52 = vpack.c.bf16 %v1421_v51, %v1418_v48  ;;  %v2115_v48 = vpop.permute.xlu0 %2114 }
 0x76d   : > { %3108 = vmatprep.subr.bf16.mxu1 %v1433_v52 }
 0x76e   : > { %3109 = vmatpush3.bf16.msra.mxu1 %v1433_v52  ;;  %v2120_v52 = vpop.permute.xlu1 %2119 }
 0x76f   : > { %v3098_v53 = vpop.f32.mrb[12].mxu1  ;;  %3110 = vmatprep.subr.bf16.mxu1 %v1434_v50 }
 0x770   : > { %v1469_v54 = vpop.f32.mrb[13].mxu1 }
 0x771   : > { %v3099_v55 = vpop.f32.mrb[14].mxu1 }
 0x772   : > { %v1485_v57 = vpack.c.bf16 %v3099_v55, %v3098_v53  ;;  %v1472_v58 = vpop.f32.mrb[15].mxu1  ;;  %3111 = vmatpush3.bf16.msra.mxu1 %v1434_v50 }
 0x773   : > { %v1484_v60 = vpack.c.bf16 %v1472_v58, %v1469_v54 }
 0x775   : > { %3113 = vmatmul.mubr.msk.bf16.vlgmr.msra.gmra.mrb[16].mxu1 %vm284_vm0, %v3299_v56  ;;  %3116 = vmatprep.subr.bf16.mxu1 %v1484_v60 }
 0x776   : > { %3117 = vmatpush3.bf16.msra.mxu1 %v1484_v60  ;;  %3120 = vmatprep.mubr.msk.bf16.mxu1 %vm284_vm0, %v3300_v59 }
 0x777   : > { %3118 = vmatprep.subr.bf16.mxu1 %v1485_v57 }
 0x77a   : > { %3119 = vmatpush3.bf16.msra.mxu1 %v1485_v57 }
 0x77b   : > { %3164 = vmatprep.subr.msk.bf16.mxu1 %vm3534_vm10, %v3331_v35 }
 0x781   : > { %3121 = vmatmul.mubr.msk.bf16.vlgmr.msra.gmra.mrb[16].mxu1 %vm284_vm0, %v3301_v61 }
 0x782   : > { %3165 = vmatpush3.bf16.msk.msra.mxu1 %vm3534_vm10, %v3331_v35  ;;  %vm1747_vm10 = vcmp.eq.s32.totalorder %v3548_v39, 27 }
 0x783   : > { %3166 = vmatprep.subr.msk.bf16.mxu1 %vm3566_vm1, %v3331_v35  ;;  %vm2796_vm6 = vmpackc.low %vm1748_vm5, %vm1747_vm10 }
 0x784   : > { %3126 = vmatprep.subr.msk.bf16.mxu0 %vm2796_vm6, %v3331_v35 }
 0x785   : > { %3127 = vmatpush3.bf16.msk.msra.mxu0 %vm2796_vm6, %v3331_v35 }
 0x786   : > { %3167 = vmatpush3.bf16.msk.msra.mxu1 %vm3566_vm1, %v3331_v35  ;;  %3132 = vmatprep.subr.bf16.mxu0 %v3335_v36 }
 0x787   : > { %3172 = vmatprep.subr.msk.bf16.mxu1 %vm3525_vm7, %v3331_v35 }
 0x854   : > { %v3122_v31 = vpop.f32.mrb[16].mxu1 }
 0x855   : > { %v1727_v63 = vadd.f32 %v3122_v31, %v1718_v62  ;;  %v1681_v4 = vpop.f32.mrb[17].mxu1 }
 0x856   : > { %v1725_v6 = vadd.f32 %v1708_v42, %v1681_v4  ;;  %v3123_v7 = vpop.f32.mrb[18].mxu1 }
 0x857   : > { %v1735_v8 = vmul.f32 0.2, %v1727_v63  ;;  %v1728_v39 = vadd.f32 %v3123_v7, %v1723_v5  ;;  %v1684_v9 = vpop.f32.mrb[19].mxu1  ;;  %vm1731_vm1 = vcmp.gt.f32.partialorder %v1727_v63, 0.0 }
 0x858   : > { %vm1729_vm8 = vcmp.gt.f32.partialorder %v1725_v6, 0.0  ;;  %v1733_v40 = vmul.f32 0.2, %v1725_v6  ;;  %v1726_v11 = vadd.f32 %v1713_v3, %v1684_v9 }
 0x859   : > { %vm1732_vm9 = vcmp.gt.f32.partialorder %v1728_v39, 0.0  ;;  %v1736_v12 = vmul.f32 0.2, %v1728_v39  ;;  %v1739_v15 = vsel %vm1731_vm1, %v1727_v63, %v1735_v8  ;;  %v3309_v8 = vld [vmem:[%s3930_s5 + $0xd8] sm:$0xff]  }
 0x85a   : > { %v1737_v13 = vsel %vm1729_vm8, %v1725_v6, %v1733_v40  ;;  %vm1730_vm11 = vcmp.gt.f32.partialorder %v1726_v11, 0.0  ;;  %v1734_v14 = vmul.f32 0.2, %v1726_v11  ;;  %v3790_v20 = vadd.f32 %v1739_v15, %v3716_v33 }
 0x85b   : > { %v1740_v16 = vsel %vm1732_vm9, %v1728_v39, %v1736_v12  ;;  %v3784_v18 = vadd.f32 %v1737_v13, %v3710_v30 }
 0x85c   : > { %v3781_v2 = vadd.f32 %v1740_v16, %v3707_v29  ;;  %v1738_v17 = vsel %vm1730_vm11, %v1726_v11, %v1734_v14  ;;  %v3311_v16 = vld [vmem:[%s3930_s5 + $0xc8] sm:$0xff]  }
 0x85d   : > { %v3787_v19 = vadd.f32 %v1738_v17, %v3713_v32  ;;  %v3305_v32 = vld [vmem:[%s3930_s5 + $0x98] sm:$0xff]  }
 0x85e   : > { %v1774_v22 = vpack.c.bf16 %v3781_v2, %v3790_v20 }
 0x85f   : > { %v1773_v21 = vpack.c.bf16 %v3787_v19, %v3784_v18 }
 0x861   : > { %3128 = vmatprep.mubr.msk.bf16.mxu0 %vm284_vm0, %v1773_v21 }
 0x862   : > { %3129 = vmatmul.mubr.msk.bf16.vlgmr.msra.gmra.mrb[20].mxu0 %vm284_vm0, %v1774_v22 }
 0x863   : > { %3133 = vmatpush3.bf16.msra.mxu0 %v3335_v36  ;;  %3136 = vmatprep.mubr.msk.bf16.mxu0 %vm284_vm0, %v1773_v21 }
 0x864   : > { %3134 = vmatprep.subr.msk.bf16.mxu0 %vm2800_vm14, %v3696_v10 }
 0x867   : > { %3135 = vmatpush3.bf16.msk.msra.mxu0 %vm2800_vm14, %v3696_v10  ;;  %v3304_v10 = vld [vmem:[%s3930_s5 + $0x90] sm:$0xff]  }
 0x868   : > { %3140 = vmatprep.subr.bf16.mxu0 %v1773_v21 }
 0x86a   : > { %3137 = vmatmul.mubr.msk.bf16.vlgmr.msra.gmra.mrb[24].mxu0 %vm284_vm0, %v1774_v22 }
 0x86b   : > { %3141 = vmatpush3.bf16.msra.mxu0 %v1773_v21  ;;  %3144 = vmatprep.mubr.msk.bf16.mxu0 %vm284_vm0, %v3302_v38  ;;  %v2474_v21 = vpop.permute.xlu0 %2473 }
 0x86c   : > { %3142 = vmatprep.subr.bf16.mxu0 %v1774_v22 }
 0x86f   : > { %3143 = vmatpush3.bf16.msra.mxu0 %v1774_v22  ;;  %v2479_v22 = vpop.permute.xlu1 %2478  ;;  %v2484_v38 = vpop.permute.xlu0 %2483 }
 0x872   : > { %3145 = vmatmul.mubr.msk.bf16.vlgmr.msra.gmra.mrb[28].mxu0 %vm284_vm0, %v3303_v23 }
 0x873   : > { %3152 = vmatprep.mubr.msk.bf16.mxu0 %vm284_vm0, %v3304_v10 }
 0x935   : > { %v3130_v24 = vpop.f32.mrb[20].mxu0 }
 0x936   : > { %v1815_v25 = vpop.f32.mrb[21].mxu0 }
 0x937   : > { %v3131_v26 = vpop.f32.mrb[22].mxu0 }
 0x938   : > { %v1831_v27 = vpack.c.bf16 %v3131_v26, %v3130_v24  ;;  %v1818_v28 = vpop.f32.mrb[23].mxu0 }
 0x939   : > { %v1830_v0 = vpack.c.bf16 %v1818_v28, %v1815_v25  ;;  %v2489_v25 = vpop.permute.xlu1 %2488 }
 0x93b   : > { %3148 = vmatprep.subr.bf16.mxu0 %v1830_v0 }
 0x93c   : > { %3149 = vmatpush3.bf16.msra.mxu0 %v1830_v0 }
 0x93d   : > { %v3138_v29 = vpop.f32.mrb[24].mxu0  ;;  %3150 = vmatprep.subr.bf16.mxu0 %v1831_v27 }
 0x93e   : > { %v1866_v1 = vpop.f32.mrb[25].mxu0 }
 0x93f   : > { %v3139_v30 = vpop.f32.mrb[26].mxu0 }
 0x940   : > { %v1882_v33 = vpack.c.bf16 %v3139_v30, %v3138_v29  ;;  %v1869_v44 = vpop.f32.mrb[27].mxu0  ;;  %3151 = vmatpush3.bf16.msra.mxu0 %v1831_v27 }
 0x941   : > { %v1881_v37 = vpack.c.bf16 %v1869_v44, %v1866_v1 }
 0x943   : > { %3153 = vmatmul.mubr.msk.bf16.vlgmr.msra.gmra.mrb[28].mxu0 %vm284_vm0, %v3305_v32  ;;  %3156 = vmatprep.subr.bf16.mxu0 %v1881_v37 }
 0x944   : > { %3157 = vmatpush3.bf16.msra.mxu0 %v1881_v37  ;;  %3160 = vmatprep.mubr.msk.bf16.mxu0 %vm284_vm0, %v3306_v43 }
 0x945   : > { %3158 = vmatprep.subr.bf16.mxu0 %v1882_v33 }
 0x948   : > { %3159 = vmatpush3.bf16.msra.mxu0 %v1882_v33 }
 0x94f   : > { %3161 = vmatmul.mubr.msk.bf16.vlgmr.msra.gmra.mrb[28].mxu0 %vm284_vm0, %v3307_v45 }
 0xa22   : > { %v3162_v49 = vpop.f32.mrb[28].mxu0 }
 0xa23   : > { %v2124_v50 = vadd.f32 %v3162_v49, %v2115_v48  ;;  %v2078_v51 = vpop.f32.mrb[29].mxu0 }
 0xa24   : > { %v2122_v53 = vadd.f32 %v2105_v46, %v2078_v51  ;;  %v3163_v54 = vpop.f32.mrb[30].mxu0 }
 0xa25   : > { %v2132_v55 = vmul.f32 0.2, %v2124_v50  ;;  %v2125_v56 = vadd.f32 %v3163_v54, %v2120_v52  ;;  %v2081_v57 = vpop.f32.mrb[31].mxu0  ;;  %vm2128_vm3 = vcmp.gt.f32.partialorder %v2124_v50, 0.0 }
 0xa26   : > { %vm2126_vm15 = vcmp.gt.f32.partialorder %v2122_v53, 0.0  ;;  %v2130_v58 = vmul.f32 0.2, %v2122_v53  ;;  %v2123_v59 = vadd.f32 %v2110_v47, %v2081_v57 }
 0xa27   : > { %vm2129_vm2 = vcmp.gt.f32.partialorder %v2125_v56, 0.0  ;;  %v2133_v60 = vmul.f32 0.2, %v2125_v56  ;;  %v2136_v42 = vsel %vm2128_vm3, %v2124_v50, %v2132_v55 }
 0xa28   : > { %v2134_v61 = vsel %vm2126_vm15, %v2122_v53, %v2130_v58  ;;  %vm2127_vm4 = vcmp.gt.f32.partialorder %v2123_v59, 0.0  ;;  %v2131_v36 = vmul.f32 0.2, %v2123_v59  ;;  %v3838_v5 = vadd.f32 %v2136_v42, %v3790_v20  ;;  %v3313_v20 = vld [vmem:[%s3930_s5 + $0xe8] sm:$0xff]  }
 0xa29   : > { %v2137_v3 = vsel %vm2129_vm2, %v2125_v56, %v2133_v60  ;;  %v3832_v63 = vadd.f32 %v2134_v61, %v3784_v18  ;;  %v3312_v18 = vld [vmem:[%s3930_s5 + $0xe0] sm:$0xff]  }
 0xa2a   : > { %v3829_v62 = vadd.f32 %v2137_v3, %v3781_v2  ;;  %v2135_v31 = vsel %vm2127_vm4, %v2123_v59, %v2131_v36 }
 0xa2b   : > { %v3835_v4 = vadd.f32 %v2135_v31, %v3787_v19 }
 0xa2c   : > { %v2143_v7 = vpack.c.bf16 %v3829_v62, %v3838_v5 }
 0xa2d   : > { %v2142_v6 = vpack.c.bf16 %v3835_v4, %v3832_v63 }
 0xa2f   : > { %3168 = vmatprep.mubr.msk.bf16.mxu1 %vm284_vm0, %v2142_v6 }
 0xa30   : > { %3169 = vmatmul.mubr.msk.bf16.vlgmr.msra.gmra.mrb[20].mxu1 %vm284_vm0, %v2143_v7 }
 0xa31   : > { %3173 = vmatpush3.bf16.msk.msra.mxu1 %vm3525_vm7, %v3331_v35  ;;  %3176 = vmatprep.mubr.msk.bf16.mxu1 %vm284_vm0, %v2142_v6 }
 0xa32   : > { %3174 = vmatprep.subr.msk.bf16.mxu1 %vm3557_vm13, %v3331_v35 }
 0xa35   : > { %3175 = vmatpush3.bf16.msk.msra.mxu1 %vm3557_vm13, %v3331_v35  ;;  %v3310_v35 = vld [vmem:[%s3930_s5 + $0xc0] sm:$0xff]  }
 0xa36   : > { %3180 = vmatprep.subr.bf16.mxu1 %v2142_v6 }
 0xa38   : > { %3177 = vmatmul.mubr.msk.bf16.vlgmr.msra.gmra.mrb[24].mxu1 %vm284_vm0, %v2143_v7 }
 0xa39   : > { %3181 = vmatpush3.bf16.msra.mxu1 %v2142_v6  ;;  %3184 = vmatprep.mubr.msk.bf16.mxu1 %vm284_vm0, %v3308_v34 }
 0xa3a   : > { %3182 = vmatprep.subr.bf16.mxu1 %v2143_v7 }
 0xa3d   : > { %3183 = vmatpush3.bf16.msra.mxu1 %v2143_v7 }
 0xa40   : > { %3185 = vmatmul.mubr.msk.bf16.vlgmr.msra.gmra.mrb[28].mxu1 %vm284_vm0, %v3309_v8 }
 0xa41   : > { %3192 = vmatprep.mubr.msk.bf16.mxu1 %vm284_vm0, %v3310_v35 }
 0xb03   : > { %v3170_v41 = vpop.f32.mrb[20].mxu1 }
 0xb04   : > { %v2184_v39 = vpop.f32.mrb[21].mxu1 }
 0xb05   : > { %v3171_v9 = vpop.f32.mrb[22].mxu1 }
 0xb06   : > { %v2200_v40 = vpack.c.bf16 %v3171_v9, %v3170_v41  ;;  %v2187_v11 = vpop.f32.mrb[23].mxu1 }
 0xb07   : > { %v2199_v12 = vpack.c.bf16 %v2187_v11, %v2184_v39 }
 0xb09   : > { %3188 = vmatprep.subr.bf16.mxu1 %v2199_v12 }
 0xb0a   : > { %3189 = vmatpush3.bf16.msra.mxu1 %v2199_v12 }
 0xb0b   : > { %v3178_v13 = vpop.f32.mrb[24].mxu1  ;;  %3190 = vmatprep.subr.bf16.mxu1 %v2200_v40 }
 0xb0c   : > { %v2235_v14 = vpop.f32.mrb[25].mxu1 }
 0xb0d   : > { %v3179_v15 = vpop.f32.mrb[26].mxu1 }
 0xb0e   : > { %v2251_v2 = vpack.c.bf16 %v3179_v15, %v3178_v13  ;;  %v2238_v17 = vpop.f32.mrb[27].mxu1  ;;  %3191 = vmatpush3.bf16.msra.mxu1 %v2200_v40 }
 0xb0f   : > { %v2250_v19 = vpack.c.bf16 %v2238_v17, %v2235_v14 }
 0xb11   : > { %3193 = vmatmul.mubr.msk.bf16.vlgmr.msra.gmra.mrb[28].mxu1 %vm284_vm0, %v3311_v16  ;;  %3196 = vmatprep.subr.bf16.mxu1 %v2250_v19 }
 0xb12   : > { %3197 = vmatpush3.bf16.msra.mxu1 %v2250_v19  ;;  %3200 = vmatprep.mubr.msk.bf16.mxu1 %vm284_vm0, %v3312_v18 }
 0xb13   : > { %3198 = vmatprep.subr.bf16.mxu1 %v2251_v2 }
 0xb16   : > { %3199 = vmatpush3.bf16.msra.mxu1 %v2251_v2 }
 0xb1d   : > { %3201 = vmatmul.mubr.msk.bf16.vlgmr.msra.gmra.mrb[28].mxu1 %vm284_vm0, %v3313_v20 }
 0xbf0   : > { %v3202_v23 = vpop.f32.mrb[28].mxu1 }
 0xbf1   : > { %v2493_v10 = vadd.f32 %v3202_v23, %v2484_v38  ;;  %v2447_v24 = vpop.f32.mrb[29].mxu1 }
 0xbf2   : > { %v2491_v26 = vadd.f32 %v2474_v21, %v2447_v24  ;;  %v3203_v27 = vpop.f32.mrb[30].mxu1 }
 0xbf3   : > { %vm2497_vm7 = vcmp.gt.f32.partialorder %v2493_v10, 0.0  ;;  %v2501_v28 = vmul.f32 0.2, %v2493_v10  ;;  %v2494_v0 = vadd.f32 %v3203_v27, %v2489_v25  ;;  %v2450_v29 = vpop.f32.mrb[31].mxu1 }
 0xbf4   : > { %vm2495_vm13 = vcmp.gt.f32.partialorder %v2491_v26, 0.0  ;;  %v2499_v1 = vmul.f32 0.2, %v2491_v26  ;;  %v2492_v30 = vadd.f32 %v2479_v22, %v2450_v29 }
 0xbf5   : > { %vm2498_vm10 = vcmp.gt.f32.partialorder %v2494_v0, 0.0  ;;  %v2502_v32 = vmul.f32 0.2, %v2494_v0  ;;  %v2505_v33 = vsel %vm2497_vm7, %v2493_v10, %v2501_v28 }
 0xbf6   : > { %v2503_v44 = vsel %vm2495_vm13, %v2491_v26, %v2499_v1  ;;  %vm2496_vm5 = vcmp.gt.f32.partialorder %v2492_v30, 0.0  ;;  %v2500_v43 = vmul.f32 0.2, %v2492_v30  ;;  %v3885_v47 = vadd.f32 %v2505_v33, %v3838_v5 }
 0xbf7   : > { %v3882_v37 = vadd.f32 %v2503_v44, %v3832_v63  ;;  %v2506_v45 = vsel %vm2498_vm10, %v2494_v0, %v2502_v32 }
 0xbf8   : > { %v2504_v46 = vsel %vm2496_vm5, %v2492_v30, %v2500_v43  ;;  %v3891_v49 = vadd.f32 %v2506_v45, %v3829_v62  ;;  %v2514_v53 = vsel %vm284_vm0, %v3885_v47, 0.0 }
 0xbf9   : > { %v3888_v48 = vadd.f32 %v2504_v46, %v3835_v4  ;;  %v2511_v50 = vsel %vm284_vm0, %v3882_v37, 0.0 }
 0xbfa   : > { %v2516_v55 = vsel %vm284_vm0, %v3891_v49, 0.0 }
 0xbfb   : > { %v2512_v51 = vsel %vm284_vm0, %v3888_v48, 0.0 }
 0xbfc   : > { %v2513_v52 = vadd.f32 %v2512_v51, %v2511_v50 }
 0xbfe   : > { %v2515_v54 = vadd.f32 %v2514_v53, %v2513_v52 }
 0xc00   : > { %v2517_v56 = vadd.f32 %v2516_v55, %v2515_v54 }
 0xc02   : > { %2518 = vadd.xlane.f32.xlu0 %v2517_v56 }
 0xc8f   : > { %v2519_v57 = vpop.xlane.xlu0 %2518 }
 0xc90   : > { %v2520_v58 = vrot.slane %v2519_v57, 4 }
 0xc92   : > { %v2521_v59 = vadd.f32 %v2520_v58, %v2519_v57 }
 0xc94   : > { %v2522_v60 = vrot.slane %v2521_v59, 2 }
 0xc96   : > { %v2523_v61 = vadd.f32 %v2522_v60, %v2521_v59 }
 0xc98   : > { %v2524_v36 = vrot.slane %v2523_v61, 1 }
 0xc9a   : > { %v2525_v42 = vadd.f32 %v2524_v36, %v2523_v61 }
 0xc9c   : > { %3255 = vpush %v2525_v42 }
 0xccd   : > { %s3256_s15 = spop %3255 }
 0xcce   : > { %s2529_s16 = smul.f32 0.0009765625, %s3256_s15 }
 0xcd0   : > { %v2530_v3 = vstv %s2529_s16 }
 0xcd1   : > { %v2531_v62 = vsub.f32 %v3882_v37, %v2530_v3  ;;  %v2532_v31 = vsub.f32 %v3888_v48, %v2530_v3  ;;  %v2533_v63 = vsub.f32 %v3885_v47, %v2530_v3  ;;  %v2534_v4 = vsub.f32 %v3891_v49, %v2530_v3 }
 0xcd3   : > { %v2535_v5 = vmul.f32 %v2531_v62, %v2531_v62  ;;  %v2536_v6 = vmul.f32 %v2532_v31, %v2532_v31  ;;  %v2537_v7 = vmul.f32 %v2533_v63, %v2533_v63  ;;  %v2538_v34 = vmul.f32 %v2534_v4, %v2534_v4 }
 0xcd5   : > { %v2539_v8 = vsel %vm284_vm0, %v2535_v5, 0.0  ;;  %v2540_v35 = vsel %vm284_vm0, %v2536_v6, 0.0  ;;  %v2542_v39 = vsel %vm284_vm0, %v2537_v7, 0.0  ;;  %v2544_v40 = vsel %vm284_vm0, %v2538_v34, 0.0 }
 0xcd6   : > { %v2541_v41 = vadd.f32 %v2540_v35, %v2539_v8 }
 0xcd8   : > { %v2543_v9 = vadd.f32 %v2542_v39, %v2541_v41 }
 0xcda   : > { %v2545_v11 = vadd.f32 %v2544_v40, %v2543_v9 }
 0xcdc   : > { %2546 = vadd.xlane.f32.xlu1 %v2545_v11 }
 0xd69   : > { %v2547_v12 = vpop.xlane.xlu1 %2546 }
 0xd6a   : > { %v2548_v13 = vrot.slane %v2547_v12, 4 }
 0xd6c   : > { %v2549_v14 = vadd.f32 %v2548_v13, %v2547_v12 }
 0xd6e   : > { %v2550_v15 = vrot.slane %v2549_v14, 2 }
 0xd70   : > { %v2551_v16 = vadd.f32 %v2550_v15, %v2549_v14 }
 0xd72   : > { %v2552_v2 = vrot.slane %v2551_v16, 1 }
 0xd74   : > { %v2553_v17 = vadd.f32 %v2552_v2, %v2551_v16 }
 0xd76   : > { %3257 = vpush %v2553_v17 }
 0xda7   : > { %s3258_s17 = spop %3257 }
 0xda8   : > { %s2557_s18 = smul.f32 0.0009765625, %s3258_s17 }
 0xdaa   : > { %v2558_v18 = vstv %s2557_s18 }
 0xdab   : > { %3318 = vrsqrt.f32 %v2558_v18  ;;  %vm2561_vm6 = vcmp.eq.f32.partialorder %v2558_v18, inf  ;;  %v2564_v21 = vand.u32 2147483648, %v2558_v18  ;;  %vm2563_vm1 = vcmp.eq.f32.partialorder %v2558_v18, 0.0 }
 0xdb5   : > { %v3319_v19 = vpop.eup %3318 }
 0xdb6   : > { %v2560_v20 = vmul.f32 %v3319_v19, %v2558_v18 }
 0xdb8   : > { %v2562_v22 = vsel %vm2561_vm6, %v2558_v18, %v2560_v20 }
 0xdb9   : > { %v2565_v38 = vsel %vm2563_vm1, %v2564_v21, %v2562_v22 }
 0xdba   : > { %3259 = vpush %v2565_v38 }
 0xdeb   : > { %s3260_s19 = spop %3259 }
 0xdec   : > { %s2567_s20 = sadd.f32 1e-08, %s3260_s19 }
 0xdee   : > { %v2568_v23 = vstv %s2567_s20 }
 0xdef   : > { %3320 = vrcp.f32 %v2568_v23 }
 0xdf9   : > { %v3321_v10 = vpop.eup %3320 }
 0xdfa   : > { %v2570_v24 = vmul.f32 %v3321_v10, %v3882_v37  ;;  %v2571_v25 = vmul.f32 %v3321_v10, %v3888_v48  ;;  %v2572_v26 = vmul.f32 %v3321_v10, %v3885_v47  ;;  %v2573_v27 = vmul.f32 %v3321_v10, %v3891_v49 }
 0xdfc   : > { %2574 = vst.msk [vmem:[%s278_s23] sm:$0xff] %vm284_vm0, %v2570_v24  ;;  %2575 = vst.msk [vmem:[%s278_s23 + $0x8] sm:$0xff] %vm284_vm0, %v2571_v25 }
 0xdfd   : > { %2576 = vst.msk [vmem:[%s278_s23 + $0x10] sm:$0xff] %vm284_vm0, %v2572_v26  ;;  %2577 = vst.msk [vmem:[%s278_s23 + $0x18] sm:$0xff] %vm284_vm0, %v2573_v27 }
 0xdfe PF: > { %s17_s24 = sadd.s32 1, %s3328_s24  }
 0xdff   : > { %p14_p4 = scmp.ge.s32.totalorder %s17_s24, 4  }
 0xe01   :  { %16 = sbr.rel (!%p14_p4) target bundleno = 1 (0x1), region = 96 }

// kernel: summarizer_forward.6
= control target key start
LH: loop header
LB: loop body
LE: loop exit
PB: predicated region body
PF: predicated region fallthrough
CT: control target
= control target key end

     0   :  { %s7825_s12 = smov 0   ;;  %s9260_s0 = inlined_call_operand.vmem [shape: bf16[2,8,2176], index: 0, kind: input, shape index: {}]   ;;  %s9261_s1 = inlined_call_operand.vmem [shape: bf16[8,32,8], index: 1, kind: input, shape index: {}]   ;;  %s9262_s2 = inlined_call_operand.vmem [shape: bf16[2048,32], index: 2, kind: input, shape index: {}]   ;;  %s9263_s3 = inlined_call_operand.vmem [shape: f32[2,32,32], index: 3, kind: output, shape index: {}]  }
   0x1 LB: > { %s6530_s13 = sadd.s32 4294967295, %s7795_s12   ;;  %p6534_p0 = scmp.ge.s32.totalorder %s7795_s12, 1  ;;  %s7795_s12 = sphi %s7825_s12, %s13_s12  }
   0x2   : > { %p137_p1 = scmp.lt.s32.totalorder %s7795_s12, 3 }
   0x4   : > { %p138_p2 = pnand %p6534_p0, %p137_p1 }
   0x5   : > { %p161_p3 = scmp.lt.s32.totalorder (!%p138_p2), %s6530_s13, 1  ;;  %v7797_v0 = vmov (!%p138_p2), 0   ;;  %s7798_s18 = smov (!%p138_p2), 120   ;;  %vm285_vm0 = vcmask (!%p138_p2), 982016   ;;  %vm309_vm1 = vcmask (!%p138_p2), 1043456   ;;  %v7969_v33 = vld [vmem:[%s9261_s1 + $0x10] sm:$0xff] (!%p138_p2)  }
   0x6   : > { %141 = sbr.rel (%p138_p2) target bundleno = 1140 (0x474), region = 32  ;;  %390 = vmatprep.mubr.bf16.mxu0 (!%p138_p2), %v7797_v0  ;;  %443 = vmatprep.mubr.bf16.mxu1 (!%p138_p2), %v7797_v0  ;;  %s7799_s19 = smov (!%p138_p2), 112   ;;  %vm302_vm2 = vcmask (!%p138_p2), 64512   ;;  %v7996_v45 = vld [vmem:[%s9261_s1 + $0x18] sm:$0xff] (!%p138_p2)   ;;  %vm1359_vm3 = vcmask (!%p138_p2), 916480   ;;  %vm1967_vm4 = vcmask (!%p138_p2), 850944  }
   0x7   : > { %s7800_s20 = smov (!%p138_p2), 104   ;;  %s7801_s21 = smov (!%p138_p2), 96   ;;  %vm2575_vm5 = vcmask (!%p138_p2), 785408   ;;  %vm3183_vm6 = vcmask (!%p138_p2), 719872   ;;  %vm3791_vm7 = vcmask (!%p138_p2), 654336   ;;  %vm4399_vm8 = vcmask (!%p138_p2), 588800  }
   0x8   : > { %s7802_s26 = smov (!%p138_p2), 88   ;;  %s7803_s4 = smov (!%p138_p2), 80   ;;  %vm6470_vm9 = vcmask (!%p138_p2), 261120  }
   0x9   : > { %s7804_s9 = smov (!%p138_p2), 72  }
   0xd   : > { %s9265_s13 = smov (!%p161_p3, %s6530_s13), 1 }
   0xe   : > { %s7610_s14 = smul.u32 68, %s9265_s13  ;;  %s6937_s11 = sshll.u32 %s9265_s13, 5 }
   0xf   : > { %s170_s16 = scalar_lea.vmem %s9263_s3, %s6937_s11 }
  0x10   : > { %s7841_s17 = scalar_lea.vmem %s9260_s0, %s7610_s14 }
  0x11   : > { %v185_v1 = vld [vmem:[%s7841_s17 + $0x8] sm:$0xff]  ;;  %v184_v2 = vld [vmem:[%s7841_s17] sm:$0xff]  ;;  %v186_v7 = vld [vmem:[%s7841_s17 + $0x10] sm:$0xff] }
  0x12   : > { %v7845_v3 = vcombine.low %v185_v1, %v185_v1  ;;  %v7847_v4 = vcombine.low %v184_v2, %v184_v2  ;;  %v7853_v5 = vcombine.high %v185_v1, %v185_v1  ;;  %v7855_v6 = vcombine.high %v184_v2, %v184_v2  ;;  %v187_v8 = vld [vmem:[%s7841_s17 + $0x18] sm:$0xff]  ;;  %v188_v11 = vld [vmem:[%s7841_s17 + $0x20] sm:$0xff]  ;;  %v189_v14 = vld [vmem:[%s7841_s17 + $0x28] sm:$0xff] }
  0x13   : > { %v7863_v9 = vcombine.high %v186_v7, %v186_v7  ;;  %v7865_v10 = vcombine.low %v186_v7, %v186_v7  ;;  %v7872_v12 = vcombine.high %v187_v8, %v187_v8  ;;  %v7874_v13 = vcombine.low %v187_v8, %v187_v8  ;;  %v190_v17 = vld [vmem:[%s7841_s17 + $0x30] sm:$0xff]  ;;  %v191_v20 = vld [vmem:[%s7841_s17 + $0x38] sm:$0xff]  ;;  %v7912_v25 = vld [vmem:[%s7841_s17 + $0x40] ss:$0 sps:$4 sm:$0xff]  }
  0x14   : > { %255 = vrot.lane.b32.xlu1 %v7845_v3, %s7798_s18  ;;  %251 = vrot.lane.b32.xlu0 %v7847_v4, %s7798_s18  ;;  %v7881_v15 = vcombine.high %v188_v11, %v188_v11  ;;  %v7883_v16 = vcombine.low %v188_v11, %v188_v11  ;;  %v7890_v18 = vcombine.low %v189_v14, %v189_v14 }
  0x15   : > { %v7892_v19 = vcombine.high %v189_v14, %v189_v14  ;;  %v7899_v21 = vcombine.low %v190_v17, %v190_v17  ;;  %v7901_v22 = vcombine.high %v190_v17, %v190_v17  ;;  %v7907_v23 = vcombine.low %v191_v20, %v191_v20 }
  0x16   : > { %v7909_v24 = vcombine.high %v191_v20, %v191_v20  ;;  %v839_v14 = vsel %vm309_vm1, %v7847_v4, 0  ;;  %v845_v17 = vsel %vm309_vm1, %v7845_v3, 0  ;;  %v8100_v20 = vld [vmem:[%s9261_s1] sm:$0xff]  }
  0x18   : > { %257 = vrot.lane.b32.xlu1 %v7853_v5, %s7798_s18  ;;  %253 = vrot.lane.b32.xlu0 %v7855_v6, %s7798_s18 }
  0x1c   : > { %261 = vrot.lane.b32.xlu1 %v7863_v9, %s7798_s18  ;;  %259 = vrot.lane.b32.xlu0 %v7865_v10, %s7798_s18 }
  0x20   : > { %265 = vrot.lane.b32.xlu1 %v7872_v12, %s7798_s18  ;;  %263 = vrot.lane.b32.xlu0 %v7874_v13, %s7798_s18 }
  0x24   : > { %269 = vrot.lane.b32.xlu1 %v7881_v15, %s7798_s18  ;;  %267 = vrot.lane.b32.xlu0 %v7883_v16, %s7798_s18 }
  0x28   : > { %271 = vrot.lane.b32.xlu0 %v7890_v18, %s7798_s18  ;;  %273 = vrot.lane.b32.xlu1 %v7892_v19, %s7798_s18 }
  0x2c   : > { %275 = vrot.lane.b32.xlu0 %v7899_v21, %s7798_s18  ;;  %277 = vrot.lane.b32.xlu1 %v7901_v22, %s7798_s18 }
  0x30   : > { %279 = vrot.lane.b32.xlu0 %v7907_v23, %s7798_s18  ;;  %281 = vrot.lane.b32.xlu1 %v7909_v24, %s7798_s18 }
  0x34   : > { %283 = vrot.lane.b32.xlu0 %v7912_v25, %s7798_s18  ;;  %1325 = vrot.lane.b32.xlu1 %v7847_v4, %s7799_s19 }
  0x38   : > { %1329 = vrot.lane.b32.xlu1 %v7845_v3, %s7799_s19  ;;  %1327 = vrot.lane.b32.xlu0 %v7855_v6, %s7799_s19 }
  0x3c   : > { %1333 = vrot.lane.b32.xlu1 %v7865_v10, %s7799_s19  ;;  %1331 = vrot.lane.b32.xlu0 %v7853_v5, %s7799_s19 }
  0x40   : > { %1335 = vrot.lane.b32.xlu0 %v7863_v9, %s7799_s19  ;;  %1337 = vrot.lane.b32.xlu1 %v7874_v13, %s7799_s19 }
  0x44   : > { %1341 = vrot.lane.b32.xlu1 %v7883_v16, %s7799_s19  ;;  %1339 = vrot.lane.b32.xlu0 %v7872_v12, %s7799_s19 }
  0x48   : > { %1343 = vrot.lane.b32.xlu0 %v7881_v15, %s7799_s19  ;;  %1345 = vrot.lane.b32.xlu1 %v7890_v18, %s7799_s19 }
  0x4c   : > { %1349 = vrot.lane.b32.xlu1 %v7899_v21, %s7799_s19  ;;  %1347 = vrot.lane.b32.xlu0 %v7892_v19, %s7799_s19 }
  0x50   : > { %1351 = vrot.lane.b32.xlu0 %v7901_v22, %s7799_s19  ;;  %1353 = vrot.lane.b32.xlu1 %v7907_v23, %s7799_s19 }
  0x54   : > { %1357 = vrot.lane.b32.xlu1 %v7912_v25, %s7799_s19  ;;  %1355 = vrot.lane.b32.xlu0 %v7909_v24, %s7799_s19 }
  0x58   : > { %1933 = vrot.lane.b32.xlu0 %v7847_v4, %s7800_s20  ;;  %1935 = vrot.lane.b32.xlu1 %v7855_v6, %s7800_s20 }
  0x5c   : > { %1937 = vrot.lane.b32.xlu0 %v7845_v3, %s7800_s20  ;;  %1939 = vrot.lane.b32.xlu1 %v7853_v5, %s7800_s20 }
  0x60   : > { %1941 = vrot.lane.b32.xlu0 %v7865_v10, %s7800_s20  ;;  %1943 = vrot.lane.b32.xlu1 %v7863_v9, %s7800_s20 }
  0x64   : > { %1945 = vrot.lane.b32.xlu0 %v7874_v13, %s7800_s20  ;;  %1947 = vrot.lane.b32.xlu1 %v7872_v12, %s7800_s20 }
  0x68   : > { %1949 = vrot.lane.b32.xlu0 %v7883_v16, %s7800_s20  ;;  %1951 = vrot.lane.b32.xlu1 %v7881_v15, %s7800_s20 }
  0x6c   : > { %1953 = vrot.lane.b32.xlu0 %v7890_v18, %s7800_s20  ;;  %1955 = vrot.lane.b32.xlu1 %v7892_v19, %s7800_s20 }
  0x70   : > { %1957 = vrot.lane.b32.xlu0 %v7899_v21, %s7800_s20  ;;  %1959 = vrot.lane.b32.xlu1 %v7901_v22, %s7800_s20 }
  0x74   : > { %1961 = vrot.lane.b32.xlu0 %v7907_v23, %s7800_s20  ;;  %1963 = vrot.lane.b32.xlu1 %v7909_v24, %s7800_s20 }
  0x78   : > { %1965 = vrot.lane.b32.xlu0 %v7912_v25, %s7800_s20  ;;  %2541 = vrot.lane.b32.xlu1 %v7847_v4, %s7801_s21 }
  0x7c   : > { %2543 = vrot.lane.b32.xlu0 %v7855_v6, %s7801_s21  ;;  %2545 = vrot.lane.b32.xlu1 %v7845_v3, %s7801_s21 }
  0x80   : > { %2547 = vrot.lane.b32.xlu0 %v7853_v5, %s7801_s21  ;;  %2549 = vrot.lane.b32.xlu1 %v7865_v10, %s7801_s21 }
  0x84   : > { %2551 = vrot.lane.b32.xlu0 %v7863_v9, %s7801_s21  ;;  %2553 = vrot.lane.b32.xlu1 %v7874_v13, %s7801_s21 }
  0x86   : > { %v256_v26 = vpop.permute.xlu1 %255  ;;  %v252_v27 = vpop.permute.xlu0 %251 }
  0x88   : > { %2555 = vrot.lane.b32.xlu0 %v7872_v12, %s7801_s21  ;;  %2557 = vrot.lane.b32.xlu1 %v7883_v16, %s7801_s21 }
  0x8a   : > { %v258_v28 = vpop.permute.xlu1 %257  ;;  %v254_v29 = vpop.permute.xlu0 %253 }
  0x8b   : > { %v287_v30 = vsel %vm285_vm0, %v254_v29, %v256_v26  ;;  %v286_v31 = vsel %vm285_vm0, %v252_v27, %v254_v29  ;;  %v288_v34 = vsel %vm285_vm0, %v256_v26, %v258_v28  ;;  %v851_v26 = vsel %vm309_vm1, %v7865_v10, 0 }
  0x8c   : > { %6561 = vmatprep.subr.msk.bf16.mxu0 %vm309_vm1, %v287_v30  ;;  %v311_v32 = vsel %vm309_vm1, %v286_v31, 0  ;;  %v317_v38 = vsel %vm309_vm1, %v288_v34, 0  ;;  %2559 = vrot.lane.b32.xlu0 %v7881_v15, %s7801_s21  ;;  %v857_v27 = vsel %vm309_vm1, %v7874_v13, 0  ;;  %v863_v29 = vsel %vm309_vm1, %v7883_v16, 0 }
  0x8d   : > { %359 = vmatpush1.bf16.msra.mxu0 %v311_v32  ;;  %2561 = vrot.lane.b32.xlu1 %v7890_v18, %s7801_s21  ;;  %v869_v30 = vsel %vm309_vm1, %v7890_v18, 0  ;;  %v875_v34 = vsel %vm309_vm1, %v7899_v21, 0 }
  0x8e   : > { %v262_v35 = vpop.permute.xlu1 %261  ;;  %v260_v36 = vpop.permute.xlu0 %259 }
  0x8f   : > { %v289_v37 = vsel %vm285_vm0, %v258_v28, %v260_v36  ;;  %v290_v39 = vsel %vm285_vm0, %v260_v36, %v262_v35  ;;  %v8125_v28 = vld [vmem:[%s9261_s1 + $0x8] sm:$0xff]  }
  0x90   : > { %6562 = vmatmul.mubr.msk.bf16.vlgmr.msra.gmra.mrb[0].mxu0 %vm302_vm2, %v7969_v33  ;;  %6564 = vmatprep.subr.msk.bf16.mxu1 %vm309_vm1, %v289_v37  ;;  %v323_v44 = vsel %vm309_vm1, %v290_v39, 0  ;;  %v881_v37 = vsel %vm309_vm1, %v7907_v23, 0 }
  0x91   : > { %412 = vmatpush1.bf16.msra.mxu1 %v317_v38  ;;  %400 = vmatprep.mubr.bf16.mxu0 %v7797_v0 }
  0x92   : > { %v266_v40 = vpop.permute.xlu1 %265  ;;  %v264_v41 = vpop.permute.xlu0 %263  ;;  %2563 = vrot.lane.b32.xlu0 %v7892_v19, %s7801_s21  ;;  %2565 = vrot.lane.b32.xlu1 %v7899_v21, %s7801_s21 }
  0x93   : > { %v292_v42 = vsel %vm285_vm0, %v264_v41, %v266_v40  ;;  %v291_v43 = vsel %vm285_vm0, %v262_v35, %v264_v41 }
  0x94   : > { %6565 = vmatmul.mubr.msk.bf16.vlgmr.msra.gmra.mrb[0].mxu1 %vm302_vm2, %v7969_v33  ;;  %6567 = vmatprep.subr.msk.bf16.mxu0 %vm309_vm1, %v291_v43  ;;  %v329_v48 = vsel %vm309_vm1, %v292_v42, 0 }
  0x95   : > { %465 = vmatpush1.bf16.msra.mxu0 %v323_v44  ;;  %453 = vmatprep.mubr.bf16.mxu1 %v7797_v0 }
  0x96   : > { %v270_v46 = vpop.permute.xlu1 %269  ;;  %v268_v47 = vpop.permute.xlu0 %267  ;;  %2567 = vrot.lane.b32.xlu0 %v7901_v22, %s7801_s21  ;;  %2569 = vrot.lane.b32.xlu1 %v7907_v23, %s7801_s21 }
  0x97   : > { %v293_v49 = vsel %vm285_vm0, %v266_v40, %v268_v47  ;;  %v294_v52 = vsel %vm285_vm0, %v268_v47, %v270_v46 }
  0x98   : > { %6563 = vmatmul.mubr.msk.bf16.gmra.mrb[4].mxu0 %vm302_vm2, %v7996_v45  ;;  %6570 = vmatprep.subr.msk.bf16.mxu1 %vm309_vm1, %v293_v49  ;;  %v335_v54 = vsel %vm309_vm1, %v294_v52, 0 }
  0x99   : > { %518 = vmatpush1.bf16.msra.mxu1 %v329_v48  ;;  %496 = vmatprep.mubr.bf16.mxu0 %v7797_v0 }
  0x9a   : > { %v272_v50 = vpop.permute.xlu0 %271  ;;  %v274_v51 = vpop.permute.xlu1 %273  ;;  %2571 = vrot.lane.b32.xlu0 %v7909_v24, %s7801_s21  ;;  %2573 = vrot.lane.b32.xlu1 %v7912_v25, %s7801_s21 }
  0x9b   : > { %v295_v53 = vsel %vm285_vm0, %v270_v46, %v272_v50  ;;  %v296_v56 = vsel %vm285_vm0, %v272_v50, %v274_v51  ;;  %v8225_v50 = vld [vmem:[%s9261_s1 + $0x20] sm:$0xff]  }
  0x9c   : > { %6566 = vmatmul.mubr.msk.bf16.gmra.mrb[4].mxu1 %vm302_vm2, %v7996_v45  ;;  %6573 = vmatprep.subr.msk.bf16.mxu0 %vm309_vm1, %v295_v53  ;;  %v341_v59 = vsel %vm309_vm1, %v296_v56, 0 }
  0x9d   : > { %549 = vmatprep.mubr.bf16.mxu1 %v7797_v0 }
  0x9e   : > { %v276_v55 = vpop.permute.xlu0 %275  ;;  %v278_v58 = vpop.permute.xlu1 %277  ;;  %3149 = vrot.lane.b32.xlu0 %v7847_v4, %s7802_s26  ;;  %3151 = vrot.lane.b32.xlu1 %v7855_v6, %s7802_s26 }
  0x9f   : > { %v297_v57 = vsel %vm285_vm0, %v274_v51, %v276_v55  ;;  %v298_v2 = vsel %vm285_vm0, %v276_v55, %v278_v58 }
  0xa0   : > { %6568 = vmatmul.mubr.msk.bf16.vlgmr.msra.gmra.mrb[8].mxu0 %vm302_vm2, %v7969_v33  ;;  %6576 = vmatprep.subr.msk.bf16.mxu1 %vm309_vm1, %v297_v57  ;;  %v347_v7 = vsel %vm309_vm1, %v298_v2, 0 }
  0xa1   : > { %571 = vmatpush1.bf16.msra.mxu0 %v335_v54  ;;  %506 = vmatprep.mubr.bf16.mxu0 %v7797_v0 }
  0xa2   : > { %v280_v60 = vpop.permute.xlu0 %279  ;;  %v282_v62 = vpop.permute.xlu1 %281  ;;  %3153 = vrot.lane.b32.xlu0 %v7845_v3, %s7802_s26  ;;  %3155 = vrot.lane.b32.xlu1 %v7853_v5, %s7802_s26 }
  0xa3   : > { %v299_v61 = vsel %vm285_vm0, %v278_v58, %v280_v60  ;;  %v300_v8 = vsel %vm285_vm0, %v280_v60, %v282_v62  ;;  %v8250_v60 = vld [vmem:[%s9261_s1 + $0x28] sm:$0xff]  }
  0xa4   : > { %6571 = vmatmul.mubr.msk.bf16.vlgmr.msra.gmra.mrb[8].mxu1 %vm302_vm2, %v7969_v33  ;;  %6579 = vmatprep.subr.msk.bf16.mxu0 %vm309_vm1, %v299_v61  ;;  %v353_v11 = vsel %vm309_vm1, %v300_v8, 0 }
  0xa5   : > { %624 = vmatpush1.bf16.msra.mxu1 %v341_v59  ;;  %559 = vmatprep.mubr.bf16.mxu1 %v7797_v0 }
  0xa6   : > { %v284_v63 = vpop.permute.xlu0 %283  ;;  %3157 = vrot.lane.b32.xlu0 %v7865_v10, %s7802_s26  ;;  %3159 = vrot.lane.b32.xlu1 %v7863_v9, %s7802_s26  ;;  %v1326_v31 = vpop.permute.xlu1 %1325 }
  0xa7   : > { %v301_v1 = vsel %vm285_vm0, %v282_v62, %v284_v63 }
  0xa8   : > { %6569 = vmatmul.mubr.msk.bf16.gmra.mrb[12].mxu0 %vm302_vm2, %v7996_v45  ;;  %6582 = vmatprep.subr.msk.bf16.mxu1 %vm309_vm1, %v301_v1 }
  0xa9   : > { %602 = vmatprep.mubr.bf16.mxu0 %v7797_v0 }
  0xaa   : > { %3161 = vrot.lane.b32.xlu0 %v7874_v13, %s7802_s26  ;;  %3163 = vrot.lane.b32.xlu1 %v7872_v12, %s7802_s26  ;;  %v1330_v32 = vpop.permute.xlu1 %1329 }
  0xac   : > { %6572 = vmatmul.mubr.msk.bf16.gmra.mrb[12].mxu1 %vm302_vm2, %v7996_v45 }
  0xad   : > { %655 = vmatprep.mubr.bf16.mxu1 %v7797_v0 }
  0xae   : > { %3165 = vrot.lane.b32.xlu0 %v7883_v16, %s7802_s26  ;;  %3167 = vrot.lane.b32.xlu1 %v7881_v15, %s7802_s26 }
  0xb0   : > { %6574 = vmatmul.mubr.msk.bf16.vlgmr.msra.gmra.mrb[16].mxu0 %vm302_vm2, %v7969_v33 }
  0xb1   : > { %677 = vmatpush1.bf16.msra.mxu0 %v347_v7  ;;  %612 = vmatprep.mubr.bf16.mxu0 %v7797_v0 }
  0xb2   : > { %6603 = vmatprep.subr.msk.bf16.mxu0 %vm309_vm1, %v7855_v6  ;;  %3169 = vrot.lane.b32.xlu0 %v7890_v18, %s7802_s26 }
  0xb3   : > { %3171 = vrot.lane.b32.xlu1 %v7892_v19, %s7802_s26 }
  0xb4   : > { %6577 = vmatmul.mubr.msk.bf16.vlgmr.msra.gmra.mrb[16].mxu1 %vm302_vm2, %v7969_v33 }
  0xb5   : > { %730 = vmatpush1.bf16.msra.mxu1 %v353_v11  ;;  %665 = vmatprep.mubr.bf16.mxu1 %v7797_v0 }
  0xb6   : > { %6606 = vmatprep.subr.msk.bf16.mxu1 %vm309_vm1, %v7853_v5  ;;  %3173 = vrot.lane.b32.xlu0 %v7899_v21, %s7802_s26 }
  0xb7   : > { %3175 = vrot.lane.b32.xlu1 %v7901_v22, %s7802_s26 }
  0xb8   : > { %6575 = vmatmul.mubr.msk.bf16.gmra.mrb[20].mxu0 %vm302_vm2, %v7996_v45 }
  0xb9   : > { %708 = vmatprep.mubr.bf16.mxu0 %v7797_v0 }
  0xba   : > { %3177 = vrot.lane.b32.xlu0 %v7907_v23, %s7802_s26 }
  0xbb   : > { %3179 = vrot.lane.b32.xlu1 %v7909_v24, %s7802_s26 }
  0xbc   : > { %6578 = vmatmul.mubr.msk.bf16.gmra.mrb[20].mxu1 %vm302_vm2, %v7996_v45 }
  0xbd   : > { %761 = vmatprep.mubr.bf16.mxu1 %v7797_v0 }
  0xbe   : > { %3181 = vrot.lane.b32.xlu0 %v7912_v25, %s7802_s26  ;;  %v1334_v25 = vpop.permute.xlu1 %1333 }
  0xbf   : > { %3757 = vrot.lane.b32.xlu1 %v7847_v4, %s7803_s4 }
  0xc0   : > { %6580 = vmatmul.mubr.msk.bf16.vlgmr.msra.gmra.mrb[24].mxu0 %vm302_vm2, %v7969_v33 }
  0xc1   : > { %718 = vmatprep.mubr.bf16.mxu0 %v7797_v0  ;;  %887 = vmatpush1.bf16.msra.mxu0 %v839_v14 }
  0xc2   : > { %6609 = vmatprep.subr.msk.bf16.mxu0 %vm309_vm1, %v7863_v9  ;;  %v1338_v41 = vpop.permute.xlu1 %1337  ;;  %3759 = vrot.lane.b32.xlu0 %v7855_v6, %s7803_s4 }
  0xc3   : > { %3761 = vrot.lane.b32.xlu1 %v7845_v3, %s7803_s4 }
  0xc4   : > { %6583 = vmatmul.mubr.msk.bf16.vlgmr.msra.gmra.mrb[24].mxu1 %vm302_vm2, %v7969_v33  ;;  %v1328_v33 = vpop.permute.xlu0 %1327 }
  0xc5   : > { %940 = vmatpush1.bf16.msra.mxu1 %v845_v17  ;;  %771 = vmatprep.mubr.bf16.mxu1 %v7797_v0  ;;  %v1361_v35 = vsel %vm1359_vm3, %v1328_v33, %v1330_v32  ;;  %v1360_v39 = vsel %vm1359_vm3, %v1326_v31, %v1328_v33 }
  0xc6   : > { %6612 = vmatprep.subr.msk.bf16.mxu1 %vm309_vm1, %v7872_v12  ;;  %v1383_v42 = vsel %vm309_vm1, %v1360_v39, 0  ;;  %3763 = vrot.lane.b32.xlu0 %v7853_v5, %s7803_s4 }
  0xc7   : > { %3765 = vrot.lane.b32.xlu1 %v7865_v10, %s7803_s4 }
  0xc8   : > { %6581 = vmatmul.mubr.msk.bf16.gmra.mrb[28].mxu0 %vm302_vm2, %v7996_v45  ;;  %v1332_v36 = vpop.permute.xlu0 %1331 }
  0xc9   : > { %918 = vmatprep.mubr.bf16.mxu0 %v7797_v0  ;;  %v1363_v38 = vsel %vm1359_vm3, %v1332_v36, %v1334_v25  ;;  %v1362_v43 = vsel %vm1359_vm3, %v1330_v32, %v1332_v36 }
  0xca   : > { %v1389_v47 = vsel %vm309_vm1, %v1362_v43, 0  ;;  %3767 = vrot.lane.b32.xlu0 %v7863_v9, %s7803_s4 }
  0xcb   : > { %3769 = vrot.lane.b32.xlu1 %v7874_v13, %s7803_s4 }
  0xcc   : > { %6584 = vmatmul.mubr.msk.bf16.gmra.mrb[28].mxu1 %vm302_vm2, %v7996_v45  ;;  %v1336_v40 = vpop.permute.xlu0 %1335  ;;  %v1342_v45 = vpop.permute.xlu1 %1341 }
  0xcd   : > { %971 = vmatprep.mubr.bf16.mxu1 %v7797_v0  ;;  %v1365_v44 = vsel %vm1359_vm3, %v1336_v40, %v1338_v41  ;;  %v1364_v49 = vsel %vm1359_vm3, %v1334_v25, %v1336_v40 }
  0xce   : > { %v1395_v53 = vsel %vm309_vm1, %v1364_v49, 0  ;;  %3771 = vrot.lane.b32.xlu0 %v7872_v12, %s7803_s4 }
  0xcf   : > { %3773 = vrot.lane.b32.xlu1 %v7883_v16, %s7803_s4 }
  0xd0   : > { %6604 = vmatmul.mubr.msk.bf16.vlgmr.msra.gmra.mrb[0].mxu0 %vm302_vm2, %v8100_v20  ;;  %v1340_v46 = vpop.permute.xlu0 %1339  ;;  %v1346_v52 = vpop.permute.xlu1 %1345 }
  0xd1   : > { %928 = vmatprep.mubr.bf16.mxu0 %v7797_v0  ;;  %993 = vmatpush1.bf16.msra.mxu0 %v851_v26  ;;  %v1367_v48 = vsel %vm1359_vm3, %v1340_v46, %v1342_v45  ;;  %v1366_v54 = vsel %vm1359_vm3, %v1338_v41, %v1340_v46  ;;  %v8291_v26 = vld [vmem:[%s7841_s17 + $0x40] ss:$0 sps:$4 sm:$0xff]  }
  0xd2   : > { %6615 = vmatprep.subr.msk.bf16.mxu0 %vm309_vm1, %v7881_v15  ;;  %v1401_v58 = vsel %vm309_vm1, %v1366_v54, 0  ;;  %3775 = vrot.lane.b32.xlu0 %v7881_v15, %s7803_s4 }
  0xd3   : > { %3777 = vrot.lane.b32.xlu1 %v7890_v18, %s7803_s4 }
  0xd4   : > { %6607 = vmatmul.mubr.msk.bf16.vlgmr.msra.gmra.mrb[0].mxu1 %vm302_vm2, %v8100_v20  ;;  %v1344_v51 = vpop.permute.xlu0 %1343  ;;  %v1350_v56 = vpop.permute.xlu1 %1349 }
  0xd5   : > { %1046 = vmatpush1.bf16.msra.mxu1 %v857_v27  ;;  %981 = vmatprep.mubr.bf16.mxu1 %v7797_v0  ;;  %v1369_v55 = vsel %vm1359_vm3, %v1344_v51, %v1346_v52  ;;  %v1368_v61 = vsel %vm1359_vm3, %v1342_v45, %v1344_v51 }
  0xd6   : > { %6618 = vmatprep.subr.msk.bf16.mxu1 %vm309_vm1, %v7892_v19  ;;  %3779 = vrot.lane.b32.xlu0 %v7892_v19, %s7803_s4  ;;  %v1407_v1 = vsel %vm309_vm1, %v1368_v61, 0 }
  0xd7   : > { %3781 = vrot.lane.b32.xlu1 %v7899_v21, %s7803_s4 }
  0xd8   : > { %6605 = vmatmul.mubr.msk.bf16.gmra.mrb[4].mxu0 %vm302_vm2, %v8125_v28  ;;  %v1348_v57 = vpop.permute.xlu0 %1347  ;;  %v1354_v63 = vpop.permute.xlu1 %1353 }
  0xd9   : > { %1024 = vmatprep.mubr.bf16.mxu0 %v7797_v0  ;;  %v1371_v59 = vsel %vm1359_vm3, %v1348_v57, %v1350_v56  ;;  %v1370_v2 = vsel %vm1359_vm3, %v1346_v52, %v1348_v57 }
  0xda   : > { %3783 = vrot.lane.b32.xlu0 %v7901_v22, %s7803_s4  ;;  %v1413_v14 = vsel %vm309_vm1, %v1370_v2, 0 }
  0xdb   : > { %3785 = vrot.lane.b32.xlu1 %v7907_v23, %s7803_s4 }
  0xdc   : > { %6608 = vmatmul.mubr.msk.bf16.gmra.mrb[4].mxu1 %vm302_vm2, %v8125_v28  ;;  %v1352_v62 = vpop.permute.xlu0 %1351  ;;  %v1358_v8 = vpop.permute.xlu1 %1357 }
  0xdd   : > { %1077 = vmatprep.mubr.bf16.mxu1 %v7797_v0  ;;  %v1373_v7 = vsel %vm1359_vm3, %v1352_v62, %v1354_v63 }
  0xde   : > { %3787 = vrot.lane.b32.xlu0 %v7909_v24, %s7803_s4 }
  0xdf   : > { %3789 = vrot.lane.b32.xlu1 %v8291_v26, %s7803_s4 }
  0xe0   : > { %6610 = vmatmul.mubr.msk.bf16.vlgmr.msra.gmra.mrb[8].mxu0 %vm302_vm2, %v8100_v20  ;;  %v1356_v11 = vpop.permute.xlu0 %1355  ;;  %v1936_v27 = vpop.permute.xlu1 %1935 }
  0xe1   : > { %1034 = vmatprep.mubr.bf16.mxu0 %v7797_v0  ;;  %1099 = vmatpush1.bf16.msra.mxu0 %v863_v29  ;;  %v1375_v17 = vsel %vm1359_vm3, %v1356_v11, %v1358_v8  ;;  %v1372_v29 = vsel %vm1359_vm3, %v1350_v56, %v1352_v62  ;;  %v1374_v31 = vsel %vm1359_vm3, %v1354_v63, %v1356_v11 }
  0xe2   : > { %6621 = vmatprep.subr.msk.bf16.mxu0 %vm309_vm1, %v7901_v22  ;;  %4365 = vrot.lane.b32.xlu0 %v7847_v4, %s7804_s9  ;;  %v8352_v4 = vld [vmem:[%s9261_s1 + $0x30] sm:$0xff]  }
  0xe3   : > { %4367 = vrot.lane.b32.xlu1 %v7855_v6, %s7804_s9 }
  0xe4   : > { %6613 = vmatmul.mubr.msk.bf16.vlgmr.msra.gmra.mrb[8].mxu1 %vm302_vm2, %v8100_v20  ;;  %v1940_v33 = vpop.permute.xlu1 %1939 }
  0xe5   : > { %1152 = vmatpush1.bf16.msra.mxu1 %v869_v30  ;;  %1087 = vmatprep.mubr.bf16.mxu1 %v7797_v0  ;;  %v1419_v30 = vsel %vm309_vm1, %v1372_v29, 0 }
  0xe6   : > { %6624 = vmatprep.subr.msk.bf16.mxu1 %vm309_vm1, %v7909_v24  ;;  %4369 = vrot.lane.b32.xlu0 %v7845_v3, %s7804_s9 }
  0xe7   : > { %4371 = vrot.lane.b32.xlu1 %v7853_v5, %s7804_s9 }
  0xe8   : > { %6611 = vmatmul.mubr.msk.bf16.gmra.mrb[12].mxu0 %vm302_vm2, %v8125_v28 }
  0xe9   : > { %1130 = vmatprep.mubr.bf16.mxu0 %v7797_v0 }
  0xea   : > { %4373 = vrot.lane.b32.xlu0 %v7865_v10, %s7804_s9 }
  0xeb   : > { %4375 = vrot.lane.b32.xlu1 %v7863_v9, %s7804_s9  ;;  %v8377_v9 = vld [vmem:[%s9261_s1 + $0x38] sm:$0xff]  }
  0xec   : > { %6614 = vmatmul.mubr.msk.bf16.gmra.mrb[12].mxu1 %vm302_vm2, %v8125_v28 }
  0xed   : > { %1183 = vmatprep.mubr.bf16.mxu1 %v7797_v0 }
  0xee   : > { %4377 = vrot.lane.b32.xlu0 %v7874_v13, %s7804_s9 }
  0xef   : > { %4379 = vrot.lane.b32.xlu1 %v7872_v12, %s7804_s9 }
  0xf0   : > { %6616 = vmatmul.mubr.msk.bf16.vlgmr.msra.gmra.mrb[16].mxu0 %vm302_vm2, %v8100_v20 }
  0xf1   : > { %1140 = vmatprep.mubr.bf16.mxu0 %v7797_v0  ;;  %1205 = vmatpush1.bf16.msra.mxu0 %v875_v34 }
  0xf2   : > { %6633 = vmatprep.subr.msk.bf16.mxu0 %vm309_vm1, %v1361_v35  ;;  %v1425_v35 = vsel %vm309_vm1, %v1374_v31, 0  ;;  %4381 = vrot.lane.b32.xlu0 %v7883_v16, %s7804_s9 }
  0xf3   : > { %4383 = vrot.lane.b32.xlu1 %v7881_v15, %s7804_s9 }
  0xf4   : > { %6619 = vmatmul.mubr.msk.bf16.vlgmr.msra.gmra.mrb[16].mxu1 %vm302_vm2, %v8100_v20 }
  0xf5   : > { %1258 = vmatpush1.bf16.msra.mxu1 %v881_v37  ;;  %1193 = vmatprep.mubr.bf16.mxu1 %v7797_v0  ;;  %v1944_v37 = vpop.permute.xlu1 %1943 }
  0xf6   : > { %6636 = vmatprep.subr.msk.bf16.mxu1 %vm309_vm1, %v1363_v38  ;;  %4385 = vrot.lane.b32.xlu0 %v7890_v18, %s7804_s9 }
  0xf7   : > { %4387 = vrot.lane.b32.xlu1 %v7892_v19, %s7804_s9 }
  0xf8   : > { %6617 = vmatmul.mubr.msk.bf16.gmra.mrb[20].mxu0 %vm302_vm2, %v8125_v28 }
  0xf9   : > { %1236 = vmatprep.mubr.bf16.mxu0 %v7797_v0 }
  0xfa   : > { %4389 = vrot.lane.b32.xlu0 %v7899_v21, %s7804_s9 }
  0xfb   : > { %4391 = vrot.lane.b32.xlu1 %v7901_v22, %s7804_s9 }
  0xfc   : > { %6620 = vmatmul.mubr.msk.bf16.gmra.mrb[20].mxu1 %vm302_vm2, %v8125_v28 }
  0xfd   : > { %1289 = vmatprep.mubr.bf16.mxu1 %v7797_v0 }
  0xfe   : > { %4393 = vrot.lane.b32.xlu0 %v7907_v23, %s7804_s9 }
  0xff   : > { %4395 = vrot.lane.b32.xlu1 %v7909_v24, %s7804_s9 }
 0x100   : > { %6622 = vmatmul.mubr.msk.bf16.vlgmr.msra.gmra.mrb[24].mxu0 %vm302_vm2, %v8100_v20 }
 0x101   : > { %1431 = vmatpush1.bf16.msra.mxu0 %v1383_v42  ;;  %1246 = vmatprep.mubr.bf16.mxu0 %v7797_v0  ;;  %v1948_v42 = vpop.permute.xlu1 %1947 }
 0x102   : > { %6639 = vmatprep.subr.msk.bf16.mxu0 %vm309_vm1, %v1365_v44  ;;  %4397 = vrot.lane.b32.xlu0 %v8291_v26, %s7804_s9 }
 0x104   : > { %6625 = vmatmul.mubr.msk.bf16.vlgmr.msra.gmra.mrb[24].mxu1 %vm302_vm2, %v8100_v20  ;;  %v1934_v20 = vpop.permute.xlu0 %1933 }
 0x105   : > { %1484 = vmatpush1.bf16.msra.mxu1 %v1389_v47  ;;  %1299 = vmatprep.mubr.bf16.mxu1 %v7797_v0  ;;  %v1968_v36 = vsel %vm1967_vm4, %v1934_v20, %v1936_v27  ;;  %v1952_v6 = vpop.permute.xlu1 %1951 }
 0x106   : > { %6642 = vmatprep.subr.msk.bf16.mxu1 %vm309_vm1, %v1367_v48  ;;  %v1991_v39 = vsel %vm309_vm1, %v1968_v36, 0 }
 0x108   : > { %6623 = vmatmul.mubr.msk.bf16.gmra.mrb[28].mxu0 %vm302_vm2, %v8125_v28 }
 0x109   : > { %1462 = vmatprep.mubr.bf16.mxu0 %v7797_v0  ;;  %v1956_v49 = vpop.permute.xlu1 %1955 }
 0x10c   : > { %6626 = vmatmul.mubr.msk.bf16.gmra.mrb[28].mxu1 %vm302_vm2, %v8125_v28  ;;  %v1938_v28 = vpop.permute.xlu0 %1937 }
 0x10d   : > { %1515 = vmatprep.mubr.bf16.mxu1 %v7797_v0  ;;  %v1969_v32 = vsel %vm1967_vm4, %v1936_v27, %v1938_v28  ;;  %v1970_v40 = vsel %vm1967_vm4, %v1938_v28, %v1940_v33  ;;  %v1960_v13 = vpop.permute.xlu1 %1959  ;;  %v8468_v28 = vld [vmem:[%s9261_s1 + $0x40] sm:$0xff]  }
 0x10e   : > { %v1997_v44 = vsel %vm309_vm1, %v1970_v40, 0 }
 0x110   : > { %6634 = vmatmul.mubr.msk.bf16.vlgmr.msra.gmra.mrb[0].mxu0 %vm302_vm2, %v8225_v50  ;;  %v1942_v34 = vpop.permute.xlu0 %1941 }
 0x111   : > { %1537 = vmatpush1.bf16.msra.mxu0 %v1395_v53  ;;  %1472 = vmatprep.mubr.bf16.mxu0 %v7797_v0  ;;  %v1971_v25 = vsel %vm1967_vm4, %v1940_v33, %v1942_v34  ;;  %v1972_v46 = vsel %vm1967_vm4, %v1942_v34, %v1944_v37  ;;  %v1964_v19 = vpop.permute.xlu1 %1963 }
 0x112   : > { %6645 = vmatprep.subr.msk.bf16.mxu0 %vm309_vm1, %v1369_v55  ;;  %v2003_v48 = vsel %vm309_vm1, %v1972_v46, 0 }
 0x114   : > { %6637 = vmatmul.mubr.msk.bf16.vlgmr.msra.gmra.mrb[0].mxu1 %vm302_vm2, %v8225_v50  ;;  %v1946_v38 = vpop.permute.xlu0 %1945 }
 0x115   : > { %1590 = vmatpush1.bf16.msra.mxu1 %v1401_v58  ;;  %1525 = vmatprep.mubr.bf16.mxu1 %v7797_v0  ;;  %v1973_v41 = vsel %vm1967_vm4, %v1944_v37, %v1946_v38  ;;  %v1974_v3 = vsel %vm1967_vm4, %v1946_v38, %v1948_v42  ;;  %v2542_v22 = vpop.permute.xlu1 %2541  ;;  %v8485_v37 = vld [vmem:[%s9261_s1 + $0x48] sm:$0xff]  }
 0x116   : > { %6648 = vmatprep.subr.msk.bf16.mxu1 %vm309_vm1, %v1371_v59  ;;  %v2009_v51 = vsel %vm309_vm1, %v1974_v3, 0 }
 0x118   : > { %6635 = vmatmul.mubr.msk.bf16.gmra.mrb[4].mxu0 %vm302_vm2, %v8250_v60  ;;  %v1950_v43 = vpop.permute.xlu0 %1949 }
 0x119   : > { %1568 = vmatprep.mubr.bf16.mxu0 %v7797_v0  ;;  %v1975_v45 = vsel %vm1967_vm4, %v1948_v42, %v1950_v43  ;;  %v1976_v12 = vsel %vm1967_vm4, %v1950_v43, %v1952_v6  ;;  %v2546_v23 = vpop.permute.xlu1 %2545 }
 0x11a   : > { %v2015_v15 = vsel %vm309_vm1, %v1976_v12, 0 }
 0x11c   : > { %6638 = vmatmul.mubr.msk.bf16.gmra.mrb[4].mxu1 %vm302_vm2, %v8250_v60  ;;  %v1954_v47 = vpop.permute.xlu0 %1953 }
 0x11d   : > { %1621 = vmatprep.mubr.bf16.mxu1 %v7797_v0  ;;  %v1977_v5 = vsel %vm1967_vm4, %v1952_v6, %v1954_v47  ;;  %v1978_v52 = vsel %vm1967_vm4, %v1954_v47, %v1956_v49  ;;  %v2550_v59 = vpop.permute.xlu1 %2549 }
 0x11e   : > { %v2021_v54 = vsel %vm309_vm1, %v1978_v52, 0 }
 0x120   : > { %6640 = vmatmul.mubr.msk.bf16.vlgmr.msra.gmra.mrb[8].mxu0 %vm302_vm2, %v8225_v50 }
 0x121   : > { %1643 = vmatpush1.bf16.msra.mxu0 %v1407_v1  ;;  %1578 = vmatprep.mubr.bf16.mxu0 %v7797_v0  ;;  %v2554_v2 = vpop.permute.xlu1 %2553 }
 0x122   : > { %6651 = vmatprep.subr.msk.bf16.mxu0 %vm309_vm1, %v1373_v7 }
 0x124   : > { %6643 = vmatmul.mubr.msk.bf16.vlgmr.msra.gmra.mrb[8].mxu1 %vm302_vm2, %v8225_v50 }
 0x125   : > { %1696 = vmatpush1.bf16.msra.mxu1 %v1413_v14  ;;  %1631 = vmatprep.mubr.bf16.mxu1 %v7797_v0  ;;  %v2558_v14 = vpop.permute.xlu1 %2557 }
 0x126   : > { %6654 = vmatprep.subr.msk.bf16.mxu1 %vm309_vm1, %v1375_v17 }
 0x128   : > { %6641 = vmatmul.mubr.msk.bf16.gmra.mrb[12].mxu0 %vm302_vm2, %v8250_v60 }
 0x129   : > { %1674 = vmatprep.mubr.bf16.mxu0 %v7797_v0 }
 0x12c   : > { %6644 = vmatmul.mubr.msk.bf16.gmra.mrb[12].mxu1 %vm302_vm2, %v8250_v60 }
 0x12d   : > { %1727 = vmatprep.mubr.bf16.mxu1 %v7797_v0 }
 0x130   : > { %6646 = vmatmul.mubr.msk.bf16.vlgmr.msra.gmra.mrb[16].mxu0 %vm302_vm2, %v8225_v50 }
 0x131   : > { %1749 = vmatpush1.bf16.msra.mxu0 %v1419_v30  ;;  %1684 = vmatprep.mubr.bf16.mxu0 %v7797_v0  ;;  %v2562_v30 = vpop.permute.xlu1 %2561 }
 0x132   : > { %6663 = vmatprep.subr.msk.bf16.mxu0 %vm309_vm1, %v1969_v32 }
 0x134   : > { %6649 = vmatmul.mubr.msk.bf16.vlgmr.msra.gmra.mrb[16].mxu1 %vm302_vm2, %v8225_v50 }
 0x135   : > { %1802 = vmatpush1.bf16.msra.mxu1 %v1425_v35  ;;  %1737 = vmatprep.mubr.bf16.mxu1 %v7797_v0  ;;  %v2566_v34 = vpop.permute.xlu1 %2565 }
 0x136   : > { %6666 = vmatprep.subr.msk.bf16.mxu1 %vm309_vm1, %v1971_v25 }
 0x138   : > { %6647 = vmatmul.mubr.msk.bf16.gmra.mrb[20].mxu0 %vm302_vm2, %v8250_v60 }
 0x139   : > { %1780 = vmatprep.mubr.bf16.mxu0 %v7797_v0  ;;  %v2570_v40 = vpop.permute.xlu1 %2569 }
 0x13c   : > { %6650 = vmatmul.mubr.msk.bf16.gmra.mrb[20].mxu1 %vm302_vm2, %v8250_v60 }
 0x13d   : > { %1833 = vmatprep.mubr.bf16.mxu1 %v7797_v0 }
 0x140   : > { %6652 = vmatmul.mubr.msk.bf16.vlgmr.msra.gmra.mrb[24].mxu0 %vm302_vm2, %v8225_v50 }
 0x141   : > { %2039 = vmatpush1.bf16.msra.mxu0 %v1991_v39  ;;  %1790 = vmatprep.mubr.bf16.mxu0 %v7797_v0 }
 0x142   : > { %6669 = vmatprep.subr.msk.bf16.mxu0 %vm309_vm1, %v1973_v41 }
 0x144   : > { %6655 = vmatmul.mubr.msk.bf16.vlgmr.msra.gmra.mrb[24].mxu1 %vm302_vm2, %v8225_v50  ;;  %v1958_v50 = vpop.permute.xlu0 %1957 }
 0x145   : > { %2092 = vmatpush1.bf16.msra.mxu1 %v1997_v44  ;;  %1843 = vmatprep.mubr.bf16.mxu1 %v7797_v0  ;;  %v1979_v10 = vsel %vm1967_vm4, %v1956_v49, %v1958_v50  ;;  %v1980_v24 = vsel %vm1967_vm4, %v1958_v50, %v1960_v13  ;;  %v2574_v44 = vpop.permute.xlu1 %2573 }
 0x146   : > { %6672 = vmatprep.subr.msk.bf16.mxu1 %vm309_vm1, %v1975_v45  ;;  %v2027_v56 = vsel %vm309_vm1, %v1980_v24, 0 }
 0x148   : > { %6653 = vmatmul.mubr.msk.bf16.gmra.mrb[28].mxu0 %vm302_vm2, %v8250_v60  ;;  %v1962_v16 = vpop.permute.xlu0 %1961 }
 0x149   : > { %2070 = vmatprep.mubr.bf16.mxu0 %v7797_v0  ;;  %v1981_v18 = vsel %vm1967_vm4, %v1960_v13, %v1962_v16  ;;  %v1982_v57 = vsel %vm1967_vm4, %v1962_v16, %v1964_v19  ;;  %v3152_v47 = vpop.permute.xlu1 %3151 }
 0x14a   : > { %v2033_v61 = vsel %vm309_vm1, %v1982_v57, 0 }
 0x14c   : > { %6656 = vmatmul.mubr.msk.bf16.gmra.mrb[28].mxu1 %vm302_vm2, %v8250_v60  ;;  %v1966_v53 = vpop.permute.xlu0 %1965 }
 0x14d   : > { %2123 = vmatprep.mubr.bf16.mxu1 %v7797_v0  ;;  %v1983_v21 = vsel %vm1967_vm4, %v1964_v19, %v1966_v53 }
 0x150   : > { %6664 = vmatmul.mubr.msk.bf16.vlgmr.msra.gmra.mrb[0].mxu0 %vm302_vm2, %v8352_v4  ;;  %v2544_v55 = vpop.permute.xlu0 %2543 }
 0x151   : > { %2145 = vmatpush1.bf16.msra.mxu0 %v2003_v48  ;;  %2080 = vmatprep.mubr.bf16.mxu0 %v7797_v0  ;;  %v2577_v58 = vsel %vm2575_vm5, %v2544_v55, %v2546_v23  ;;  %v2576_v63 = vsel %vm2575_vm5, %v2542_v22, %v2544_v55  ;;  %v8558_v55 = vld [vmem:[%s9261_s1 + $0x50] sm:$0xff]  }
 0x152   : > { %6675 = vmatprep.subr.msk.bf16.mxu0 %vm309_vm1, %v1977_v5  ;;  %v2599_v7 = vsel %vm309_vm1, %v2576_v63, 0 }
 0x154   : > { %6667 = vmatmul.mubr.msk.bf16.vlgmr.msra.gmra.mrb[0].mxu1 %vm302_vm2, %v8352_v4  ;;  %v2548_v60 = vpop.permute.xlu0 %2547 }
 0x155   : > { %2198 = vmatpush1.bf16.msra.mxu1 %v2009_v51  ;;  %2133 = vmatprep.mubr.bf16.mxu1 %v7797_v0  ;;  %v2579_v62 = vsel %vm2575_vm5, %v2548_v60, %v2550_v59  ;;  %v2578_v8 = vsel %vm2575_vm5, %v2546_v23, %v2548_v60  ;;  %v3156_v51 = vpop.permute.xlu1 %3155 }
 0x156   : > { %6678 = vmatprep.subr.msk.bf16.mxu1 %vm309_vm1, %v1979_v10  ;;  %v2605_v20 = vsel %vm309_vm1, %v2578_v8, 0 }
 0x158   : > { %6665 = vmatmul.mubr.msk.bf16.gmra.mrb[4].mxu0 %vm302_vm2, %v8377_v9  ;;  %v2552_v1 = vpop.permute.xlu0 %2551 }
 0x159   : > { %2176 = vmatprep.mubr.bf16.mxu0 %v7797_v0  ;;  %v2581_v11 = vsel %vm2575_vm5, %v2552_v1, %v2554_v2  ;;  %v2580_v27 = vsel %vm2575_vm5, %v2550_v59, %v2552_v1  ;;  %v3160_v16 = vpop.permute.xlu1 %3159  ;;  %v8575_v1 = vld [vmem:[%s9261_s1 + $0x58] sm:$0xff]  }
 0x15a   : > { %v2611_v31 = vsel %vm309_vm1, %v2580_v27, 0 }
 0x15c   : > { %6668 = vmatmul.mubr.msk.bf16.gmra.mrb[4].mxu1 %vm302_vm2, %v8377_v9  ;;  %v2556_v17 = vpop.permute.xlu0 %2555 }
 0x15d   : > { %2229 = vmatprep.mubr.bf16.mxu1 %v7797_v0  ;;  %v2583_v26 = vsel %vm2575_vm5, %v2556_v17, %v2558_v14  ;;  %v2582_v32 = vsel %vm2575_vm5, %v2554_v2, %v2556_v17  ;;  %v3164_v53 = vpop.permute.xlu1 %3163 }
 0x15e   : > { %v2617_v25 = vsel %vm309_vm1, %v2582_v32, 0 }
 0x160   : > { %6670 = vmatmul.mubr.msk.bf16.vlgmr.msra.gmra.mrb[8].mxu0 %vm302_vm2, %v8352_v4  ;;  %v2560_v29 = vpop.permute.xlu0 %2559 }
 0x161   : > { %2251 = vmatpush1.bf16.msra.mxu0 %v2015_v15  ;;  %2186 = vmatprep.mubr.bf16.mxu0 %v7797_v0  ;;  %v2585_v33 = vsel %vm2575_vm5, %v2560_v29, %v2562_v30  ;;  %v2584_v38 = vsel %vm2575_vm5, %v2558_v14, %v2560_v29  ;;  %v3168_v24 = vpop.permute.xlu1 %3167 }
 0x162   : > { %6681 = vmatprep.subr.msk.bf16.mxu0 %vm309_vm1, %v1981_v18  ;;  %v2623_v41 = vsel %vm309_vm1, %v2584_v38, 0 }
 0x164   : > { %6673 = vmatmul.mubr.msk.bf16.vlgmr.msra.gmra.mrb[8].mxu1 %vm302_vm2, %v8352_v4  ;;  %v2564_v35 = vpop.permute.xlu0 %2563 }
 0x165   : > { %2304 = vmatpush1.bf16.msra.mxu1 %v2021_v54  ;;  %2239 = vmatprep.mubr.bf16.mxu1 %v7797_v0  ;;  %v2587_v36 = vsel %vm2575_vm5, %v2564_v35, %v2566_v34  ;;  %v2586_v42 = vsel %vm2575_vm5, %v2562_v30, %v2564_v35  ;;  %v3172_v60 = vpop.permute.xlu1 %3171 }
 0x166   : > { %6684 = vmatprep.subr.msk.bf16.mxu1 %vm309_vm1, %v1983_v21  ;;  %v2629_v46 = vsel %vm309_vm1, %v2586_v42, 0 }
 0x168   : > { %6671 = vmatmul.mubr.msk.bf16.gmra.mrb[12].mxu0 %vm302_vm2, %v8377_v9  ;;  %v2568_v39 = vpop.permute.xlu0 %2567 }
 0x169   : > { %2282 = vmatprep.mubr.bf16.mxu0 %v7797_v0  ;;  %v2589_v43 = vsel %vm2575_vm5, %v2568_v39, %v2570_v40  ;;  %v2588_v3 = vsel %vm2575_vm5, %v2566_v34, %v2568_v39 }
 0x16a   : > { %v2635_v5 = vsel %vm309_vm1, %v2588_v3, 0 }
 0x16c   : > { %6674 = vmatmul.mubr.msk.bf16.gmra.mrb[12].mxu1 %vm302_vm2, %v8377_v9  ;;  %v2572_v45 = vpop.permute.xlu0 %2571 }
 0x16d   : > { %2335 = vmatprep.mubr.bf16.mxu1 %v7797_v0  ;;  %v2590_v49 = vsel %vm2575_vm5, %v2570_v40, %v2572_v45 }
 0x170   : > { %6676 = vmatmul.mubr.msk.bf16.vlgmr.msra.gmra.mrb[16].mxu0 %vm302_vm2, %v8352_v4  ;;  %v3150_v6 = vpop.permute.xlu0 %3149 }
 0x171   : > { %2357 = vmatpush1.bf16.msra.mxu0 %v2027_v56  ;;  %2292 = vmatprep.mubr.bf16.mxu0 %v7797_v0  ;;  %v3184_v13 = vsel %vm3183_vm6, %v3150_v6, %v3152_v47 }
 0x172   : > { %6693 = vmatprep.subr.msk.bf16.mxu0 %vm309_vm1, %v2577_v58  ;;  %v3207_v52 = vsel %vm309_vm1, %v3184_v13, 0 }
 0x174   : > { %6679 = vmatmul.mubr.msk.bf16.vlgmr.msra.gmra.mrb[16].mxu1 %vm302_vm2, %v8352_v4  ;;  %v3154_v48 = vpop.permute.xlu0 %3153 }
 0x175   : > { %2410 = vmatpush1.bf16.msra.mxu1 %v2033_v61  ;;  %2345 = vmatprep.mubr.bf16.mxu1 %v7797_v0  ;;  %v3185_v50 = vsel %vm3183_vm6, %v3152_v47, %v3154_v48  ;;  %v3186_v18 = vsel %vm3183_vm6, %v3154_v48, %v3156_v51  ;;  %v8648_v48 = vld [vmem:[%s9261_s1 + $0x60] sm:$0xff]  }
 0x176   : > { %6696 = vmatprep.subr.msk.bf16.mxu1 %vm309_vm1, %v2579_v62  ;;  %v3213_v21 = vsel %vm309_vm1, %v3186_v18, 0 }
 0x178   : > { %6677 = vmatmul.mubr.msk.bf16.gmra.mrb[20].mxu0 %vm302_vm2, %v8377_v9  ;;  %v3158_v10 = vpop.permute.xlu0 %3157 }
 0x179   : > { %2388 = vmatprep.mubr.bf16.mxu0 %v7797_v0  ;;  %v3187_v12 = vsel %vm3183_vm6, %v3156_v51, %v3158_v10  ;;  %v3188_v23 = vsel %vm3183_vm6, %v3158_v10, %v3160_v16 }
 0x17a   : > { %v3219_v57 = vsel %vm309_vm1, %v3188_v23, 0 }
 0x17c   : > { %6680 = vmatmul.mubr.msk.bf16.gmra.mrb[20].mxu1 %vm302_vm2, %v8377_v9  ;;  %v3162_v15 = vpop.permute.xlu0 %3161 }
 0x17d   : > { %2441 = vmatprep.mubr.bf16.mxu1 %v7797_v0  ;;  %v3189_v19 = vsel %vm3183_vm6, %v3160_v16, %v3162_v15  ;;  %v3190_v58 = vsel %vm3183_vm6, %v3162_v15, %v3164_v53  ;;  %v8665_v16 = vld [vmem:[%s9261_s1 + $0x68] sm:$0xff]  }
 0x17e   : > { %v3225_v62 = vsel %vm309_vm1, %v3190_v58, 0 }
 0x180   : > { %6682 = vmatmul.mubr.msk.bf16.vlgmr.msra.gmra.mrb[24].mxu0 %vm302_vm2, %v8352_v4  ;;  %v3166_v54 = vpop.permute.xlu0 %3165 }
 0x181   : > { %2647 = vmatpush1.bf16.msra.mxu0 %v2599_v7  ;;  %2398 = vmatprep.mubr.bf16.mxu0 %v7797_v0  ;;  %v3191_v22 = vsel %vm3183_vm6, %v3164_v53, %v3166_v54  ;;  %v3192_v2 = vsel %vm3183_vm6, %v3166_v54, %v3168_v24  ;;  %v3176_v7 = vpop.permute.xlu1 %3175 }
 0x182   : > { %6699 = vmatprep.subr.msk.bf16.mxu0 %vm309_vm1, %v2581_v11  ;;  %v3231_v11 = vsel %vm309_vm1, %v3192_v2, 0 }
 0x184   : > { %6685 = vmatmul.mubr.msk.bf16.vlgmr.msra.gmra.mrb[24].mxu1 %vm302_vm2, %v8352_v4  ;;  %v2591_v4 = vsel %vm2575_vm5, %v2572_v45, %v2574_v44  ;;  %v3170_v56 = vpop.permute.xlu0 %3169 }
 0x185   : > { %2700 = vmatpush1.bf16.msra.mxu1 %v2605_v20  ;;  %2451 = vmatprep.mubr.bf16.mxu1 %v7797_v0  ;;  %v3193_v59 = vsel %vm3183_vm6, %v3168_v24, %v3170_v56  ;;  %v3194_v14 = vsel %vm3183_vm6, %v3170_v56, %v3172_v60  ;;  %v3180_v20 = vpop.permute.xlu1 %3179 }
 0x186   : > { %6702 = vmatprep.subr.msk.bf16.mxu1 %vm309_vm1, %v2583_v26  ;;  %v3237_v27 = vsel %vm309_vm1, %v3194_v14, 0 }
 0x188   : > { %6683 = vmatmul.mubr.msk.bf16.gmra.mrb[28].mxu0 %vm302_vm2, %v8377_v9  ;;  %v3174_v61 = vpop.permute.xlu0 %3173 }
 0x189   : > { %2678 = vmatprep.mubr.bf16.mxu0 %v7797_v0  ;;  %v3195_v63 = vsel %vm3183_vm6, %v3172_v60, %v3174_v61  ;;  %v3758_v29 = vpop.permute.xlu1 %3757  ;;  %v3196_v32 = vsel %vm3183_vm6, %v3174_v61, %v3176_v7 }
 0x18c   : > { %6686 = vmatmul.mubr.msk.bf16.gmra.mrb[28].mxu1 %vm302_vm2, %v8377_v9  ;;  %v2641_v9 = vsel %vm309_vm1, %v2590_v49, 0  ;;  %v3178_v8 = vpop.permute.xlu0 %3177 }
 0x18d   : > { %2731 = vmatprep.mubr.bf16.mxu1 %v7797_v0  ;;  %v3197_v17 = vsel %vm3183_vm6, %v3176_v7, %v3178_v8  ;;  %v3762_v30 = vpop.permute.xlu1 %3761  ;;  %v3198_v34 = vsel %vm3183_vm6, %v3178_v8, %v3180_v20 }
 0x190   : > { %6694 = vmatmul.mubr.msk.bf16.vlgmr.msra.gmra.mrb[0].mxu0 %vm302_vm2, %v8468_v28  ;;  %v3182_v26 = vpop.permute.xlu0 %3181 }
 0x191   : > { %2753 = vmatpush1.bf16.msra.mxu0 %v2611_v31  ;;  %2688 = vmatprep.mubr.bf16.mxu0 %v7797_v0 }
 0x192   : > { %6705 = vmatprep.subr.msk.bf16.mxu0 %vm309_vm1, %v2585_v33  ;;  %v3243_v33 = vsel %vm309_vm1, %v3196_v32, 0 }
 0x194   : > { %6697 = vmatmul.mubr.msk.bf16.vlgmr.msra.gmra.mrb[0].mxu1 %vm302_vm2, %v8468_v28  ;;  %v3760_v31 = vpop.permute.xlu0 %3759 }
 0x195   : > { %2806 = vmatpush1.bf16.msra.mxu1 %v2617_v25  ;;  %2741 = vmatprep.mubr.bf16.mxu1 %v7797_v0  ;;  %v3793_v35 = vsel %vm3791_vm7, %v3760_v31, %v3762_v30  ;;  %v3766_v25 = vpop.permute.xlu1 %3765  ;;  %v3792_v39 = vsel %vm3791_vm7, %v3758_v29, %v3760_v31 }
 0x196   : > { %6708 = vmatprep.subr.msk.bf16.mxu1 %vm309_vm1, %v2587_v36  ;;  %v3815_v42 = vsel %vm309_vm1, %v3792_v39, 0 }
 0x198   : > { %6695 = vmatmul.mubr.msk.bf16.gmra.mrb[4].mxu0 %vm302_vm2, %v8485_v37  ;;  %v3764_v36 = vpop.permute.xlu0 %3763 }
 0x199   : > { %2784 = vmatprep.mubr.bf16.mxu0 %v7797_v0  ;;  %v3795_v38 = vsel %vm3791_vm7, %v3764_v36, %v3766_v25 }
 0x19c   : > { %6698 = vmatmul.mubr.msk.bf16.gmra.mrb[4].mxu1 %vm302_vm2, %v8485_v37  ;;  %v3768_v40 = vpop.permute.xlu0 %3767 }
 0x19d   : > { %2837 = vmatprep.mubr.bf16.mxu1 %v7797_v0  ;;  %v3796_v47 = vsel %vm3791_vm7, %v3766_v25, %v3768_v40 }
 0x19e   : > { %v3827_v49 = vsel %vm309_vm1, %v3796_v47, 0 }
 0x1a0   : > { %6700 = vmatmul.mubr.msk.bf16.vlgmr.msra.gmra.mrb[8].mxu0 %vm302_vm2, %v8468_v28 }
 0x1a1   : > { %2859 = vmatpush1.bf16.msra.mxu0 %v2623_v41  ;;  %2794 = vmatprep.mubr.bf16.mxu0 %v7797_v0  ;;  %v3770_v41 = vpop.permute.xlu1 %3769 }
 0x1a2   : > { %6711 = vmatprep.subr.msk.bf16.mxu0 %vm309_vm1, %v2589_v43  ;;  %v3794_v43 = vsel %vm3791_vm7, %v3762_v30, %v3764_v36  ;;  %v3797_v44 = vsel %vm3791_vm7, %v3768_v40, %v3770_v41  ;;  %v8755_v40 = vld [vmem:[%s9261_s1 + $0x78] sm:$0xff]  }
 0x1a4   : > { %6703 = vmatmul.mubr.msk.bf16.vlgmr.msra.gmra.mrb[8].mxu1 %vm302_vm2, %v8468_v28 }
 0x1a5   : > { %2912 = vmatpush1.bf16.msra.mxu1 %v2629_v46  ;;  %2847 = vmatprep.mubr.bf16.mxu1 %v7797_v0  ;;  %v3774_v45 = vpop.permute.xlu1 %3773  ;;  %v3772_v46 = vpop.permute.xlu0 %3771 }
 0x1a6   : > { %6714 = vmatprep.subr.msk.bf16.mxu1 %vm309_vm1, %v2591_v4  ;;  %v3821_v4 = vsel %vm309_vm1, %v3794_v43, 0  ;;  %v3799_v6 = vsel %vm3791_vm7, %v3772_v46, %v3774_v45 }
 0x1a8   : > { %6701 = vmatmul.mubr.msk.bf16.gmra.mrb[12].mxu0 %vm302_vm2, %v8485_v37 }
 0x1a9   : > { %2890 = vmatprep.mubr.bf16.mxu0 %v7797_v0  ;;  %v3776_v3 = vpop.permute.xlu0 %3775 }
 0x1aa   : > { %v3800_v15 = vsel %vm3791_vm7, %v3774_v45, %v3776_v3 }
 0x1ac   : > { %6704 = vmatmul.mubr.msk.bf16.gmra.mrb[12].mxu1 %vm302_vm2, %v8485_v37 }
 0x1ad   : > { %2943 = vmatprep.mubr.bf16.mxu1 %v7797_v0 }
 0x1b0   : > { %6706 = vmatmul.mubr.msk.bf16.vlgmr.msra.gmra.mrb[16].mxu0 %vm302_vm2, %v8468_v28 }
 0x1b1   : > { %2965 = vmatpush1.bf16.msra.mxu0 %v2635_v5  ;;  %2900 = vmatprep.mubr.bf16.mxu0 %v7797_v0  ;;  %v3778_v5 = vpop.permute.xlu1 %3777 }
 0x1b2   : > { %6723 = vmatprep.subr.msk.bf16.mxu0 %vm309_vm1, %v3185_v50  ;;  %v3798_v50 = vsel %vm3791_vm7, %v3770_v41, %v3772_v46  ;;  %v3801_v51 = vsel %vm3791_vm7, %v3776_v3, %v3778_v5 }
 0x1b4   : > { %6709 = vmatmul.mubr.msk.bf16.vlgmr.msra.gmra.mrb[16].mxu1 %vm302_vm2, %v8468_v28 }
 0x1b5   : > { %3018 = vmatpush1.bf16.msra.mxu1 %v2641_v9  ;;  %2953 = vmatprep.mubr.bf16.mxu1 %v7797_v0  ;;  %v3782_v10 = vpop.permute.xlu1 %3781  ;;  %v3780_v9 = vpop.permute.xlu0 %3779 }
 0x1b6   : > { %6726 = vmatprep.subr.msk.bf16.mxu1 %vm309_vm1, %v3187_v12  ;;  %v3833_v12 = vsel %vm309_vm1, %v3798_v50, 0  ;;  %v3803_v13 = vsel %vm3791_vm7, %v3780_v9, %v3782_v10  ;;  %v3802_v53 = vsel %vm3791_vm7, %v3778_v5, %v3780_v9  ;;  %v7661_v9 = vld [vmem:[%s9262_s2] sm:$0xff]  }
 0x1b7   : > { %v3845_v23 = vsel %vm309_vm1, %v3802_v53, 0  ;;  %v7670_v53 = vld [vmem:[%s9262_s2 + $0x58] sm:$0xff]  }
 0x1b8   : > { %6707 = vmatmul.mubr.msk.bf16.gmra.mrb[20].mxu0 %vm302_vm2, %v8485_v37 }
 0x1b9   : > { %2996 = vmatprep.mubr.bf16.mxu0 %v7797_v0  ;;  %v3786_v18 = vpop.permute.xlu1 %3785 }
 0x1bc   : > { %6710 = vmatmul.mubr.msk.bf16.gmra.mrb[20].mxu1 %vm302_vm2, %v8485_v37 }
 0x1bd   : > { %3049 = vmatprep.mubr.bf16.mxu1 %v7797_v0 }
 0x1c0   : > { %6712 = vmatmul.mubr.msk.bf16.vlgmr.msra.gmra.mrb[24].mxu0 %vm302_vm2, %v8468_v28 }
 0x1c1   : > { %3255 = vmatpush1.bf16.msra.mxu0 %v3207_v52  ;;  %3006 = vmatprep.mubr.bf16.mxu0 %v7797_v0  ;;  %v3784_v52 = vpop.permute.xlu0 %3783 }
 0x1c2   : > { %6729 = vmatprep.subr.msk.bf16.mxu0 %vm309_vm1, %v3189_v19  ;;  %v3839_v19 = vsel %vm309_vm1, %v3800_v15, 0  ;;  %v3805_v54 = vsel %vm3791_vm7, %v3784_v52, %v3786_v18  ;;  %v3804_v58 = vsel %vm3791_vm7, %v3782_v10, %v3784_v52  ;;  %v7663_v10 = vld [vmem:[%s9262_s2 + $0xc0] sm:$0xff]   ;;  %v7666_v15 = vld [vmem:[%s9262_s2 + $0x50] sm:$0xff]   ;;  %v7667_v52 = vld [vmem:[%s9262_s2 + $0xc8] sm:$0xff]  }
 0x1c4   : > { %6715 = vmatmul.mubr.msk.bf16.vlgmr.msra.gmra.mrb[24].mxu1 %vm302_vm2, %v8468_v28  ;;  %v3199_v28 = vsel %vm3183_vm6, %v3180_v20, %v3182_v26 }
 0x1c5   : > { %3308 = vmatpush1.bf16.msra.mxu1 %v3213_v21  ;;  %3059 = vmatprep.mubr.bf16.mxu1 %v7797_v0  ;;  %v3790_v21 = vpop.permute.xlu1 %3789 }
 0x1c6   : > { %6732 = vmatprep.subr.msk.bf16.mxu1 %vm309_vm1, %v3191_v22  ;;  %v3788_v22 = vpop.permute.xlu0 %3787 }
 0x1c7   : > { %v3806_v60 = vsel %vm3791_vm7, %v3786_v18, %v3788_v22  ;;  %v7668_v18 = vld [vmem:[%s9262_s2 + $0x10] sm:$0xff]  }
 0x1c8   : > { %6713 = vmatmul.mubr.msk.bf16.gmra.mrb[28].mxu0 %vm302_vm2, %v8485_v37 }
 0x1c9   : > { %3286 = vmatprep.mubr.bf16.mxu0 %v7797_v0  ;;  %v4368_v56 = vpop.permute.xlu1 %4367 }
 0x1ca   : > { %v4366_v24 = vpop.permute.xlu0 %4365 }
 0x1cb   : > { %v4400_v7 = vsel %vm4399_vm8, %v4366_v24, %v4368_v56  ;;  %v7677_v24 = vld [vmem:[%s9262_s2 + $0x98] sm:$0xff]  }
 0x1cc   : > { %6716 = vmatmul.mubr.msk.bf16.gmra.mrb[28].mxu1 %vm302_vm2, %v8485_v37  ;;  %v3249_v37 = vsel %vm309_vm1, %v3198_v34, 0  ;;  %v4423_v14 = vsel %vm309_vm1, %v4400_v7, 0  ;;  %v7688_v7 = vld [vmem:[%s9262_s2 + $0x38] sm:$0xff]  }
 0x1cd   : > { %3339 = vmatprep.mubr.bf16.mxu1 %v7797_v0 }
 0x1d0   : > { %6724 = vmatmul.mubr.msk.bf16.vlgmr.msra.gmra.mrb[0].mxu0 %vm302_vm2, %v8558_v55 }
 0x1d1   : > { %3361 = vmatpush1.bf16.msra.mxu0 %v3219_v57  ;;  %3296 = vmatprep.mubr.bf16.mxu0 %v7797_v0  ;;  %v4370_v57 = vpop.permute.xlu0 %4369 }
 0x1d2   : > { %6735 = vmatprep.subr.msk.bf16.mxu0 %vm309_vm1, %v3193_v59  ;;  %v3851_v59 = vsel %vm309_vm1, %v3804_v58, 0  ;;  %v4401_v61 = vsel %vm4399_vm8, %v4368_v56, %v4370_v57  ;;  %v7678_v56 = vld [vmem:[%s9262_s2 + $0x68] sm:$0xff]  }
 0x1d3   : > { %v7680_v58 = vld [vmem:[%s9262_s2 + $0x28] sm:$0xff]  }
 0x1d4   : > { %6727 = vmatmul.mubr.msk.bf16.vlgmr.msra.gmra.mrb[0].mxu1 %vm302_vm2, %v8558_v55 }
 0x1d5   : > { %3414 = vmatpush1.bf16.msra.mxu1 %v3225_v62  ;;  %3349 = vmatprep.mubr.bf16.mxu1 %v7797_v0  ;;  %v4372_v62 = vpop.permute.xlu1 %4371 }
 0x1d6   : > { %6738 = vmatprep.subr.msk.bf16.mxu1 %vm309_vm1, %v3195_v63  ;;  %v4374_v63 = vpop.permute.xlu0 %4373 }
 0x1d7   : > { %v4403_v2 = vsel %vm4399_vm8, %v4372_v62, %v4374_v63 }
 0x1d8   : > { %6725 = vmatmul.mubr.msk.bf16.gmra.mrb[4].mxu0 %vm302_vm2, %v8575_v1 }
 0x1d9   : > { %3392 = vmatprep.mubr.bf16.mxu0 %v7797_v0  ;;  %v4376_v8 = vpop.permute.xlu1 %4375 }
 0x1da   : > { %v4404_v32 = vsel %vm4399_vm8, %v4374_v63, %v4376_v8  ;;  %v7685_v63 = vld [vmem:[%s9262_s2 + $0xa8] sm:$0xff]  }
 0x1db   : > { %v4435_v34 = vsel %vm309_vm1, %v4404_v32, 0 }
 0x1dc   : > { %6728 = vmatmul.mubr.msk.bf16.gmra.mrb[4].mxu1 %vm302_vm2, %v8575_v1 }
 0x1dd   : > { %3445 = vmatprep.mubr.bf16.mxu1 %v7797_v0  ;;  %v4380_v26 = vpop.permute.xlu1 %4379 }
 0x1e0   : > { %6730 = vmatmul.mubr.msk.bf16.vlgmr.msra.gmra.mrb[8].mxu0 %vm302_vm2, %v8558_v55 }
 0x1e1   : > { %3467 = vmatpush1.bf16.msra.mxu0 %v3231_v11  ;;  %3402 = vmatprep.mubr.bf16.mxu0 %v7797_v0  ;;  %v4378_v11 = vpop.permute.xlu0 %4377  ;;  %v4384_v30 = vpop.permute.xlu1 %4383 }
 0x1e2   : > { %6741 = vmatprep.subr.msk.bf16.mxu0 %vm309_vm1, %v3197_v17  ;;  %v4402_v17 = vsel %vm4399_vm8, %v4370_v57, %v4372_v62  ;;  %v4405_v20 = vsel %vm4399_vm8, %v4376_v8, %v4378_v11  ;;  %v7679_v57 = vld [vmem:[%s9262_s2 + $0xe0] sm:$0xff]   ;;  %v7684_v62 = vld [vmem:[%s9262_s2 + $0x30] sm:$0xff]  }
 0x1e3   : > { %v7689_v8 = vld [vmem:[%s9262_s2 + $0xb0] sm:$0xff]  }
 0x1e4   : > { %6733 = vmatmul.mubr.msk.bf16.vlgmr.msra.gmra.mrb[8].mxu1 %vm302_vm2, %v8558_v55 }
 0x1e5   : > { %3520 = vmatpush1.bf16.msra.mxu1 %v3237_v27  ;;  %3455 = vmatprep.mubr.bf16.mxu1 %v7797_v0  ;;  %v4382_v27 = vpop.permute.xlu0 %4381  ;;  %v4388_v36 = vpop.permute.xlu1 %4387 }
 0x1e6   : > { %6744 = vmatprep.subr.msk.bf16.mxu1 %vm309_vm1, %v3199_v28  ;;  %v4429_v28 = vsel %vm309_vm1, %v4402_v17, 0  ;;  %v4407_v29 = vsel %vm4399_vm8, %v4380_v26, %v4382_v27  ;;  %v4408_v43 = vsel %vm4399_vm8, %v4382_v27, %v4384_v30  ;;  %v7692_v17 = vld [vmem:[%s9262_s2 + $0xb8] sm:$0xff]  }
 0x1e8   : > { %6731 = vmatmul.mubr.msk.bf16.gmra.mrb[12].mxu0 %vm302_vm2, %v8575_v1 }
 0x1e9   : > { %3498 = vmatprep.mubr.bf16.mxu0 %v7797_v0  ;;  %v4386_v31 = vpop.permute.xlu0 %4385  ;;  %v4392_v41 = vpop.permute.xlu1 %4391 }
 0x1ea   : > { %v4409_v25 = vsel %vm4399_vm8, %v4384_v30, %v4386_v31  ;;  %v4410_v45 = vsel %vm4399_vm8, %v4386_v31, %v4388_v36 }
 0x1eb   : > { %v4453_v47 = vsel %vm309_vm1, %v4410_v45, 0 }
 0x1ec   : > { %6734 = vmatmul.mubr.msk.bf16.gmra.mrb[12].mxu1 %vm302_vm2, %v8575_v1 }
 0x1ed   : > { %3551 = vmatprep.mubr.bf16.mxu1 %v7797_v0 }
 0x1f0   : > { %6736 = vmatmul.mubr.msk.bf16.vlgmr.msra.gmra.mrb[16].mxu0 %vm302_vm2, %v8558_v55 }
 0x1f1   : > { %3573 = vmatpush1.bf16.msra.mxu0 %v3243_v33  ;;  %3508 = vmatprep.mubr.bf16.mxu0 %v7797_v0  ;;  %v8738_v33 = vld [vmem:[%s9261_s1 + $0x70] sm:$0xff]  }
 0x1f2   : > { %6753 = vmatprep.subr.msk.bf16.mxu0 %vm309_vm1, %v3793_v35  ;;  %v4406_v35 = vsel %vm4399_vm8, %v4378_v11, %v4380_v26  ;;  %v7690_v11 = vld [vmem:[%s9262_s2 + $0xf8] sm:$0xff]  }
 0x1f4   : > { %6739 = vmatmul.mubr.msk.bf16.vlgmr.msra.gmra.mrb[16].mxu1 %vm302_vm2, %v8558_v55 }
 0x1f5   : > { %3626 = vmatpush1.bf16.msra.mxu1 %v3249_v37  ;;  %3561 = vmatprep.mubr.bf16.mxu1 %v7797_v0  ;;  %v4390_v37 = vpop.permute.xlu0 %4389 }
 0x1f6   : > { %6756 = vmatprep.subr.msk.bf16.mxu1 %vm309_vm1, %v3795_v38  ;;  %v4441_v38 = vsel %vm309_vm1, %v4406_v35, 0  ;;  %v4411_v39 = vsel %vm4399_vm8, %v4388_v36, %v4390_v37  ;;  %v4412_v3 = vsel %vm4399_vm8, %v4390_v37, %v4392_v41 }
 0x1f7   : > { %v4459_v5 = vsel %vm309_vm1, %v4412_v3, 0  ;;  %v7697_v3 = vld [vmem:[%s9262_s2 + $0x180] sm:$0xff]  }
 0x1f8   : > { %6737 = vmatmul.mubr.msk.bf16.gmra.mrb[20].mxu0 %vm302_vm2, %v8575_v1 }
 0x1f9   : > { %3604 = vmatprep.mubr.bf16.mxu0 %v7797_v0 }
 0x1fc   : > { %6740 = vmatmul.mubr.msk.bf16.gmra.mrb[20].mxu1 %vm302_vm2, %v8575_v1 }
 0x1fd   : > { %3657 = vmatprep.mubr.bf16.mxu1 %v7797_v0 }
 0x200   : > { %6742 = vmatmul.mubr.msk.bf16.vlgmr.msra.gmra.mrb[24].mxu0 %vm302_vm2, %v8558_v55 }
 0x201   : > { %3863 = vmatpush1.bf16.msra.mxu0 %v3815_v42  ;;  %3614 = vmatprep.mubr.bf16.mxu0 %v7797_v0  ;;  %v4394_v42 = vpop.permute.xlu0 %4393 }
 0x202   : > { %6759 = vmatprep.subr.msk.bf16.mxu0 %vm309_vm1, %v3797_v44  ;;  %v4447_v44 = vsel %vm309_vm1, %v4408_v43, 0  ;;  %v4413_v46 = vsel %vm4399_vm8, %v4392_v41, %v4394_v42 }
 0x204   : > { %6745 = vmatmul.mubr.msk.bf16.vlgmr.msra.gmra.mrb[24].mxu1 %vm302_vm2, %v8558_v55  ;;  %v3807_v55 = vsel %vm3791_vm7, %v3788_v22, %v3790_v21  ;;  %v7673_v21 = vld [vmem:[%s9262_s2 + $0x90] sm:$0xff]   ;;  %v7674_v22 = vld [vmem:[%s9262_s2 + $0x60] sm:$0xff]  }
 0x205   : > { %3916 = vmatpush1.bf16.msra.mxu1 %v3821_v4  ;;  %3667 = vmatprep.mubr.bf16.mxu1 %v7797_v0  ;;  %v4396_v4 = vpop.permute.xlu1 %4395 }
 0x206   : > { %6762 = vmatprep.subr.msk.bf16.mxu1 %vm309_vm1, %v3799_v6  ;;  %v4398_v6 = vpop.permute.xlu0 %4397  ;;  %v4414_v50 = vsel %vm4399_vm8, %v4394_v42, %v4396_v4  ;;  %v7694_v42 = vld [vmem:[%s9262_s2 + $0x148] sm:$0xff]  }
 0x208   : > { %6743 = vmatmul.mubr.msk.bf16.gmra.mrb[28].mxu0 %vm302_vm2, %v8575_v1 }
 0x209   : > { %3894 = vmatprep.mubr.bf16.mxu0 %v7797_v0 }
 0x20c   : > { %6746 = vmatmul.mubr.msk.bf16.gmra.mrb[28].mxu1 %vm302_vm2, %v8575_v1  ;;  %v3857_v1 = vsel %vm309_vm1, %v3806_v60, 0  ;;  %v7682_v60 = vld [vmem:[%s9262_s2 + $0x70] sm:$0xff]  }
 0x20d   : > { %3947 = vmatprep.mubr.bf16.mxu1 %v7797_v0 }
 0x210   : > { %6754 = vmatmul.mubr.msk.bf16.vlgmr.msra.gmra.mrb[0].mxu0 %vm302_vm2, %v8648_v48 }
 0x211   : > { %3969 = vmatpush1.bf16.msra.mxu0 %v3827_v49  ;;  %3904 = vmatprep.mubr.bf16.mxu0 %v7797_v0  ;;  %v7660_v49 = vld [vmem:[%s9262_s2 + $0x40] sm:$0xff]  }
 0x212   : > { %6765 = vmatprep.subr.msk.bf16.mxu0 %vm309_vm1, %v3801_v51  ;;  %v4465_v51 = vsel %vm309_vm1, %v4414_v50, 0 }
 0x214   : > { %6757 = vmatmul.mubr.msk.bf16.vlgmr.msra.gmra.mrb[0].mxu1 %vm302_vm2, %v8648_v48 }
 0x215   : > { %4022 = vmatpush1.bf16.msra.mxu1 %v3833_v12  ;;  %3957 = vmatprep.mubr.bf16.mxu1 %v7797_v0  ;;  %v7662_v12 = vld [vmem:[%s9262_s2 + $0x48] sm:$0xff]  }
 0x216   : > { %6768 = vmatprep.subr.msk.bf16.mxu1 %vm309_vm1, %v3803_v13  ;;  %v7664_v13 = vld [vmem:[%s9262_s2 + $0x8] sm:$0xff]  }
 0x218   : > { %6755 = vmatmul.mubr.msk.bf16.gmra.mrb[4].mxu0 %vm302_vm2, %v8665_v16 }
 0x219   : > { %4000 = vmatprep.mubr.bf16.mxu0 %v7797_v0 }
 0x21c   : > { %6758 = vmatmul.mubr.msk.bf16.gmra.mrb[4].mxu1 %vm302_vm2, %v8665_v16 }
 0x21d   : > { %4053 = vmatprep.mubr.bf16.mxu1 %v7797_v0 }
 0x220   : > { %6760 = vmatmul.mubr.msk.bf16.vlgmr.msra.gmra.mrb[8].mxu0 %vm302_vm2, %v8648_v48 }
 0x221   : > { %4075 = vmatpush1.bf16.msra.mxu0 %v3839_v19  ;;  %4010 = vmatprep.mubr.bf16.mxu0 %v7797_v0  ;;  %v7669_v19 = vld [vmem:[%s9262_s2 + $0x88] sm:$0xff]  }
 0x222   : > { %6771 = vmatprep.subr.msk.bf16.mxu0 %vm309_vm1, %v3805_v54  ;;  %v7672_v54 = vld [vmem:[%s9262_s2 + $0x18] sm:$0xff]  }
 0x224   : > { %6763 = vmatmul.mubr.msk.bf16.vlgmr.msra.gmra.mrb[8].mxu1 %vm302_vm2, %v8648_v48 }
 0x225   : > { %4128 = vmatpush1.bf16.msra.mxu1 %v3845_v23  ;;  %4063 = vmatprep.mubr.bf16.mxu1 %v7797_v0  ;;  %v7675_v23 = vld [vmem:[%s9262_s2 + $0xd8] sm:$0xff]  }
 0x226   : > { %6774 = vmatprep.subr.msk.bf16.mxu1 %vm309_vm1, %v3807_v55  ;;  %v7676_v55 = vld [vmem:[%s9262_s2 + $0x20] sm:$0xff]  }
 0x228   : > { %6761 = vmatmul.mubr.msk.bf16.gmra.mrb[12].mxu0 %vm302_vm2, %v8665_v16 }
 0x229   : > { %4106 = vmatprep.mubr.bf16.mxu0 %v7797_v0 }
 0x22c   : > { %6764 = vmatmul.mubr.msk.bf16.gmra.mrb[12].mxu1 %vm302_vm2, %v8665_v16 }
 0x22d   : > { %4159 = vmatprep.mubr.bf16.mxu1 %v7797_v0 }
 0x230   : > { %6766 = vmatmul.mubr.msk.bf16.vlgmr.msra.gmra.mrb[16].mxu0 %vm302_vm2, %v8648_v48 }
 0x231   : > { %4181 = vmatpush1.bf16.msra.mxu0 %v3851_v59  ;;  %4116 = vmatprep.mubr.bf16.mxu0 %v7797_v0  ;;  %v7681_v59 = vld [vmem:[%s9262_s2 + $0xa0] sm:$0xff]  }
 0x232   : > { %6783 = vmatprep.subr.msk.bf16.mxu0 %vm309_vm1, %v4401_v61  ;;  %v7683_v61 = vld [vmem:[%s9262_s2 + $0xe8] sm:$0xff]  }
 0x234   : > { %6769 = vmatmul.mubr.msk.bf16.vlgmr.msra.gmra.mrb[16].mxu1 %vm302_vm2, %v8648_v48 }
 0x235   : > { %4234 = vmatpush1.bf16.msra.mxu1 %v3857_v1  ;;  %4169 = vmatprep.mubr.bf16.mxu1 %v7797_v0  ;;  %v7686_v1 = vld [vmem:[%s9262_s2 + $0x78] sm:$0xff]  }
 0x236   : > { %6786 = vmatprep.subr.msk.bf16.mxu1 %vm309_vm1, %v4403_v2  ;;  %v7687_v2 = vld [vmem:[%s9262_s2 + $0xf0] sm:$0xff]  }
 0x238   : > { %6767 = vmatmul.mubr.msk.bf16.gmra.mrb[20].mxu0 %vm302_vm2, %v8665_v16 }
 0x239   : > { %4212 = vmatprep.mubr.bf16.mxu0 %v7797_v0 }
 0x23c   : > { %6770 = vmatmul.mubr.msk.bf16.gmra.mrb[20].mxu1 %vm302_vm2, %v8665_v16 }
 0x23d   : > { %4265 = vmatprep.mubr.bf16.mxu1 %v7797_v0 }
 0x240   : > { %6772 = vmatmul.mubr.msk.bf16.vlgmr.msra.gmra.mrb[24].mxu0 %vm302_vm2, %v8648_v48 }
 0x241   : > { %4471 = vmatpush1.bf16.msra.mxu0 %v4423_v14  ;;  %4222 = vmatprep.mubr.bf16.mxu0 %v7797_v0  ;;  %v7691_v14 = vld [vmem:[%s9262_s2 + $0x140] sm:$0xff]  }
 0x242   : > { %6789 = vmatprep.subr.msk.bf16.mxu0 %vm309_vm1, %v4405_v20  ;;  %v7695_v20 = vld [vmem:[%s9262_s2 + $0x1c0] sm:$0xff]  }
 0x244   : > { %6775 = vmatmul.mubr.msk.bf16.vlgmr.msra.gmra.mrb[24].mxu1 %vm302_vm2, %v8648_v48  ;;  %v4415_v48 = vsel %vm4399_vm8, %v4396_v4, %v4398_v6 }
 0x245   : > { %4524 = vmatpush1.bf16.msra.mxu1 %v4429_v28  ;;  %4275 = vmatprep.mubr.bf16.mxu1 %v7797_v0 }
 0x246   : > { %6792 = vmatprep.subr.msk.bf16.mxu1 %vm309_vm1, %v4407_v29 }
 0x248   : > { %6773 = vmatmul.mubr.msk.bf16.gmra.mrb[28].mxu0 %vm302_vm2, %v8665_v16 }
 0x249   : > { %4502 = vmatprep.mubr.bf16.mxu0 %v7797_v0 }
 0x24c   : > { %6776 = vmatmul.mubr.msk.bf16.gmra.mrb[28].mxu1 %vm302_vm2, %v8665_v16  ;;  %v7665_v16 = vld [vmem:[%s9262_s2 + $0x80] sm:$0xff]  }
 0x24d   : > { %4555 = vmatprep.mubr.bf16.mxu1 %v7797_v0 }
 0x250   : > { %6784 = vmatmul.mubr.msk.bf16.vlgmr.msra.gmra.mrb[0].mxu0 %vm302_vm2, %v8738_v33 }
 0x251   : > { %4577 = vmatpush1.bf16.msra.mxu0 %v4435_v34  ;;  %4512 = vmatprep.mubr.bf16.mxu0 %v7797_v0 }
 0x252   : > { %6795 = vmatprep.subr.msk.bf16.mxu0 %vm309_vm1, %v4409_v25 }
 0x254   : > { %6787 = vmatmul.mubr.msk.bf16.vlgmr.msra.gmra.mrb[0].mxu1 %vm302_vm2, %v8738_v33 }
 0x255   : > { %4565 = vmatprep.mubr.bf16.mxu1 %v7797_v0  ;;  %4630 = vmatpush1.bf16.msra.mxu1 %v4441_v38  ;;  %v7693_v38 = vld [vmem:[%s9262_s2 + $0x100] sm:$0xff]  }
 0x256   : > { %6798 = vmatprep.subr.msk.bf16.mxu1 %vm309_vm1, %v4411_v39 }
 0x258   : > { %6785 = vmatmul.mubr.msk.bf16.gmra.mrb[4].mxu0 %vm302_vm2, %v8755_v40 }
 0x259   : > { %4608 = vmatprep.mubr.bf16.mxu0 %v7797_v0 }
 0x25c   : > { %6788 = vmatmul.mubr.msk.bf16.gmra.mrb[4].mxu1 %vm302_vm2, %v8755_v40 }
 0x25d   : > { %4661 = vmatprep.mubr.bf16.mxu1 %v7797_v0 }
 0x260   : > { %6790 = vmatmul.mubr.msk.bf16.vlgmr.msra.gmra.mrb[8].mxu0 %vm302_vm2, %v8738_v33 }
 0x261   : > { %4618 = vmatprep.mubr.bf16.mxu0 %v7797_v0  ;;  %4683 = vmatpush1.bf16.msra.mxu0 %v4447_v44 }
 0x262   : > { %6801 = vmatprep.subr.msk.bf16.mxu0 %vm309_vm1, %v4413_v46 }
 0x264   : > { %6793 = vmatmul.mubr.msk.bf16.vlgmr.msra.gmra.mrb[8].mxu1 %vm302_vm2, %v8738_v33 }
 0x265   : > { %4671 = vmatprep.mubr.bf16.mxu1 %v7797_v0  ;;  %4736 = vmatpush1.bf16.msra.mxu1 %v4453_v47 }
 0x266   : > { %6804 = vmatprep.subr.msk.bf16.mxu1 %vm309_vm1, %v4415_v48  ;;  %v7696_v48 = vld [vmem:[%s9262_s2 + $0x108] sm:$0xff]  }
 0x268   : > { %6791 = vmatmul.mubr.msk.bf16.gmra.mrb[12].mxu0 %vm302_vm2, %v8755_v40 }
 0x269   : > { %4714 = vmatprep.mubr.bf16.mxu0 %v7797_v0 }
 0x26c   : > { %6794 = vmatmul.mubr.msk.bf16.gmra.mrb[12].mxu1 %vm302_vm2, %v8755_v40 }
 0x26d   : > { %4767 = vmatprep.mubr.bf16.mxu1 %v7797_v0 }
 0x270   : > { %6796 = vmatmul.mubr.msk.bf16.vlgmr.msra.gmra.mrb[16].mxu0 %vm302_vm2, %v8738_v33 }
 0x271   : > { %4724 = vmatprep.mubr.bf16.mxu0 %v7797_v0  ;;  %4789 = vmatpush1.bf16.msra.mxu0 %v4459_v5  ;;  %v7698_v5 = vld [vmem:[%s9262_s2 + $0x150] sm:$0xff]  }
 0x272   : > { %6938 = vmatprep.subr.bf16.mxu0 %v7660_v49 }
 0x274   : > { %6799 = vmatmul.mubr.msk.bf16.vlgmr.msra.gmra.mrb[16].mxu1 %vm302_vm2, %v8738_v33 }
 0x275   : > { %4777 = vmatprep.mubr.bf16.mxu1 %v7797_v0  ;;  %4842 = vmatpush1.bf16.msra.mxu1 %v4465_v51 }
 0x276   : > { %6966 = vmatprep.subr.bf16.mxu1 %v7663_v10  ;;  %v7699_v10 = vld [vmem:[%s9262_s2 + $0x1c8] sm:$0xff]  }
 0x278   : > { %6797 = vmatmul.mubr.msk.bf16.gmra.mrb[20].mxu0 %vm302_vm2, %v8755_v40 }
 0x279   : > { %4820 = vmatprep.mubr.bf16.mxu0 %v7797_v0 }
 0x27c   : > { %6800 = vmatmul.mubr.msk.bf16.gmra.mrb[20].mxu1 %vm302_vm2, %v8755_v40 }
 0x27d   : > { %4873 = vmatprep.mubr.bf16.mxu1 %v7797_v0 }
 0x280   : > { %6802 = vmatmul.mubr.msk.bf16.vlgmr.msra.gmra.mrb[24].mxu0 %vm302_vm2, %v8738_v33 }
 0x281   : > { %4830 = vmatprep.mubr.bf16.mxu0 %v7797_v0  ;;  %6939 = vmatpush3.bf16.msra.mxu0 %v7661_v9 }
 0x282   : > { %6940 = vmatprep.subr.bf16.mxu0 %v7662_v12 }
 0x284   : > { %6805 = vmatmul.mubr.msk.bf16.vlgmr.msra.gmra.mrb[24].mxu1 %vm302_vm2, %v8738_v33 }
 0x285   : > { %4883 = vmatprep.mubr.bf16.mxu1 %v7797_v0  ;;  %6941 = vmatpush3.bf16.msra.mxu0 %v7664_v13  ;;  %v7671_v0 = vld [vmem:[%s9262_s2 + $0xd0] sm:$0xff]  }
 0x286   : > { %6967 = vmatpush3.bf16.msra.mxu1 %v7665_v16  ;;  %6942 = vmatprep.subr.bf16.mxu0 %v7666_v15 }
 0x287   : > { %6968 = vmatprep.subr.bf16.mxu1 %v7667_v52 }
 0x288   : > { %6803 = vmatmul.mubr.msk.bf16.gmra.mrb[28].mxu0 %vm302_vm2, %v8755_v40 }
 0x289   : > { %6943 = vmatpush3.bf16.msra.mxu0 %v7668_v18 }
 0x28a   : > { %6969 = vmatpush3.bf16.msra.mxu1 %v7669_v19  ;;  %6944 = vmatprep.subr.bf16.mxu0 %v7670_v53  ;;  %v7700_v19 = vld [vmem:[%s9262_s2 + $0x110] sm:$0xff]   ;;  %v7701_v53 = vld [vmem:[%s9262_s2 + $0x188] sm:$0xff]  }
 0x28b   : > { %6970 = vmatprep.subr.bf16.mxu1 %v7671_v0  ;;  %v7702_v0 = vld [vmem:[%s9262_s2 + $0x158] sm:$0xff]  }
 0x28c   : > { %6806 = vmatmul.mubr.msk.bf16.gmra.mrb[28].mxu1 %vm302_vm2, %v8755_v40 }
 0x28d   : > { %6945 = vmatpush3.bf16.msra.mxu0 %v7672_v54 }
 0x28e   : > { %6971 = vmatpush3.bf16.msra.mxu1 %v7673_v21  ;;  %6946 = vmatprep.subr.bf16.mxu0 %v7674_v22 }
 0x28f   : > { %6972 = vmatprep.subr.bf16.mxu1 %v7675_v23  ;;  %v7703_v23 = vld [vmem:[%s9262_s2 + $0x1d0] sm:$0xff]  }
 0x291   : > { %6947 = vmatpush3.bf16.msra.mxu0 %v7676_v55 }
 0x292   : > { %6973 = vmatpush3.bf16.msra.mxu1 %v7677_v24  ;;  %6948 = vmatprep.subr.bf16.mxu0 %v7678_v56 }
 0x293   : > { %6974 = vmatprep.subr.bf16.mxu1 %v7679_v57 }
 0x295   : > { %6949 = vmatpush3.bf16.msra.mxu0 %v7680_v58 }
 0x296   : > { %6975 = vmatpush3.bf16.msra.mxu1 %v7681_v59  ;;  %6950 = vmatprep.subr.bf16.mxu0 %v7682_v60 }
 0x297   : > { %6976 = vmatprep.subr.bf16.mxu1 %v7683_v61  ;;  %v7704_v61 = vld [vmem:[%s9262_s2 + $0x118] sm:$0xff]  }
 0x299   : > { %6951 = vmatpush3.bf16.msra.mxu0 %v7684_v62  ;;  %v7705_v62 = vld [vmem:[%s9262_s2 + $0x190] sm:$0xff]  }
 0x29a   : > { %6977 = vmatpush3.bf16.msra.mxu1 %v7685_v63  ;;  %6952 = vmatprep.subr.bf16.mxu0 %v7686_v1  ;;  %v7706_v63 = vld [vmem:[%s9262_s2 + $0x160] sm:$0xff]  }
 0x29b   : > { %6978 = vmatprep.subr.bf16.mxu1 %v7687_v2 }
 0x29d   : > { %6953 = vmatpush3.bf16.msra.mxu0 %v7688_v7 }
 0x29e   : > { %6979 = vmatpush3.bf16.msra.mxu1 %v7689_v8  ;;  %6994 = vmatprep.subr.bf16.mxu0 %v7691_v14  ;;  %v7707_v8 = vld [vmem:[%s9262_s2 + $0x1d8] sm:$0xff]  }
 0x29f   : > { %6980 = vmatprep.subr.bf16.mxu1 %v7690_v11 }
 0x2a2   : > { %6981 = vmatpush3.bf16.msra.mxu1 %v7692_v17 }
 0x2a3   : > { %7022 = vmatprep.subr.bf16.mxu1 %v7695_v20 }
 0x323   : > { %v4504_v26 = vpop.f32.mrb[0].mxu0 }
 0x324   : > { %v4506_v27 = vpop.f32.mrb[1].mxu0  ;;  %v4958_v29 = vand.u32 2147483647, %v4504_v26 }
 0x325   : > { %v4508_v28 = vpop.f32.mrb[2].mxu0  ;;  %v4959_v32 = vand.u32 2147483647, %v4506_v27 }
 0x326   : > { %v4974_v30 = vand.u32 2147483647, %v4508_v28  ;;  %v4510_v31 = vpop.f32.mrb[3].mxu0 }
 0x327   : > { %v4975_v33 = vand.u32 2147483647, %v4510_v31  ;;  %v4557_v34 = vpop.f32.mrb[0].mxu1  ;;  %v7710_v31 = vld [vmem:[%s9262_s2 + $0x168] sm:$0xff]  }
 0x328   : > { %v5022_v35 = vpack.c.bf16 %v4974_v30, %v4958_v29  ;;  %v4559_v25 = vpop.f32.mrb[1].mxu1  ;;  %v4960_v39 = vand.u32 2147483647, %v4557_v34  ;;  %v7708_v29 = vld [vmem:[%s9262_s2 + $0x120] sm:$0xff]   ;;  %v7709_v30 = vld [vmem:[%s9262_s2 + $0x198] sm:$0xff]  }
 0x329   : > { %v5023_v36 = vpack.c.bf16 %v4975_v33, %v4959_v32  ;;  %v4561_v37 = vpop.f32.mrb[2].mxu1  ;;  %v4961_v43 = vand.u32 2147483647, %v4559_v25 }
 0x32a   : > { %v4976_v40 = vand.u32 2147483647, %v4561_v37  ;;  %v4563_v41 = vpop.f32.mrb[3].mxu1 }
 0x32b   : > { %v4977_v44 = vand.u32 2147483647, %v4563_v41  ;;  %v4514_v45 = vpop.f32.mrb[4].mxu0  ;;  %6110 = vmatprep.mubr.bf16.mxu0 %v5023_v36 }
 0x32c   : > { %v5024_v46 = vpack.c.bf16 %v4976_v40, %v4960_v39  ;;  %v4516_v4 = vpop.f32.mrb[5].mxu0  ;;  %6111 = vmatmul.mubr.bf16.vlgmr.msra.gmra.mrb[32].mxu0 %v5022_v35  ;;  %v4990_v49 = vand.u32 2147483647, %v4514_v45  ;;  %v7711_v35 = vld [vmem:[%s9262_s2 + $0x1e0] sm:$0xff]  }
 0x32d   : > { %v5025_v6 = vpack.c.bf16 %v4977_v44, %v4961_v43  ;;  %6995 = vmatpush3.bf16.msra.mxu0 %v7693_v38  ;;  %v4518_v47 = vpop.f32.mrb[6].mxu0  ;;  %v4991_v9 = vand.u32 2147483647, %v4516_v4  ;;  %v7713_v43 = vld [vmem:[%s9262_s2 + $0x1a0] sm:$0xff]   ;;  %v7714_v44 = vld [vmem:[%s9262_s2 + $0x170] sm:$0xff]  }
 0x32e   : > { %v5006_v50 = vand.u32 2147483647, %v4518_v47  ;;  %v4520_v51 = vpop.f32.mrb[7].mxu0  ;;  %6996 = vmatprep.subr.bf16.mxu0 %v7694_v42  ;;  %v7712_v42 = vld [vmem:[%s9262_s2 + $0x128] sm:$0xff]  }
 0x32f   : > { %v5007_v12 = vand.u32 2147483647, %v4520_v51  ;;  %v4567_v13 = vpop.f32.mrb[4].mxu1  ;;  %6159 = vmatprep.mubr.bf16.mxu1 %v5025_v6  ;;  %v7715_v6 = vld [vmem:[%s9262_s2 + $0x1e8] sm:$0xff]  }
 0x330   : > { %v5038_v16 = vpack.c.bf16 %v5006_v50, %v4990_v49  ;;  %v4569_v15 = vpop.f32.mrb[5].mxu1  ;;  %6160 = vmatmul.mubr.bf16.vlgmr.msra.gmra.mrb[32].mxu1 %v5024_v46  ;;  %v4992_v54 = vand.u32 2147483647, %v4567_v13 }
 0x331   : > { %v5039_v52 = vpack.c.bf16 %v5007_v12, %v4991_v9  ;;  %6997 = vmatpush3.bf16.msra.mxu0 %v7696_v48  ;;  %7023 = vmatpush3.bf16.msra.mxu1 %v7697_v3  ;;  %v4571_v18 = vpop.f32.mrb[6].mxu1  ;;  %v4993_v55 = vand.u32 2147483647, %v4569_v15  ;;  %v7717_v9 = vld [vmem:[%s9262_s2 + $0x1a8] sm:$0xff]   ;;  %v7718_v12 = vld [vmem:[%s9262_s2 + $0x178] sm:$0xff]  }
 0x332   : > { %v5008_v21 = vand.u32 2147483647, %v4571_v18  ;;  %v4573_v22 = vpop.f32.mrb[7].mxu1  ;;  %6998 = vmatprep.subr.bf16.mxu0 %v7698_v5  ;;  %7024 = vmatprep.subr.bf16.mxu1 %v7699_v10  ;;  %v7716_v10 = vld [vmem:[%s9262_s2 + $0x130] sm:$0xff]  }
 0x333   : > { %v5009_v24 = vand.u32 2147483647, %v4573_v22  ;;  %v4610_v56 = vpop.f32.mrb[8].mxu0  ;;  %6118 = vmatprep.mubr.bf16.mxu0 %v5039_v52  ;;  %v7719_v52 = vld [vmem:[%s9262_s2 + $0x1f0] sm:$0xff]  }
 0x334   : > { %v5040_v57 = vpack.c.bf16 %v5008_v21, %v4992_v54  ;;  %v4612_v58 = vpop.f32.mrb[9].mxu0  ;;  %6119 = vmatmul.mubr.bf16.gmra.mrb[36].mxu0 %v5038_v16  ;;  %v4962_v1 = vand.u32 2147483647, %v4610_v56 }
 0x335   : > { %v5041_v59 = vpack.c.bf16 %v5009_v24, %v4993_v55  ;;  %6999 = vmatpush3.bf16.msra.mxu0 %v7700_v19  ;;  %7025 = vmatpush3.bf16.msra.mxu1 %v7701_v53  ;;  %v4614_v60 = vpop.f32.mrb[10].mxu0  ;;  %v4963_v11 = vand.u32 2147483647, %v4612_v58  ;;  %v7721_v55 = vld [vmem:[%s9262_s2 + $0x1b0] sm:$0xff]   ;;  %v7722_v24 = vld [vmem:[%s9262_s2 + $0x1f8] sm:$0xff]  }
 0x336   : > { %v4978_v2 = vand.u32 2147483647, %v4614_v60  ;;  %v4616_v7 = vpop.f32.mrb[11].mxu0  ;;  %7000 = vmatprep.subr.bf16.mxu0 %v7702_v0  ;;  %7026 = vmatprep.subr.bf16.mxu1 %v7703_v23  ;;  %v7720_v23 = vld [vmem:[%s9262_s2 + $0x138] sm:$0xff]  }
 0x337   : > { %v4979_v14 = vand.u32 2147483647, %v4616_v7  ;;  %v4663_v17 = vpop.f32.mrb[8].mxu1  ;;  %6167 = vmatprep.mubr.bf16.mxu1 %v5041_v59  ;;  %v7723_v59 = vld [vmem:[%s9262_s2 + $0x240] sm:$0xff]  }
 0x338   : > { %v8955_v20 = vpack.c.bf16 %v4978_v2, %v4962_v1  ;;  %v4665_v26 = vpop.f32.mrb[9].mxu1  ;;  %6168 = vmatmul.mubr.bf16.gmra.mrb[36].mxu1 %v5040_v57  ;;  %v4964_v32 = vand.u32 2147483647, %v4663_v17 }
 0x339   : > { %v5027_v27 = vpack.c.bf16 %v4979_v14, %v4963_v11  ;;  %7001 = vmatpush3.bf16.msra.mxu0 %v7704_v61  ;;  %7027 = vmatpush3.bf16.msra.mxu1 %v7705_v62  ;;  %v4667_v28 = vpop.f32.mrb[10].mxu1  ;;  %v4965_v25 = vand.u32 2147483647, %v4665_v26  ;;  %v7725_v11 = vld [vmem:[%s9262_s2 + $0x200] sm:$0xff]  }
 0x33a   : > { %v4980_v33 = vand.u32 2147483647, %v4667_v28  ;;  %v4669_v34 = vpop.f32.mrb[11].mxu1  ;;  %7002 = vmatprep.subr.bf16.mxu0 %v7706_v63  ;;  %7028 = vmatprep.subr.bf16.mxu1 %v7707_v8  ;;  %v7724_v8 = vld [vmem:[%s9262_s2 + $0x1b8] sm:$0xff]  }
 0x33b   : > { %v4981_v36 = vand.u32 2147483647, %v4669_v34  ;;  %v4620_v37 = vpop.f32.mrb[12].mxu0  ;;  %6208 = vmatprep.mubr.bf16.mxu0 %v5027_v27  ;;  %v7727_v27 = vld [vmem:[%s9262_s2 + $0x2c0] sm:$0xff]  }
 0x33c   : > { %v8969_v38 = vpack.c.bf16 %v4980_v33, %v4964_v32  ;;  %v4622_v39 = vpop.f32.mrb[13].mxu0  ;;  %v4994_v45 = vand.u32 2147483647, %v4620_v37 }
 0x33d   : > { %v5029_v40 = vpack.c.bf16 %v4981_v36, %v4965_v25  ;;  %7003 = vmatpush3.bf16.msra.mxu0 %v7708_v29  ;;  %7029 = vmatpush3.bf16.msra.mxu1 %v7709_v30  ;;  %v4624_v41 = vpop.f32.mrb[14].mxu0  ;;  %v4995_v47 = vand.u32 2147483647, %v4622_v39  ;;  %v7728_v25 = vld [vmem:[%s9262_s2 + $0x208] sm:$0xff]   ;;  %v7729_v36 = vld [vmem:[%s9262_s2 + $0x280] sm:$0xff]  }
 0x33e   : > { %v5010_v46 = vand.u32 2147483647, %v4624_v41  ;;  %v4626_v4 = vpop.f32.mrb[15].mxu0  ;;  %7004 = vmatprep.subr.bf16.mxu0 %v7710_v31  ;;  %7030 = vmatprep.subr.bf16.mxu1 %v7711_v35  ;;  %v7726_v31 = vld [vmem:[%s9262_s2 + $0x248] sm:$0xff]  }
 0x33f   : > { %v5011_v48 = vand.u32 2147483647, %v4626_v4  ;;  %v4673_v3 = vpop.f32.mrb[12].mxu1  ;;  %6257 = vmatprep.mubr.bf16.mxu1 %v5029_v40 }
 0x340   : > { %v8983_v5 = vpack.c.bf16 %v5010_v46, %v4994_v45  ;;  %v4675_v49 = vpop.f32.mrb[13].mxu1  ;;  %v4996_v13 = vand.u32 2147483647, %v4673_v3 }
 0x341   : > { %v5043_v50 = vpack.c.bf16 %v5011_v48, %v4995_v47  ;;  %7005 = vmatpush3.bf16.msra.mxu0 %v7712_v42  ;;  %7031 = vmatpush3.bf16.msra.mxu1 %v7713_v43  ;;  %v4677_v51 = vpop.f32.mrb[14].mxu1  ;;  %v4997_v18 = vand.u32 2147483647, %v4675_v49  ;;  %v7732_v47 = vld [vmem:[%s9262_s2 + $0x210] sm:$0xff]   ;;  %v7733_v48 = vld [vmem:[%s9262_s2 + $0x288] sm:$0xff]  }
 0x342   : > { %v5012_v16 = vand.u32 2147483647, %v4677_v51  ;;  %v4679_v15 = vpop.f32.mrb[15].mxu1  ;;  %7006 = vmatprep.subr.bf16.mxu0 %v7714_v44  ;;  %7032 = vmatprep.subr.bf16.mxu1 %v7715_v6  ;;  %v7730_v44 = vld [vmem:[%s9262_s2 + $0x250] sm:$0xff]  }
 0x343   : > { %v5013_v19 = vand.u32 2147483647, %v4679_v15  ;;  %v4716_v53 = vpop.f32.mrb[16].mxu0 }
 0x344   : > { %v8997_v0 = vpack.c.bf16 %v5012_v16, %v4996_v13  ;;  %v4718_v54 = vpop.f32.mrb[17].mxu0  ;;  %v4966_v56 = vand.u32 2147483647, %v4716_v53 }
 0x345   : > { %v5045_v21 = vpack.c.bf16 %v5013_v19, %v4997_v18  ;;  %7007 = vmatpush3.bf16.msra.mxu0 %v7716_v10  ;;  %7033 = vmatpush3.bf16.msra.mxu1 %v7717_v9  ;;  %v4720_v22 = vpop.f32.mrb[18].mxu0  ;;  %v4967_v60 = vand.u32 2147483647, %v4718_v54  ;;  %v7736_v18 = vld [vmem:[%s9262_s2 + $0x218] sm:$0xff]   ;;  %v7737_v19 = vld [vmem:[%s9262_s2 + $0x290] sm:$0xff]  }
 0x346   : > { %v4982_v57 = vand.u32 2147483647, %v4720_v22  ;;  %v4722_v58 = vpop.f32.mrb[19].mxu0  ;;  %7008 = vmatprep.subr.bf16.mxu0 %v7718_v12  ;;  %7034 = vmatprep.subr.bf16.mxu1 %v7719_v52  ;;  %v7734_v12 = vld [vmem:[%s9262_s2 + $0x258] sm:$0xff]  }
 0x347   : > { %v4983_v61 = vand.u32 2147483647, %v4722_v58  ;;  %v4769_v62 = vpop.f32.mrb[16].mxu1 }
 0x348   : > { %v9011_v63 = vpack.c.bf16 %v4982_v57, %v4966_v56  ;;  %v4771_v1 = vpop.f32.mrb[17].mxu1  ;;  %v4968_v14 = vand.u32 2147483647, %v4769_v62 }
 0x349   : > { %v5031_v2 = vpack.c.bf16 %v4983_v61, %v4967_v60  ;;  %7009 = vmatpush3.bf16.msra.mxu0 %v7720_v23  ;;  %7035 = vmatpush3.bf16.msra.mxu1 %v7721_v55  ;;  %v4773_v7 = vpop.f32.mrb[18].mxu1  ;;  %v4969_v28 = vand.u32 2147483647, %v4771_v1  ;;  %v7740_v60 = vld [vmem:[%s9262_s2 + $0x220] sm:$0xff]   ;;  %v7741_v61 = vld [vmem:[%s9262_s2 + $0x298] sm:$0xff]  }
 0x34a   : > { %v4984_v17 = vand.u32 2147483647, %v4773_v7  ;;  %v4775_v26 = vpop.f32.mrb[19].mxu1  ;;  %7036 = vmatprep.subr.bf16.mxu1 %v7722_v24  ;;  %7050 = vmatprep.subr.bf16.mxu0 %v7723_v59  ;;  %v7738_v24 = vld [vmem:[%s9262_s2 + $0x260] sm:$0xff]  }
 0x34b   : > { %v4985_v29 = vand.u32 2147483647, %v4775_v26  ;;  %v4726_v30 = vpop.f32.mrb[20].mxu0 }
 0x34c   : > { %v9025_v32 = vpack.c.bf16 %v4984_v17, %v4968_v14  ;;  %6209 = vmatmul.mubr.bf16.vlgmr.msra.gmra.mrb[40].mxu0 %v8955_v20  ;;  %v4728_v33 = vpop.f32.mrb[21].mxu0  ;;  %v4998_v37 = vand.u32 2147483647, %v4726_v30  ;;  %v7731_v20 = vld [vmem:[%s9262_s2 + $0x2c8] sm:$0xff]   ;;  %v7745_v30 = vld [vmem:[%s9262_s2 + $0x2a0] sm:$0xff]  }
 0x34d   : > { %v5033_v34 = vpack.c.bf16 %v4985_v29, %v4969_v28  ;;  %6216 = vmatprep.mubr.bf16.mxu0 %v5043_v50  ;;  %7037 = vmatpush3.bf16.msra.mxu1 %v7724_v8  ;;  %v4730_v35 = vpop.f32.mrb[22].mxu0  ;;  %v4999_v41 = vand.u32 2147483647, %v4728_v33  ;;  %v7742_v14 = vld [vmem:[%s9262_s2 + $0x268] sm:$0xff]  }
 0x34e   : > { %7051 = vmatpush3.bf16.msra.mxu0 %v7725_v11  ;;  %v5014_v39 = vand.u32 2147483647, %v4730_v35  ;;  %v4732_v40 = vpop.f32.mrb[23].mxu0  ;;  %7078 = vmatprep.subr.bf16.mxu1 %v7727_v27  ;;  %v7744_v29 = vld [vmem:[%s9262_s2 + $0x228] sm:$0xff]  }
 0x34f   : > { %v5015_v42 = vand.u32 2147483647, %v4732_v40  ;;  %v4779_v43 = vpop.f32.mrb[20].mxu1  ;;  %7052 = vmatprep.subr.bf16.mxu0 %v7726_v31  ;;  %v7747_v35 = vld [vmem:[%s9262_s2 + $0x2e8] sm:$0xff]  }
 0x350   : > { %v9040_v45 = vpack.c.bf16 %v5014_v39, %v4998_v37  ;;  %6258 = vmatmul.mubr.bf16.vlgmr.msra.gmra.mrb[40].mxu1 %v8969_v38  ;;  %v4781_v46 = vpop.f32.mrb[21].mxu1  ;;  %v5000_v3 = vand.u32 2147483647, %v4779_v43  ;;  %v7735_v38 = vld [vmem:[%s9262_s2 + $0x2d0] sm:$0xff]  }
 0x351   : > { %v9043_v4 = vpack.c.bf16 %v5015_v42, %v4999_v41  ;;  %6265 = vmatprep.mubr.bf16.mxu1 %v5045_v21  ;;  %7079 = vmatpush3.bf16.msra.mxu1 %v7729_v36  ;;  %v4783_v6 = vpop.f32.mrb[22].mxu1  ;;  %v5001_v51 = vand.u32 2147483647, %v4781_v46  ;;  %v7746_v39 = vld [vmem:[%s9262_s2 + $0x270] sm:$0xff]  }
 0x352   : > { %7053 = vmatpush3.bf16.msra.mxu0 %v7728_v25  ;;  %v5016_v49 = vand.u32 2147483647, %v4783_v6  ;;  %v4785_v50 = vpop.f32.mrb[23].mxu1  ;;  %7080 = vmatprep.subr.bf16.mxu1 %v7731_v20  ;;  %v7748_v43 = vld [vmem:[%s9262_s2 + $0x230] sm:$0xff]  }
 0x353   : > { %v5017_v10 = vand.u32 2147483647, %v4785_v50  ;;  %v4822_v9 = vpop.f32.mrb[24].mxu0  ;;  %7054 = vmatprep.subr.bf16.mxu0 %v7730_v44  ;;  %v7749_v44 = vld [vmem:[%s9262_s2 + $0x2a8] sm:$0xff]   ;;  %v7750_v50 = vld [vmem:[%s9262_s2 + $0x278] sm:$0xff]  }
 0x354   : > { %v9057_v13 = vpack.c.bf16 %v5016_v49, %v5000_v3  ;;  %6217 = vmatmul.mubr.bf16.gmra.mrb[44].mxu0 %v8983_v5  ;;  %v4824_v16 = vpop.f32.mrb[25].mxu0  ;;  %v4970_v53 = vand.u32 2147483647, %v4822_v9  ;;  %v7739_v5 = vld [vmem:[%s9262_s2 + $0x2d8] sm:$0xff]  }
 0x355   : > { %v9060_v15 = vpack.c.bf16 %v5017_v10, %v5001_v51  ;;  %6306 = vmatprep.mubr.bf16.mxu0 %v5031_v2  ;;  %7081 = vmatpush3.bf16.msra.mxu1 %v7733_v48  ;;  %v4826_v52 = vpop.f32.mrb[26].mxu0  ;;  %v4971_v22 = vand.u32 2147483647, %v4824_v16  ;;  %v7751_v48 = vld [vmem:[%s9262_s2 + $0x2f0] sm:$0xff]   ;;  %v7752_v9 = vld [vmem:[%s9262_s2 + $0x238] sm:$0xff]   ;;  %v7755_v16 = vld [vmem:[%s9262_s2 + $0x340] sm:$0xff]  }
 0x356   : > { %7055 = vmatpush3.bf16.msra.mxu0 %v7732_v47  ;;  %v4986_v54 = vand.u32 2147483647, %v4826_v52  ;;  %v4828_v21 = vpop.f32.mrb[27].mxu0  ;;  %7082 = vmatprep.subr.bf16.mxu1 %v7735_v38  ;;  %v7753_v10 = vld [vmem:[%s9262_s2 + $0x2b0] sm:$0xff]   ;;  %v7756_v52 = vld [vmem:[%s9262_s2 + $0x2b8] sm:$0xff]  }
 0x357   : > { %v4987_v23 = vand.u32 2147483647, %v4828_v21  ;;  %v4875_v55 = vpop.f32.mrb[24].mxu1  ;;  %7056 = vmatprep.subr.bf16.mxu0 %v7734_v12  ;;  %v7754_v12 = vld [vmem:[%s9262_s2 + $0x2f8] sm:$0xff]   ;;  %v7760_v21 = vld [vmem:[%s9262_s2 + $0x308] sm:$0xff]  }
 0x358   : > { %v9074_v56 = vpack.c.bf16 %v4986_v54, %v4970_v53  ;;  %6266 = vmatmul.mubr.bf16.gmra.mrb[44].mxu1 %v8997_v0  ;;  %v4877_v57 = vpop.f32.mrb[25].mxu1  ;;  %v4972_v62 = vand.u32 2147483647, %v4875_v55  ;;  %v7743_v0 = vld [vmem:[%s9262_s2 + $0x2e0] sm:$0xff]   ;;  %v7768_v55 = vld [vmem:[%s9262_s2 + $0x318] sm:$0xff]  }
 0x359   : > { %v9077_v58 = vpack.c.bf16 %v4987_v23, %v4971_v22  ;;  %7083 = vmatpush3.bf16.msra.mxu1 %v7737_v19  ;;  %6355 = vmatprep.mubr.bf16.mxu1 %v5033_v34  ;;  %v4879_v59 = vpop.f32.mrb[26].mxu1  ;;  %v4973_v7 = vand.u32 2147483647, %v4877_v57  ;;  %v7758_v19 = vld [vmem:[%s9262_s2 + $0x348] sm:$0xff]   ;;  %v7759_v53 = vld [vmem:[%s9262_s2 + $0x3c0] sm:$0xff]   ;;  %v7764_v22 = vld [vmem:[%s9262_s2 + $0x310] sm:$0xff]  }
 0x35a   : > { %7057 = vmatpush3.bf16.msra.mxu0 %v7736_v18  ;;  %v4988_v1 = vand.u32 2147483647, %v4879_v59  ;;  %v4881_v2 = vpop.f32.mrb[27].mxu1  ;;  %7084 = vmatprep.subr.bf16.mxu1 %v7739_v5  ;;  %v7757_v18 = vld [vmem:[%s9262_s2 + $0x300] sm:$0xff]   ;;  %v7763_v5 = vld [vmem:[%s9262_s2 + $0x3c8] sm:$0xff]   ;;  %v7766_v23 = vld [vmem:[%s9262_s2 + $0x358] sm:$0xff]  }
 0x35b   : > { %v4989_v8 = vand.u32 2147483647, %v4881_v2  ;;  %v4832_v11 = vpop.f32.mrb[28].mxu0  ;;  %7058 = vmatprep.subr.bf16.mxu0 %v7738_v24  ;;  %v7761_v54 = vld [vmem:[%s9262_s2 + $0x380] sm:$0xff]   ;;  %v7771_v24 = vld [vmem:[%s9262_s2 + $0x3d8] sm:$0xff]   ;;  %v7781_v2 = vld [vmem:[%s9262_s2 + $0x3a8] sm:$0xff]  }
 0x35c   : > { %v9091_v17 = vpack.c.bf16 %v4988_v1, %v4972_v62  ;;  %v4834_v26 = vpop.f32.mrb[29].mxu0  ;;  %v5002_v31 = vand.u32 2147483647, %v4832_v11  ;;  %v7773_v57 = vld [vmem:[%s9262_s2 + $0x398] sm:$0xff]   ;;  %v7775_v59 = vld [vmem:[%s9262_s2 + $0x3e0] sm:$0xff]   ;;  %v7779_v62 = vld [vmem:[%s9262_s2 + $0x3e8] sm:$0xff]  }
 0x35d   : > { %v9093_v27 = vpack.c.bf16 %v4989_v8, %v4973_v7  ;;  %7085 = vmatpush3.bf16.msra.mxu1 %v7741_v61  ;;  %v4836_v28 = vpop.f32.mrb[30].mxu0  ;;  %v5003_v25 = vand.u32 2147483647, %v4834_v26  ;;  %v7776_v61 = vld [vmem:[%s9262_s2 + $0x328] sm:$0xff]   ;;  %v7778_v1 = vld [vmem:[%s9262_s2 + $0x370] sm:$0xff]   ;;  %v7782_v8 = vld [vmem:[%s9262_s2 + $0x378] sm:$0xff]  }
 0x35e   : > { %7059 = vmatpush3.bf16.msra.mxu0 %v7740_v60  ;;  %v5018_v33 = vand.u32 2147483647, %v4836_v28  ;;  %v4838_v34 = vpop.f32.mrb[31].mxu0  ;;  %7086 = vmatprep.subr.bf16.mxu1 %v7743_v0  ;;  %v7777_v60 = vld [vmem:[%s9262_s2 + $0x3a0] sm:$0xff]   ;;  %v7780_v0 = vld [vmem:[%s9262_s2 + $0x330] sm:$0xff]   ;;  %v7786_v26 = vld [vmem:[%s9262_s2 + $0x3f8] sm:$0xff]  }
 0x35f   : > { %v5019_v36 = vand.u32 2147483647, %v4838_v34  ;;  %v4885_v37 = vpop.f32.mrb[28].mxu1  ;;  %7060 = vmatprep.subr.bf16.mxu0 %v7742_v14  ;;  %v7783_v7 = vld [vmem:[%s9262_s2 + $0x3f0] sm:$0xff]   ;;  %v7784_v14 = vld [vmem:[%s9262_s2 + $0x338] sm:$0xff]  }
 0x360   : > { %v9107_v40 = vpack.c.bf16 %v5018_v33, %v5002_v31  ;;  %v4887_v20 = vpop.f32.mrb[29].mxu1  ;;  %v5004_v46 = vand.u32 2147483647, %v4885_v37  ;;  %v7785_v11 = vld [vmem:[%s9262_s2 + $0x3b0] sm:$0xff]  }
 0x361   : > { %v9109_v41 = vpack.c.bf16 %v5019_v36, %v5003_v25  ;;  %7087 = vmatpush3.bf16.msra.mxu1 %v7745_v30  ;;  %v4889_v42 = vpop.f32.mrb[30].mxu1  ;;  %v5005_v3 = vand.u32 2147483647, %v4887_v20 }
 0x362   : > { %7061 = vmatpush3.bf16.msra.mxu0 %v7744_v29  ;;  %v5020_v6 = vand.u32 2147483647, %v4889_v42  ;;  %v4891_v47 = vpop.f32.mrb[31].mxu1  ;;  %7088 = vmatprep.subr.bf16.mxu1 %v7747_v35 }
 0x363   : > { %v5021_v49 = vand.u32 2147483647, %v4891_v47  ;;  %7062 = vmatprep.subr.bf16.mxu0 %v7746_v39 }
 0x364   : > { %v9123_v38 = vpack.c.bf16 %v5020_v6, %v5004_v46 }
 0x365   : > { %v9125_v51 = vpack.c.bf16 %v5021_v49, %v5005_v3  ;;  %7089 = vmatpush3.bf16.msra.mxu1 %v7749_v44 }
 0x366   : > { %7063 = vmatpush3.bf16.msra.mxu0 %v7748_v43  ;;  %7090 = vmatprep.subr.bf16.mxu1 %v7751_v48 }
 0x367   : > { %7064 = vmatprep.subr.bf16.mxu0 %v7750_v50 }
 0x369   : > { %7091 = vmatpush3.bf16.msra.mxu1 %v7753_v10 }
 0x36a   : > { %7065 = vmatpush3.bf16.msra.mxu0 %v7752_v9  ;;  %7092 = vmatprep.subr.bf16.mxu1 %v7754_v12 }
 0x36b   : > { %7106 = vmatprep.subr.bf16.mxu0 %v7755_v16 }
 0x36d   : > { %6307 = vmatmul.mubr.bf16.vlgmr.msra.gmra.mrb[48].mxu0 %v9011_v63  ;;  %7093 = vmatpush3.bf16.msra.mxu1 %v7756_v52  ;;  %v7762_v63 = vld [vmem:[%s9262_s2 + $0x350] sm:$0xff]  }
 0x36e   : > { %6314 = vmatprep.mubr.bf16.mxu0 %v9043_v4  ;;  %7107 = vmatpush3.bf16.msra.mxu0 %v7757_v18  ;;  %v7765_v4 = vld [vmem:[%s9262_s2 + $0x388] sm:$0xff]  }
 0x36f   : > { %7108 = vmatprep.subr.bf16.mxu0 %v7758_v19  ;;  %7134 = vmatprep.subr.bf16.mxu1 %v7759_v53 }
 0x370   : > { %6356 = vmatmul.mubr.bf16.vlgmr.msra.gmra.mrb[48].mxu1 %v9025_v32  ;;  %v7767_v32 = vld [vmem:[%s9262_s2 + $0x3d0] sm:$0xff]  }
 0x371   : > { %6363 = vmatprep.mubr.bf16.mxu1 %v9060_v15  ;;  %7135 = vmatpush3.bf16.msra.mxu1 %v7761_v54  ;;  %v7769_v15 = vld [vmem:[%s9262_s2 + $0x390] sm:$0xff]  }
 0x372   : > { %7109 = vmatpush3.bf16.msra.mxu0 %v7760_v21  ;;  %7136 = vmatprep.subr.bf16.mxu1 %v7763_v5 }
 0x373   : > { %7110 = vmatprep.subr.bf16.mxu0 %v7762_v63 }
 0x375   : > { %6315 = vmatmul.mubr.bf16.gmra.mrb[52].mxu0 %v9040_v45  ;;  %7137 = vmatpush3.bf16.msra.mxu1 %v7765_v4  ;;  %v7770_v45 = vld [vmem:[%s9262_s2 + $0x360] sm:$0xff]  }
 0x376   : > { %7111 = vmatpush3.bf16.msra.mxu0 %v7764_v22  ;;  %6404 = vmatprep.mubr.bf16.mxu0 %v9077_v58  ;;  %v7772_v58 = vld [vmem:[%s9262_s2 + $0x320] sm:$0xff]  }
 0x377   : > { %7112 = vmatprep.subr.bf16.mxu0 %v7766_v23  ;;  %7138 = vmatprep.subr.bf16.mxu1 %v7767_v32 }
 0x378   : > { %6364 = vmatmul.mubr.bf16.gmra.mrb[52].mxu1 %v9057_v13  ;;  %v7774_v13 = vld [vmem:[%s9262_s2 + $0x368] sm:$0xff]  }
 0x379   : > { %7139 = vmatpush3.bf16.msra.mxu1 %v7769_v15  ;;  %6453 = vmatprep.mubr.bf16.mxu1 %v9093_v27  ;;  %v7787_v27 = vld [vmem:[%s9262_s2 + $0x3b8] sm:$0xff]  }
 0x37a   : > { %7113 = vmatpush3.bf16.msra.mxu0 %v7768_v55  ;;  %7140 = vmatprep.subr.bf16.mxu1 %v7771_v24 }
 0x37b   : > { %7114 = vmatprep.subr.bf16.mxu0 %v7770_v45 }
 0x37d   : > { %7141 = vmatpush3.bf16.msra.mxu1 %v7773_v57 }
 0x37e   : > { %7115 = vmatpush3.bf16.msra.mxu0 %v7772_v58  ;;  %7142 = vmatprep.subr.bf16.mxu1 %v7775_v59 }
 0x37f   : > { %7116 = vmatprep.subr.bf16.mxu0 %v7774_v13 }
 0x381   : > { %7143 = vmatpush3.bf16.msra.mxu1 %v7777_v60 }
 0x382   : > { %7117 = vmatpush3.bf16.msra.mxu0 %v7776_v61  ;;  %7144 = vmatprep.subr.bf16.mxu1 %v7779_v62 }
 0x383   : > { %7118 = vmatprep.subr.bf16.mxu0 %v7778_v1 }
 0x385   : > { %7145 = vmatpush3.bf16.msra.mxu1 %v7781_v2 }
 0x386   : > { %7119 = vmatpush3.bf16.msra.mxu0 %v7780_v0  ;;  %7146 = vmatprep.subr.bf16.mxu1 %v7783_v7 }
 0x387   : > { %7120 = vmatprep.subr.bf16.mxu0 %v7782_v8 }
 0x389   : > { %7147 = vmatpush3.bf16.msra.mxu1 %v7785_v11 }
 0x38a   : > { %7121 = vmatpush3.bf16.msra.mxu0 %v7784_v14  ;;  %7148 = vmatprep.subr.bf16.mxu1 %v7786_v26 }
 0x38d   : > { %6405 = vmatmul.mubr.bf16.vlgmr.msra.gmra.mrb[56].mxu0 %v9074_v56  ;;  %7149 = vmatpush3.bf16.msra.mxu1 %v7787_v27 }
 0x38e   : > { %6412 = vmatprep.mubr.bf16.mxu0 %v9109_v41 }
 0x390   : > { %6454 = vmatmul.mubr.bf16.vlgmr.msra.gmra.mrb[56].mxu1 %v9091_v17 }
 0x391   : > { %6461 = vmatprep.mubr.bf16.mxu1 %v9125_v51 }
 0x395   : > { %6413 = vmatmul.mubr.bf16.gmra.mrb[60].mxu0 %v9107_v40 }
 0x398   : > { %6462 = vmatmul.mubr.bf16.gmra.mrb[60].mxu1 %v9123_v38 }
 0x3ff   : > { %v6954_v28 = vpop.f32.mrb[32].mxu0 }
 0x400   : > { %v6955_v29 = vpop.f32.mrb[33].mxu0 }
 0x401   : > { %v6956_v30 = vadd.f32 %v6955_v29, %v6954_v28  ;;  %v6957_v31 = vpop.f32.mrb[34].mxu0 }
 0x402   : > { %v6958_v33 = vpop.f32.mrb[35].mxu0 }
 0x403   : > { %v6959_v34 = vadd.f32 %v6958_v33, %v6957_v31  ;;  %v6982_v35 = vpop.f32.mrb[32].mxu1 }
 0x404   : > { %v6983_v25 = vpop.f32.mrb[33].mxu1 }
 0x405   : > { %v6984_v56 = vadd.f32 %v6983_v25, %v6982_v35  ;;  %v6985_v36 = vpop.f32.mrb[34].mxu1 }
 0x406   : > { %v6986_v37 = vpop.f32.mrb[35].mxu1 }
 0x407   : > { %v6162_v39 = vadd.f32 %v6984_v56, %v6956_v30  ;;  %v6987_v20 = vadd.f32 %v6986_v37, %v6985_v36  ;;  %v6960_v17 = vpop.f32.mrb[36].mxu0 }
 0x408   : > { %v6961_v41 = vpop.f32.mrb[37].mxu0 }
 0x409   : > { %v6165_v42 = vadd.f32 %v6987_v20, %v6959_v34  ;;  %v6962_v43 = vadd.f32 %v6961_v41, %v6960_v17  ;;  %v6963_v40 = vpop.f32.mrb[38].mxu0 }
 0x40a   : > { %v6964_v44 = vpop.f32.mrb[39].mxu0 }
 0x40b   : > { %v6965_v46 = vadd.f32 %v6964_v44, %v6963_v40  ;;  %v6988_v6 = vpop.f32.mrb[36].mxu1 }
 0x40c   : > { %v6989_v47 = vpop.f32.mrb[37].mxu1 }
 0x40d   : > { %v6990_v48 = vadd.f32 %v6989_v47, %v6988_v6  ;;  %v6991_v3 = vpop.f32.mrb[38].mxu1 }
 0x40e   : > { %v6992_v49 = vpop.f32.mrb[39].mxu1 }
 0x40f   : > { %v6170_v50 = vadd.f32 %v6990_v48, %v6962_v43  ;;  %v6993_v38 = vadd.f32 %v6992_v49, %v6991_v3 }
 0x411   : > { %v6173_v51 = vadd.f32 %v6993_v38, %v6965_v46 }
 0x41f   : > { %v7010_v10 = vpop.f32.mrb[40].mxu0 }
 0x420   : > { %v7011_v9 = vpop.f32.mrb[41].mxu0 }
 0x421   : > { %v7012_v12 = vadd.f32 %v7011_v9, %v7010_v10  ;;  %v7013_v16 = vpop.f32.mrb[42].mxu0 }
 0x422   : > { %v7014_v52 = vpop.f32.mrb[43].mxu0 }
 0x423   : > { %v6211_v18 = vadd.f32 %v7012_v12, %v6162_v39  ;;  %v7015_v19 = vadd.f32 %v7014_v52, %v7013_v16  ;;  %v7038_v53 = vpop.f32.mrb[40].mxu1 }
 0x424   : > { %v7039_v54 = vpop.f32.mrb[41].mxu1 }
 0x425   : > { %v6214_v21 = vadd.f32 %v7015_v19, %v6165_v42  ;;  %v7040_v5 = vadd.f32 %v7039_v54, %v7038_v53  ;;  %v7041_v63 = vpop.f32.mrb[42].mxu1 }
 0x426   : > { %v7042_v4 = vpop.f32.mrb[43].mxu1 }
 0x427   : > { %v6260_v22 = vadd.f32 %v7040_v5, %v6211_v18  ;;  %v7043_v23 = vadd.f32 %v7042_v4, %v7041_v63  ;;  %v7016_v32 = vpop.f32.mrb[44].mxu0 }
 0x428   : > { %v7017_v15 = vpop.f32.mrb[45].mxu0 }
 0x429   : > { %v6263_v55 = vadd.f32 %v7043_v23, %v6214_v21  ;;  %v7018_v24 = vadd.f32 %v7017_v15, %v7016_v32  ;;  %v7019_v45 = vpop.f32.mrb[46].mxu0 }
 0x42a   : > { %v7020_v57 = vpop.f32.mrb[47].mxu0 }
 0x42b   : > { %v6219_v58 = vadd.f32 %v7018_v24, %v6170_v50  ;;  %v7021_v59 = vadd.f32 %v7020_v57, %v7019_v45  ;;  %v7044_v13 = vpop.f32.mrb[44].mxu1 }
 0x42c   : > { %v7045_v60 = vpop.f32.mrb[45].mxu1 }
 0x42d   : > { %v6222_v61 = vadd.f32 %v7021_v59, %v6173_v51  ;;  %v7046_v62 = vadd.f32 %v7045_v60, %v7044_v13  ;;  %v7047_v1 = vpop.f32.mrb[46].mxu1 }
 0x42e   : > { %v7048_v2 = vpop.f32.mrb[47].mxu1 }
 0x42f   : > { %v6268_v0 = vadd.f32 %v7046_v62, %v6219_v58  ;;  %v7049_v7 = vadd.f32 %v7048_v2, %v7047_v1 }
 0x431   : > { %v6271_v8 = vadd.f32 %v7049_v7, %v6222_v61 }
 0x440   : > { %v7066_v11 = vpop.f32.mrb[48].mxu0 }
 0x441   : > { %v7067_v14 = vpop.f32.mrb[49].mxu0 }
 0x442   : > { %v7068_v26 = vadd.f32 %v7067_v14, %v7066_v11  ;;  %v7069_v27 = vpop.f32.mrb[50].mxu0 }
 0x443   : > { %v7070_v28 = vpop.f32.mrb[51].mxu0  ;;  %v7094_v29 = vpop.f32.mrb[48].mxu1 }
 0x444   : > { %v6309_v30 = vadd.f32 %v7068_v26, %v6260_v22  ;;  %v7071_v31 = vadd.f32 %v7070_v28, %v7069_v27  ;;  %v7095_v33 = vpop.f32.mrb[49].mxu1 }
 0x445   : > { %v7096_v34 = vadd.f32 %v7095_v33, %v7094_v29  ;;  %v7097_v35 = vpop.f32.mrb[50].mxu1 }
 0x446   : > { %v6312_v25 = vadd.f32 %v7071_v31, %v6263_v55  ;;  %v7098_v56 = vpop.f32.mrb[51].mxu1 }
 0x447   : > { %v6358_v36 = vadd.f32 %v7096_v34, %v6309_v30  ;;  %v7099_v37 = vadd.f32 %v7098_v56, %v7097_v35 }
 0x448   : > { %v7072_v39 = vpop.f32.mrb[52].mxu0 }
 0x449   : > { %v6361_v20 = vadd.f32 %v7099_v37, %v6312_v25  ;;  %v7073_v17 = vpop.f32.mrb[53].mxu0 }
 0x44a   : > { %v7074_v41 = vadd.f32 %v7073_v17, %v7072_v39  ;;  %v7075_v42 = vpop.f32.mrb[54].mxu0 }
 0x44b   : > { %v7076_v43 = vpop.f32.mrb[55].mxu0  ;;  %v7100_v40 = vpop.f32.mrb[52].mxu1 }
 0x44c   : > { %v6317_v44 = vadd.f32 %v7074_v41, %v6268_v0  ;;  %v7077_v46 = vadd.f32 %v7076_v43, %v7075_v42  ;;  %v7101_v6 = vpop.f32.mrb[53].mxu1 }
 0x44d   : > { %v7102_v47 = vadd.f32 %v7101_v6, %v7100_v40  ;;  %v7103_v48 = vpop.f32.mrb[54].mxu1 }
 0x44e   : > { %v6320_v3 = vadd.f32 %v7077_v46, %v6271_v8  ;;  %v7104_v49 = vpop.f32.mrb[55].mxu1 }
 0x44f   : > { %v6366_v50 = vadd.f32 %v7102_v47, %v6317_v44  ;;  %v7105_v38 = vadd.f32 %v7104_v49, %v7103_v48 }
 0x451   : > { %v6369_v51 = vadd.f32 %v7105_v38, %v6320_v3 }
 0x460   : > { %v7122_v10 = vpop.f32.mrb[56].mxu0 }
 0x461   : > { %v7123_v9 = vpop.f32.mrb[57].mxu0 }
 0x462   : > { %v7124_v12 = vadd.f32 %v7123_v9, %v7122_v10  ;;  %v7125_v16 = vpop.f32.mrb[58].mxu0 }
 0x463   : > { %v7126_v52 = vpop.f32.mrb[59].mxu0  ;;  %v7150_v18 = vpop.f32.mrb[56].mxu1 }
 0x464   : > { %v6407_v19 = vadd.f32 %v7124_v12, %v6358_v36  ;;  %v7127_v53 = vadd.f32 %v7126_v52, %v7125_v16  ;;  %v7151_v54 = vpop.f32.mrb[57].mxu1 }
 0x465   : > { %v7152_v21 = vadd.f32 %v7151_v54, %v7150_v18  ;;  %v7153_v5 = vpop.f32.mrb[58].mxu1 }
 0x466   : > { %v6410_v63 = vadd.f32 %v7127_v53, %v6361_v20  ;;  %v7154_v4 = vpop.f32.mrb[59].mxu1 }
 0x467   : > { %v6456_v22 = vadd.f32 %v7152_v21, %v6407_v19  ;;  %v7155_v23 = vadd.f32 %v7154_v4, %v7153_v5 }
 0x468   : > { %v7128_v32 = vpop.f32.mrb[60].mxu0 }
 0x469   : > { %6471 = vst.msk [vmem:[%s170_s16] sm:$0xff] %vm6470_vm9, %v6456_v22  ;;  %v6459_v15 = vadd.f32 %v7155_v23, %v6410_v63  ;;  %v7129_v55 = vpop.f32.mrb[61].mxu0 }
 0x46a   : > { %v7130_v24 = vadd.f32 %v7129_v55, %v7128_v32  ;;  %v7131_v45 = vpop.f32.mrb[62].mxu0 }
 0x46b   : > { %6472 = vst.msk [vmem:[%s170_s16 + $0x8] sm:$0xff] %vm6470_vm9, %v6459_v15  ;;  %v7132_v57 = vpop.f32.mrb[63].mxu0  ;;  %v7156_v58 = vpop.f32.mrb[60].mxu1 }
 0x46c   : > { %v6415_v59 = vadd.f32 %v7130_v24, %v6366_v50  ;;  %v7133_v13 = vadd.f32 %v7132_v57, %v7131_v45  ;;  %v7157_v60 = vpop.f32.mrb[61].mxu1 }
 0x46d   : > { %v7158_v61 = vadd.f32 %v7157_v60, %v7156_v58  ;;  %v7159_v62 = vpop.f32.mrb[62].mxu1 }
 0x46e   : > { %v6418_v1 = vadd.f32 %v7133_v13, %v6369_v51  ;;  %v7160_v2 = vpop.f32.mrb[63].mxu1 }
 0x46f   : > { %v6464_v0 = vadd.f32 %v7158_v61, %v6415_v59  ;;  %v7161_v7 = vadd.f32 %v7160_v2, %v7159_v62 }
 0x471   : > { %6473 = vst.msk [vmem:[%s170_s16 + $0x10] sm:$0xff] %vm6470_vm9, %v6464_v0  ;;  %v6467_v8 = vadd.f32 %v7161_v7, %v6418_v1 }
 0x473   : > { %6474 = vst.msk [vmem:[%s170_s16 + $0x18] sm:$0xff] %vm6470_vm9, %v6467_v8 }
 0x474 PF: > { %s13_s12 = sadd.s32 1, %s7795_s12  }
 0x475   : > { %p10_p4 = scmp.ge.s32.totalorder %s13_s12, 4  }
 0x477   :  { %12 = sbr.rel (!%p10_p4) target bundleno = 1 (0x1), region = 69 }

// kernel: summarizer_forward.9
= control target key start
LH: loop header
LB: loop body
LE: loop exit
PB: predicated region body
PF: predicated region fallthrough
CT: control target
= control target key end

     0   :  { %vm81_vm0 = vcmask 261120   ;;  %v4777_v9 = vmov 0   ;;  %vm566_vm5 = vcmask 523264   ;;  %s5908_s3 = inlined_call_operand.vmem [shape: bf16[3,32,64], index: 3, kind: input, shape index: {}]   ;;  %s5909_s0 = inlined_call_operand.vmem [shape: bf16[32,32], index: 0, kind: input, shape index: {}]   ;;  %s5910_s1 = inlined_call_operand.vmem [shape: bf16[3,32,32], index: 1, kind: input, shape index: {}]   ;;  %s5911_s2 = inlined_call_operand.vmem [shape: f32[32,1], index: 2, kind: input, shape index: {}]   ;;  %s5912_s11 = inlined_call_operand.<no memory space> [shape: f32[1,1], index: 11, kind: input, shape index: {}]   ;;  %s5913_s5 = inlined_call_operand.vmem [shape: f32[32,1], index: 5, kind: input, shape index: {}]   ;;  %s5914_s8 = inlined_call_operand.vmem [shape: f32[32,1], index: 8, kind: input, shape index: {}]   ;;  %s5915_s6 = inlined_call_operand.vmem [shape: bf16[3,64,128], index: 6, kind: input, shape index: {}]   ;;  %s5916_s4 = inlined_call_operand.vmem [shape: bf16[3,32,32], index: 4, kind: input, shape index: {}]   ;;  %s5917_s9 = inlined_call_operand.vmem [shape: bf16[3,128,256], index: 9, kind: input, shape index: {}]   ;;  %s5918_s7 = inlined_call_operand.vmem [shape: bf16[3,32,32], index: 7, kind: input, shape index: {}]   ;;  %s5919_s12 = inlined_call_operand.vmem [shape: bf16[3,256,512], index: 12, kind: input, shape index: {}]   ;;  %s5920_s10 = inlined_call_operand.vmem [shape: bf16[3,1,32], index: 10, kind: input, shape index: {}]   ;;  %s5921_s13 = inlined_call_operand.vmem [shape: f32[1,512], index: 13, kind: output, shape index: {}]  }
   0x1   :  { %v4379_v0 = vld [vmem:[%s5908_s3] sm:$0xff]   ;;  %v4380_v1 = vld [vmem:[%s5908_s3 + $0x8] sm:$0xff]   ;;  %v4383_v3 = vld [vmem:[%s5908_s3 + $0x10] sm:$0xff]   ;;  %4377 = vset.pattern.permute.xlu0 %v4777_v9  ;;  %4378 = vset.pattern.permute.xlu1 %v4777_v9  ;;  %v18_v12 = vstv %s5912_s11 }
   0x2   :  { %4199 = vmatprep.subr.bf16.mxu1 %v4379_v0  ;;  %v4381_v2 = vld [vmem:[%s5909_s0] sm:$0xff]   ;;  %v4384_v4 = vld [vmem:[%s5908_s3 + $0x18] sm:$0xff]   ;;  %v4382_v5 = vld [vmem:[%s5909_s0 + $0x8] sm:$0xff]   ;;  %4215 = vmatprep.subr.bf16.mxu0 %v4383_v3  ;;  %19 = vst [vmem:[#allocation2] sm:$0x1] %v18_v12 }
   0x3   :  { %4200 = vmatpush3.bf16.msra.mxu1 %v4379_v0  ;;  %4203 = vmatprep.mubr.msk.bf16.mxu1 %vm81_vm0, %v4381_v2  ;;  %v4385_v6 = vld [vmem:[%s5908_s3 + $0x20] sm:$0xff]   ;;  %v4386_v7 = vld [vmem:[%s5908_s3 + $0x28] sm:$0xff]   ;;  %v53_v11 = vld [vmem:[%s5911_s2 + $0x10] sm:$0xff] }
   0x4   :  { %4201 = vmatprep.subr.bf16.mxu1 %v4380_v1  ;;  %4219 = vmatprep.mubr.msk.bf16.mxu0 %vm81_vm0, %v4381_v2  ;;  %v4387_v8 = vld [vmem:[%s5910_s1] sm:$0xff]   ;;  %v52_v13 = vld [vmem:[%s5911_s2 + $0x8] sm:$0xff]  ;;  %v54_v14 = vld [vmem:[%s5911_s2 + $0x18] sm:$0xff] }
   0x5   :  { %4216 = vmatpush3.bf16.msra.mxu0 %v4383_v3  ;;  %v51_v10 = vld [vmem:[%s5911_s2] sm:$0xff]  ;;  %220 = vperm.xlu1 %4378, %v53_v11   ;;  %v531_v16 = vld [vmem:[%s5913_s5 + $0x8] sm:$0xff]  ;;  %v532_v17 = vld [vmem:[%s5913_s5 + $0x10] sm:$0xff] }
   0x6   :  { %4217 = vmatprep.subr.bf16.mxu0 %v4384_v4  ;;  %210 = vperm.xlu0 %4377, %v51_v10   ;;  %v530_v15 = vld [vmem:[%s5913_s5] sm:$0xff]  ;;  %v533_v18 = vld [vmem:[%s5913_s5 + $0x18] sm:$0xff]  ;;  %v1048_v20 = vld [vmem:[%s5914_s8 + $0x8] sm:$0xff] }
   0x7   :  { %4202 = vmatpush3.bf16.msra.mxu1 %v4380_v1  ;;  %v1047_v19 = vld [vmem:[%s5914_s8] sm:$0xff]  ;;  %v1049_v21 = vld [vmem:[%s5914_s8 + $0x10] sm:$0xff]  ;;  %v1050_v22 = vld [vmem:[%s5914_s8 + $0x18] sm:$0xff] }
   0x8   :  { %v4394_v24 = vld [vmem:[%s5915_s6 + $0x40] sm:$0xff]   ;;  %v4388_v37 = vld [vmem:[%s5910_s1 + $0x8] sm:$0xff]   ;;  %v4389_v38 = vld [vmem:[%s5910_s1 + $0x10] sm:$0xff]  }
   0x9   :  { %4218 = vmatpush3.bf16.msra.mxu0 %v4384_v4  ;;  %225 = vperm.xlu1 %4378, %v54_v14   ;;  %v1805_v23 = vld [vmem:[#allocation2] sm:$0x1]  ;;  %v4390_v45 = vld [vmem:[%s5910_s1 + $0x18] sm:$0xff]   ;;  %v4392_v48 = vld [vmem:[%s5910_s1 + $0x28] sm:$0xff]  }
   0xa   :  { %4204 = vmatmul.mubr.msk.bf16.vlgmr.msra.gmra.mrb[0].mxu1 %vm81_vm0, %v4382_v5  ;;  %4231 = vmatprep.subr.bf16.mxu0 %v4385_v6  ;;  %v4391_v46 = vld [vmem:[%s5910_s1 + $0x20] sm:$0xff]   ;;  %v4395_v49 = vld [vmem:[%s5915_s6 + $0x8] sm:$0xff]   ;;  %v4397_v51 = vld [vmem:[%s5915_s6 + $0x10] sm:$0xff]  }
   0xb   :  { %4211 = vmatprep.mubr.msk.bf16.mxu1 %vm81_vm0, %v4387_v8  ;;  %215 = vperm.xlu0 %4377, %v52_v13   ;;  %v4393_v47 = vld [vmem:[%s5915_s6] sm:$0xff]   ;;  %v4396_v50 = vld [vmem:[%s5915_s6 + $0x48] sm:$0xff]   ;;  %v4398_v52 = vld [vmem:[%s5915_s6 + $0x50] sm:$0xff]  }
   0xc   :  { %4220 = vmatmul.mubr.msk.bf16.vlgmr.msra.gmra.mrb[0].mxu0 %vm81_vm0, %v4382_v5  ;;  %v4399_v53 = vld [vmem:[%s5915_s6 + $0x18] sm:$0xff]   ;;  %v4401_v14 = vld [vmem:[%s5916_s4] sm:$0xff]  }
   0xd   :  { %4232 = vmatpush3.bf16.msra.mxu0 %v4385_v6  ;;  %4235 = vmatprep.mubr.msk.bf16.mxu0 %vm81_vm0, %v4381_v2  ;;  %v4400_v54 = vld [vmem:[%s5915_s6 + $0x58] sm:$0xff]  }
   0xe   :  { %4233 = vmatprep.subr.bf16.mxu0 %v4386_v7  ;;  %700 = vperm.xlu1 %4378, %v531_v16  }
   0xf   :  { %695 = vperm.xlu0 %4377, %v530_v15  }
  0x11   :  { %4234 = vmatpush3.bf16.msra.mxu0 %v4386_v7 }
  0x12   :  { %710 = vperm.xlu1 %4378, %v533_v18   ;;  %4287 = vmatprep.subr.bf16.mxu0 %v4394_v24 }
  0x13   :  { %705 = vperm.xlu0 %4377, %v532_v17  }
  0x14   :  { %4236 = vmatmul.mubr.msk.bf16.vlgmr.msra.gmra.mrb[4].mxu0 %vm81_vm0, %v4382_v5 }
  0x15   :  { %4288 = vmatpush3.bf16.msra.mxu0 %v4394_v24 }
  0x16   :  { %1284 = vperm.xlu1 %4378, %v1048_v20   ;;  %4289 = vmatprep.subr.bf16.mxu0 %v4396_v50 }
  0x17   :  { %1279 = vperm.xlu0 %4377, %v1047_v19  }
  0x19   :  { %4290 = vmatpush3.bf16.msra.mxu0 %v4396_v50 }
  0x1a   :  { %1294 = vperm.xlu1 %4378, %v1050_v22   ;;  %4291 = vmatprep.subr.bf16.mxu0 %v4398_v52 }
  0x1b   :  { %1289 = vperm.xlu0 %4377, %v1049_v21  }
  0x1d   :  { %4292 = vmatpush3.bf16.msra.mxu0 %v4398_v52  ;;  %v4409_v52 = vld [vmem:[%s5916_s4 + $0x20] sm:$0xff]  }
  0x1e   :  { %4293 = vmatprep.subr.bf16.mxu0 %v4400_v54 }
  0x1f   :  { %2392 = vperm.xlu0 %4377, %v1805_v23  }
  0x21   :  { %4294 = vmatpush3.bf16.msra.mxu0 %v4400_v54  ;;  %v4431_v54 = vld [vmem:[%s5917_s9 + $0x64] ss:$8 sps:$4 sm:$0xff]  }
  0x84   :  { %v221_v55 = vpop.permute.xlu1 %220 }
  0x85   :  { %v211_v56 = vpop.permute.xlu0 %210 }
  0x88   :  { %v226_v60 = vpop.permute.xlu1 %225 }
  0x8a   :  { %v216_v63 = vpop.permute.xlu0 %215 }
  0xdd   :  { %v4205_v25 = vpop.f32.mrb[0].mxu1 }
  0xde   :  { %v122_v26 = vpop.f32.mrb[1].mxu1 }
  0xdf   :  { %v4206_v27 = vpop.f32.mrb[2].mxu1  ;;  %v4221_v31 = vpop.f32.mrb[0].mxu0 }
  0xe0   :  { %v142_v28 = vpack.c.bf16 %v4206_v27, %v4205_v25  ;;  %v125_v29 = vpop.f32.mrb[3].mxu1  ;;  %v283_v32 = vpop.f32.mrb[1].mxu0  ;;  %v4403_v27 = vld [vmem:[%s5915_s6 + $0x20] sm:$0xff]  }
  0xe1   :  { %v141_v30 = vpack.c.bf16 %v125_v29, %v122_v26  ;;  %v4222_v33 = vpop.f32.mrb[2].mxu0  ;;  %v4404_v29 = vld [vmem:[%s5915_s6 + $0x28] sm:$0xff]  }
  0xe2   :  { %v304_v34 = vpack.c.bf16 %v4222_v33, %v4221_v31  ;;  %v286_v35 = vpop.f32.mrb[3].mxu0  ;;  %v4406_v31 = vld [vmem:[%s5915_s6 + $0x38] sm:$0xff]   ;;  %v4411_v33 = vld [vmem:[%s5917_s9] ss:$8 sps:$4 sm:$0xff]  }
  0xe3   :  { %4207 = vmatprep.subr.bf16.mxu1 %v141_v30  ;;  %v303_v36 = vpack.c.bf16 %v286_v35, %v283_v32  ;;  %v4407_v32 = vld [vmem:[%s5916_s4 + $0x10] sm:$0xff]  }
  0xe4   :  { %4208 = vmatpush3.bf16.msra.mxu1 %v141_v30  ;;  %v4405_v30 = vld [vmem:[%s5915_s6 + $0x30] sm:$0xff]  }
  0xe5   :  { %4209 = vmatprep.subr.bf16.mxu1 %v142_v28  ;;  %v4416_v35 = vld [vmem:[%s5917_s9 + $0x14] ss:$8 sps:$4 sm:$0xff]  }
  0xe7   :  { %v4237_v39 = vpop.f32.mrb[4].mxu0 }
  0xe8   :  { %4210 = vmatpush3.bf16.msra.mxu1 %v142_v28  ;;  %v425_v40 = vpop.f32.mrb[5].mxu0  ;;  %v4402_v28 = vld [vmem:[%s5916_s4 + $0x8] sm:$0xff]  }
  0xe9   :  { %4223 = vmatprep.subr.bf16.mxu1 %v303_v36  ;;  %v4238_v41 = vpop.f32.mrb[6].mxu0 }
  0xea   :  { %v446_v42 = vpack.c.bf16 %v4238_v41, %v4237_v39  ;;  %v428_v43 = vpop.f32.mrb[7].mxu0  ;;  %v4422_v39 = vld [vmem:[%s5917_s9 + $0x34] ss:$8 sps:$4 sm:$0xff]   ;;  %v4425_v41 = vld [vmem:[%s5917_s9 + $0x44] ss:$8 sps:$4 sm:$0xff]  }
  0xeb   :  { %4212 = vmatmul.mubr.msk.bf16.vlgmr.msra.gmra.mrb[4].mxu1 %vm81_vm0, %v4388_v37  ;;  %v445_v44 = vpack.c.bf16 %v428_v43, %v425_v40  ;;  %v4419_v37 = vld [vmem:[%s5917_s9 + $0x24] ss:$8 sps:$4 sm:$0xff]   ;;  %v4420_v40 = vld [vmem:[%s5917_s9 + $0x30] ss:$8 sps:$4 sm:$0xff]   ;;  %v4428_v43 = vld [vmem:[%s5917_s9 + $0x54] ss:$8 sps:$4 sm:$0xff]  }
  0xec   :  { %4224 = vmatpush3.bf16.msra.mxu1 %v303_v36  ;;  %4227 = vmatprep.mubr.msk.bf16.mxu1 %vm81_vm0, %v4389_v38  ;;  %v4414_v36 = vld [vmem:[%s5917_s9 + $0x10] ss:$8 sps:$4 sm:$0xff]   ;;  %v4417_v38 = vld [vmem:[%s5917_s9 + $0x20] ss:$8 sps:$4 sm:$0xff]  }
  0xed   :  { %4225 = vmatprep.subr.bf16.mxu1 %v304_v34 }
  0xf0   :  { %4226 = vmatpush3.bf16.msra.mxu1 %v304_v34  ;;  %v4413_v34 = vld [vmem:[%s5917_s9 + $0x4] ss:$8 sps:$4 sm:$0xff]  }
  0xf1   :  { %4239 = vmatprep.subr.bf16.mxu1 %v445_v44  ;;  %1147 = vmatprep.subr.bf16.mxu0 %v4413_v34 }
  0xf7   :  { %4228 = vmatmul.mubr.msk.bf16.vlgmr.msra.gmra.mrb[4].mxu1 %vm81_vm0, %v4390_v45 }
  0xf8   :  { %4240 = vmatpush3.bf16.msra.mxu1 %v445_v44  ;;  %4243 = vmatprep.mubr.msk.bf16.mxu1 %vm81_vm0, %v4391_v46  ;;  %v4426_v44 = vld [vmem:[%s5917_s9 + $0x50] ss:$8 sps:$4 sm:$0xff]  }
  0xf9   :  { %4241 = vmatprep.subr.bf16.mxu1 %v446_v42 }
  0xfc   :  { %4242 = vmatpush3.bf16.msra.mxu1 %v446_v42  ;;  %v4423_v42 = vld [vmem:[%s5917_s9 + $0x40] ss:$8 sps:$4 sm:$0xff]  }
  0xfd   :  { %4247 = vmatprep.subr.bf16.mxu1 %v4393_v47 }
 0x103   :  { %4244 = vmatmul.mubr.msk.bf16.vlgmr.msra.gmra.mrb[4].mxu1 %vm81_vm0, %v4392_v48 }
 0x104   :  { %4248 = vmatpush3.bf16.msra.mxu1 %v4393_v47 }
 0x105   :  { %4249 = vmatprep.subr.bf16.mxu1 %v4395_v49 }
 0x108   :  { %4250 = vmatpush3.bf16.msra.mxu1 %v4395_v49 }
 0x109   :  { %4251 = vmatprep.subr.bf16.mxu1 %v4397_v51 }
 0x10c   :  { %4252 = vmatpush3.bf16.msra.mxu1 %v4397_v51  ;;  %v4408_v51 = vld [vmem:[%s5916_s4 + $0x18] sm:$0xff]  }
 0x10d   :  { %4253 = vmatprep.subr.bf16.mxu1 %v4399_v53 }
 0x110   :  { %4254 = vmatpush3.bf16.msra.mxu1 %v4399_v53  ;;  %v4410_v53 = vld [vmem:[%s5916_s4 + $0x28] sm:$0xff]  }
 0x1d6   :  { %v4245_v57 = vpop.f32.mrb[4].mxu1 }
 0x1d7   :  { %v4307_v58 = vadd.f32 %v4245_v57, %v221_v55  ;;  %v497_v59 = vpop.f32.mrb[5].mxu1  ;;  %v4429_v55 = vld [vmem:[%s5917_s9 + $0x60] ss:$8 sps:$4 sm:$0xff]   ;;  %v4432_v57 = vld [vmem:[%s5917_s9 + $0x70] ss:$8 sps:$4 sm:$0xff]  }
 0x1d8   :  { %v4308_v61 = vadd.f32 %v497_v59, %v211_v56  ;;  %v4246_v62 = vpop.f32.mrb[6].mxu1  ;;  %v4434_v56 = vld [vmem:[%s5917_s9 + $0x74] ss:$8 sps:$4 sm:$0xff]   ;;  %v696_v59 = vpop.permute.xlu0 %695 }
 0x1d9   :  { %v522_v0 = vmul.f32 0.2, %v4307_v58  ;;  %v4309_v1 = vadd.f32 %v4246_v62, %v226_v60  ;;  %v500_v2 = vpop.f32.mrb[7].mxu1  ;;  %vm518_vm1 = vcmp.gt.f32.partialorder %v4307_v58, 0.0  ;;  %v701_v60 = vpop.permute.xlu1 %700 }
 0x1da   :  { %v520_v3 = vmul.f32 0.2, %v4308_v61  ;;  %v4310_v4 = vadd.f32 %v500_v2, %v216_v63  ;;  %vm516_vm2 = vcmp.gt.f32.partialorder %v4308_v61, 0.0 }
 0x1db   :  { %vm519_vm3 = vcmp.gt.f32.partialorder %v4309_v1, 0.0  ;;  %v523_v5 = vmul.f32 0.2, %v4309_v1  ;;  %v526_v7 = vsel %vm518_vm1, %v4307_v58, %v522_v0  ;;  %v4437_v58 = vld [vmem:[%s5917_s9 + $0x104] ss:$8 sps:$4 sm:$0xff]  }
 0x1dc   :  { %vm517_vm4 = vcmp.gt.f32.partialorder %v4310_v4, 0.0  ;;  %v521_v6 = vmul.f32 0.2, %v4310_v4  ;;  %v524_v10 = vsel %vm516_vm2, %v4308_v61, %v520_v3  ;;  %v706_v61 = vpop.permute.xlu0 %705 }
 0x1dd   :  { %v527_v8 = vsel %vm519_vm3, %v4309_v1, %v523_v5  ;;  %v711_v1 = vpop.permute.xlu1 %710 }
 0x1de   :  { %v529_v11 = vpack.c.bf16 %v527_v8, %v526_v7  ;;  %v525_v12 = vsel %vm517_vm4, %v4310_v4, %v521_v6 }
 0x1df   :  { %v528_v13 = vpack.c.bf16 %v525_v12, %v524_v10 }
 0x1e1   :  { %4255 = vmatprep.mubr.msk.bf16.mxu1 %vm566_vm5, %v528_v13  ;;  %4295 = vmatprep.mubr.msk.bf16.mxu0 %vm566_vm5, %v528_v13 }
 0x1e2   :  { %4256 = vmatmul.mubr.msk.bf16.vlgmr.msra.gmra.mrb[8].mxu1 %vm566_vm5, %v529_v11  ;;  %4296 = vmatmul.mubr.msk.bf16.vlgmr.msra.gmra.mrb[8].mxu0 %vm566_vm5, %v529_v11 }
 0x1e3   :  { %1179 = vmatprep.mubr.bf16.mxu0 %v4777_v9  ;;  %4263 = vmatprep.mubr.msk.bf16.mxu1 %vm81_vm0, %v4401_v14 }
 0x1e4   :  { %1148 = vmatpush1.bf16.msra.mxu0 %v4411_v33 }
 0x1e5   :  { %1149 = vmatprep.subr.bf16.mxu0 %v4416_v35 }
 0x1e8   :  { %1150 = vmatpush1.bf16.msra.mxu0 %v4414_v36 }
 0x1e9   :  { %1151 = vmatprep.subr.bf16.mxu0 %v4419_v37 }
 0x1ec   :  { %1152 = vmatpush1.bf16.msra.mxu0 %v4417_v38 }
 0x1ed   :  { %1153 = vmatprep.subr.bf16.mxu0 %v4422_v39 }
 0x1f0   :  { %1154 = vmatpush1.bf16.msra.mxu0 %v4420_v40 }
 0x1f1   :  { %1155 = vmatprep.subr.bf16.mxu0 %v4425_v41 }
 0x1f4   :  { %1156 = vmatpush1.bf16.msra.mxu0 %v4423_v42 }
 0x1f5   :  { %1157 = vmatprep.subr.bf16.mxu0 %v4428_v43 }
 0x1f8   :  { %1158 = vmatpush1.bf16.msra.mxu0 %v4426_v44 }
 0x1f9   :  { %1159 = vmatprep.subr.bf16.mxu0 %v4431_v54  ;;  %v4469_v54 = vld [vmem:[%s5917_s9 + $0xb0] ss:$8 sps:$4 sm:$0xff]  }
 0x1fc   :  { %1160 = vmatpush1.bf16.msra.mxu0 %v4429_v55  ;;  %v4474_v55 = vld [vmem:[%s5917_s9 + $0xc4] ss:$8 sps:$4 sm:$0xff]  }
 0x1fd   :  { %1161 = vmatprep.subr.bf16.mxu0 %v4434_v56  ;;  %v4472_v56 = vld [vmem:[%s5917_s9 + $0xc0] ss:$8 sps:$4 sm:$0xff]  }
 0x200   :  { %1162 = vmatpush1.bf16.msra.mxu0 %v4432_v57 }
 0x201   :  { %1638 = vmatprep.subr.bf16.mxu0 %v4437_v58  ;;  %v4477_v58 = vld [vmem:[%s5917_s9 + $0xd4] ss:$8 sps:$4 sm:$0xff]  }
 0x2b5   :  { %v4257_v15 = vpop.f32.mrb[8].mxu1  ;;  %v4297_v16 = vpop.f32.mrb[8].mxu0 }
 0x2b6   :  { %v607_v17 = vpop.f32.mrb[9].mxu1  ;;  %v942_v18 = vpop.f32.mrb[9].mxu0 }
 0x2b7   :  { %v4258_v19 = vpop.f32.mrb[10].mxu1  ;;  %v4298_v20 = vpop.f32.mrb[10].mxu0 }
 0x2b8   :  { %v627_v21 = vpack.c.bf16 %v4258_v19, %v4257_v15  ;;  %v4977_v22 = vpack.c.bf16 %v4298_v20, %v4297_v16  ;;  %v610_v23 = vpop.f32.mrb[11].mxu1  ;;  %v945_v24 = vpop.f32.mrb[11].mxu0  ;;  %v4435_v16 = vld [vmem:[%s5917_s9 + $0x100] ss:$8 sps:$4 sm:$0xff]   ;;  %v4440_v19 = vld [vmem:[%s5917_s9 + $0x114] ss:$8 sps:$4 sm:$0xff]  }
 0x2b9   :  { %v626_v25 = vpack.c.bf16 %v610_v23, %v607_v17  ;;  %v962_v26 = vpack.c.bf16 %v945_v24, %v942_v18  ;;  %v4438_v20 = vld [vmem:[%s5917_s9 + $0x110] ss:$8 sps:$4 sm:$0xff]   ;;  %v4446_v23 = vld [vmem:[%s5917_s9 + $0x134] ss:$8 sps:$4 sm:$0xff]  }
 0x2ba   :  { %v4444_v24 = vld [vmem:[%s5917_s9 + $0x130] ss:$8 sps:$4 sm:$0xff]  }
 0x2bb   :  { %4259 = vmatprep.subr.bf16.mxu1 %v626_v25 }
 0x2bc   :  { %4260 = vmatpush3.bf16.msra.mxu1 %v626_v25  ;;  %v4449_v25 = vld [vmem:[%s5917_s9 + $0x144] ss:$8 sps:$4 sm:$0xff]  }
 0x2bd   :  { %4261 = vmatprep.subr.bf16.mxu1 %v627_v21 }
 0x2c0   :  { %4262 = vmatpush3.bf16.msra.mxu1 %v627_v21  ;;  %v4443_v21 = vld [vmem:[%s5917_s9 + $0x124] ss:$8 sps:$4 sm:$0xff]  }
 0x2c1   :  { %4267 = vmatprep.subr.bf16.mxu1 %v4403_v27 }
 0x2c3   :  { %4264 = vmatmul.mubr.msk.bf16.vlgmr.msra.gmra.mrb[12].mxu1 %vm81_vm0, %v4402_v28  ;;  %v4450_v28 = vld [vmem:[%s5917_s9 + $0x150] ss:$8 sps:$4 sm:$0xff]  }
 0x2c4   :  { %4268 = vmatpush3.bf16.msra.mxu1 %v4403_v27  ;;  %4275 = vmatprep.mubr.msk.bf16.mxu1 %vm566_vm5, %v528_v13  ;;  %v4452_v27 = vld [vmem:[%s5917_s9 + $0x154] ss:$8 sps:$4 sm:$0xff]  }
 0x2c5   :  { %4269 = vmatprep.subr.bf16.mxu1 %v4404_v29 }
 0x2c8   :  { %4270 = vmatpush3.bf16.msra.mxu1 %v4404_v29  ;;  %v4455_v29 = vld [vmem:[%s5917_s9 + $0x164] ss:$8 sps:$4 sm:$0xff]  }
 0x2c9   :  { %4271 = vmatprep.subr.bf16.mxu1 %v4405_v30 }
 0x2cc   :  { %4272 = vmatpush3.bf16.msra.mxu1 %v4405_v30  ;;  %v4453_v30 = vld [vmem:[%s5917_s9 + $0x160] ss:$8 sps:$4 sm:$0xff]  }
 0x2cd   :  { %4273 = vmatprep.subr.bf16.mxu1 %v4406_v31 }
 0x2d0   :  { %4274 = vmatpush3.bf16.msra.mxu1 %v4406_v31  ;;  %v4458_v31 = vld [vmem:[%s5917_s9 + $0x174] ss:$8 sps:$4 sm:$0xff]  }
 0x2d3   :  { %4276 = vmatmul.mubr.msk.bf16.vlgmr.msra.gmra.mrb[16].mxu1 %vm566_vm5, %v529_v11 }
 0x2d4   :  { %4283 = vmatprep.mubr.msk.bf16.mxu1 %vm81_vm0, %v4407_v32  ;;  %v4456_v32 = vld [vmem:[%s5917_s9 + $0x170] ss:$8 sps:$4 sm:$0xff]  }
 0x3a6   :  { %v4277_v45 = vpop.f32.mrb[16].mxu1 }
 0x3a7   :  { %v784_v46 = vpop.f32.mrb[17].mxu1 }
 0x3a8   :  { %v4278_v47 = vpop.f32.mrb[18].mxu1 }
 0x3a9   :  { %v805_v48 = vpack.c.bf16 %v4278_v47, %v4277_v45  ;;  %v787_v49 = vpop.f32.mrb[19].mxu1  ;;  %v4461_v45 = vld [vmem:[%s5917_s9 + $0x84] ss:$8 sps:$4 sm:$0xff]   ;;  %v4459_v47 = vld [vmem:[%s5917_s9 + $0x80] ss:$8 sps:$4 sm:$0xff]  }
 0x3aa   :  { %v804_v50 = vpack.c.bf16 %v787_v49, %v784_v46  ;;  %v4462_v46 = vld [vmem:[%s5918_s7] sm:$0xff]   ;;  %v4463_v49 = vld [vmem:[%s5917_s9 + $0x90] ss:$8 sps:$4 sm:$0xff]  }
 0x3ac   :  { %4279 = vmatprep.subr.bf16.mxu1 %v804_v50 }
 0x3ad   :  { %4280 = vmatpush3.bf16.msra.mxu1 %v804_v50  ;;  %v4468_v50 = vld [vmem:[%s5917_s9 + $0xa4] ss:$8 sps:$4 sm:$0xff]  }
 0x3ae   :  { %4281 = vmatprep.subr.bf16.mxu1 %v805_v48 }
 0x3b1   :  { %4282 = vmatpush3.bf16.msra.mxu1 %v805_v48  ;;  %v4465_v48 = vld [vmem:[%s5917_s9 + $0x94] ss:$8 sps:$4 sm:$0xff]  }
 0x3b2   :  { %4299 = vmatprep.subr.bf16.mxu1 %v962_v26 }
 0x3b4   :  { %4284 = vmatmul.mubr.msk.bf16.vlgmr.msra.gmra.mrb[12].mxu1 %vm81_vm0, %v4408_v51  ;;  %v4478_v51 = vld [vmem:[%s5918_s7 + $0x8] sm:$0xff]  }
 0x3b5   :  { %4300 = vmatpush3.bf16.msra.mxu1 %v962_v26  ;;  %4303 = vmatprep.mubr.msk.bf16.mxu1 %vm81_vm0, %v4409_v52  ;;  %v4447_v26 = vld [vmem:[%s5917_s9 + $0x140] ss:$8 sps:$4 sm:$0xff]  }
 0x3b6   :  { %4301 = vmatprep.subr.bf16.mxu1 %v4977_v22  ;;  %v4466_v52 = vld [vmem:[%s5917_s9 + $0xa0] ss:$8 sps:$4 sm:$0xff]  }
 0x3b9   :  { %4302 = vmatpush3.bf16.msra.mxu1 %v4977_v22  ;;  %v4441_v22 = vld [vmem:[%s5917_s9 + $0x120] ss:$8 sps:$4 sm:$0xff]  }
 0x3c0   :  { %4304 = vmatmul.mubr.msk.bf16.vlgmr.msra.gmra.mrb[12].mxu1 %vm81_vm0, %v4410_v53  ;;  %v4471_v53 = vld [vmem:[%s5917_s9 + $0xb4] ss:$8 sps:$4 sm:$0xff]  }
 0x3c1   :  { %1256 = vmatprep.mubr.bf16.mxu1 %v4777_v9 }
 0x493   :  { %v4305_v62 = vpop.f32.mrb[12].mxu1 }
 0x494   :  { %v4311_v63 = vadd.f32 %v4305_v62, %v706_v61  ;;  %v1014_v0 = vpop.f32.mrb[13].mxu1 }
 0x495   :  { %v4312_v2 = vadd.f32 %v1014_v0, %v696_v59  ;;  %v4306_v3 = vpop.f32.mrb[14].mxu1 }
 0x496   :  { %v1039_v4 = vmul.f32 0.2, %v4311_v63  ;;  %v4313_v5 = vadd.f32 %v4306_v3, %v711_v1  ;;  %v1017_v6 = vpop.f32.mrb[15].mxu1  ;;  %vm1035_vm6 = vcmp.gt.f32.partialorder %v4311_v63, 0.0  ;;  %v4481_v1 = vld [vmem:[%s5917_s9 + $0xe4] ss:$8 sps:$4 sm:$0xff]  }
 0x497   :  { %v1037_v7 = vmul.f32 0.2, %v4312_v2  ;;  %v4314_v8 = vadd.f32 %v1017_v6, %v701_v60  ;;  %vm1033_vm7 = vcmp.gt.f32.partialorder %v4312_v2, 0.0 }
 0x498   :  { %vm1036_vm8 = vcmp.gt.f32.partialorder %v4313_v5, 0.0  ;;  %v1040_v10 = vmul.f32 0.2, %v4313_v5  ;;  %v1043_v12 = vsel %vm1035_vm6, %v4311_v63, %v1039_v4  ;;  %v4475_v63 = vld [vmem:[%s5917_s9 + $0xd0] ss:$8 sps:$4 sm:$0xff]  }
 0x499   :  { %vm1034_vm9 = vcmp.gt.f32.partialorder %v4314_v8, 0.0  ;;  %v1038_v11 = vmul.f32 0.2, %v4314_v8  ;;  %v1041_v14 = vsel %vm1033_vm7, %v4312_v2, %v1037_v7  ;;  %v4479_v2 = vld [vmem:[%s5917_s9 + $0xe0] ss:$8 sps:$4 sm:$0xff]  }
 0x49a   :  { %v1044_v13 = vsel %vm1036_vm8, %v4313_v5, %v1040_v10  ;;  %v4484_v4 = vld [vmem:[%s5917_s9 + $0xf4] ss:$8 sps:$4 sm:$0xff]   ;;  %v4482_v10 = vld [vmem:[%s5917_s9 + $0xf0] ss:$8 sps:$4 sm:$0xff]  }
 0x49b   :  { %v1042_v15 = vsel %vm1034_vm9, %v4314_v8, %v1038_v11  ;;  %v5070_v17 = vpack.c.bf16 %v1044_v13, %v1043_v12  ;;  %v4492_v12 = vld [vmem:[%s5919_s12] ss:$16 sps:$4 sm:$0xff]   ;;  %v4494_v13 = vld [vmem:[%s5919_s12 + $0x4] ss:$16 sps:$4 sm:$0xff]  }
 0x49c   :  { %v5072_v18 = vpack.c.bf16 %v1042_v15, %v1041_v14  ;;  %v4498_v14 = vld [vmem:[%s5919_s12 + $0x20] ss:$16 sps:$4 sm:$0xff]   ;;  %v4500_v15 = vld [vmem:[%s5919_s12 + $0x24] ss:$16 sps:$4 sm:$0xff]  }
 0x49e   :  { %1180 = vmatmul.mubr.bf16.vlgmr.msra.gmra.mrb[12].mxu0 %v5072_v18 }
 0x49f   :  { %1639 = vmatpush1.bf16.msra.mxu0 %v4435_v16  ;;  %1189 = vmatprep.mubr.bf16.mxu0 %v4777_v9  ;;  %v4506_v16 = vld [vmem:[%s5919_s12 + $0x44] ss:$16 sps:$4 sm:$0xff]  }
 0x4a0   :  { %1640 = vmatprep.subr.bf16.mxu0 %v4440_v19  ;;  %v4510_v19 = vld [vmem:[%s5919_s12 + $0x60] ss:$16 sps:$4 sm:$0xff]  }
 0x4a3   :  { %1641 = vmatpush1.bf16.msra.mxu0 %v4438_v20  ;;  %v4518_v20 = vld [vmem:[%s5919_s12 + $0x84] ss:$16 sps:$4 sm:$0xff]  }
 0x4a4   :  { %1642 = vmatprep.subr.bf16.mxu0 %v4443_v21  ;;  %v4516_v21 = vld [vmem:[%s5919_s12 + $0x80] ss:$16 sps:$4 sm:$0xff]  }
 0x4a6   :  { %1190 = vmatmul.mubr.bf16.gmra.mrb[16].mxu0 %v5070_v17 }
 0x4a7   :  { %1643 = vmatpush1.bf16.msra.mxu0 %v4441_v22  ;;  %1670 = vmatprep.mubr.bf16.mxu0 %v4777_v9  ;;  %v4524_v22 = vld [vmem:[%s5919_s12 + $0xa4] ss:$16 sps:$4 sm:$0xff]  }
 0x4a8   :  { %1644 = vmatprep.subr.bf16.mxu0 %v4446_v23  ;;  %v4522_v23 = vld [vmem:[%s5919_s12 + $0xa0] ss:$16 sps:$4 sm:$0xff]  }
 0x4ab   :  { %1645 = vmatpush1.bf16.msra.mxu0 %v4444_v24  ;;  %v4530_v24 = vld [vmem:[%s5919_s12 + $0xc4] ss:$16 sps:$4 sm:$0xff]  }
 0x4ac   :  { %1646 = vmatprep.subr.bf16.mxu0 %v4449_v25  ;;  %v4528_v25 = vld [vmem:[%s5919_s12 + $0xc0] ss:$16 sps:$4 sm:$0xff]  }
 0x4af   :  { %1647 = vmatpush1.bf16.msra.mxu0 %v4447_v26  ;;  %v4536_v26 = vld [vmem:[%s5919_s12 + $0xe4] ss:$16 sps:$4 sm:$0xff]  }
 0x4b0   :  { %1648 = vmatprep.subr.bf16.mxu0 %v4452_v27  ;;  %v4534_v27 = vld [vmem:[%s5919_s12 + $0xe0] ss:$16 sps:$4 sm:$0xff]  }
 0x4b3   :  { %1649 = vmatpush1.bf16.msra.mxu0 %v4450_v28  ;;  %v4542_v28 = vld [vmem:[%s5919_s12 + $0x104] ss:$16 sps:$4 sm:$0xff]  }
 0x4b4   :  { %1650 = vmatprep.subr.bf16.mxu0 %v4455_v29  ;;  %v4540_v29 = vld [vmem:[%s5919_s12 + $0x100] ss:$16 sps:$4 sm:$0xff]  }
 0x4b7   :  { %1651 = vmatpush1.bf16.msra.mxu0 %v4453_v30  ;;  %v4548_v30 = vld [vmem:[%s5919_s12 + $0x124] ss:$16 sps:$4 sm:$0xff]  }
 0x4b8   :  { %1652 = vmatprep.subr.bf16.mxu0 %v4458_v31  ;;  %v4546_v31 = vld [vmem:[%s5919_s12 + $0x120] ss:$16 sps:$4 sm:$0xff]  }
 0x4bb   :  { %1653 = vmatpush1.bf16.msra.mxu0 %v4456_v32  ;;  %v4554_v32 = vld [vmem:[%s5919_s12 + $0x144] ss:$16 sps:$4 sm:$0xff]  }
 0x4bc   :  { %2190 = vmatprep.subr.bf16.mxu0 %v4494_v13  ;;  %v4557_v13 = vld [vmem:[%s5919_s12 + $0x16c] ss:$16 sps:$4 sm:$0xff]  }
 0x4be   :  { %1671 = vmatmul.mubr.bf16.vlgmr.msra.gmra.mrb[20].mxu0 %v5072_v18 }
 0x4bf   :  { %1680 = vmatprep.mubr.bf16.mxu0 %v4777_v9  ;;  %2191 = vmatpush1.bf16.msra.mxu0 %v4492_v12  ;;  %v4549_v12 = vld [vmem:[%s5919_s12 + $0x148] ss:$16 sps:$4 sm:$0xff]  }
 0x4c0   :  { %2192 = vmatprep.subr.bf16.mxu0 %v4500_v15  ;;  %v4563_v15 = vld [vmem:[%s5919_s12 + $0x18c] ss:$16 sps:$4 sm:$0xff]  }
 0x4c3   :  { %2193 = vmatpush1.bf16.msra.mxu0 %v4498_v14  ;;  %v4555_v14 = vld [vmem:[%s5919_s12 + $0x168] ss:$16 sps:$4 sm:$0xff]  }
 0x4c4   :  { %2194 = vmatprep.subr.bf16.mxu0 %v4506_v16  ;;  %v4561_v16 = vld [vmem:[%s5919_s12 + $0x188] ss:$16 sps:$4 sm:$0xff]  }
 0x4c6   :  { %1681 = vmatmul.mubr.bf16.gmra.mrb[24].mxu0 %v5070_v17 }
 0x571   :  { %v1181_v33 = vpop.f32.mrb[12].mxu0 }
 0x572   :  { %v1183_v34 = vpop.f32.mrb[13].mxu0 }
 0x573   :  { %v1185_v35 = vpop.f32.mrb[14].mxu0 }
 0x574   :  { %v1204_v36 = vpack.c.bf16 %v1185_v35, %v1181_v33  ;;  %v1187_v37 = vpop.f32.mrb[15].mxu0  ;;  %v4552_v33 = vld [vmem:[%s5919_s12 + $0x140] ss:$16 sps:$4 sm:$0xff]  }
 0x575   :  { %v1205_v38 = vpack.c.bf16 %v1187_v37, %v1183_v34  ;;  %v4560_v34 = vld [vmem:[%s5919_s12 + $0x164] ss:$16 sps:$4 sm:$0xff]   ;;  %v4558_v35 = vld [vmem:[%s5919_s12 + $0x160] ss:$16 sps:$4 sm:$0xff]  }
 0x576   :  { %v4564_v37 = vld [vmem:[%s5919_s12 + $0x180] ss:$16 sps:$4 sm:$0xff]  }
 0x577   :  { %1224 = vmatprep.subr.bf16.mxu1 %v1205_v38 }
 0x578   :  { %1225 = vmatpush1.bf16.msra.mxu1 %v1204_v36  ;;  %v4566_v36 = vld [vmem:[%s5919_s12 + $0x184] ss:$16 sps:$4 sm:$0xff]  }
 0x579   :  { %v1191_v39 = vpop.f32.mrb[16].mxu0 }
 0x57a   :  { %v1193_v40 = vpop.f32.mrb[17].mxu0 }
 0x57b   :  { %v1195_v41 = vpop.f32.mrb[18].mxu0 }
 0x57c   :  { %v1206_v42 = vpack.c.bf16 %v1195_v41, %v1191_v39  ;;  %v1197_v43 = vpop.f32.mrb[19].mxu0 }
 0x57d   :  { %v1207_v44 = vpack.c.bf16 %v1197_v43, %v1193_v40 }
 0x57f   :  { %1226 = vmatprep.subr.bf16.mxu1 %v1207_v44 }
 0x580   :  { %1227 = vmatpush1.bf16.msra.mxu1 %v1206_v42 }
 0x581   :  { %1402 = vmatprep.subr.bf16.mxu1 %v4461_v45 }
 0x583   :  { %3735 = vmatmul.mubr.msk.bf16.vlgmr.msra.gmra.mrb[20].mxu1 %vm81_vm0, %v4462_v46 }
 0x584   :  { %1403 = vmatpush1.bf16.msra.mxu1 %v4459_v47  ;;  %1266 = vmatprep.mubr.bf16.mxu1 %v4777_v9 }
 0x585   :  { %1404 = vmatprep.subr.bf16.mxu1 %v4465_v48 }
 0x588   :  { %1405 = vmatpush1.bf16.msra.mxu1 %v4463_v49 }
 0x589   :  { %1406 = vmatprep.subr.bf16.mxu1 %v4468_v50  ;;  %v4485_v50 = vld [vmem:[%s5918_s7 + $0x10] sm:$0xff]  }
 0x58b   :  { %3736 = vmatmul.mubr.msk.bf16.gmra.mrb[24].mxu1 %vm81_vm0, %v4478_v51  ;;  %v4491_v51 = vld [vmem:[%s5919_s12 + $0xc] ss:$16 sps:$4 sm:$0xff]  }
 0x58c   :  { %1407 = vmatpush1.bf16.msra.mxu1 %v4466_v52  ;;  %1434 = vmatprep.mubr.bf16.mxu1 %v4777_v9  ;;  %v4486_v52 = vld [vmem:[%s5918_s7 + $0x18] sm:$0xff]  }
 0x58d   :  { %1408 = vmatprep.subr.bf16.mxu1 %v4471_v53  ;;  %v4487_v53 = vld [vmem:[%s5918_s7 + $0x20] sm:$0xff]  }
 0x590   :  { %1409 = vmatpush1.bf16.msra.mxu1 %v4469_v54  ;;  %v4489_v54 = vld [vmem:[%s5919_s12 + $0x8] ss:$16 sps:$4 sm:$0xff]  }
 0x591   :  { %v5163_v57 = vpop.f32.mrb[20].mxu0  ;;  %1410 = vmatprep.subr.bf16.mxu1 %v4474_v55  ;;  %v4497_v55 = vld [vmem:[%s5919_s12 + $0x2c] ss:$16 sps:$4 sm:$0xff]  }
 0x592   :  { %v5168_v59 = vpop.f32.mrb[21].mxu0 }
 0x593   :  { %v5170_v60 = vpop.f32.mrb[22].mxu0 }
 0x594   :  { %v1696_v61 = vpack.c.bf16 %v5170_v60, %v5163_v57  ;;  %v5174_v62 = vpop.f32.mrb[23].mxu0  ;;  %1411 = vmatpush1.bf16.msra.mxu1 %v4472_v56  ;;  %v4495_v56 = vld [vmem:[%s5919_s12 + $0x28] ss:$16 sps:$4 sm:$0xff]   ;;  %v4503_v57 = vld [vmem:[%s5919_s12 + $0x4c] ss:$16 sps:$4 sm:$0xff]  }
 0x595   :  { %v1697_v0 = vpack.c.bf16 %v5174_v62, %v5168_v59  ;;  %1412 = vmatprep.subr.bf16.mxu1 %v4477_v58  ;;  %v4488_v58 = vld [vmem:[%s5918_s7 + $0x28] sm:$0xff]  }
 0x596   :  { %v4501_v59 = vld [vmem:[%s5919_s12 + $0x48] ss:$16 sps:$4 sm:$0xff]   ;;  %v4509_v60 = vld [vmem:[%s5919_s12 + $0x6c] ss:$16 sps:$4 sm:$0xff]  }
 0x597   :  { %v4515_v62 = vld [vmem:[%s5919_s12 + $0x8c] ss:$16 sps:$4 sm:$0xff]  }
 0x598   :  { %1413 = vmatpush1.bf16.msra.mxu1 %v4475_v63  ;;  %v4513_v63 = vld [vmem:[%s5919_s12 + $0x88] ss:$16 sps:$4 sm:$0xff]  }
 0x599   :  { %v5187_v3 = vpop.f32.mrb[24].mxu0  ;;  %1414 = vmatprep.subr.bf16.mxu1 %v4481_v1  ;;  %v4519_v1 = vld [vmem:[%s5919_s12 + $0xa8] ss:$16 sps:$4 sm:$0xff]  }
 0x59a   :  { %v5192_v5 = vpop.f32.mrb[25].mxu0 }
 0x59b   :  { %v5194_v6 = vpop.f32.mrb[26].mxu0 }
 0x59c   :  { %v1698_v7 = vpack.c.bf16 %v5194_v6, %v5187_v3  ;;  %v5198_v8 = vpop.f32.mrb[27].mxu0  ;;  %1415 = vmatpush1.bf16.msra.mxu1 %v4479_v2  ;;  %v4527_v2 = vld [vmem:[%s5919_s12 + $0xcc] ss:$16 sps:$4 sm:$0xff]   ;;  %v4525_v3 = vld [vmem:[%s5919_s12 + $0xc8] ss:$16 sps:$4 sm:$0xff]  }
 0x59d   :  { %v1699_v11 = vpack.c.bf16 %v5198_v8, %v5192_v5  ;;  %1416 = vmatprep.subr.bf16.mxu1 %v4484_v4  ;;  %v4533_v4 = vld [vmem:[%s5919_s12 + $0xec] ss:$16 sps:$4 sm:$0xff]   ;;  %v4531_v5 = vld [vmem:[%s5919_s12 + $0xe8] ss:$16 sps:$4 sm:$0xff]  }
 0x59e   :  { %v4539_v6 = vld [vmem:[%s5919_s12 + $0x10c] ss:$16 sps:$4 sm:$0xff]  }
 0x59f   :  { %v4545_v8 = vld [vmem:[%s5919_s12 + $0x12c] ss:$16 sps:$4 sm:$0xff]  }
 0x5a0   :  { %1417 = vmatpush1.bf16.msra.mxu1 %v4482_v10  ;;  %v4543_v10 = vld [vmem:[%s5919_s12 + $0x128] ss:$16 sps:$4 sm:$0xff]  }
 0x5a3   :  { %1435 = vmatmul.mubr.bf16.vlgmr.msra.gmra.mrb[28].mxu1 %v5072_v18  ;;  %v4512_v18 = vld [vmem:[%s5919_s12 + $0x64] ss:$16 sps:$4 sm:$0xff]  }
 0x5a4   :  { %1444 = vmatprep.mubr.bf16.mxu1 %v4777_v9 }
 0x5ab   :  { %1445 = vmatmul.mubr.bf16.gmra.mrb[32].mxu1 %v5070_v17  ;;  %v4504_v17 = vld [vmem:[%s5919_s12 + $0x40] ss:$16 sps:$4 sm:$0xff]  }
 0x5ac   :  { %1512 = vmatprep.mubr.bf16.mxu1 %v4777_v9  ;;  %2195 = vmatpush1.bf16.msra.mxu0 %v4504_v17  ;;  %v4569_v17 = vld [vmem:[%s5919_s12 + $0x1ac] ss:$16 sps:$4 sm:$0xff]  }
 0x5ad   :  { %2196 = vmatprep.subr.bf16.mxu0 %v4512_v18  ;;  %v4567_v18 = vld [vmem:[%s5919_s12 + $0x1a8] ss:$16 sps:$4 sm:$0xff]  }
 0x5b0   :  { %2197 = vmatpush1.bf16.msra.mxu0 %v4510_v19  ;;  %v4572_v19 = vld [vmem:[%s5919_s12 + $0x1a4] ss:$16 sps:$4 sm:$0xff]  }
 0x5b1   :  { %2198 = vmatprep.subr.bf16.mxu0 %v4518_v20  ;;  %v4570_v20 = vld [vmem:[%s5919_s12 + $0x1a0] ss:$16 sps:$4 sm:$0xff]  }
 0x5b4   :  { %2199 = vmatpush1.bf16.msra.mxu0 %v4516_v21  ;;  %v4575_v21 = vld [vmem:[%s5919_s12 + $0x1cc] ss:$16 sps:$4 sm:$0xff]  }
 0x5b5   :  { %2200 = vmatprep.subr.bf16.mxu0 %v4524_v22  ;;  %v4573_v22 = vld [vmem:[%s5919_s12 + $0x1c8] ss:$16 sps:$4 sm:$0xff]  }
 0x5b8   :  { %2201 = vmatpush1.bf16.msra.mxu0 %v4522_v23  ;;  %v4578_v23 = vld [vmem:[%s5919_s12 + $0x1c4] ss:$16 sps:$4 sm:$0xff]  }
 0x5b9   :  { %2202 = vmatprep.subr.bf16.mxu0 %v4530_v24  ;;  %v4576_v24 = vld [vmem:[%s5919_s12 + $0x1c0] ss:$16 sps:$4 sm:$0xff]  }
 0x5bc   :  { %2203 = vmatpush1.bf16.msra.mxu0 %v4528_v25  ;;  %v4581_v25 = vld [vmem:[%s5919_s12 + $0x1ec] ss:$16 sps:$4 sm:$0xff]  }
 0x5bd   :  { %2204 = vmatprep.subr.bf16.mxu0 %v4536_v26  ;;  %v4579_v26 = vld [vmem:[%s5919_s12 + $0x1e8] ss:$16 sps:$4 sm:$0xff]  }
 0x5c0   :  { %2205 = vmatpush1.bf16.msra.mxu0 %v4534_v27  ;;  %v4584_v27 = vld [vmem:[%s5919_s12 + $0x1e4] ss:$16 sps:$4 sm:$0xff]  }
 0x5c1   :  { %2206 = vmatprep.subr.bf16.mxu0 %v4542_v28  ;;  %v4582_v28 = vld [vmem:[%s5919_s12 + $0x1e0] ss:$16 sps:$4 sm:$0xff]  }
 0x5c4   :  { %2207 = vmatpush1.bf16.msra.mxu0 %v4540_v29  ;;  %v4587_v29 = vld [vmem:[%s5919_s12 + $0x204] ss:$16 sps:$4 sm:$0xff]  }
 0x5c5   :  { %2208 = vmatprep.subr.bf16.mxu0 %v4548_v30  ;;  %v1280_v30 = vpop.permute.xlu0 %1279 }
 0x5c8   :  { %2209 = vmatpush1.bf16.msra.mxu0 %v4546_v31 }
 0x5c9   :  { %2210 = vmatprep.subr.bf16.mxu0 %v4554_v32 }
 0x5cc   :  { %2211 = vmatpush1.bf16.msra.mxu0 %v4552_v33 }
 0x5cd   :  { %2212 = vmatprep.subr.bf16.mxu0 %v4560_v34  ;;  %v1285_v34 = vpop.permute.xlu1 %1284 }
 0x5d0   :  { %2213 = vmatpush1.bf16.msra.mxu0 %v4558_v35 }
 0x5d1   :  { %2214 = vmatprep.subr.bf16.mxu0 %v4566_v36 }
 0x5d4   :  { %2215 = vmatpush1.bf16.msra.mxu0 %v4564_v37 }
 0x5d5   :  { %2216 = vmatprep.subr.bf16.mxu0 %v4572_v19  ;;  %v4603_v19 = vld [vmem:[%s5919_s12 + $0x2c0] ss:$16 sps:$4 sm:$0xff]  }
 0x5d8   :  { %2217 = vmatpush1.bf16.msra.mxu0 %v4570_v20  ;;  %v4608_v20 = vld [vmem:[%s5919_s12 + $0x2e4] ss:$16 sps:$4 sm:$0xff]  }
 0x5d9   :  { %2218 = vmatprep.subr.bf16.mxu0 %v4578_v23  ;;  %v4609_v23 = vld [vmem:[%s5919_s12 + $0x300] ss:$16 sps:$4 sm:$0xff]  }
 0x5dc   :  { %2219 = vmatpush1.bf16.msra.mxu0 %v4576_v24  ;;  %v4614_v24 = vld [vmem:[%s5919_s12 + $0x324] ss:$16 sps:$4 sm:$0xff]  }
 0x5dd   :  { %2220 = vmatprep.subr.bf16.mxu0 %v4584_v27  ;;  %v4615_v27 = vld [vmem:[%s5919_s12 + $0x340] ss:$16 sps:$4 sm:$0xff]  }
 0x5e0   :  { %2221 = vmatpush1.bf16.msra.mxu0 %v4582_v28  ;;  %v4620_v28 = vld [vmem:[%s5919_s12 + $0x364] ss:$16 sps:$4 sm:$0xff]  }
 0x676   :  { %v1436_v38 = vpop.f32.mrb[28].mxu1 }
 0x677   :  { %v1438_v39 = vpop.f32.mrb[29].mxu1 }
 0x678   :  { %v1440_v40 = vpop.f32.mrb[30].mxu1 }
 0x679   :  { %v1460_v41 = vpack.c.bf16 %v1440_v40, %v1436_v38  ;;  %v1442_v42 = vpop.f32.mrb[31].mxu1 }
 0x67a   :  { %v1461_v43 = vpack.c.bf16 %v1442_v42, %v1438_v39 }
 0x67c   :  { %1480 = vmatprep.subr.bf16.mxu1 %v1461_v43 }
 0x67d   :  { %1481 = vmatpush1.bf16.msra.mxu1 %v1460_v41 }
 0x67e   :  { %v1446_v44 = vpop.f32.mrb[32].mxu1 }
 0x67f   :  { %v1448_v45 = vpop.f32.mrb[33].mxu1 }
 0x680   :  { %v1450_v46 = vpop.f32.mrb[34].mxu1 }
 0x681   :  { %v1462_v47 = vpack.c.bf16 %v1450_v46, %v1446_v44  ;;  %v1452_v48 = vpop.f32.mrb[35].mxu1  ;;  %v1290_v46 = vpop.permute.xlu0 %1289 }
 0x682   :  { %v1463_v49 = vpack.c.bf16 %v1452_v48, %v1448_v45 }
 0x684   :  { %1482 = vmatprep.subr.bf16.mxu1 %v1463_v49 }
 0x685   :  { %1483 = vmatpush1.bf16.msra.mxu1 %v1462_v47 }
 0x686   :  { %1716 = vmatprep.subr.bf16.mxu1 %v1697_v0  ;;  %v4521_v0 = vld [vmem:[%s5919_s12 + $0xac] ss:$16 sps:$4 sm:$0xff]  }
 0x688   :  { %3775 = vmatmul.mubr.msk.bf16.vlgmr.msra.gmra.mrb[20].mxu1 %vm81_vm0, %v4485_v50 }
 0x689   :  { %1717 = vmatpush1.bf16.msra.mxu1 %v1696_v61  ;;  %1522 = vmatprep.mubr.bf16.mxu1 %v4777_v9  ;;  %v4507_v61 = vld [vmem:[%s5919_s12 + $0x68] ss:$16 sps:$4 sm:$0xff]  }
 0x68a   :  { %1718 = vmatprep.subr.bf16.mxu1 %v1699_v11  ;;  %v4551_v11 = vld [vmem:[%s5919_s12 + $0x14c] ss:$16 sps:$4 sm:$0xff]  }
 0x68d   :  { %1719 = vmatpush1.bf16.msra.mxu1 %v1698_v7  ;;  %v4537_v7 = vld [vmem:[%s5919_s12 + $0x108] ss:$16 sps:$4 sm:$0xff]  }
 0x68e   :  { %2243 = vmatprep.subr.bf16.mxu1 %v4491_v51 }
 0x690   :  { %3776 = vmatmul.mubr.msk.bf16.gmra.mrb[24].mxu1 %vm81_vm0, %v4486_v52 }
 0x691   :  { %1748 = vmatprep.mubr.bf16.mxu1 %v4777_v9 }
 0x698   :  { %3815 = vmatmul.mubr.msk.bf16.vlgmr.msra.gmra.mrb[20].mxu1 %vm81_vm0, %v4487_v53 }
 0x699   :  { %1758 = vmatprep.mubr.bf16.mxu1 %v4777_v9  ;;  %2244 = vmatpush1.bf16.msra.mxu1 %v4489_v54  ;;  %v4585_v54 = vld [vmem:[%s5919_s12 + $0x200] ss:$16 sps:$4 sm:$0xff]  }
 0x69a   :  { %2245 = vmatprep.subr.bf16.mxu1 %v4497_v55  ;;  %v1295_v55 = vpop.permute.xlu1 %1294 }
 0x69d   :  { %2246 = vmatpush1.bf16.msra.mxu1 %v4495_v56 }
 0x69e   :  { %2247 = vmatprep.subr.bf16.mxu1 %v4503_v57 }
 0x6a0   :  { %3816 = vmatmul.mubr.msk.bf16.gmra.mrb[24].mxu1 %vm81_vm0, %v4488_v58  ;;  %v4590_v58 = vld [vmem:[%s5919_s12 + $0x224] ss:$16 sps:$4 sm:$0xff]  }
 0x6a1   :  { %2248 = vmatpush1.bf16.msra.mxu1 %v4501_v59 }
 0x6a2   :  { %2249 = vmatprep.subr.bf16.mxu1 %v4509_v60 }
 0x6a5   :  { %2250 = vmatpush1.bf16.msra.mxu1 %v4507_v61 }
 0x6a6   :  { %2251 = vmatprep.subr.bf16.mxu1 %v4515_v62 }
 0x6a9   :  { %2252 = vmatpush1.bf16.msra.mxu1 %v4513_v63 }
 0x6aa   :  { %2253 = vmatprep.subr.bf16.mxu1 %v4521_v0 }
 0x6ad   :  { %2254 = vmatpush1.bf16.msra.mxu1 %v4519_v1  ;;  %v4588_v1 = vld [vmem:[%s5919_s12 + $0x220] ss:$16 sps:$4 sm:$0xff]  }
 0x6ae   :  { %2255 = vmatprep.subr.bf16.mxu1 %v4527_v2 }
 0x6b1   :  { %2256 = vmatpush1.bf16.msra.mxu1 %v4525_v3  ;;  %v4593_v3 = vld [vmem:[%s5919_s12 + $0x244] ss:$16 sps:$4 sm:$0xff]  }
 0x6b2   :  { %2257 = vmatprep.subr.bf16.mxu1 %v4533_v4 }
 0x6b5   :  { %2258 = vmatpush1.bf16.msra.mxu1 %v4531_v5 }
 0x6b6   :  { %2259 = vmatprep.subr.bf16.mxu1 %v4539_v6 }
 0x6b9   :  { %2260 = vmatpush1.bf16.msra.mxu1 %v4537_v7 }
 0x6ba   :  { %2261 = vmatprep.subr.bf16.mxu1 %v4545_v8 }
 0x6bd   :  { %2262 = vmatpush1.bf16.msra.mxu1 %v4543_v10 }
 0x6be   :  { %2263 = vmatprep.subr.bf16.mxu1 %v4551_v11  ;;  %v4591_v11 = vld [vmem:[%s5919_s12 + $0x240] ss:$16 sps:$4 sm:$0xff]  }
 0x6c1   :  { %2264 = vmatpush1.bf16.msra.mxu1 %v4549_v12  ;;  %v4596_v12 = vld [vmem:[%s5919_s12 + $0x264] ss:$16 sps:$4 sm:$0xff]  }
 0x6c2   :  { %2265 = vmatprep.subr.bf16.mxu1 %v4557_v13  ;;  %v4594_v13 = vld [vmem:[%s5919_s12 + $0x260] ss:$16 sps:$4 sm:$0xff]  }
 0x6c5   :  { %2266 = vmatpush1.bf16.msra.mxu1 %v4555_v14  ;;  %v4599_v14 = vld [vmem:[%s5919_s12 + $0x284] ss:$16 sps:$4 sm:$0xff]  }
 0x6c6   :  { %2267 = vmatprep.subr.bf16.mxu1 %v4563_v15  ;;  %v4597_v15 = vld [vmem:[%s5919_s12 + $0x280] ss:$16 sps:$4 sm:$0xff]  }
 0x6c9   :  { %2268 = vmatpush1.bf16.msra.mxu1 %v4561_v16  ;;  %v4602_v16 = vld [vmem:[%s5919_s12 + $0x2a4] ss:$16 sps:$4 sm:$0xff]  }
 0x6ca   :  { %2269 = vmatprep.subr.bf16.mxu1 %v4569_v17  ;;  %v4600_v17 = vld [vmem:[%s5919_s12 + $0x2a0] ss:$16 sps:$4 sm:$0xff]  }
 0x6cd   :  { %2270 = vmatpush1.bf16.msra.mxu1 %v4567_v18  ;;  %v4605_v18 = vld [vmem:[%s5919_s12 + $0x2c4] ss:$16 sps:$4 sm:$0xff]  }
 0x6ce   :  { %2271 = vmatprep.subr.bf16.mxu1 %v4575_v21  ;;  %v4606_v21 = vld [vmem:[%s5919_s12 + $0x2e0] ss:$16 sps:$4 sm:$0xff]  }
 0x6d1   :  { %2272 = vmatpush1.bf16.msra.mxu1 %v4573_v22  ;;  %v4611_v22 = vld [vmem:[%s5919_s12 + $0x304] ss:$16 sps:$4 sm:$0xff]  }
 0x6d2   :  { %2273 = vmatprep.subr.bf16.mxu1 %v4581_v25  ;;  %v4612_v25 = vld [vmem:[%s5919_s12 + $0x320] ss:$16 sps:$4 sm:$0xff]  }
 0x6d5   :  { %2274 = vmatpush1.bf16.msra.mxu1 %v4579_v26  ;;  %v4617_v26 = vld [vmem:[%s5919_s12 + $0x344] ss:$16 sps:$4 sm:$0xff]  }
 0x6d6   :  { %2788 = vmatprep.subr.bf16.mxu1 %v4587_v29  ;;  %v4618_v29 = vld [vmem:[%s5919_s12 + $0x360] ss:$16 sps:$4 sm:$0xff]  }
 0x76b   :  { %v1750_v31 = vpop.f32.mrb[20].mxu1 }
 0x76c   :  { %v4315_v32 = vadd.f32 %v1750_v31, %v1280_v30  ;;  %v1752_v33 = vpop.f32.mrb[21].mxu1  ;;  %v4621_v31 = vld [vmem:[%s5919_s12 + $0x380] ss:$16 sps:$4 sm:$0xff]  }
 0x76d   :  { %v4316_v35 = vadd.f32 %v1752_v33, %v1280_v30  ;;  %v1754_v36 = vpop.f32.mrb[22].mxu1  ;;  %v4623_v30 = vld [vmem:[%s5919_s12 + $0x384] ss:$16 sps:$4 sm:$0xff]   ;;  %v4624_v33 = vld [vmem:[%s5919_s12 + $0x3a0] ss:$16 sps:$4 sm:$0xff]  }
 0x76e   :  { %v1785_v37 = vmul.f32 0.2, %v4315_v32  ;;  %v4317_v38 = vadd.f32 %v1754_v36, %v1285_v34  ;;  %v1756_v39 = vpop.f32.mrb[23].mxu1  ;;  %vm1777_vm10 = vcmp.gt.f32.partialorder %v4315_v32, 0.0  ;;  %v4632_v36 = vld [vmem:[%s5919_s12 + $0x3e4] ss:$16 sps:$4 sm:$0xff]  }
 0x76f   :  { %v1786_v40 = vmul.f32 0.2, %v4316_v35  ;;  %v4318_v41 = vadd.f32 %v1756_v39, %v1285_v34  ;;  %vm1778_vm11 = vcmp.gt.f32.partialorder %v4316_v35, 0.0  ;;  %v4629_v34 = vld [vmem:[%s5919_s12 + $0x3c4] ss:$16 sps:$4 sm:$0xff]  }
 0x770   :  { %vm1779_vm12 = vcmp.gt.f32.partialorder %v4317_v38, 0.0  ;;  %v1787_v42 = vmul.f32 0.2, %v4317_v38  ;;  %v1793_v44 = vsel %vm1777_vm10, %v4315_v32, %v1785_v37  ;;  %v4626_v32 = vld [vmem:[%s5919_s12 + $0x3a4] ss:$16 sps:$4 sm:$0xff]  }
 0x771   :  { %vm1780_vm13 = vcmp.gt.f32.partialorder %v4318_v41, 0.0  ;;  %v1788_v43 = vmul.f32 0.2, %v4318_v41  ;;  %v1794_v47 = vsel %vm1778_vm11, %v4316_v35, %v1786_v40  ;;  %v4627_v35 = vld [vmem:[%s5919_s12 + $0x3c0] ss:$16 sps:$4 sm:$0xff]  }
 0x772   :  { %v1795_v45 = vsel %vm1779_vm12, %v4317_v38, %v1787_v42  ;;  %v4630_v37 = vld [vmem:[%s5919_s12 + $0x3e0] ss:$16 sps:$4 sm:$0xff]   ;;  %v4635_v38 = vld [vmem:[%s5919_s12 + $0x404] ss:$16 sps:$4 sm:$0xff]  }
 0x773   :  { %v5435_v48 = vpack.c.bf16 %v1795_v45, %v1793_v44  ;;  %v1796_v49 = vsel %vm1780_vm13, %v4318_v41, %v1788_v43  ;;  %v1760_v50 = vpop.f32.mrb[24].mxu1  ;;  %v4633_v39 = vld [vmem:[%s5919_s12 + $0x400] ss:$16 sps:$4 sm:$0xff]   ;;  %v4638_v40 = vld [vmem:[%s5919_s12 + $0x424] ss:$16 sps:$4 sm:$0xff]  }
 0x774   :  { %v5437_v51 = vpack.c.bf16 %v1796_v49, %v1794_v47  ;;  %v4319_v52 = vadd.f32 %v1760_v50, %v1290_v46  ;;  %v1762_v53 = vpop.f32.mrb[25].mxu1  ;;  %v4636_v41 = vld [vmem:[%s5919_s12 + $0x420] ss:$16 sps:$4 sm:$0xff]   ;;  %v4641_v42 = vld [vmem:[%s5919_s12 + $0x444] ss:$16 sps:$4 sm:$0xff]  }
 0x775   :  { %v4320_v56 = vadd.f32 %v1762_v53, %v1290_v46  ;;  %v1764_v57 = vpop.f32.mrb[26].mxu1  ;;  %v4639_v43 = vld [vmem:[%s5919_s12 + $0x440] ss:$16 sps:$4 sm:$0xff]   ;;  %v4644_v44 = vld [vmem:[%s5919_s12 + $0x464] ss:$16 sps:$4 sm:$0xff]  }
 0x776   :  { %v1789_v59 = vmul.f32 0.2, %v4319_v52  ;;  %v4321_v60 = vadd.f32 %v1764_v57, %v1295_v55  ;;  %v1766_v61 = vpop.f32.mrb[27].mxu1  ;;  %2222 = vmatprep.mubr.bf16.mxu0 %v5437_v51  ;;  %2275 = vmatprep.mubr.bf16.mxu1 %v5437_v51  ;;  %vm1781_vm14 = vcmp.gt.f32.partialorder %v4319_v52, 0.0  ;;  %v4642_v45 = vld [vmem:[%s5919_s12 + $0x460] ss:$16 sps:$4 sm:$0xff]  }
 0x777   :  { %v1790_v62 = vmul.f32 0.2, %v4320_v56  ;;  %v4322_v63 = vadd.f32 %v1766_v61, %v1295_v55  ;;  %2223 = vmatmul.mubr.bf16.vlgmr.msra.gmra.mrb[28].mxu0 %v5435_v48  ;;  %2276 = vmatmul.mubr.bf16.vlgmr.msra.gmra.mrb[36].mxu1 %v5435_v48  ;;  %vm1782_vm15 = vcmp.gt.f32.partialorder %v4320_v56, 0.0  ;;  %v4647_v46 = vld [vmem:[%s5919_s12 + $0x484] ss:$16 sps:$4 sm:$0xff]  }
 0x778   :  { %vm1783_vm1 = vcmp.gt.f32.partialorder %v4321_v60, 0.0  ;;  %v1791_v0 = vmul.f32 0.2, %v4321_v60  ;;  %2789 = vmatpush1.bf16.msra.mxu1 %v4585_v54  ;;  %v1797_v4 = vsel %vm1781_vm14, %v4319_v52, %v1789_v59  ;;  %v4645_v47 = vld [vmem:[%s5919_s12 + $0x480] ss:$16 sps:$4 sm:$0xff]  }
 0x779   :  { %vm1784_vm2 = vcmp.gt.f32.partialorder %v4322_v63, 0.0  ;;  %v1792_v2 = vmul.f32 0.2, %v4322_v63  ;;  %2790 = vmatprep.subr.bf16.mxu1 %v4590_v58  ;;  %v1798_v6 = vsel %vm1782_vm15, %v4320_v56, %v1790_v62  ;;  %v4650_v49 = vld [vmem:[%s5919_s12 + $0x4a4] ss:$16 sps:$4 sm:$0xff]  }
 0x77a   :  { %v1799_v5 = vsel %vm1783_vm1, %v4321_v60, %v1791_v0  ;;  %v4648_v50 = vld [vmem:[%s5919_s12 + $0x4a0] ss:$16 sps:$4 sm:$0xff]   ;;  %v4653_v52 = vld [vmem:[%s5919_s12 + $0x4c4] ss:$16 sps:$4 sm:$0xff]  }
 0x77b   :  { %v5455_v7 = vpack.c.bf16 %v1799_v5, %v1797_v4  ;;  %v1800_v8 = vsel %vm1784_vm2, %v4322_v63, %v1792_v2  ;;  %v4651_v53 = vld [vmem:[%s5919_s12 + $0x4c0] ss:$16 sps:$4 sm:$0xff]   ;;  %v4656_v54 = vld [vmem:[%s5919_s12 + $0x4e4] ss:$16 sps:$4 sm:$0xff]  }
 0x77c   :  { %v5457_v10 = vpack.c.bf16 %v1800_v8, %v1798_v6  ;;  %2791 = vmatpush1.bf16.msra.mxu1 %v4588_v1  ;;  %v4654_v55 = vld [vmem:[%s5919_s12 + $0x4e0] ss:$16 sps:$4 sm:$0xff]   ;;  %v4659_v56 = vld [vmem:[%s5919_s12 + $0x504] ss:$16 sps:$4 sm:$0xff]  }
 0x77d   :  { %2792 = vmatprep.subr.bf16.mxu1 %v4593_v3  ;;  %v4657_v57 = vld [vmem:[%s5919_s12 + $0x500] ss:$16 sps:$4 sm:$0xff]   ;;  %v4662_v58 = vld [vmem:[%s5919_s12 + $0x524] ss:$16 sps:$4 sm:$0xff]  }
 0x77e   :  { %2232 = vmatprep.mubr.bf16.mxu0 %v5457_v10  ;;  %2285 = vmatprep.mubr.bf16.mxu1 %v5457_v10  ;;  %v4660_v59 = vld [vmem:[%s5919_s12 + $0x520] ss:$16 sps:$4 sm:$0xff]   ;;  %v4665_v60 = vld [vmem:[%s5919_s12 + $0x544] ss:$16 sps:$4 sm:$0xff]  }
 0x77f   :  { %2233 = vmatmul.mubr.bf16.gmra.mrb[32].mxu0 %v5455_v7  ;;  %2286 = vmatmul.mubr.bf16.gmra.mrb[40].mxu1 %v5455_v7  ;;  %v4663_v61 = vld [vmem:[%s5919_s12 + $0x540] ss:$16 sps:$4 sm:$0xff]   ;;  %v4668_v62 = vld [vmem:[%s5919_s12 + $0x564] ss:$16 sps:$4 sm:$0xff]  }
 0x780   :  { %2793 = vmatpush1.bf16.msra.mxu1 %v4591_v11  ;;  %2820 = vmatprep.mubr.bf16.mxu1 %v5437_v51  ;;  %v4666_v63 = vld [vmem:[%s5919_s12 + $0x560] ss:$16 sps:$4 sm:$0xff]   ;;  %v4671_v0 = vld [vmem:[%s5919_s12 + $0x584] ss:$16 sps:$4 sm:$0xff]  }
 0x781   :  { %2794 = vmatprep.subr.bf16.mxu1 %v4596_v12  ;;  %2340 = vmatprep.mubr.bf16.mxu0 %v4777_v9  ;;  %v4669_v1 = vld [vmem:[%s5919_s12 + $0x580] ss:$16 sps:$4 sm:$0xff]   ;;  %v4674_v2 = vld [vmem:[%s5919_s12 + $0x5a4] ss:$16 sps:$4 sm:$0xff]  }
 0x782   :  { %v4672_v3 = vld [vmem:[%s5919_s12 + $0x5a0] ss:$16 sps:$4 sm:$0xff]   ;;  %v4677_v4 = vld [vmem:[%s5919_s12 + $0x5c4] ss:$16 sps:$4 sm:$0xff]  }
 0x783   :  { %v4675_v5 = vld [vmem:[%s5919_s12 + $0x5c0] ss:$16 sps:$4 sm:$0xff]   ;;  %v4680_v6 = vld [vmem:[%s5919_s12 + $0x5e4] ss:$16 sps:$4 sm:$0xff]  }
 0x784   :  { %2795 = vmatpush1.bf16.msra.mxu1 %v4594_v13  ;;  %v4678_v8 = vld [vmem:[%s5919_s12 + $0x5e0] ss:$16 sps:$4 sm:$0xff]  }
 0x785   :  { %2796 = vmatprep.subr.bf16.mxu1 %v4599_v14 }
 0x788   :  { %2797 = vmatpush1.bf16.msra.mxu1 %v4597_v15 }
 0x789   :  { %2798 = vmatprep.subr.bf16.mxu1 %v4602_v16 }
 0x78c   :  { %2799 = vmatpush1.bf16.msra.mxu1 %v4600_v17 }
 0x78d   :  { %2800 = vmatprep.subr.bf16.mxu1 %v4605_v18 }
 0x790   :  { %2801 = vmatpush1.bf16.msra.mxu1 %v4603_v19 }
 0x791   :  { %2802 = vmatprep.subr.bf16.mxu1 %v4608_v20 }
 0x794   :  { %2803 = vmatpush1.bf16.msra.mxu1 %v4606_v21 }
 0x795   :  { %2804 = vmatprep.subr.bf16.mxu1 %v4611_v22 }
 0x798   :  { %2805 = vmatpush1.bf16.msra.mxu1 %v4609_v23 }
 0x799   :  { %2806 = vmatprep.subr.bf16.mxu1 %v4614_v24 }
 0x79c   :  { %2807 = vmatpush1.bf16.msra.mxu1 %v4612_v25 }
 0x79d   :  { %2808 = vmatprep.subr.bf16.mxu1 %v4617_v26 }
 0x7a0   :  { %2809 = vmatpush1.bf16.msra.mxu1 %v4615_v27 }
 0x7a1   :  { %2810 = vmatprep.subr.bf16.mxu1 %v4620_v28 }
 0x7a4   :  { %2811 = vmatpush1.bf16.msra.mxu1 %v4618_v29 }
 0x7a5   :  { %2812 = vmatprep.subr.bf16.mxu1 %v4623_v30 }
 0x7a8   :  { %2813 = vmatpush1.bf16.msra.mxu1 %v4621_v31 }
 0x7a9   :  { %2814 = vmatprep.subr.bf16.mxu1 %v4626_v32 }
 0x7ac   :  { %2815 = vmatpush1.bf16.msra.mxu1 %v4624_v33 }
 0x7ad   :  { %2816 = vmatprep.subr.bf16.mxu1 %v4629_v34 }
 0x7b0   :  { %2817 = vmatpush1.bf16.msra.mxu1 %v4627_v35  ;;  %v2296_v35 = vld [vmem:[%s5920_s10] sm:$0x1] }
 0x7b1   :  { %2818 = vmatprep.subr.bf16.mxu1 %v4632_v36  ;;  %v4683_v36 = vld [vmem:[%s5919_s12 + $0x20c] ss:$16 sps:$4 sm:$0xff]  }
 0x7b4   :  { %2819 = vmatpush1.bf16.msra.mxu1 %v4630_v37  ;;  %v4681_v37 = vld [vmem:[%s5919_s12 + $0x208] ss:$16 sps:$4 sm:$0xff]  }
 0x7b5   :  { %3378 = vmatprep.subr.bf16.mxu1 %v4635_v38  ;;  %v4686_v38 = vld [vmem:[%s5919_s12 + $0x22c] ss:$16 sps:$4 sm:$0xff]  }
 0x7b7   :  { %2821 = vmatmul.mubr.bf16.vlgmr.msra.gmra.mrb[44].mxu1 %v5435_v48 }
 0x7b8   :  { %2830 = vmatprep.mubr.bf16.mxu1 %v5457_v10  ;;  %3379 = vmatpush1.bf16.msra.mxu1 %v4633_v39  ;;  %v4684_v39 = vld [vmem:[%s5919_s12 + $0x228] ss:$16 sps:$4 sm:$0xff]  }
 0x7b9   :  { %3380 = vmatprep.subr.bf16.mxu1 %v4638_v40  ;;  %v4689_v40 = vld [vmem:[%s5919_s12 + $0x24c] ss:$16 sps:$4 sm:$0xff]  }
 0x7bc   :  { %3381 = vmatpush1.bf16.msra.mxu1 %v4636_v41  ;;  %v4687_v41 = vld [vmem:[%s5919_s12 + $0x248] ss:$16 sps:$4 sm:$0xff]  }
 0x7bd   :  { %3382 = vmatprep.subr.bf16.mxu1 %v4641_v42  ;;  %v4692_v42 = vld [vmem:[%s5919_s12 + $0x26c] ss:$16 sps:$4 sm:$0xff]  }
 0x7bf   :  { %2831 = vmatmul.mubr.bf16.gmra.mrb[48].mxu1 %v5455_v7 }
 0x7c0   :  { %3383 = vmatpush1.bf16.msra.mxu1 %v4639_v43  ;;  %3410 = vmatprep.mubr.bf16.mxu1 %v5437_v51  ;;  %v4690_v43 = vld [vmem:[%s5919_s12 + $0x268] ss:$16 sps:$4 sm:$0xff]  }
 0x7c1   :  { %3384 = vmatprep.subr.bf16.mxu1 %v4644_v44  ;;  %v4695_v44 = vld [vmem:[%s5919_s12 + $0x28c] ss:$16 sps:$4 sm:$0xff]  }
 0x7c4   :  { %3385 = vmatpush1.bf16.msra.mxu1 %v4642_v45  ;;  %v4693_v45 = vld [vmem:[%s5919_s12 + $0x288] ss:$16 sps:$4 sm:$0xff]  }
 0x7c5   :  { %3386 = vmatprep.subr.bf16.mxu1 %v4647_v46  ;;  %v4698_v46 = vld [vmem:[%s5919_s12 + $0x2ac] ss:$16 sps:$4 sm:$0xff]  }
 0x7c8   :  { %3387 = vmatpush1.bf16.msra.mxu1 %v4645_v47  ;;  %v4696_v47 = vld [vmem:[%s5919_s12 + $0x2a8] ss:$16 sps:$4 sm:$0xff]  }
 0x7c9   :  { %3388 = vmatprep.subr.bf16.mxu1 %v4650_v49  ;;  %v4701_v49 = vld [vmem:[%s5919_s12 + $0x2cc] ss:$16 sps:$4 sm:$0xff]  }
 0x7cc   :  { %3389 = vmatpush1.bf16.msra.mxu1 %v4648_v50  ;;  %v4699_v50 = vld [vmem:[%s5919_s12 + $0x2c8] ss:$16 sps:$4 sm:$0xff]  }
 0x7cd   :  { %3390 = vmatprep.subr.bf16.mxu1 %v4653_v52  ;;  %v4704_v52 = vld [vmem:[%s5919_s12 + $0x2ec] ss:$16 sps:$4 sm:$0xff]  }
 0x7d0   :  { %3391 = vmatpush1.bf16.msra.mxu1 %v4651_v53  ;;  %v4702_v53 = vld [vmem:[%s5919_s12 + $0x2e8] ss:$16 sps:$4 sm:$0xff]  }
 0x7d1   :  { %3392 = vmatprep.subr.bf16.mxu1 %v4656_v54  ;;  %v4707_v54 = vld [vmem:[%s5919_s12 + $0x30c] ss:$16 sps:$4 sm:$0xff]  }
 0x7d4   :  { %3393 = vmatpush1.bf16.msra.mxu1 %v4654_v55  ;;  %v4705_v55 = vld [vmem:[%s5919_s12 + $0x308] ss:$16 sps:$4 sm:$0xff]  }
 0x7d5   :  { %3394 = vmatprep.subr.bf16.mxu1 %v4659_v56  ;;  %v4710_v56 = vld [vmem:[%s5919_s12 + $0x32c] ss:$16 sps:$4 sm:$0xff]  }
 0x7d8   :  { %3395 = vmatpush1.bf16.msra.mxu1 %v4657_v57  ;;  %v4708_v57 = vld [vmem:[%s5919_s12 + $0x328] ss:$16 sps:$4 sm:$0xff]  }
 0x7d9   :  { %3396 = vmatprep.subr.bf16.mxu1 %v4662_v58  ;;  %v4713_v58 = vld [vmem:[%s5919_s12 + $0x34c] ss:$16 sps:$4 sm:$0xff]  }
 0x7dc   :  { %3397 = vmatpush1.bf16.msra.mxu1 %v4660_v59  ;;  %v4711_v59 = vld [vmem:[%s5919_s12 + $0x348] ss:$16 sps:$4 sm:$0xff]  }
 0x7dd   :  { %3398 = vmatprep.subr.bf16.mxu1 %v4665_v60 }
 0x7e0   :  { %3399 = vmatpush1.bf16.msra.mxu1 %v4663_v61  ;;  %v4716_v61 = vld [vmem:[%s5919_s12 + $0x36c] ss:$16 sps:$4 sm:$0xff]  }
 0x7e1   :  { %3400 = vmatprep.subr.bf16.mxu1 %v4668_v62 }
 0x7e4   :  { %3401 = vmatpush1.bf16.msra.mxu1 %v4666_v63 }
 0x7e5   :  { %3402 = vmatprep.subr.bf16.mxu1 %v4671_v0 }
 0x7e8   :  { %3403 = vmatpush1.bf16.msra.mxu1 %v4669_v1 }
 0x7e9   :  { %3404 = vmatprep.subr.bf16.mxu1 %v4674_v2  ;;  %v4714_v2 = vld [vmem:[%s5919_s12 + $0x368] ss:$16 sps:$4 sm:$0xff]  }
 0x7ec   :  { %3405 = vmatpush1.bf16.msra.mxu1 %v4672_v3 }
 0x7ed   :  { %3406 = vmatprep.subr.bf16.mxu1 %v4677_v4  ;;  %v4719_v4 = vld [vmem:[%s5919_s12 + $0x38c] ss:$16 sps:$4 sm:$0xff]  }
 0x7f0   :  { %3407 = vmatpush1.bf16.msra.mxu1 %v4675_v5  ;;  %v4717_v5 = vld [vmem:[%s5919_s12 + $0x388] ss:$16 sps:$4 sm:$0xff]  }
 0x7f1   :  { %3408 = vmatprep.subr.bf16.mxu1 %v4680_v6 }
 0x7f4   :  { %3409 = vmatpush1.bf16.msra.mxu1 %v4678_v8  ;;  %v4722_v8 = vld [vmem:[%s5919_s12 + $0x3ac] ss:$16 sps:$4 sm:$0xff]  }
 0x7f7   :  { %3411 = vmatmul.mubr.bf16.vlgmr.msra.gmra.mrb[52].mxu1 %v5435_v48 }
 0x7f8   :  { %3420 = vmatprep.mubr.bf16.mxu1 %v5457_v10 }
 0x7ff   :  { %3421 = vmatmul.mubr.bf16.gmra.mrb[56].mxu1 %v5455_v7 }
 0x84a   :  { %v2224_v11 = vpop.f32.mrb[28].mxu0  ;;  %v2277_v12 = vpop.f32.mrb[36].mxu1 }
 0x84b   :  { %v2226_v13 = vpop.f32.mrb[29].mxu0  ;;  %v2279_v14 = vpop.f32.mrb[37].mxu1 }
 0x84c   :  { %v2228_v15 = vpop.f32.mrb[30].mxu0  ;;  %v2281_v16 = vpop.f32.mrb[38].mxu1 }
 0x84d   :  { %v2297_v17 = vpack.c.bf16 %v2228_v15, %v2224_v11  ;;  %v2299_v18 = vpack.c.bf16 %v2281_v16, %v2277_v12  ;;  %v2230_v19 = vpop.f32.mrb[31].mxu0  ;;  %v2283_v20 = vpop.f32.mrb[39].mxu1  ;;  %v4720_v15 = vld [vmem:[%s5919_s12 + $0x3a8] ss:$16 sps:$4 sm:$0xff]  }
 0x84e   :  { %v2298_v21 = vpack.c.bf16 %v2230_v19, %v2226_v13  ;;  %v2300_v22 = vpack.c.bf16 %v2283_v20, %v2279_v14  ;;  %v4728_v19 = vld [vmem:[%s5919_s12 + $0x3ec] ss:$16 sps:$4 sm:$0xff]   ;;  %v4726_v20 = vld [vmem:[%s5919_s12 + $0x3e8] ss:$16 sps:$4 sm:$0xff]  }
 0x850   :  { %2308 = vmatprep.subr.bf16.mxu0 %v2298_v21 }
 0x851   :  { %2309 = vmatpush1.bf16.msra.mxu0 %v2297_v17  ;;  %v4725_v17 = vld [vmem:[%s5919_s12 + $0x3cc] ss:$16 sps:$4 sm:$0xff]  }
 0x852   :  { %v2234_v23 = vpop.f32.mrb[32].mxu0  ;;  %v2287_v24 = vpop.f32.mrb[40].mxu1 }
 0x853   :  { %v2236_v25 = vpop.f32.mrb[33].mxu0  ;;  %v2289_v26 = vpop.f32.mrb[41].mxu1 }
 0x854   :  { %v2238_v27 = vpop.f32.mrb[34].mxu0  ;;  %v2291_v28 = vpop.f32.mrb[42].mxu1 }
 0x855   :  { %v2301_v29 = vpack.c.bf16 %v2238_v27, %v2234_v23  ;;  %v2303_v30 = vpack.c.bf16 %v2291_v28, %v2287_v24  ;;  %v2240_v31 = vpop.f32.mrb[35].mxu0  ;;  %v2293_v32 = vpop.f32.mrb[43].mxu1 }
 0x856   :  { %v2302_v33 = vpack.c.bf16 %v2240_v31, %v2236_v25  ;;  %v2304_v34 = vpack.c.bf16 %v2293_v32, %v2289_v26 }
 0x858   :  { %2310 = vmatprep.subr.bf16.mxu0 %v2302_v33  ;;  %v4011_v33 = vld [vmem:[%s5920_s10 + $0x1] sm:$0x1] }
 0x859   :  { %2311 = vmatpush1.bf16.msra.mxu0 %v2301_v29 }
 0x85a   :  { %2349 = vmatprep.subr.bf16.mxu0 %v2300_v22 }
 0x85c   :  { %3881 = vmatmul.mubr.msk.bf16.vlgmr.msra.gmra.mrb[36].mxu0 %vm81_vm0, %v2296_v35 }
 0x85d   :  { %2350 = vmatpush1.bf16.msra.mxu0 %v2299_v18  ;;  %2381 = vmatprep.mubr.bf16.mxu0 %v4777_v9  ;;  %v4723_v18 = vld [vmem:[%s5919_s12 + $0x3c8] ss:$16 sps:$4 sm:$0xff]  }
 0x85e   :  { %2351 = vmatprep.subr.bf16.mxu0 %v2304_v34 }
 0x861   :  { %2352 = vmatpush1.bf16.msra.mxu0 %v2303_v30 }
 0x862   :  { %2841 = vmatprep.subr.bf16.mxu0 %v4683_v36 }
 0x864   :  { %3882 = vmatmul.mubr.msk.bf16.vlgmr.msra.gmra.mrb[40].mxu0 %vm81_vm0, %v2296_v35 }
 0x865   :  { %2842 = vmatpush1.bf16.msra.mxu0 %v4681_v37  ;;  %2873 = vmatprep.mubr.bf16.mxu0 %v5437_v51 }
 0x866   :  { %2843 = vmatprep.subr.bf16.mxu0 %v4686_v38 }
 0x869   :  { %2844 = vmatpush1.bf16.msra.mxu0 %v4684_v39 }
 0x86a   :  { %2845 = vmatprep.subr.bf16.mxu0 %v4689_v40 }
 0x86d   :  { %2846 = vmatpush1.bf16.msra.mxu0 %v4687_v41 }
 0x86e   :  { %2847 = vmatprep.subr.bf16.mxu0 %v4692_v42 }
 0x871   :  { %2848 = vmatpush1.bf16.msra.mxu0 %v4690_v43 }
 0x872   :  { %2849 = vmatprep.subr.bf16.mxu0 %v4695_v44 }
 0x875   :  { %2850 = vmatpush1.bf16.msra.mxu0 %v4693_v45 }
 0x876   :  { %2851 = vmatprep.subr.bf16.mxu0 %v4698_v46  ;;  %v4731_v46 = vld [vmem:[%s5919_s12 + $0x40c] ss:$16 sps:$4 sm:$0xff]  }
 0x879   :  { %2852 = vmatpush1.bf16.msra.mxu0 %v4696_v47  ;;  %v4729_v47 = vld [vmem:[%s5919_s12 + $0x408] ss:$16 sps:$4 sm:$0xff]  }
 0x87a   :  { %2853 = vmatprep.subr.bf16.mxu0 %v4701_v49  ;;  %v4734_v49 = vld [vmem:[%s5919_s12 + $0x42c] ss:$16 sps:$4 sm:$0xff]  }
 0x87d   :  { %2854 = vmatpush1.bf16.msra.mxu0 %v4699_v50  ;;  %v4732_v50 = vld [vmem:[%s5919_s12 + $0x428] ss:$16 sps:$4 sm:$0xff]  }
 0x87e   :  { %2855 = vmatprep.subr.bf16.mxu0 %v4704_v52  ;;  %v4737_v52 = vld [vmem:[%s5919_s12 + $0x44c] ss:$16 sps:$4 sm:$0xff]  }
 0x881   :  { %2856 = vmatpush1.bf16.msra.mxu0 %v4702_v53  ;;  %v4735_v53 = vld [vmem:[%s5919_s12 + $0x448] ss:$16 sps:$4 sm:$0xff]  }
 0x882   :  { %2857 = vmatprep.subr.bf16.mxu0 %v4707_v54  ;;  %v4740_v54 = vld [vmem:[%s5919_s12 + $0x46c] ss:$16 sps:$4 sm:$0xff]  }
 0x885   :  { %2858 = vmatpush1.bf16.msra.mxu0 %v4705_v55  ;;  %v4743_v55 = vld [vmem:[%s5919_s12 + $0x48c] ss:$16 sps:$4 sm:$0xff]  }
 0x886   :  { %2859 = vmatprep.subr.bf16.mxu0 %v4710_v56  ;;  %v4741_v56 = vld [vmem:[%s5919_s12 + $0x488] ss:$16 sps:$4 sm:$0xff]  }
 0x889   :  { %2860 = vmatpush1.bf16.msra.mxu0 %v4708_v57  ;;  %v4746_v57 = vld [vmem:[%s5919_s12 + $0x4ac] ss:$16 sps:$4 sm:$0xff]  }
 0x88a   :  { %v2822_v60 = vpop.f32.mrb[44].mxu1  ;;  %2861 = vmatprep.subr.bf16.mxu0 %v4713_v58  ;;  %v4744_v58 = vld [vmem:[%s5919_s12 + $0x4a8] ss:$16 sps:$4 sm:$0xff]  }
 0x88b   :  { %v2824_v62 = vpop.f32.mrb[45].mxu1 }
 0x88c   :  { %v2826_v63 = vpop.f32.mrb[46].mxu1 }
 0x88d   :  { %v2896_v0 = vpack.c.bf16 %v2826_v63, %v2822_v60  ;;  %v2828_v1 = vpop.f32.mrb[47].mxu1  ;;  %2862 = vmatpush1.bf16.msra.mxu0 %v4711_v59  ;;  %v4749_v59 = vld [vmem:[%s5919_s12 + $0x4cc] ss:$16 sps:$4 sm:$0xff]   ;;  %v4747_v60 = vld [vmem:[%s5919_s12 + $0x4c8] ss:$16 sps:$4 sm:$0xff]  }
 0x88e   :  { %v2897_v3 = vpack.c.bf16 %v2828_v1, %v2824_v62  ;;  %2863 = vmatprep.subr.bf16.mxu0 %v4716_v61  ;;  %v4752_v61 = vld [vmem:[%s5919_s12 + $0x4ec] ss:$16 sps:$4 sm:$0xff]   ;;  %v4750_v62 = vld [vmem:[%s5919_s12 + $0x4e8] ss:$16 sps:$4 sm:$0xff]  }
 0x88f   :  { %v4755_v63 = vld [vmem:[%s5919_s12 + $0x50c] ss:$16 sps:$4 sm:$0xff]  }
 0x890   :  { %v4758_v1 = vld [vmem:[%s5919_s12 + $0x52c] ss:$16 sps:$4 sm:$0xff]  }
 0x891   :  { %2864 = vmatpush1.bf16.msra.mxu0 %v4714_v2  ;;  %v4756_v2 = vld [vmem:[%s5919_s12 + $0x528] ss:$16 sps:$4 sm:$0xff]  }
 0x892   :  { %v2832_v6 = vpop.f32.mrb[48].mxu1  ;;  %2865 = vmatprep.subr.bf16.mxu0 %v4719_v4  ;;  %v4759_v4 = vld [vmem:[%s5919_s12 + $0x548] ss:$16 sps:$4 sm:$0xff]  }
 0x893   :  { %v2834_v11 = vpop.f32.mrb[49].mxu1 }
 0x894   :  { %v2836_v12 = vpop.f32.mrb[50].mxu1 }
 0x895   :  { %v2900_v13 = vpack.c.bf16 %v2836_v12, %v2832_v6  ;;  %v2838_v14 = vpop.f32.mrb[51].mxu1  ;;  %2866 = vmatpush1.bf16.msra.mxu0 %v4717_v5  ;;  %v4764_v5 = vld [vmem:[%s5919_s12 + $0x56c] ss:$16 sps:$4 sm:$0xff]   ;;  %v4762_v6 = vld [vmem:[%s5919_s12 + $0x568] ss:$16 sps:$4 sm:$0xff]  }
 0x896   :  { %v2901_v16 = vpack.c.bf16 %v2838_v14, %v2834_v11  ;;  %2867 = vmatprep.subr.bf16.mxu0 %v4722_v8  ;;  %v4767_v8 = vld [vmem:[%s5919_s12 + $0x58c] ss:$16 sps:$4 sm:$0xff]   ;;  %v4765_v11 = vld [vmem:[%s5919_s12 + $0x588] ss:$16 sps:$4 sm:$0xff]  }
 0x897   :  { %v4770_v12 = vld [vmem:[%s5919_s12 + $0x5ac] ss:$16 sps:$4 sm:$0xff]  }
 0x898   :  { %v4773_v14 = vld [vmem:[%s5919_s12 + $0x5cc] ss:$16 sps:$4 sm:$0xff]  }
 0x899   :  { %2868 = vmatpush1.bf16.msra.mxu0 %v4720_v15  ;;  %v4771_v15 = vld [vmem:[%s5919_s12 + $0x5c8] ss:$16 sps:$4 sm:$0xff]  }
 0x89a   :  { %2869 = vmatprep.subr.bf16.mxu0 %v4725_v17  ;;  %v4774_v17 = vld [vmem:[%s5919_s12 + $0x5e8] ss:$16 sps:$4 sm:$0xff]  }
 0x89d   :  { %2870 = vmatpush1.bf16.msra.mxu0 %v4723_v18 }
 0x89e   :  { %2871 = vmatprep.subr.bf16.mxu0 %v4728_v19 }
 0x8a1   :  { %2872 = vmatpush1.bf16.msra.mxu0 %v4726_v20  ;;  %v2395_v20 = vlaneseq }
 0x8a2   :  { %2907 = vmatprep.subr.bf16.mxu0 %v2897_v3  ;;  %v4761_v3 = vld [vmem:[%s5919_s12 + $0x54c] ss:$16 sps:$4 sm:$0xff]  }
 0x8a3   :  { %vm3614_vm3 = vcmp.lt.s32.totalorder %v2395_v20, 512 }
 0x8a4   :  { %2874 = vmatmul.mubr.bf16.vlgmr.msra.gmra.mrb[44].mxu0 %v5435_v48 }
 0x8a5   :  { %2883 = vmatprep.mubr.bf16.mxu0 %v5457_v10  ;;  %2908 = vmatpush1.bf16.msra.mxu0 %v2896_v0  ;;  %v4753_v0 = vld [vmem:[%s5919_s12 + $0x508] ss:$16 sps:$4 sm:$0xff]  }
 0x8a6   :  { %2909 = vmatprep.subr.bf16.mxu0 %v2901_v16  ;;  %v4776_v16 = vld [vmem:[%s5919_s12 + $0x5ec] ss:$16 sps:$4 sm:$0xff]  }
 0x8a9   :  { %2910 = vmatpush1.bf16.msra.mxu0 %v2900_v13  ;;  %v4768_v13 = vld [vmem:[%s5919_s12 + $0x5a8] ss:$16 sps:$4 sm:$0xff]  }
 0x8ac   :  { %2884 = vmatmul.mubr.bf16.gmra.mrb[48].mxu0 %v5455_v7 }
 0x8ad   :  { %2939 = vmatprep.mubr.bf16.mxu0 %v4777_v9 }
 0x8b4   :  { %4012 = vmatmul.mubr.msk.bf16.vlgmr.msra.gmra.mrb[36].mxu0 %vm81_vm0, %v4011_v33 }
 0x8b5   :  { %2980 = vmatprep.mubr.bf16.mxu0 %v4777_v9 }
 0x8ca   :  { %v5756_v21 = vpop.f32.mrb[52].mxu1 }
 0x8cb   :  { %v5758_v22 = vpop.f32.mrb[53].mxu1 }
 0x8cc   :  { %v5760_v23 = vpop.f32.mrb[54].mxu1 }
 0x8cd   :  { %v3486_v24 = vpack.c.bf16 %v5760_v23, %v5756_v21  ;;  %v5764_v25 = vpop.f32.mrb[55].mxu1 }
 0x8ce   :  { %v3487_v26 = vpack.c.bf16 %v5764_v25, %v5758_v22 }
 0x8d2   :  { %v5768_v27 = vpop.f32.mrb[56].mxu1 }
 0x8d3   :  { %v5770_v28 = vpop.f32.mrb[57].mxu1 }
 0x8d4   :  { %v5772_v29 = vpop.f32.mrb[58].mxu1 }
 0x8d5   :  { %v3490_v30 = vpack.c.bf16 %v5772_v29, %v5768_v27  ;;  %v5776_v31 = vpop.f32.mrb[59].mxu1 }
 0x8d6   :  { %v3491_v32 = vpack.c.bf16 %v5776_v31, %v5770_v28 }
 0x977   :  { %v2875_v34 = vpop.f32.mrb[44].mxu0 }
 0x978   :  { %v2877_v35 = vpop.f32.mrb[45].mxu0 }
 0x979   :  { %v2879_v36 = vpop.f32.mrb[46].mxu0 }
 0x97a   :  { %v2898_v37 = vpack.c.bf16 %v2879_v36, %v2875_v34  ;;  %v2881_v38 = vpop.f32.mrb[47].mxu0 }
 0x97b   :  { %v2899_v39 = vpack.c.bf16 %v2881_v38, %v2877_v35 }
 0x97d   :  { %2948 = vmatprep.subr.bf16.mxu0 %v2899_v39  ;;  %v4778_v39 = vmov 1966171168  }
 0x97e   :  { %2949 = vmatpush1.bf16.msra.mxu0 %v2898_v37 }
 0x97f   :  { %v2885_v40 = vpop.f32.mrb[48].mxu0 }
 0x980   :  { %v2887_v41 = vpop.f32.mrb[49].mxu0 }
 0x981   :  { %v2889_v42 = vpop.f32.mrb[50].mxu0 }
 0x982   :  { %v2902_v43 = vpack.c.bf16 %v2889_v42, %v2885_v40  ;;  %v2891_v44 = vpop.f32.mrb[51].mxu0  ;;  %v3590_v40 = vunpack.c.l.s4 %v4778_v39 }
 0x983   :  { %v2903_v45 = vpack.c.bf16 %v2891_v44, %v2887_v41 }
 0x984   :  { %v3591_v41 = vunpack.c.0.s8 %v3590_v40 }
 0x985   :  { %2950 = vmatprep.subr.bf16.mxu0 %v2903_v45 }
 0x986   :  { %2951 = vmatpush1.bf16.msra.mxu0 %v2902_v43 }
 0x987   :  { %3431 = vmatprep.subr.bf16.mxu0 %v4731_v46 }
 0x989   :  { %4013 = vmatmul.mubr.msk.bf16.vlgmr.msra.gmra.mrb[40].mxu0 %vm81_vm0, %v4011_v33 }
 0x98a   :  { %3432 = vmatpush1.bf16.msra.mxu0 %v4729_v47  ;;  %3463 = vmatprep.mubr.bf16.mxu0 %v5437_v51  ;;  %v4738_v51 = vld [vmem:[%s5919_s12 + $0x468] ss:$16 sps:$4 sm:$0xff]  }
 0x98b   :  { %3433 = vmatprep.subr.bf16.mxu0 %v4734_v49 }
 0x98e   :  { %3434 = vmatpush1.bf16.msra.mxu0 %v4732_v50 }
 0x98f   :  { %3435 = vmatprep.subr.bf16.mxu0 %v4737_v52 }
 0x992   :  { %3436 = vmatpush1.bf16.msra.mxu0 %v4735_v53 }
 0x993   :  { %3437 = vmatprep.subr.bf16.mxu0 %v4740_v54 }
 0x996   :  { %3438 = vmatpush1.bf16.msra.mxu0 %v4738_v51 }
 0x997   :  { %3439 = vmatprep.subr.bf16.mxu0 %v4743_v55 }
 0x99a   :  { %3440 = vmatpush1.bf16.msra.mxu0 %v4741_v56 }
 0x99b   :  { %3441 = vmatprep.subr.bf16.mxu0 %v4746_v57 }
 0x99e   :  { %3442 = vmatpush1.bf16.msra.mxu0 %v4744_v58 }
 0x99f   :  { %3443 = vmatprep.subr.bf16.mxu0 %v4749_v59 }
 0x9a2   :  { %3444 = vmatpush1.bf16.msra.mxu0 %v4747_v60 }
 0x9a3   :  { %3445 = vmatprep.subr.bf16.mxu0 %v4752_v61 }
 0x9a6   :  { %3446 = vmatpush1.bf16.msra.mxu0 %v4750_v62 }
 0x9a7   :  { %3447 = vmatprep.subr.bf16.mxu0 %v4755_v63 }
 0x9aa   :  { %3448 = vmatpush1.bf16.msra.mxu0 %v4753_v0 }
 0x9ab   :  { %3449 = vmatprep.subr.bf16.mxu0 %v4758_v1 }
 0x9ae   :  { %3450 = vmatpush1.bf16.msra.mxu0 %v4756_v2 }
 0x9af   :  { %3451 = vmatprep.subr.bf16.mxu0 %v4761_v3 }
 0x9b2   :  { %3452 = vmatpush1.bf16.msra.mxu0 %v4759_v4 }
 0x9b3   :  { %3453 = vmatprep.subr.bf16.mxu0 %v4764_v5 }
 0x9b6   :  { %3454 = vmatpush1.bf16.msra.mxu0 %v4762_v6 }
 0x9b7   :  { %3455 = vmatprep.subr.bf16.mxu0 %v4767_v8 }
 0x9ba   :  { %3456 = vmatpush1.bf16.msra.mxu0 %v4765_v11 }
 0x9bb   :  { %3457 = vmatprep.subr.bf16.mxu0 %v4770_v12 }
 0x9be   :  { %3458 = vmatpush1.bf16.msra.mxu0 %v4768_v13 }
 0x9bf   :  { %3459 = vmatprep.subr.bf16.mxu0 %v4773_v14 }
 0x9c2   :  { %3460 = vmatpush1.bf16.msra.mxu0 %v4771_v15 }
 0x9c3   :  { %3461 = vmatprep.subr.bf16.mxu0 %v4776_v16 }
 0x9c6   :  { %3462 = vmatpush1.bf16.msra.mxu0 %v4774_v17 }
 0x9c7   :  { %3497 = vmatprep.subr.bf16.mxu0 %v3487_v26 }
 0x9c9   :  { %3464 = vmatmul.mubr.bf16.vlgmr.msra.gmra.mrb[52].mxu0 %v5435_v48  ;;  %v4142_v48 = vld [vmem:[%s5920_s10 + $0x2] sm:$0x1] }
 0x9ca   :  { %3473 = vmatprep.mubr.bf16.mxu0 %v5457_v10  ;;  %3498 = vmatpush1.bf16.msra.mxu0 %v3486_v24  ;;  %v2396_v24 = vshrl.u32 %v2395_v20, 7 }
 0x9cb   :  { %3499 = vmatprep.subr.bf16.mxu0 %v3491_v32 }
 0x9cc   :  { %v2397_v27 = vsub.s32 0, %v2396_v24  ;;  %v3594_v45 = vsub.s32 %v3591_v41, %v2396_v24 }
 0x9ce   :  { %3500 = vmatpush1.bf16.msra.mxu0 %v3490_v30  ;;  %v2393_v30 = vpop.permute.xlu0 %2392 }
 0x9d1   :  { %3474 = vmatmul.mubr.bf16.gmra.mrb[56].mxu0 %v5455_v7 }
 0x9d2   :  { %3529 = vmatprep.mubr.bf16.mxu0 %v4777_v9 }
 0x9d9   :  { %4143 = vmatmul.mubr.msk.bf16.vlgmr.msra.gmra.mrb[36].mxu0 %vm81_vm0, %v4142_v48 }
 0x9da   :  { %3570 = vmatprep.mubr.bf16.mxu0 %v4777_v9  ;;  %v2398_v9 = vrot.slane %v2393_v30, %v2397_v27 }
 0xa9c   :  { %v3465_v10 = vpop.f32.mrb[52].mxu0 }
 0xa9d   :  { %v3467_v18 = vpop.f32.mrb[53].mxu0 }
 0xa9e   :  { %v3469_v19 = vpop.f32.mrb[54].mxu0 }
 0xa9f   :  { %v3488_v21 = vpack.c.bf16 %v3469_v19, %v3465_v10  ;;  %v3471_v22 = vpop.f32.mrb[55].mxu0 }
 0xaa0   :  { %v3489_v23 = vpack.c.bf16 %v3471_v22, %v3467_v18 }
 0xaa2   :  { %3538 = vmatprep.subr.bf16.mxu0 %v3489_v23 }
 0xaa3   :  { %3539 = vmatpush1.bf16.msra.mxu0 %v3488_v21 }
 0xaa4   :  { %v3475_v7 = vpop.f32.mrb[56].mxu0 }
 0xaa5   :  { %v3477_v25 = vpop.f32.mrb[57].mxu0 }
 0xaa6   :  { %v3479_v26 = vpop.f32.mrb[58].mxu0 }
 0xaa7   :  { %v3492_v28 = vpack.c.bf16 %v3479_v26, %v3475_v7  ;;  %v3481_v29 = vpop.f32.mrb[59].mxu0 }
 0xaa8   :  { %v3493_v31 = vpack.c.bf16 %v3481_v29, %v3477_v25 }
 0xaaa   :  { %3540 = vmatprep.subr.bf16.mxu0 %v3493_v31 }
 0xaab   :  { %3541 = vmatpush1.bf16.msra.mxu0 %v3492_v28 }
 0xaac   :  { %v3531_v32 = vpop.f32.mrb[36].mxu0 }
 0xaad   :  { %v4323_v33 = vadd.f32 %v3531_v32, %v2398_v9  ;;  %v3533_v34 = vpop.f32.mrb[37].mxu0 }
 0xaae   :  { %v4324_v35 = vadd.f32 %v3533_v34, %v2398_v9  ;;  %v3535_v36 = vpop.f32.mrb[38].mxu0  ;;  %4144 = vmatmul.mubr.msk.bf16.vlgmr.msra.gmra.mrb[40].mxu0 %vm81_vm0, %v4142_v48 }
 0xaaf   :  { %v3536_v37 = vpop.f32.mrb[39].mxu0 }
 0xab0   :  { %v3587_v38 = vcombine.low %v4323_v33, %v4324_v35 }
 0xab2   :  { %v3595_v52 = vrot.slane %v3587_v38, %v3594_v45 }
 0xb81   :  { %v3572_v42 = vpop.f32.mrb[40].mxu0 }
 0xb82   :  { %v4325_v43 = vadd.f32 %v3572_v42, %v2398_v9  ;;  %v3574_v44 = vpop.f32.mrb[41].mxu0 }
 0xb83   :  { %v4326_v46 = vadd.f32 %v3574_v44, %v2398_v9  ;;  %v3576_v47 = vpop.f32.mrb[42].mxu0 }
 0xb84   :  { %v3577_v49 = vpop.f32.mrb[43].mxu0 }
 0xb85   :  { %v3588_v50 = vcombine.low %v4325_v43, %v4326_v46 }
 0xb87   :  { %v3602_v53 = vrot.slane %v3588_v50, %v3594_v45 }
 0xb89   :  { %v3603_v54 = vcombine.low %v3595_v52, %v3602_v53 }
 0xb8b   :  { %v3610_v51 = vrot.slane %v3603_v54, %v3594_v45 }
 0xb8d   :  { %3616 = vst.msk [vmem:[%s5921_s13] sm:$0xf] %vm3614_vm3, %v3610_v51 }

// kernel: summarizer_forward.10
= control target key start
LH: loop header
LB: loop body
LE: loop exit
PB: predicated region body
PF: predicated region fallthrough
CT: control target
= control target key end

     0   :  { %vm77_vm0 = vcmask 523264   ;;  %vm149_vm1 = vcmask 261120   ;;  %v1523_v29 = vmov 0   ;;  %s1834_s3 = inlined_call_operand.vmem [shape: bf16[3,64,128], index: 3, kind: input, shape index: {}]   ;;  %s1835_s0 = inlined_call_operand.vmem [shape: bf16[32,64], index: 0, kind: input, shape index: {}]   ;;  %s1836_s1 = inlined_call_operand.vmem [shape: bf16[3,32,32], index: 1, kind: input, shape index: {}]   ;;  %s1837_s2 = inlined_call_operand.vmem [shape: f32[32,1], index: 2, kind: input, shape index: {}]   ;;  %s1838_s6 = inlined_call_operand.vmem [shape: bf16[3,128,256], index: 6, kind: input, shape index: {}]   ;;  %s1839_s5 = inlined_call_operand.vmem [shape: f32[8,1], index: 5, kind: input, shape index: {}]   ;;  %s1840_s4 = inlined_call_operand.vmem [shape: bf16[3,8,32], index: 4, kind: input, shape index: {}]   ;;  %s1841_s7 = inlined_call_operand.vmem [shape: f32[8,256], index: 7, kind: output, shape index: {}]  }
   0x1   :  { %v1431_v0 = vld [vmem:[%s1834_s3] sm:$0xff]   ;;  %v1432_v1 = vld [vmem:[%s1834_s3 + $0x8] sm:$0xff]   ;;  %v1433_v2 = vld [vmem:[%s1834_s3 + $0x10] sm:$0xff]   ;;  %1429 = vset.pattern.permute.xlu0 %v1523_v29  ;;  %1430 = vset.pattern.permute.xlu1 %v1523_v29 }
   0x2   :  { %1346 = vmatprep.subr.bf16.mxu0 %v1431_v0  ;;  %v1435_v3 = vld [vmem:[%s1835_s0] sm:$0xff]   ;;  %v1434_v4 = vld [vmem:[%s1834_s3 + $0x18] sm:$0xff]   ;;  %v1436_v5 = vld [vmem:[%s1835_s0 + $0x8] sm:$0xff]  }
   0x3   :  { %1347 = vmatpush3.bf16.msra.mxu0 %v1431_v0  ;;  %1354 = vmatprep.mubr.msk.bf16.mxu0 %vm77_vm0, %v1435_v3  ;;  %v1437_v6 = vld [vmem:[%s1836_s1] sm:$0xff]   ;;  %v1444_v8 = vld [vmem:[%s1834_s3 + $0x48] sm:$0xff]   ;;  %v1445_v9 = vld [vmem:[%s1834_s3 + $0x50] sm:$0xff]  }
   0x4   :  { %1348 = vmatprep.subr.bf16.mxu0 %v1432_v1  ;;  %1362 = vmatprep.mubr.msk.bf16.mxu1 %vm149_vm1, %v1437_v6  ;;  %v1442_v7 = vld [vmem:[%s1834_s3 + $0x40] sm:$0xff]   ;;  %v1446_v10 = vld [vmem:[%s1834_s3 + $0x58] sm:$0xff]   ;;  %v1439_v18 = vld [vmem:[%s1836_s1 + $0x8] sm:$0xff]  }
   0x5   :  { %v1438_v17 = vld [vmem:[%s1834_s3 + $0x20] sm:$0xff]   ;;  %v1440_v19 = vld [vmem:[%s1834_s3 + $0x28] sm:$0xff]   ;;  %v1441_v20 = vld [vmem:[%s1834_s3 + $0x30] sm:$0xff]  }
   0x6   :  { %v1443_v21 = vld [vmem:[%s1834_s3 + $0x38] sm:$0xff]   ;;  %v1447_v27 = vld [vmem:[%s1836_s1 + $0x10] sm:$0xff]   ;;  %v31_v30 = vld [vmem:[%s1837_s2] sm:$0xff] }
   0x7   :  { %1349 = vmatpush3.bf16.msra.mxu0 %v1432_v1  ;;  %v33_v31 = vld [vmem:[%s1837_s2 + $0x10] sm:$0xff]  ;;  %207 = vperm.xlu0 %1429, %v31_v30   ;;  %v32_v32 = vld [vmem:[%s1837_s2 + $0x8] sm:$0xff]  ;;  %v34_v33 = vld [vmem:[%s1837_s2 + $0x18] sm:$0xff] }
   0x8   :  { %1350 = vmatprep.subr.bf16.mxu0 %v1433_v2  ;;  %217 = vperm.xlu1 %1430, %v33_v31   ;;  %v1451_v34 = vld [vmem:[%s1838_s6] ss:$8 sps:$4 sm:$0xff]   ;;  %v1453_v35 = vld [vmem:[%s1838_s6 + $0x4] ss:$8 sps:$4 sm:$0xff]   ;;  %v1456_v36 = vld [vmem:[%s1838_s6 + $0x14] ss:$8 sps:$4 sm:$0xff]  }
   0x9   :  { %v559_v37 = vld [vmem:[%s1839_s5] sm:$0xff]  ;;  %v1454_v38 = vld [vmem:[%s1838_s6 + $0x10] ss:$8 sps:$4 sm:$0xff]   ;;  %v1462_v41 = vld [vmem:[%s1838_s6 + $0x34] ss:$8 sps:$4 sm:$0xff]  }
   0xa   :  { %v1459_v39 = vld [vmem:[%s1838_s6 + $0x24] ss:$8 sps:$4 sm:$0xff]   ;;  %v1457_v40 = vld [vmem:[%s1838_s6 + $0x20] ss:$8 sps:$4 sm:$0xff]   ;;  %v1460_v42 = vld [vmem:[%s1838_s6 + $0x30] ss:$8 sps:$4 sm:$0xff]  }
   0xb   :  { %1351 = vmatpush3.bf16.msra.mxu0 %v1433_v2  ;;  %212 = vperm.xlu0 %1429, %v32_v32   ;;  %v1465_v43 = vld [vmem:[%s1838_s6 + $0x44] ss:$8 sps:$4 sm:$0xff]   ;;  %v1463_v44 = vld [vmem:[%s1838_s6 + $0x40] ss:$8 sps:$4 sm:$0xff]   ;;  %v1468_v45 = vld [vmem:[%s1838_s6 + $0x54] ss:$8 sps:$4 sm:$0xff]  }
   0xc   :  { %1352 = vmatprep.subr.bf16.mxu0 %v1434_v4  ;;  %222 = vperm.xlu1 %1430, %v34_v33   ;;  %v1466_v46 = vld [vmem:[%s1838_s6 + $0x50] ss:$8 sps:$4 sm:$0xff]   ;;  %v1449_v54 = vld [vmem:[%s1836_s1 + $0x20] sm:$0xff]   ;;  %v1450_v55 = vld [vmem:[%s1836_s1 + $0x28] sm:$0xff]  }
   0xd   :  { %v1448_v53 = vld [vmem:[%s1836_s1 + $0x18] sm:$0xff]   ;;  %v1471_v56 = vld [vmem:[%s1838_s6 + $0x64] ss:$8 sps:$4 sm:$0xff]   ;;  %v1469_v57 = vld [vmem:[%s1838_s6 + $0x60] ss:$8 sps:$4 sm:$0xff]  }
   0xe   :  { %v1474_v58 = vld [vmem:[%s1838_s6 + $0x74] ss:$8 sps:$4 sm:$0xff]   ;;  %v1472_v59 = vld [vmem:[%s1838_s6 + $0x70] ss:$8 sps:$4 sm:$0xff]   ;;  %v1477_v60 = vld [vmem:[%s1838_s6 + $0x104] ss:$8 sps:$4 sm:$0xff]  }
   0xf   :  { %1353 = vmatpush3.bf16.msra.mxu0 %v1434_v4  ;;  %760 = vperm.xlu0 %1429, %v559_v37   ;;  %v1490_v30 = vld [vmem:[%s1838_s6 + $0x150] ss:$8 sps:$4 sm:$0xff]   ;;  %v1495_v31 = vld [vmem:[%s1838_s6 + $0x164] ss:$8 sps:$4 sm:$0xff]   ;;  %v1493_v32 = vld [vmem:[%s1838_s6 + $0x160] ss:$8 sps:$4 sm:$0xff]  }
  0x10   :  { %1386 = vmatprep.subr.bf16.mxu0 %v1442_v7  ;;  %v1498_v33 = vld [vmem:[%s1838_s6 + $0x174] ss:$8 sps:$4 sm:$0xff]  }
  0x12   :  { %1355 = vmatmul.mubr.msk.bf16.vlgmr.msra.gmra.mrb[0].mxu0 %vm77_vm0, %v1436_v5 }
  0x13   :  { %1394 = vmatprep.mubr.msk.bf16.mxu0 %vm77_vm0, %v1435_v3  ;;  %1387 = vmatpush3.bf16.msra.mxu0 %v1442_v7 }
  0x14   :  { %1388 = vmatprep.subr.bf16.mxu0 %v1444_v8 }
  0x17   :  { %1389 = vmatpush3.bf16.msra.mxu0 %v1444_v8 }
  0x18   :  { %1390 = vmatprep.subr.bf16.mxu0 %v1445_v9 }
  0x1b   :  { %1391 = vmatpush3.bf16.msra.mxu0 %v1445_v9 }
  0x1c   :  { %1392 = vmatprep.subr.bf16.mxu0 %v1446_v10 }
  0x1f   :  { %1393 = vmatpush3.bf16.msra.mxu0 %v1446_v10 }
  0x20   :  { %656 = vmatprep.subr.bf16.mxu0 %v1453_v35 }
  0x22   :  { %1395 = vmatmul.mubr.msk.bf16.vlgmr.msra.gmra.mrb[4].mxu0 %vm77_vm0, %v1436_v5 }
  0x23   :  { %688 = vmatprep.mubr.bf16.mxu0 %v1523_v29  ;;  %657 = vmatpush1.bf16.msra.mxu0 %v1451_v34  ;;  %v1496_v34 = vld [vmem:[%s1838_s6 + $0x170] ss:$8 sps:$4 sm:$0xff]  }
  0x24   :  { %658 = vmatprep.subr.bf16.mxu0 %v1456_v36 }
  0x27   :  { %659 = vmatpush1.bf16.msra.mxu0 %v1454_v38 }
  0x28   :  { %660 = vmatprep.subr.bf16.mxu0 %v1459_v39 }
  0x2b   :  { %661 = vmatpush1.bf16.msra.mxu0 %v1457_v40 }
  0x2c   :  { %662 = vmatprep.subr.bf16.mxu0 %v1462_v41 }
  0x2f   :  { %663 = vmatpush1.bf16.msra.mxu0 %v1460_v42 }
  0x30   :  { %664 = vmatprep.subr.bf16.mxu0 %v1465_v43 }
  0x33   :  { %665 = vmatpush1.bf16.msra.mxu0 %v1463_v44 }
  0x34   :  { %666 = vmatprep.subr.bf16.mxu0 %v1468_v45 }
  0x37   :  { %667 = vmatpush1.bf16.msra.mxu0 %v1466_v46 }
  0x38   :  { %668 = vmatprep.subr.bf16.mxu0 %v1471_v56  ;;  %v1513_v56 = vld [vmem:[%s1838_s6 + $0xc4] ss:$8 sps:$4 sm:$0xff]  }
  0x3b   :  { %669 = vmatpush1.bf16.msra.mxu0 %v1469_v57  ;;  %v1511_v57 = vld [vmem:[%s1838_s6 + $0xc0] ss:$8 sps:$4 sm:$0xff]  }
  0x3c   :  { %670 = vmatprep.subr.bf16.mxu0 %v1474_v58 }
  0x3f   :  { %671 = vmatpush1.bf16.msra.mxu0 %v1472_v59  ;;  %v1516_v59 = vld [vmem:[%s1838_s6 + $0xd4] ss:$8 sps:$4 sm:$0xff]  }
  0x40   :  { %1064 = vmatprep.subr.bf16.mxu0 %v1477_v60 }
  0x86   :  { %v208_v62 = vpop.permute.xlu0 %207 }
  0x87   :  { %v218_v61 = vpop.permute.xlu1 %217 }
  0x8b   :  { %v223_v0 = vpop.permute.xlu1 %222 }
  0xe5   :  { %v1356_v11 = vpop.f32.mrb[0].mxu0 }
  0xe6   :  { %v118_v12 = vpop.f32.mrb[1].mxu0 }
  0xe7   :  { %v1357_v13 = vpop.f32.mrb[2].mxu0 }
  0xe8   :  { %v138_v14 = vpack.c.bf16 %v1357_v13, %v1356_v11  ;;  %v121_v15 = vpop.f32.mrb[3].mxu0 }
  0xe9   :  { %v137_v16 = vpack.c.bf16 %v121_v15, %v118_v12 }
  0xeb   :  { %1358 = vmatprep.subr.bf16.mxu1 %v137_v16 }
  0xec   :  { %1359 = vmatpush3.bf16.msra.mxu1 %v137_v16 }
  0xed   :  { %1360 = vmatprep.subr.bf16.mxu1 %v138_v14 }
  0xf0   :  { %1361 = vmatpush3.bf16.msra.mxu1 %v138_v14 }
  0xf1   :  { %1366 = vmatprep.subr.bf16.mxu1 %v1438_v17 }
  0xf3   :  { %1363 = vmatmul.mubr.msk.bf16.vlgmr.msra.gmra.mrb[0].mxu1 %vm149_vm1, %v1439_v18 }
  0xf4   :  { %1367 = vmatpush3.bf16.msra.mxu1 %v1438_v17  ;;  %1374 = vmatprep.mubr.msk.bf16.mxu1 %vm77_vm0, %v1435_v3  ;;  %v1475_v17 = vld [vmem:[%s1838_s6 + $0x100] ss:$8 sps:$4 sm:$0xff]  }
  0xf5   :  { %1368 = vmatprep.subr.bf16.mxu1 %v1440_v19  ;;  %v1396_v22 = vpop.f32.mrb[4].mxu0 }
  0xf6   :  { %v454_v23 = vpop.f32.mrb[5].mxu0 }
  0xf7   :  { %v1397_v24 = vpop.f32.mrb[6].mxu0 }
  0xf8   :  { %1369 = vmatpush3.bf16.msra.mxu1 %v1440_v19  ;;  %v475_v25 = vpack.c.bf16 %v1397_v24, %v1396_v22  ;;  %v457_v26 = vpop.f32.mrb[7].mxu0  ;;  %v1483_v22 = vld [vmem:[%s1838_s6 + $0x124] ss:$8 sps:$4 sm:$0xff]   ;;  %v1486_v24 = vld [vmem:[%s1838_s6 + $0x134] ss:$8 sps:$4 sm:$0xff]  }
  0xf9   :  { %1370 = vmatprep.subr.bf16.mxu1 %v1441_v20  ;;  %v474_v28 = vpack.c.bf16 %v457_v26, %v454_v23  ;;  %v1481_v23 = vld [vmem:[%s1838_s6 + $0x120] ss:$8 sps:$4 sm:$0xff]   ;;  %v1489_v26 = vld [vmem:[%s1838_s6 + $0x144] ss:$8 sps:$4 sm:$0xff]  }
  0xfc   :  { %1371 = vmatpush3.bf16.msra.mxu1 %v1441_v20  ;;  %v1480_v20 = vld [vmem:[%s1838_s6 + $0x114] ss:$8 sps:$4 sm:$0xff]  }
  0xfd   :  { %1372 = vmatprep.subr.bf16.mxu1 %v1443_v21 }
 0x100   :  { %1373 = vmatpush3.bf16.msra.mxu1 %v1443_v21  ;;  %v1478_v21 = vld [vmem:[%s1838_s6 + $0x110] ss:$8 sps:$4 sm:$0xff]  }
 0x103   :  { %1375 = vmatmul.mubr.msk.bf16.vlgmr.msra.gmra.mrb[4].mxu1 %vm77_vm0, %v1436_v5  ;;  %v213_v5 = vpop.permute.xlu0 %212 }
 0x104   :  { %1382 = vmatprep.mubr.msk.bf16.mxu1 %vm149_vm1, %v1447_v27  ;;  %v1487_v27 = vld [vmem:[%s1838_s6 + $0x140] ss:$8 sps:$4 sm:$0xff]  }
 0x1d6   :  { %v1376_v47 = vpop.f32.mrb[4].mxu1 }
 0x1d7   :  { %v296_v48 = vpop.f32.mrb[5].mxu1 }
 0x1d8   :  { %v1377_v49 = vpop.f32.mrb[6].mxu1 }
 0x1d9   :  { %v317_v50 = vpack.c.bf16 %v1377_v49, %v1376_v47  ;;  %v299_v51 = vpop.f32.mrb[7].mxu1  ;;  %v1501_v47 = vld [vmem:[%s1838_s6 + $0x84] ss:$8 sps:$4 sm:$0xff]   ;;  %v709_v49 = vld [vmem:[%s1840_s4] sm:$0xf] }
 0x1da   :  { %v316_v52 = vpack.c.bf16 %v299_v51, %v296_v48  ;;  %v1499_v48 = vld [vmem:[%s1838_s6 + $0x80] ss:$8 sps:$4 sm:$0xff]   ;;  %v1502_v51 = vld [vmem:[%s1838_s6 + $0x90] ss:$8 sps:$4 sm:$0xff]  }
 0x1dc   :  { %1378 = vmatprep.subr.bf16.mxu1 %v316_v52 }
 0x1dd   :  { %1379 = vmatpush3.bf16.msra.mxu1 %v316_v52  ;;  %v1507_v52 = vld [vmem:[%s1838_s6 + $0xa4] ss:$8 sps:$4 sm:$0xff]  }
 0x1de   :  { %1380 = vmatprep.subr.bf16.mxu1 %v317_v50 }
 0x1e1   :  { %1381 = vmatpush3.bf16.msra.mxu1 %v317_v50  ;;  %v1504_v50 = vld [vmem:[%s1838_s6 + $0x94] ss:$8 sps:$4 sm:$0xff]  }
 0x1e2   :  { %1398 = vmatprep.subr.bf16.mxu1 %v474_v28 }
 0x1e4   :  { %1383 = vmatmul.mubr.msk.bf16.vlgmr.msra.gmra.mrb[0].mxu1 %vm149_vm1, %v1448_v53  ;;  %v1505_v53 = vld [vmem:[%s1838_s6 + $0xa0] ss:$8 sps:$4 sm:$0xff]  }
 0x1e5   :  { %1399 = vmatpush3.bf16.msra.mxu1 %v474_v28  ;;  %1402 = vmatprep.mubr.msk.bf16.mxu1 %vm149_vm1, %v1449_v54  ;;  %v1492_v28 = vld [vmem:[%s1838_s6 + $0x154] ss:$8 sps:$4 sm:$0xff]  }
 0x1e6   :  { %1400 = vmatprep.subr.bf16.mxu1 %v475_v25  ;;  %v1510_v54 = vld [vmem:[%s1838_s6 + $0xb4] ss:$8 sps:$4 sm:$0xff]  }
 0x1e9   :  { %1401 = vmatpush3.bf16.msra.mxu1 %v475_v25  ;;  %v1484_v25 = vld [vmem:[%s1838_s6 + $0x130] ss:$8 sps:$4 sm:$0xff]  }
 0x1f0   :  { %1403 = vmatmul.mubr.msk.bf16.vlgmr.msra.gmra.mrb[0].mxu1 %vm149_vm1, %v1450_v55  ;;  %v1508_v55 = vld [vmem:[%s1838_s6 + $0xb0] ss:$8 sps:$4 sm:$0xff]  }
 0x1f1   :  { %749 = vmatprep.mubr.bf16.mxu1 %v1523_v29 }
 0x2c3   :  { %v1404_v63 = vpop.f32.mrb[0].mxu1 }
 0x2c4   :  { %v1406_v1 = vadd.f32 %v1404_v63, %v218_v61  ;;  %v526_v2 = vpop.f32.mrb[1].mxu1 }
 0x2c5   :  { %v1407_v3 = vadd.f32 %v526_v2, %v208_v62  ;;  %v1405_v4 = vpop.f32.mrb[2].mxu1  ;;  %v1519_v2 = vld [vmem:[%s1838_s6 + $0xe4] ss:$8 sps:$4 sm:$0xff]  }
 0x2c6   :  { %v551_v6 = vmul.f32 0.2, %v1406_v1  ;;  %v1408_v7 = vadd.f32 %v1405_v4, %v223_v0  ;;  %v529_v8 = vpop.f32.mrb[3].mxu1  ;;  %vm547_vm2 = vcmp.gt.f32.partialorder %v1406_v1, 0.0  ;;  %v1514_v0 = vld [vmem:[%s1838_s6 + $0xd0] ss:$8 sps:$4 sm:$0xff]  }
 0x2c7   :  { %v549_v9 = vmul.f32 0.2, %v1407_v3  ;;  %v1409_v10 = vadd.f32 %v529_v8, %v213_v5  ;;  %vm545_vm3 = vcmp.gt.f32.partialorder %v1407_v3, 0.0  ;;  %v1522_v5 = vld [vmem:[%s1838_s6 + $0xf4] ss:$8 sps:$4 sm:$0xff]  }
 0x2c8   :  { %vm548_vm4 = vcmp.gt.f32.partialorder %v1408_v7, 0.0  ;;  %v552_v11 = vmul.f32 0.2, %v1408_v7  ;;  %v555_v13 = vsel %vm547_vm2, %v1406_v1, %v551_v6 }
 0x2c9   :  { %vm546_vm5 = vcmp.gt.f32.partialorder %v1409_v10, 0.0  ;;  %v550_v12 = vmul.f32 0.2, %v1409_v10  ;;  %v553_v15 = vsel %vm545_vm3, %v1407_v3, %v549_v9  ;;  %v1517_v3 = vld [vmem:[%s1838_s6 + $0xe0] ss:$8 sps:$4 sm:$0xff]  }
 0x2ca   :  { %v556_v14 = vsel %vm548_vm4, %v1408_v7, %v552_v11 }
 0x2cb   :  { %v554_v16 = vsel %vm546_vm5, %v1409_v10, %v550_v12  ;;  %v1709_v18 = vpack.c.bf16 %v556_v14, %v555_v13  ;;  %v1520_v10 = vld [vmem:[%s1838_s6 + $0xf0] ss:$8 sps:$4 sm:$0xff]  }
 0x2cc   :  { %v1711_v19 = vpack.c.bf16 %v554_v16, %v553_v15 }
 0x2ce   :  { %689 = vmatmul.mubr.bf16.vlgmr.msra.gmra.mrb[8].mxu0 %v1711_v19 }
 0x2cf   :  { %1065 = vmatpush1.bf16.msra.mxu0 %v1475_v17  ;;  %698 = vmatprep.mubr.bf16.mxu0 %v1523_v29 }
 0x2d0   :  { %1066 = vmatprep.subr.bf16.mxu0 %v1480_v20 }
 0x2d3   :  { %1067 = vmatpush1.bf16.msra.mxu0 %v1478_v21 }
 0x2d4   :  { %1068 = vmatprep.subr.bf16.mxu0 %v1483_v22 }
 0x2d6   :  { %699 = vmatmul.mubr.bf16.gmra.mrb[12].mxu0 %v1709_v18 }
 0x2d7   :  { %1069 = vmatpush1.bf16.msra.mxu0 %v1481_v23  ;;  %1096 = vmatprep.mubr.bf16.mxu0 %v1523_v29 }
 0x2d8   :  { %1070 = vmatprep.subr.bf16.mxu0 %v1486_v24 }
 0x2db   :  { %1071 = vmatpush1.bf16.msra.mxu0 %v1484_v25  ;;  %v1314_v25 = vld [vmem:[%s1840_s4 + $0x8] sm:$0xf] }
 0x2dc   :  { %1072 = vmatprep.subr.bf16.mxu0 %v1489_v26  ;;  %v761_v26 = vpop.permute.xlu0 %760 }
 0x2df   :  { %1073 = vmatpush1.bf16.msra.mxu0 %v1487_v27 }
 0x2e0   :  { %1074 = vmatprep.subr.bf16.mxu0 %v1492_v28 }
 0x2e3   :  { %1075 = vmatpush1.bf16.msra.mxu0 %v1490_v30 }
 0x2e4   :  { %1076 = vmatprep.subr.bf16.mxu0 %v1495_v31 }
 0x2e7   :  { %1077 = vmatpush1.bf16.msra.mxu0 %v1493_v32 }
 0x2e8   :  { %1078 = vmatprep.subr.bf16.mxu0 %v1498_v33 }
 0x2eb   :  { %1079 = vmatpush1.bf16.msra.mxu0 %v1496_v34 }
 0x2ee   :  { %1097 = vmatmul.mubr.bf16.vlgmr.msra.gmra.mrb[16].mxu0 %v1711_v19 }
 0x2ef   :  { %1106 = vmatprep.mubr.bf16.mxu0 %v1523_v29 }
 0x2f6   :  { %1107 = vmatmul.mubr.bf16.gmra.mrb[20].mxu0 %v1709_v18 }
 0x3a1   :  { %v690_v35 = vpop.f32.mrb[8].mxu0 }
 0x3a2   :  { %v692_v36 = vpop.f32.mrb[9].mxu0 }
 0x3a3   :  { %v694_v37 = vpop.f32.mrb[10].mxu0 }
 0x3a4   :  { %v710_v38 = vpack.c.bf16 %v694_v37, %v690_v35  ;;  %v696_v39 = vpop.f32.mrb[11].mxu0 }
 0x3a5   :  { %v711_v40 = vpack.c.bf16 %v696_v39, %v692_v36 }
 0x3a7   :  { %717 = vmatprep.subr.bf16.mxu1 %v711_v40 }
 0x3a8   :  { %718 = vmatpush1.bf16.msra.mxu1 %v710_v38 }
 0x3a9   :  { %v700_v41 = vpop.f32.mrb[12].mxu0 }
 0x3aa   :  { %v702_v42 = vpop.f32.mrb[13].mxu0 }
 0x3ab   :  { %v704_v43 = vpop.f32.mrb[14].mxu0 }
 0x3ac   :  { %v712_v44 = vpack.c.bf16 %v704_v43, %v700_v41  ;;  %v706_v45 = vpop.f32.mrb[15].mxu0 }
 0x3ad   :  { %v713_v46 = vpack.c.bf16 %v706_v45, %v702_v42 }
 0x3af   :  { %719 = vmatprep.subr.bf16.mxu1 %v713_v46 }
 0x3b0   :  { %720 = vmatpush1.bf16.msra.mxu1 %v712_v44 }
 0x3b1   :  { %862 = vmatprep.subr.bf16.mxu1 %v1501_v47 }
 0x3b3   :  { %1247 = vmatmul.mubr.msk.bf16.vlgmr.msra.gmra.mrb[8].mxu1 %vm149_vm1, %v709_v49 }
 0x3b4   :  { %863 = vmatpush1.bf16.msra.mxu1 %v1499_v48  ;;  %894 = vmatprep.mubr.bf16.mxu1 %v1523_v29 }
 0x3b5   :  { %864 = vmatprep.subr.bf16.mxu1 %v1504_v50 }
 0x3b8   :  { %865 = vmatpush1.bf16.msra.mxu1 %v1502_v51 }
 0x3b9   :  { %866 = vmatprep.subr.bf16.mxu1 %v1507_v52 }
 0x3bc   :  { %867 = vmatpush1.bf16.msra.mxu1 %v1505_v53 }
 0x3bd   :  { %868 = vmatprep.subr.bf16.mxu1 %v1510_v54 }
 0x3c0   :  { %869 = vmatpush1.bf16.msra.mxu1 %v1508_v55 }
 0x3c1   :  { %v1098_v58 = vpop.f32.mrb[16].mxu0  ;;  %870 = vmatprep.subr.bf16.mxu1 %v1513_v56 }
 0x3c2   :  { %v1100_v60 = vpop.f32.mrb[17].mxu0 }
 0x3c3   :  { %v1102_v61 = vpop.f32.mrb[18].mxu0 }
 0x3c4   :  { %v1119_v62 = vpack.c.bf16 %v1102_v61, %v1098_v58  ;;  %v1104_v63 = vpop.f32.mrb[19].mxu0  ;;  %871 = vmatpush1.bf16.msra.mxu1 %v1511_v57 }
 0x3c5   :  { %v1120_v1 = vpack.c.bf16 %v1104_v63, %v1100_v60  ;;  %872 = vmatprep.subr.bf16.mxu1 %v1516_v59 }
 0x3c8   :  { %873 = vmatpush1.bf16.msra.mxu1 %v1514_v0 }
 0x3c9   :  { %v1108_v4 = vpop.f32.mrb[20].mxu0  ;;  %874 = vmatprep.subr.bf16.mxu1 %v1519_v2 }
 0x3ca   :  { %v1110_v6 = vpop.f32.mrb[21].mxu0 }
 0x3cb   :  { %v1112_v7 = vpop.f32.mrb[22].mxu0 }
 0x3cc   :  { %v1121_v8 = vpack.c.bf16 %v1112_v7, %v1108_v4  ;;  %v1114_v9 = vpop.f32.mrb[23].mxu0  ;;  %875 = vmatpush1.bf16.msra.mxu1 %v1517_v3 }
 0x3cd   :  { %v1122_v11 = vpack.c.bf16 %v1114_v9, %v1110_v6  ;;  %876 = vmatprep.subr.bf16.mxu1 %v1522_v5 }
 0x3d0   :  { %877 = vmatpush1.bf16.msra.mxu1 %v1520_v10 }
 0x3d3   :  { %895 = vmatmul.mubr.bf16.vlgmr.msra.gmra.mrb[12].mxu1 %v1711_v19 }
 0x3d4   :  { %904 = vmatprep.mubr.bf16.mxu1 %v1523_v29 }
 0x3db   :  { %905 = vmatmul.mubr.bf16.gmra.mrb[16].mxu1 %v1709_v18  ;;  %v1280_v18 = vld [vmem:[%s1840_s4 + $0x4] sm:$0xf] }
 0x3dc   :  { %956 = vmatprep.mubr.bf16.mxu1 %v1523_v29 }
 0x4a6   :  { %v896_v12 = vpop.f32.mrb[12].mxu1 }
 0x4a7   :  { %v898_v13 = vpop.f32.mrb[13].mxu1 }
 0x4a8   :  { %v900_v14 = vpop.f32.mrb[14].mxu1 }
 0x4a9   :  { %v917_v15 = vpack.c.bf16 %v900_v14, %v896_v12  ;;  %v902_v16 = vpop.f32.mrb[15].mxu1 }
 0x4aa   :  { %v918_v17 = vpack.c.bf16 %v902_v16, %v898_v13 }
 0x4ac   :  { %924 = vmatprep.subr.bf16.mxu1 %v918_v17 }
 0x4ad   :  { %925 = vmatpush1.bf16.msra.mxu1 %v917_v15 }
 0x4ae   :  { %v906_v20 = vpop.f32.mrb[16].mxu1 }
 0x4af   :  { %v908_v21 = vpop.f32.mrb[17].mxu1 }
 0x4b0   :  { %v910_v22 = vpop.f32.mrb[18].mxu1 }
 0x4b1   :  { %v919_v23 = vpack.c.bf16 %v910_v22, %v906_v20  ;;  %v912_v24 = vpop.f32.mrb[19].mxu1 }
 0x4b2   :  { %v920_v19 = vpack.c.bf16 %v912_v24, %v908_v21 }
 0x4b4   :  { %926 = vmatprep.subr.bf16.mxu1 %v920_v19 }
 0x4b5   :  { %927 = vmatpush1.bf16.msra.mxu1 %v919_v23 }
 0x4b6   :  { %1126 = vmatprep.subr.bf16.mxu1 %v1120_v1 }
 0x4b8   :  { %1281 = vmatmul.mubr.msk.bf16.vlgmr.msra.gmra.mrb[8].mxu1 %vm149_vm1, %v1280_v18 }
 0x4b9   :  { %1127 = vmatpush1.bf16.msra.mxu1 %v1119_v62  ;;  %1158 = vmatprep.mubr.bf16.mxu1 %v1523_v29 }
 0x4ba   :  { %1128 = vmatprep.subr.bf16.mxu1 %v1122_v11 }
 0x4bd   :  { %1129 = vmatpush1.bf16.msra.mxu1 %v1121_v8 }
 0x4c4   :  { %1315 = vmatmul.mubr.msk.bf16.vlgmr.msra.gmra.mrb[8].mxu1 %vm149_vm1, %v1314_v25 }
 0x597   :  { %v1160_v27 = vpop.f32.mrb[8].mxu1 }
 0x598   :  { %v1410_v28 = vadd.f32 %v1160_v27, %v761_v26  ;;  %v1162_v30 = vpop.f32.mrb[9].mxu1 }
 0x599   :  { %v1411_v31 = vadd.f32 %v1162_v30, %v761_v26  ;;  %v1164_v32 = vpop.f32.mrb[10].mxu1 }
 0x59a   :  { %1169 = vst [vmem:[%s1841_s7] sm:$0xff] %v1410_v28  ;;  %v1165_v33 = vpop.f32.mrb[11].mxu1 }
 0x59b   :  { %1170 = vst [vmem:[%s1841_s7 + $0x8] sm:$0xff] %v1411_v31 }

// kernel: summarizer_forward.11
= control target key start
LH: loop header
LB: loop body
LE: loop exit
PB: predicated region body
PF: predicated region fallthrough
CT: control target
= control target key end

     0   :  { %s3023_s1 = inlined_call_operand.vmem [shape: bf16[256,2048], index: 1, kind: input, shape index: {}]   ;;  %s3024_s0 = inlined_call_operand.vmem [shape: bf16[8,256], index: 0, kind: input, shape index: {}]   ;;  %s3025_s2 = inlined_call_operand.vmem [shape: f32[8,2048], index: 2, kind: output, shape index: {}]  }
   0x1   :  { %v12_v0 = vld [vmem:[%s3023_s1] sm:$0xff]  ;;  %v13_v2 = vld [vmem:[%s3023_s1 + $0x8] sm:$0xff] }
   0x2   :  { %v20_v1 = vld [vmem:[%s3023_s1 + $0x40] sm:$0xff]  ;;  %v21_v4 = vld [vmem:[%s3023_s1 + $0x48] sm:$0xff] }
   0x3   :  { %v1906_v3 = vcombine.high %v12_v0, %v20_v1  ;;  %v1905_v5 = vcombine.low %v12_v0, %v20_v1  ;;  %v28_v6 = vld [vmem:[%s3023_s1 + $0x80] sm:$0xff]  ;;  %v1908_v8 = vcombine.high %v13_v2, %v21_v4  ;;  %v1907_v9 = vcombine.low %v13_v2, %v21_v4  ;;  %v29_v11 = vld [vmem:[%s3023_s1 + $0x88] sm:$0xff] }
   0x4   :  { %v36_v7 = vld [vmem:[%s3023_s1 + $0xc0] sm:$0xff]  ;;  %v37_v12 = vld [vmem:[%s3023_s1 + $0xc8] sm:$0xff] }
   0x5   :  { %v1922_v10 = vcombine.high %v28_v6, %v36_v7  ;;  %v44_v13 = vld [vmem:[%s3023_s1 + $0x100] sm:$0xff]  ;;  %1555 = vmatprep.subr.bf16.mxu0 %v1906_v3  ;;  %v1924_v14 = vcombine.high %v29_v11, %v37_v12  ;;  %v45_v16 = vld [vmem:[%s3023_s1 + $0x108] sm:$0xff]  ;;  %1596 = vmatprep.subr.bf16.mxu1 %v1908_v8  ;;  %v1921_v18 = vcombine.low %v28_v6, %v36_v7 }
   0x6   :  { %v52_v15 = vld [vmem:[%s3023_s1 + $0x140] sm:$0xff]  ;;  %v53_v17 = vld [vmem:[%s3023_s1 + $0x148] sm:$0xff]  ;;  %1556 = vmatpush1.bf16.msra.mxu0 %v1905_v5  ;;  %1597 = vmatpush1.bf16.msra.mxu1 %v1907_v9  ;;  %v1923_v19 = vcombine.low %v29_v11, %v37_v12 }
   0x7   :  { %1557 = vmatprep.subr.bf16.mxu0 %v1922_v10  ;;  %v1938_v20 = vcombine.high %v44_v13, %v52_v15  ;;  %1598 = vmatprep.subr.bf16.mxu1 %v1924_v14  ;;  %v1940_v21 = vcombine.high %v45_v16, %v53_v17  ;;  %v60_v22 = vld [vmem:[%s3023_s1 + $0x180] sm:$0xff]  ;;  %v61_v24 = vld [vmem:[%s3023_s1 + $0x188] sm:$0xff]  ;;  %v1937_v26 = vcombine.low %v44_v13, %v52_v15 }
   0x8   :  { %v68_v23 = vld [vmem:[%s3023_s1 + $0x1c0] sm:$0xff]  ;;  %v69_v25 = vld [vmem:[%s3023_s1 + $0x1c8] sm:$0xff]  ;;  %v1939_v27 = vcombine.low %v45_v16, %v53_v17 }
   0x9   :  { %v1954_v28 = vcombine.high %v60_v22, %v68_v23  ;;  %v1956_v29 = vcombine.high %v61_v24, %v69_v25  ;;  %v76_v30 = vld [vmem:[%s3023_s1 + $0x200] sm:$0xff]  ;;  %v77_v32 = vld [vmem:[%s3023_s1 + $0x208] sm:$0xff]  ;;  %v1953_v34 = vcombine.low %v60_v22, %v68_v23  ;;  %v1955_v35 = vcombine.low %v61_v24, %v69_v25 }
   0xa   :  { %1558 = vmatpush1.bf16.msra.mxu0 %v1921_v18  ;;  %1599 = vmatpush1.bf16.msra.mxu1 %v1923_v19  ;;  %v84_v31 = vld [vmem:[%s3023_s1 + $0x240] sm:$0xff]  ;;  %v85_v33 = vld [vmem:[%s3023_s1 + $0x248] sm:$0xff] }
   0xb   :  { %1559 = vmatprep.subr.bf16.mxu0 %v1938_v20  ;;  %1600 = vmatprep.subr.bf16.mxu1 %v1940_v21  ;;  %v1970_v36 = vcombine.high %v76_v30, %v84_v31  ;;  %v1972_v37 = vcombine.high %v77_v32, %v85_v33  ;;  %v92_v38 = vld [vmem:[%s3023_s1 + $0x280] sm:$0xff]  ;;  %v93_v40 = vld [vmem:[%s3023_s1 + $0x288] sm:$0xff]  ;;  %v1969_v42 = vcombine.low %v76_v30, %v84_v31 }
   0xc   :  { %v100_v39 = vld [vmem:[%s3023_s1 + $0x2c0] sm:$0xff]  ;;  %v101_v41 = vld [vmem:[%s3023_s1 + $0x2c8] sm:$0xff]  ;;  %v1971_v43 = vcombine.low %v77_v32, %v85_v33 }
   0xd   :  { %v1986_v44 = vcombine.high %v92_v38, %v100_v39  ;;  %v1988_v45 = vcombine.high %v93_v40, %v101_v41  ;;  %v108_v46 = vld [vmem:[%s3023_s1 + $0x300] sm:$0xff]  ;;  %v109_v48 = vld [vmem:[%s3023_s1 + $0x308] sm:$0xff]  ;;  %v1985_v50 = vcombine.low %v92_v38, %v100_v39  ;;  %v1987_v51 = vcombine.low %v93_v40, %v101_v41 }
   0xe   :  { %1560 = vmatpush1.bf16.msra.mxu0 %v1937_v26  ;;  %1601 = vmatpush1.bf16.msra.mxu1 %v1939_v27  ;;  %v116_v47 = vld [vmem:[%s3023_s1 + $0x340] sm:$0xff]  ;;  %v117_v49 = vld [vmem:[%s3023_s1 + $0x348] sm:$0xff] }
   0xf   :  { %1561 = vmatprep.subr.bf16.mxu0 %v1954_v28  ;;  %1602 = vmatprep.subr.bf16.mxu1 %v1956_v29  ;;  %v2002_v52 = vcombine.high %v108_v46, %v116_v47  ;;  %v2265_v53 = vld [vmem:[%s3024_s0] sm:$0xff]  ;;  %v2004_v54 = vcombine.high %v109_v48, %v117_v49  ;;  %v125_v58 = vld [vmem:[%s3023_s1 + $0x388] sm:$0xff]  ;;  %v2001_v60 = vcombine.low %v108_v46, %v116_v47 }
  0x10   :  { %v124_v55 = vld [vmem:[%s3023_s1 + $0x380] sm:$0xff]  ;;  %v2275_v57 = vcombine.high %v2265_v53, %v2265_v53  ;;  %v133_v59 = vld [vmem:[%s3023_s1 + $0x3c8] sm:$0xff]  ;;  %v2003_v61 = vcombine.low %v109_v48, %v117_v49 }
  0x11   :  { %v132_v56 = vld [vmem:[%s3023_s1 + $0x3c0] sm:$0xff]  ;;  %v2020_v63 = vcombine.high %v125_v58, %v133_v59  ;;  %v141_v2 = vld [vmem:[%s3023_s1 + $0x408] sm:$0xff]  ;;  %v2019_v5 = vcombine.low %v125_v58, %v133_v59 }
  0x12   :  { %1562 = vmatpush1.bf16.msra.mxu0 %v1953_v34  ;;  %1603 = vmatpush1.bf16.msra.mxu1 %v1955_v35  ;;  %v2018_v62 = vcombine.high %v124_v55, %v132_v56  ;;  %v140_v0 = vld [vmem:[%s3023_s1 + $0x400] sm:$0xff]  ;;  %v149_v3 = vld [vmem:[%s3023_s1 + $0x448] sm:$0xff]  ;;  %v2017_v4 = vcombine.low %v124_v55, %v132_v56 }
  0x13   :  { %1563 = vmatprep.subr.bf16.mxu0 %v1970_v36  ;;  %1604 = vmatprep.subr.bf16.mxu1 %v1972_v37  ;;  %v148_v1 = vld [vmem:[%s3023_s1 + $0x440] sm:$0xff]  ;;  %v2036_v7 = vcombine.high %v141_v2, %v149_v3  ;;  %v157_v10 = vld [vmem:[%s3023_s1 + $0x488] sm:$0xff]  ;;  %v2035_v13 = vcombine.low %v141_v2, %v149_v3  ;;  %v14_v2 = vld [vmem:[%s3023_s1 + $0x10] sm:$0xff] }
  0x14   :  { %1587 = vmatprep.mubr.bf16.mxu0 %v2275_v57  ;;  %1628 = vmatprep.mubr.bf16.mxu1 %v2275_v57  ;;  %v2034_v6 = vcombine.high %v140_v0, %v148_v1  ;;  %v156_v8 = vld [vmem:[%s3023_s1 + $0x480] sm:$0xff]  ;;  %v165_v11 = vld [vmem:[%s3023_s1 + $0x4c8] sm:$0xff]  ;;  %v2033_v12 = vcombine.low %v140_v0, %v148_v1  ;;  %v22_v3 = vld [vmem:[%s3023_s1 + $0x50] sm:$0xff] }
  0x15   :  { %v164_v9 = vld [vmem:[%s3023_s1 + $0x4c0] sm:$0xff]  ;;  %v2052_v15 = vcombine.high %v157_v10, %v165_v11  ;;  %v173_v18 = vld [vmem:[%s3023_s1 + $0x508] sm:$0xff]  ;;  %v2051_v21 = vcombine.low %v157_v10, %v165_v11  ;;  %v30_v10 = vld [vmem:[%s3023_s1 + $0x90] sm:$0xff] }
  0x16   :  { %1564 = vmatpush1.bf16.msra.mxu0 %v1969_v42  ;;  %1605 = vmatpush1.bf16.msra.mxu1 %v1971_v43  ;;  %v2050_v14 = vcombine.high %v156_v8, %v164_v9  ;;  %v172_v16 = vld [vmem:[%s3023_s1 + $0x500] sm:$0xff]  ;;  %v181_v19 = vld [vmem:[%s3023_s1 + $0x548] sm:$0xff]  ;;  %v2049_v20 = vcombine.low %v156_v8, %v164_v9  ;;  %v1910_v8 = vcombine.high %v14_v2, %v22_v3  ;;  %v38_v11 = vld [vmem:[%s3023_s1 + $0xd0] sm:$0xff] }
  0x17   :  { %1565 = vmatprep.subr.bf16.mxu0 %v1986_v44  ;;  %1606 = vmatprep.subr.bf16.mxu1 %v1988_v45  ;;  %v180_v17 = vld [vmem:[%s3023_s1 + $0x540] sm:$0xff]  ;;  %v2068_v23 = vcombine.high %v173_v18, %v181_v19  ;;  %v189_v26 = vld [vmem:[%s3023_s1 + $0x588] sm:$0xff]  ;;  %v2067_v29 = vcombine.low %v173_v18, %v181_v19  ;;  %v54_v19 = vld [vmem:[%s3023_s1 + $0x150] sm:$0xff] }
  0x18   :  { %v2066_v22 = vcombine.high %v172_v16, %v180_v17  ;;  %v188_v24 = vld [vmem:[%s3023_s1 + $0x580] sm:$0xff]  ;;  %v197_v27 = vld [vmem:[%s3023_s1 + $0x5c8] sm:$0xff]  ;;  %v2065_v28 = vcombine.low %v172_v16, %v180_v17  ;;  %v1926_v17 = vcombine.high %v30_v10, %v38_v11 }
  0x19   :  { %v196_v25 = vld [vmem:[%s3023_s1 + $0x5c0] sm:$0xff]  ;;  %v2084_v31 = vcombine.high %v189_v26, %v197_v27  ;;  %v205_v34 = vld [vmem:[%s3023_s1 + $0x608] sm:$0xff]  ;;  %v2083_v37 = vcombine.low %v189_v26, %v197_v27  ;;  %v62_v26 = vld [vmem:[%s3023_s1 + $0x190] sm:$0xff] }
  0x1a   :  { %1566 = vmatpush1.bf16.msra.mxu0 %v1985_v50  ;;  %1607 = vmatpush1.bf16.msra.mxu1 %v1987_v51  ;;  %v2082_v30 = vcombine.high %v188_v24, %v196_v25  ;;  %v204_v32 = vld [vmem:[%s3023_s1 + $0x600] sm:$0xff]  ;;  %v213_v35 = vld [vmem:[%s3023_s1 + $0x648] sm:$0xff]  ;;  %v2081_v36 = vcombine.low %v188_v24, %v196_v25  ;;  %v70_v27 = vld [vmem:[%s3023_s1 + $0x1d0] sm:$0xff] }
  0x1b   :  { %1567 = vmatprep.subr.bf16.mxu0 %v2002_v52  ;;  %1608 = vmatprep.subr.bf16.mxu1 %v2004_v54  ;;  %v212_v33 = vld [vmem:[%s3023_s1 + $0x640] sm:$0xff]  ;;  %v2100_v39 = vcombine.high %v205_v34, %v213_v35  ;;  %v221_v42 = vld [vmem:[%s3023_s1 + $0x688] sm:$0xff]  ;;  %v2099_v45 = vcombine.low %v205_v34, %v213_v35  ;;  %v78_v34 = vld [vmem:[%s3023_s1 + $0x210] sm:$0xff] }
  0x1c   :  { %v2098_v38 = vcombine.high %v204_v32, %v212_v33  ;;  %v220_v40 = vld [vmem:[%s3023_s1 + $0x680] sm:$0xff]  ;;  %v229_v43 = vld [vmem:[%s3023_s1 + $0x6c8] sm:$0xff]  ;;  %v2097_v44 = vcombine.low %v204_v32, %v212_v33  ;;  %v1958_v32 = vcombine.high %v62_v26, %v70_v27  ;;  %v86_v35 = vld [vmem:[%s3023_s1 + $0x250] sm:$0xff] }
  0x1d   :  { %v228_v41 = vld [vmem:[%s3023_s1 + $0x6c0] sm:$0xff]  ;;  %v2116_v47 = vcombine.high %v221_v42, %v229_v43  ;;  %v237_v50 = vld [vmem:[%s3023_s1 + $0x708] sm:$0xff]  ;;  %v2115_v54 = vcombine.low %v221_v42, %v229_v43  ;;  %v94_v42 = vld [vmem:[%s3023_s1 + $0x290] sm:$0xff] }
  0x1e   :  { %1568 = vmatpush1.bf16.msra.mxu0 %v2001_v60  ;;  %1609 = vmatpush1.bf16.msra.mxu1 %v2003_v61  ;;  %v2114_v46 = vcombine.high %v220_v40, %v228_v41  ;;  %v236_v48 = vld [vmem:[%s3023_s1 + $0x700] sm:$0xff]  ;;  %v245_v51 = vld [vmem:[%s3023_s1 + $0x748] sm:$0xff]  ;;  %v2113_v52 = vcombine.low %v220_v40, %v228_v41  ;;  %v1974_v40 = vcombine.high %v78_v34, %v86_v35  ;;  %v102_v43 = vld [vmem:[%s3023_s1 + $0x2d0] sm:$0xff] }
  0x1f   :  { %1569 = vmatprep.subr.bf16.mxu0 %v2018_v62  ;;  %1610 = vmatprep.subr.bf16.mxu1 %v2020_v63  ;;  %v244_v49 = vld [vmem:[%s3023_s1 + $0x740] sm:$0xff]  ;;  %v2132_v56 = vcombine.high %v237_v50, %v245_v51  ;;  %v253_v60 = vld [vmem:[%s3023_s1 + $0x788] sm:$0xff]  ;;  %v2131_v63 = vcombine.low %v237_v50, %v245_v51  ;;  %v110_v50 = vld [vmem:[%s3023_s1 + $0x310] sm:$0xff] }
  0x20   :  { %v2130_v55 = vcombine.high %v236_v48, %v244_v49  ;;  %v252_v58 = vld [vmem:[%s3023_s1 + $0x780] sm:$0xff]  ;;  %v261_v61 = vld [vmem:[%s3023_s1 + $0x7c8] sm:$0xff]  ;;  %v2129_v62 = vcombine.low %v236_v48, %v244_v49  ;;  %v1990_v48 = vcombine.high %v94_v42, %v102_v43  ;;  %v118_v51 = vld [vmem:[%s3023_s1 + $0x350] sm:$0xff] }
  0x21   :  { %v260_v59 = vld [vmem:[%s3023_s1 + $0x7c0] sm:$0xff]  ;;  %v2148_v1 = vcombine.high %v253_v60, %v261_v61 }
  0x22   :  { %1570 = vmatpush1.bf16.msra.mxu0 %v2017_v4  ;;  %1611 = vmatpush1.bf16.msra.mxu1 %v2019_v5  ;;  %v2146_v0 = vcombine.high %v252_v58, %v260_v59  ;;  %v15_v4 = vld [vmem:[%s3023_s1 + $0x18] sm:$0xff] }
  0x23   :  { %1571 = vmatprep.subr.bf16.mxu0 %v2034_v6  ;;  %1612 = vmatprep.subr.bf16.mxu1 %v2036_v7  ;;  %v23_v5 = vld [vmem:[%s3023_s1 + $0x58] sm:$0xff]  ;;  %v2145_v6 = vcombine.low %v252_v58, %v260_v59  ;;  %v2147_v7 = vcombine.low %v253_v60, %v261_v61  ;;  %v2006_v58 = vcombine.high %v110_v50, %v118_v51  ;;  %v126_v60 = vld [vmem:[%s3023_s1 + $0x390] sm:$0xff] }
  0x24   :  { %v1912_v9 = vcombine.high %v15_v4, %v23_v5  ;;  %v1911_v16 = vcombine.low %v15_v4, %v23_v5  ;;  %v134_v61 = vld [vmem:[%s3023_s1 + $0x3d0] sm:$0xff] }
  0x25   :  { %v142_v4 = vld [vmem:[%s3023_s1 + $0x410] sm:$0xff] }
  0x26   :  { %1572 = vmatpush1.bf16.msra.mxu0 %v2033_v12  ;;  %1613 = vmatpush1.bf16.msra.mxu1 %v2035_v13  ;;  %v2401_v12 = vcombine.low %v2265_v53, %v2265_v53  ;;  %v31_v13 = vld [vmem:[%s3023_s1 + $0x98] sm:$0xff]  ;;  %v46_v53 = vld [vmem:[%s3023_s1 + $0x110] sm:$0xff] }
  0x27   :  { %1573 = vmatprep.subr.bf16.mxu0 %v2050_v14  ;;  %1614 = vmatprep.subr.bf16.mxu1 %v2052_v15  ;;  %v39_v14 = vld [vmem:[%s3023_s1 + $0xd8] sm:$0xff]  ;;  %v1909_v15 = vcombine.low %v14_v2, %v22_v3  ;;  %v1942_v24 = vcombine.high %v46_v53, %v54_v19  ;;  %v2022_v2 = vcombine.high %v126_v60, %v134_v61  ;;  %v150_v5 = vld [vmem:[%s3023_s1 + $0x450] sm:$0xff] }
  0x28   :  { %v1928_v18 = vcombine.high %v31_v13, %v39_v14 }
  0x2a   :  { %1574 = vmatpush1.bf16.msra.mxu0 %v2049_v20  ;;  %1615 = vmatpush1.bf16.msra.mxu1 %v2051_v21  ;;  %v47_v20 = vld [vmem:[%s3023_s1 + $0x118] sm:$0xff] }
  0x2b   :  { %1575 = vmatprep.subr.bf16.mxu0 %v2066_v22  ;;  %1616 = vmatprep.subr.bf16.mxu1 %v2068_v23  ;;  %v55_v21 = vld [vmem:[%s3023_s1 + $0x158] sm:$0xff]  ;;  %v1925_v22 = vcombine.low %v30_v10, %v38_v11  ;;  %v1927_v23 = vcombine.low %v31_v13, %v39_v14  ;;  %v2038_v10 = vcombine.high %v142_v4, %v150_v5  ;;  %v158_v13 = vld [vmem:[%s3023_s1 + $0x490] sm:$0xff] }
  0x2c   :  { %v1944_v25 = vcombine.high %v47_v20, %v55_v21  ;;  %v166_v14 = vld [vmem:[%s3023_s1 + $0x4d0] sm:$0xff] }
  0x2e   :  { %1576 = vmatpush1.bf16.msra.mxu0 %v2065_v28  ;;  %1617 = vmatpush1.bf16.msra.mxu1 %v2067_v29  ;;  %v63_v28 = vld [vmem:[%s3023_s1 + $0x198] sm:$0xff] }
  0x2f   :  { %1577 = vmatprep.subr.bf16.mxu0 %v2082_v30  ;;  %1618 = vmatprep.subr.bf16.mxu1 %v2084_v31  ;;  %v71_v29 = vld [vmem:[%s3023_s1 + $0x1d8] sm:$0xff]  ;;  %v1941_v30 = vcombine.low %v46_v53, %v54_v19  ;;  %v1943_v31 = vcombine.low %v47_v20, %v55_v21  ;;  %v2054_v53 = vcombine.high %v158_v13, %v166_v14  ;;  %v174_v20 = vld [vmem:[%s3023_s1 + $0x510] sm:$0xff] }
  0x30   :  { %v1960_v33 = vcombine.high %v63_v28, %v71_v29  ;;  %v182_v21 = vld [vmem:[%s3023_s1 + $0x550] sm:$0xff] }
  0x32   :  { %1578 = vmatpush1.bf16.msra.mxu0 %v2081_v36  ;;  %1619 = vmatpush1.bf16.msra.mxu1 %v2083_v37  ;;  %v79_v36 = vld [vmem:[%s3023_s1 + $0x218] sm:$0xff] }
  0x33   :  { %1579 = vmatprep.subr.bf16.mxu0 %v2098_v38  ;;  %1620 = vmatprep.subr.bf16.mxu1 %v2100_v39  ;;  %v87_v37 = vld [vmem:[%s3023_s1 + $0x258] sm:$0xff]  ;;  %v1957_v38 = vcombine.low %v62_v26, %v70_v27  ;;  %v1959_v39 = vcombine.low %v63_v28, %v71_v29  ;;  %v2070_v26 = vcombine.high %v174_v20, %v182_v21  ;;  %v190_v28 = vld [vmem:[%s3023_s1 + $0x590] sm:$0xff] }
  0x34   :  { %v1976_v41 = vcombine.high %v79_v36, %v87_v37  ;;  %v198_v29 = vld [vmem:[%s3023_s1 + $0x5d0] sm:$0xff] }
  0x36   :  { %1580 = vmatpush1.bf16.msra.mxu0 %v2097_v44  ;;  %1621 = vmatpush1.bf16.msra.mxu1 %v2099_v45  ;;  %v95_v44 = vld [vmem:[%s3023_s1 + $0x298] sm:$0xff] }
  0x37   :  { %1581 = vmatprep.subr.bf16.mxu0 %v2114_v46  ;;  %1622 = vmatprep.subr.bf16.mxu1 %v2116_v47  ;;  %v103_v45 = vld [vmem:[%s3023_s1 + $0x2d8] sm:$0xff]  ;;  %v1973_v46 = vcombine.low %v78_v34, %v86_v35  ;;  %v1975_v47 = vcombine.low %v79_v36, %v87_v37  ;;  %v2086_v34 = vcombine.high %v190_v28, %v198_v29  ;;  %v206_v36 = vld [vmem:[%s3023_s1 + $0x610] sm:$0xff] }
  0x38   :  { %v1992_v49 = vcombine.high %v95_v44, %v103_v45  ;;  %v214_v37 = vld [vmem:[%s3023_s1 + $0x650] sm:$0xff] }
  0x3a   :  { %1582 = vmatpush1.bf16.msra.mxu0 %v2113_v52  ;;  %1623 = vmatpush1.bf16.msra.mxu1 %v2115_v54  ;;  %v111_v52 = vld [vmem:[%s3023_s1 + $0x318] sm:$0xff] }
  0x3b   :  { %1583 = vmatprep.subr.bf16.mxu0 %v2130_v55  ;;  %1624 = vmatprep.subr.bf16.mxu1 %v2132_v56  ;;  %v119_v54 = vld [vmem:[%s3023_s1 + $0x358] sm:$0xff]  ;;  %v1989_v55 = vcombine.low %v94_v42, %v102_v43  ;;  %v1991_v56 = vcombine.low %v95_v44, %v103_v45  ;;  %v2102_v42 = vcombine.high %v206_v36, %v214_v37  ;;  %v222_v44 = vld [vmem:[%s3023_s1 + $0x690] sm:$0xff] }
  0x3c   :  { %v2008_v59 = vcombine.high %v111_v52, %v119_v54  ;;  %v230_v45 = vld [vmem:[%s3023_s1 + $0x6d0] sm:$0xff] }
  0x3e   :  { %1584 = vmatpush1.bf16.msra.mxu0 %v2129_v62  ;;  %1625 = vmatpush1.bf16.msra.mxu1 %v2131_v63  ;;  %v127_v62 = vld [vmem:[%s3023_s1 + $0x398] sm:$0xff] }
  0x3f   :  { %1585 = vmatprep.subr.bf16.mxu0 %v2146_v0  ;;  %1626 = vmatprep.subr.bf16.mxu1 %v2148_v1  ;;  %v135_v63 = vld [vmem:[%s3023_s1 + $0x3d8] sm:$0xff]  ;;  %v2005_v0 = vcombine.low %v110_v50, %v118_v51  ;;  %v2007_v1 = vcombine.low %v111_v52, %v119_v54  ;;  %v2118_v50 = vcombine.high %v222_v44, %v230_v45  ;;  %v238_v52 = vld [vmem:[%s3023_s1 + $0x710] sm:$0xff] }
  0x40   :  { %v2024_v3 = vcombine.high %v127_v62, %v135_v63  ;;  %v246_v54 = vld [vmem:[%s3023_s1 + $0x750] sm:$0xff] }
  0x42   :  { %1586 = vmatpush1.bf16.msra.mxu0 %v2145_v6  ;;  %1627 = vmatpush1.bf16.msra.mxu1 %v2147_v7  ;;  %v143_v6 = vld [vmem:[%s3023_s1 + $0x418] sm:$0xff] }
  0x43   :  { %1637 = vmatprep.subr.bf16.mxu0 %v1910_v8  ;;  %1678 = vmatprep.subr.bf16.mxu1 %v1912_v9  ;;  %v151_v7 = vld [vmem:[%s3023_s1 + $0x458] sm:$0xff]  ;;  %v2021_v8 = vcombine.low %v126_v60, %v134_v61  ;;  %v2023_v9 = vcombine.low %v127_v62, %v135_v63  ;;  %v2134_v60 = vcombine.high %v238_v52, %v246_v54  ;;  %v254_v62 = vld [vmem:[%s3023_s1 + $0x790] sm:$0xff] }
  0x44   :  { %v2040_v11 = vcombine.high %v143_v6, %v151_v7  ;;  %v262_v63 = vld [vmem:[%s3023_s1 + $0x7d0] sm:$0xff] }
  0x45   :  { %1588 = vmatmul.mubr.bf16.vlgmr.msra.gmra.mrb[0].mxu0 %v2401_v12  ;;  %1629 = vmatmul.mubr.bf16.vlgmr.msra.gmra.mrb[0].mxu1 %v2401_v12 }
  0x46   :  { %1638 = vmatpush1.bf16.msra.mxu0 %v1909_v15  ;;  %1679 = vmatpush1.bf16.msra.mxu1 %v1911_v16  ;;  %v159_v15 = vld [vmem:[%s3023_s1 + $0x498] sm:$0xff] }
  0x47   :  { %1639 = vmatprep.subr.bf16.mxu0 %v1926_v17  ;;  %1680 = vmatprep.subr.bf16.mxu1 %v1928_v18  ;;  %v167_v16 = vld [vmem:[%s3023_s1 + $0x4d8] sm:$0xff]  ;;  %v2037_v17 = vcombine.low %v142_v4, %v150_v5  ;;  %v2039_v18 = vcombine.low %v143_v6, %v151_v7  ;;  %v2150_v4 = vcombine.high %v254_v62, %v262_v63  ;;  %v16_v6 = vld [vmem:[%s3023_s1 + $0x20] sm:$0xff] }
  0x48   :  { %1669 = vmatprep.mubr.bf16.mxu0 %v2275_v57  ;;  %1710 = vmatprep.mubr.bf16.mxu1 %v2275_v57  ;;  %v2056_v19 = vcombine.high %v159_v15, %v167_v16  ;;  %v24_v7 = vld [vmem:[%s3023_s1 + $0x60] sm:$0xff] }
  0x4a   :  { %1640 = vmatpush1.bf16.msra.mxu0 %v1925_v22  ;;  %1681 = vmatpush1.bf16.msra.mxu1 %v1927_v23  ;;  %v175_v22 = vld [vmem:[%s3023_s1 + $0x518] sm:$0xff] }
  0x4b   :  { %1641 = vmatprep.subr.bf16.mxu0 %v1942_v24  ;;  %1682 = vmatprep.subr.bf16.mxu1 %v1944_v25  ;;  %v183_v23 = vld [vmem:[%s3023_s1 + $0x558] sm:$0xff]  ;;  %v2053_v24 = vcombine.low %v158_v13, %v166_v14  ;;  %v2055_v25 = vcombine.low %v159_v15, %v167_v16  ;;  %v1914_v13 = vcombine.high %v16_v6, %v24_v7  ;;  %v32_v15 = vld [vmem:[%s3023_s1 + $0xa0] sm:$0xff] }
  0x4c   :  { %v2072_v27 = vcombine.high %v175_v22, %v183_v23  ;;  %v40_v16 = vld [vmem:[%s3023_s1 + $0xe0] sm:$0xff] }
  0x4e   :  { %1642 = vmatpush1.bf16.msra.mxu0 %v1941_v30  ;;  %1683 = vmatpush1.bf16.msra.mxu1 %v1943_v31  ;;  %v191_v30 = vld [vmem:[%s3023_s1 + $0x598] sm:$0xff] }
  0x4f   :  { %1643 = vmatprep.subr.bf16.mxu0 %v1958_v32  ;;  %1684 = vmatprep.subr.bf16.mxu1 %v1960_v33  ;;  %v199_v31 = vld [vmem:[%s3023_s1 + $0x5d8] sm:$0xff]  ;;  %v2069_v32 = vcombine.low %v174_v20, %v182_v21  ;;  %v2071_v33 = vcombine.low %v175_v22, %v183_v23  ;;  %v1930_v20 = vcombine.high %v32_v15, %v40_v16  ;;  %v48_v22 = vld [vmem:[%s3023_s1 + $0x120] sm:$0xff] }
  0x50   :  { %v2088_v35 = vcombine.high %v191_v30, %v199_v31  ;;  %v56_v23 = vld [vmem:[%s3023_s1 + $0x160] sm:$0xff] }
  0x52   :  { %1644 = vmatpush1.bf16.msra.mxu0 %v1957_v38  ;;  %1685 = vmatpush1.bf16.msra.mxu1 %v1959_v39  ;;  %v207_v38 = vld [vmem:[%s3023_s1 + $0x618] sm:$0xff] }
  0x53   :  { %1645 = vmatprep.subr.bf16.mxu0 %v1974_v40  ;;  %1686 = vmatprep.subr.bf16.mxu1 %v1976_v41  ;;  %v215_v39 = vld [vmem:[%s3023_s1 + $0x658] sm:$0xff]  ;;  %v2085_v40 = vcombine.low %v190_v28, %v198_v29  ;;  %v2087_v41 = vcombine.low %v191_v30, %v199_v31  ;;  %v1946_v28 = vcombine.high %v48_v22, %v56_v23  ;;  %v64_v30 = vld [vmem:[%s3023_s1 + $0x1a0] sm:$0xff] }
  0x54   :  { %v2104_v43 = vcombine.high %v207_v38, %v215_v39  ;;  %v72_v31 = vld [vmem:[%s3023_s1 + $0x1e0] sm:$0xff] }
  0x56   :  { %1646 = vmatpush1.bf16.msra.mxu0 %v1973_v46  ;;  %1687 = vmatpush1.bf16.msra.mxu1 %v1975_v47  ;;  %v223_v46 = vld [vmem:[%s3023_s1 + $0x698] sm:$0xff] }
  0x57   :  { %1647 = vmatprep.subr.bf16.mxu0 %v1990_v48  ;;  %1688 = vmatprep.subr.bf16.mxu1 %v1992_v49  ;;  %v231_v47 = vld [vmem:[%s3023_s1 + $0x6d8] sm:$0xff]  ;;  %v2101_v48 = vcombine.low %v206_v36, %v214_v37  ;;  %v2103_v49 = vcombine.low %v207_v38, %v215_v39  ;;  %v1962_v36 = vcombine.high %v64_v30, %v72_v31  ;;  %v80_v38 = vld [vmem:[%s3023_s1 + $0x220] sm:$0xff] }
  0x58   :  { %v2120_v51 = vcombine.high %v223_v46, %v231_v47  ;;  %v88_v39 = vld [vmem:[%s3023_s1 + $0x260] sm:$0xff] }
  0x5a   :  { %1648 = vmatpush1.bf16.msra.mxu0 %v1989_v55  ;;  %1689 = vmatpush1.bf16.msra.mxu1 %v1991_v56  ;;  %v239_v55 = vld [vmem:[%s3023_s1 + $0x718] sm:$0xff] }
  0x5b   :  { %1649 = vmatprep.subr.bf16.mxu0 %v2006_v58  ;;  %1690 = vmatprep.subr.bf16.mxu1 %v2008_v59  ;;  %v247_v56 = vld [vmem:[%s3023_s1 + $0x758] sm:$0xff]  ;;  %v2117_v58 = vcombine.low %v222_v44, %v230_v45  ;;  %v2119_v59 = vcombine.low %v223_v46, %v231_v47  ;;  %v1978_v44 = vcombine.high %v80_v38, %v88_v39  ;;  %v96_v46 = vld [vmem:[%s3023_s1 + $0x2a0] sm:$0xff] }
  0x5c   :  { %v2136_v61 = vcombine.high %v239_v55, %v247_v56  ;;  %v104_v47 = vld [vmem:[%s3023_s1 + $0x2e0] sm:$0xff] }
  0x5e   :  { %1650 = vmatpush1.bf16.msra.mxu0 %v2005_v0  ;;  %1691 = vmatpush1.bf16.msra.mxu1 %v2007_v1  ;;  %v255_v0 = vld [vmem:[%s3023_s1 + $0x798] sm:$0xff] }
  0x5f   :  { %1651 = vmatprep.subr.bf16.mxu0 %v2022_v2  ;;  %1692 = vmatprep.subr.bf16.mxu1 %v2024_v3  ;;  %v263_v1 = vld [vmem:[%s3023_s1 + $0x7d8] sm:$0xff]  ;;  %v2133_v2 = vcombine.low %v238_v52, %v246_v54  ;;  %v2135_v3 = vcombine.low %v239_v55, %v247_v56  ;;  %v1994_v52 = vcombine.high %v96_v46, %v104_v47  ;;  %v112_v55 = vld [vmem:[%s3023_s1 + $0x320] sm:$0xff] }
  0x60   :  { %v2152_v5 = vcombine.high %v255_v0, %v263_v1  ;;  %v120_v56 = vld [vmem:[%s3023_s1 + $0x360] sm:$0xff] }
  0x62   :  { %1652 = vmatpush1.bf16.msra.mxu0 %v2021_v8  ;;  %1693 = vmatpush1.bf16.msra.mxu1 %v2023_v9  ;;  %v17_v8 = vld [vmem:[%s3023_s1 + $0x28] sm:$0xff] }
  0x63   :  { %1653 = vmatprep.subr.bf16.mxu0 %v2038_v10  ;;  %1694 = vmatprep.subr.bf16.mxu1 %v2040_v11  ;;  %v25_v9 = vld [vmem:[%s3023_s1 + $0x68] sm:$0xff]  ;;  %v2149_v10 = vcombine.low %v254_v62, %v262_v63  ;;  %v2151_v11 = vcombine.low %v255_v0, %v263_v1  ;;  %v2010_v62 = vcombine.high %v112_v55, %v120_v56  ;;  %v128_v0 = vld [vmem:[%s3023_s1 + $0x3a0] sm:$0xff] }
  0x64   :  { %v1916_v14 = vcombine.high %v17_v8, %v25_v9  ;;  %v136_v1 = vld [vmem:[%s3023_s1 + $0x3e0] sm:$0xff] }
  0x66   :  { %1654 = vmatpush1.bf16.msra.mxu0 %v2037_v17  ;;  %1695 = vmatpush1.bf16.msra.mxu1 %v2039_v18  ;;  %v33_v17 = vld [vmem:[%s3023_s1 + $0xa8] sm:$0xff] }
  0x67   :  { %1655 = vmatprep.subr.bf16.mxu0 %v2054_v53  ;;  %1696 = vmatprep.subr.bf16.mxu1 %v2056_v19  ;;  %v41_v18 = vld [vmem:[%s3023_s1 + $0xe8] sm:$0xff]  ;;  %v1913_v53 = vcombine.low %v16_v6, %v24_v7  ;;  %v1915_v19 = vcombine.low %v17_v8, %v25_v9  ;;  %v2026_v6 = vcombine.high %v128_v0, %v136_v1  ;;  %v144_v8 = vld [vmem:[%s3023_s1 + $0x420] sm:$0xff] }
  0x68   :  { %v1932_v21 = vcombine.high %v33_v17, %v41_v18  ;;  %v152_v9 = vld [vmem:[%s3023_s1 + $0x460] sm:$0xff] }
  0x6a   :  { %1656 = vmatpush1.bf16.msra.mxu0 %v2053_v24  ;;  %1697 = vmatpush1.bf16.msra.mxu1 %v2055_v25  ;;  %v49_v24 = vld [vmem:[%s3023_s1 + $0x128] sm:$0xff] }
  0x6b   :  { %1657 = vmatprep.subr.bf16.mxu0 %v2070_v26  ;;  %1698 = vmatprep.subr.bf16.mxu1 %v2072_v27  ;;  %v57_v25 = vld [vmem:[%s3023_s1 + $0x168] sm:$0xff]  ;;  %v1929_v26 = vcombine.low %v32_v15, %v40_v16  ;;  %v1931_v27 = vcombine.low %v33_v17, %v41_v18  ;;  %v2042_v15 = vcombine.high %v144_v8, %v152_v9  ;;  %v160_v17 = vld [vmem:[%s3023_s1 + $0x4a0] sm:$0xff] }
  0x6c   :  { %v1948_v29 = vcombine.high %v49_v24, %v57_v25  ;;  %v168_v18 = vld [vmem:[%s3023_s1 + $0x4e0] sm:$0xff] }
  0x6e   :  { %1658 = vmatpush1.bf16.msra.mxu0 %v2069_v32  ;;  %1699 = vmatpush1.bf16.msra.mxu1 %v2071_v33  ;;  %v65_v32 = vld [vmem:[%s3023_s1 + $0x1a8] sm:$0xff] }
  0x6f   :  { %1659 = vmatprep.subr.bf16.mxu0 %v2086_v34  ;;  %1700 = vmatprep.subr.bf16.mxu1 %v2088_v35  ;;  %v73_v33 = vld [vmem:[%s3023_s1 + $0x1e8] sm:$0xff]  ;;  %v1945_v34 = vcombine.low %v48_v22, %v56_v23  ;;  %v1947_v35 = vcombine.low %v49_v24, %v57_v25  ;;  %v2058_v22 = vcombine.high %v160_v17, %v168_v18  ;;  %v176_v24 = vld [vmem:[%s3023_s1 + $0x520] sm:$0xff] }
  0x70   :  { %v1964_v37 = vcombine.high %v65_v32, %v73_v33  ;;  %v184_v25 = vld [vmem:[%s3023_s1 + $0x560] sm:$0xff] }
  0x72   :  { %1660 = vmatpush1.bf16.msra.mxu0 %v2085_v40  ;;  %1701 = vmatpush1.bf16.msra.mxu1 %v2087_v41  ;;  %v81_v40 = vld [vmem:[%s3023_s1 + $0x228] sm:$0xff] }
  0x73   :  { %1661 = vmatprep.subr.bf16.mxu0 %v2102_v42  ;;  %1702 = vmatprep.subr.bf16.mxu1 %v2104_v43  ;;  %v89_v41 = vld [vmem:[%s3023_s1 + $0x268] sm:$0xff]  ;;  %v1961_v42 = vcombine.low %v64_v30, %v72_v31  ;;  %v1963_v43 = vcombine.low %v65_v32, %v73_v33  ;;  %v2074_v30 = vcombine.high %v176_v24, %v184_v25  ;;  %v192_v32 = vld [vmem:[%s3023_s1 + $0x5a0] sm:$0xff] }
  0x74   :  { %v1980_v45 = vcombine.high %v81_v40, %v89_v41  ;;  %v200_v33 = vld [vmem:[%s3023_s1 + $0x5e0] sm:$0xff] }
  0x76   :  { %1662 = vmatpush1.bf16.msra.mxu0 %v2101_v48  ;;  %1703 = vmatpush1.bf16.msra.mxu1 %v2103_v49  ;;  %v97_v48 = vld [vmem:[%s3023_s1 + $0x2a8] sm:$0xff] }
  0x77   :  { %1663 = vmatprep.subr.bf16.mxu0 %v2118_v50  ;;  %1704 = vmatprep.subr.bf16.mxu1 %v2120_v51  ;;  %v105_v49 = vld [vmem:[%s3023_s1 + $0x2e8] sm:$0xff]  ;;  %v1977_v50 = vcombine.low %v80_v38, %v88_v39  ;;  %v1979_v51 = vcombine.low %v81_v40, %v89_v41  ;;  %v2090_v38 = vcombine.high %v192_v32, %v200_v33  ;;  %v208_v40 = vld [vmem:[%s3023_s1 + $0x620] sm:$0xff] }
  0x78   :  { %v1996_v54 = vcombine.high %v97_v48, %v105_v49  ;;  %v216_v41 = vld [vmem:[%s3023_s1 + $0x660] sm:$0xff] }
  0x7a   :  { %1664 = vmatpush1.bf16.msra.mxu0 %v2117_v58  ;;  %1705 = vmatpush1.bf16.msra.mxu1 %v2119_v59  ;;  %v113_v58 = vld [vmem:[%s3023_s1 + $0x328] sm:$0xff] }
  0x7b   :  { %1665 = vmatprep.subr.bf16.mxu0 %v2134_v60  ;;  %1706 = vmatprep.subr.bf16.mxu1 %v2136_v61  ;;  %v121_v59 = vld [vmem:[%s3023_s1 + $0x368] sm:$0xff]  ;;  %v1993_v60 = vcombine.low %v96_v46, %v104_v47  ;;  %v1995_v61 = vcombine.low %v97_v48, %v105_v49  ;;  %v2106_v46 = vcombine.high %v208_v40, %v216_v41  ;;  %v224_v48 = vld [vmem:[%s3023_s1 + $0x6a0] sm:$0xff] }
  0x7c   :  { %v2012_v63 = vcombine.high %v113_v58, %v121_v59  ;;  %v232_v49 = vld [vmem:[%s3023_s1 + $0x6e0] sm:$0xff] }
  0x7e   :  { %1666 = vmatpush1.bf16.msra.mxu0 %v2133_v2  ;;  %1707 = vmatpush1.bf16.msra.mxu1 %v2135_v3  ;;  %v129_v2 = vld [vmem:[%s3023_s1 + $0x3a8] sm:$0xff] }
  0x7f   :  { %1667 = vmatprep.subr.bf16.mxu0 %v2150_v4  ;;  %1708 = vmatprep.subr.bf16.mxu1 %v2152_v5  ;;  %v137_v3 = vld [vmem:[%s3023_s1 + $0x3e8] sm:$0xff]  ;;  %v2009_v4 = vcombine.low %v112_v55, %v120_v56  ;;  %v2011_v5 = vcombine.low %v113_v58, %v121_v59  ;;  %v2122_v55 = vcombine.high %v224_v48, %v232_v49  ;;  %v240_v58 = vld [vmem:[%s3023_s1 + $0x720] sm:$0xff] }
  0x80   :  { %v2028_v7 = vcombine.high %v129_v2, %v137_v3  ;;  %v248_v59 = vld [vmem:[%s3023_s1 + $0x760] sm:$0xff] }
  0x82   :  { %1668 = vmatpush1.bf16.msra.mxu0 %v2149_v10  ;;  %1709 = vmatpush1.bf16.msra.mxu1 %v2151_v11  ;;  %v145_v10 = vld [vmem:[%s3023_s1 + $0x428] sm:$0xff] }
  0x83   :  { %1719 = vmatprep.subr.bf16.mxu0 %v1914_v13  ;;  %1760 = vmatprep.subr.bf16.mxu1 %v1916_v14  ;;  %v153_v11 = vld [vmem:[%s3023_s1 + $0x468] sm:$0xff]  ;;  %v2025_v13 = vcombine.low %v128_v0, %v136_v1  ;;  %v2027_v14 = vcombine.low %v129_v2, %v137_v3  ;;  %v2138_v0 = vcombine.high %v240_v58, %v248_v59  ;;  %v256_v2 = vld [vmem:[%s3023_s1 + $0x7a0] sm:$0xff] }
  0x84   :  { %v2044_v16 = vcombine.high %v145_v10, %v153_v11  ;;  %v264_v3 = vld [vmem:[%s3023_s1 + $0x7e0] sm:$0xff] }
  0x85   :  { %1670 = vmatmul.mubr.bf16.vlgmr.msra.gmra.mrb[4].mxu0 %v2401_v12  ;;  %1711 = vmatmul.mubr.bf16.vlgmr.msra.gmra.mrb[4].mxu1 %v2401_v12 }
  0x86   :  { %1720 = vmatpush1.bf16.msra.mxu0 %v1913_v53  ;;  %1761 = vmatpush1.bf16.msra.mxu1 %v1915_v19  ;;  %v161_v53 = vld [vmem:[%s3023_s1 + $0x4a8] sm:$0xff] }
  0x87   :  { %1721 = vmatprep.subr.bf16.mxu0 %v1930_v20  ;;  %1762 = vmatprep.subr.bf16.mxu1 %v1932_v21  ;;  %v169_v19 = vld [vmem:[%s3023_s1 + $0x4e8] sm:$0xff]  ;;  %v2041_v20 = vcombine.low %v144_v8, %v152_v9  ;;  %v2043_v21 = vcombine.low %v145_v10, %v153_v11  ;;  %v2154_v8 = vcombine.high %v256_v2, %v264_v3  ;;  %v18_v10 = vld [vmem:[%s3023_s1 + $0x30] sm:$0xff] }
  0x88   :  { %1751 = vmatprep.mubr.bf16.mxu0 %v2275_v57  ;;  %1792 = vmatprep.mubr.bf16.mxu1 %v2275_v57  ;;  %v2060_v23 = vcombine.high %v161_v53, %v169_v19  ;;  %v26_v11 = vld [vmem:[%s3023_s1 + $0x70] sm:$0xff] }
  0x8a   :  { %1722 = vmatpush1.bf16.msra.mxu0 %v1929_v26  ;;  %1763 = vmatpush1.bf16.msra.mxu1 %v1931_v27  ;;  %v177_v26 = vld [vmem:[%s3023_s1 + $0x528] sm:$0xff] }
  0x8b   :  { %1723 = vmatprep.subr.bf16.mxu0 %v1946_v28  ;;  %1764 = vmatprep.subr.bf16.mxu1 %v1948_v29  ;;  %v185_v27 = vld [vmem:[%s3023_s1 + $0x568] sm:$0xff]  ;;  %v2057_v28 = vcombine.low %v160_v17, %v168_v18  ;;  %v2059_v29 = vcombine.low %v161_v53, %v169_v19  ;;  %v1918_v17 = vcombine.high %v18_v10, %v26_v11  ;;  %v34_v53 = vld [vmem:[%s3023_s1 + $0xb0] sm:$0xff] }
  0x8c   :  { %v2076_v31 = vcombine.high %v177_v26, %v185_v27  ;;  %v42_v19 = vld [vmem:[%s3023_s1 + $0xf0] sm:$0xff] }
  0x8e   :  { %1724 = vmatpush1.bf16.msra.mxu0 %v1945_v34  ;;  %1765 = vmatpush1.bf16.msra.mxu1 %v1947_v35  ;;  %v193_v34 = vld [vmem:[%s3023_s1 + $0x5a8] sm:$0xff] }
  0x8f   :  { %1725 = vmatprep.subr.bf16.mxu0 %v1962_v36  ;;  %1766 = vmatprep.subr.bf16.mxu1 %v1964_v37  ;;  %v201_v35 = vld [vmem:[%s3023_s1 + $0x5e8] sm:$0xff]  ;;  %v2073_v36 = vcombine.low %v176_v24, %v184_v25  ;;  %v2075_v37 = vcombine.low %v177_v26, %v185_v27  ;;  %v1934_v24 = vcombine.high %v34_v53, %v42_v19  ;;  %v50_v26 = vld [vmem:[%s3023_s1 + $0x130] sm:$0xff] }
  0x90   :  { %v2092_v39 = vcombine.high %v193_v34, %v201_v35  ;;  %v58_v27 = vld [vmem:[%s3023_s1 + $0x170] sm:$0xff] }
  0x92   :  { %1726 = vmatpush1.bf16.msra.mxu0 %v1961_v42  ;;  %1767 = vmatpush1.bf16.msra.mxu1 %v1963_v43  ;;  %v209_v42 = vld [vmem:[%s3023_s1 + $0x628] sm:$0xff] }
  0x93   :  { %1727 = vmatprep.subr.bf16.mxu0 %v1978_v44  ;;  %1768 = vmatprep.subr.bf16.mxu1 %v1980_v45  ;;  %v217_v43 = vld [vmem:[%s3023_s1 + $0x668] sm:$0xff]  ;;  %v2089_v44 = vcombine.low %v192_v32, %v200_v33  ;;  %v2091_v45 = vcombine.low %v193_v34, %v201_v35  ;;  %v1950_v32 = vcombine.high %v50_v26, %v58_v27  ;;  %v66_v34 = vld [vmem:[%s3023_s1 + $0x1b0] sm:$0xff] }
  0x94   :  { %v2108_v47 = vcombine.high %v209_v42, %v217_v43  ;;  %v74_v35 = vld [vmem:[%s3023_s1 + $0x1f0] sm:$0xff] }
  0x96   :  { %1728 = vmatpush1.bf16.msra.mxu0 %v1977_v50  ;;  %1769 = vmatpush1.bf16.msra.mxu1 %v1979_v51  ;;  %v225_v50 = vld [vmem:[%s3023_s1 + $0x6a8] sm:$0xff] }
  0x97   :  { %1729 = vmatprep.subr.bf16.mxu0 %v1994_v52  ;;  %1770 = vmatprep.subr.bf16.mxu1 %v1996_v54  ;;  %v233_v51 = vld [vmem:[%s3023_s1 + $0x6e8] sm:$0xff]  ;;  %v2105_v52 = vcombine.low %v208_v40, %v216_v41  ;;  %v2107_v54 = vcombine.low %v209_v42, %v217_v43  ;;  %v1966_v40 = vcombine.high %v66_v34, %v74_v35  ;;  %v82_v42 = vld [vmem:[%s3023_s1 + $0x230] sm:$0xff] }
  0x98   :  { %v2124_v56 = vcombine.high %v225_v50, %v233_v51  ;;  %v90_v43 = vld [vmem:[%s3023_s1 + $0x270] sm:$0xff] }
  0x9a   :  { %1730 = vmatpush1.bf16.msra.mxu0 %v1993_v60  ;;  %1771 = vmatpush1.bf16.msra.mxu1 %v1995_v61  ;;  %v241_v60 = vld [vmem:[%s3023_s1 + $0x728] sm:$0xff] }
  0x9b   :  { %1731 = vmatprep.subr.bf16.mxu0 %v2010_v62  ;;  %1772 = vmatprep.subr.bf16.mxu1 %v2012_v63  ;;  %v249_v61 = vld [vmem:[%s3023_s1 + $0x768] sm:$0xff]  ;;  %v2121_v62 = vcombine.low %v224_v48, %v232_v49  ;;  %v2123_v63 = vcombine.low %v225_v50, %v233_v51  ;;  %v98_v49 = vld [vmem:[%s3023_s1 + $0x2b0] sm:$0xff]  ;;  %v99_v51 = vld [vmem:[%s3023_s1 + $0x2b8] sm:$0xff] }
  0x9c   :  { %v2140_v1 = vcombine.high %v241_v60, %v249_v61  ;;  %v106_v50 = vld [vmem:[%s3023_s1 + $0x2f0] sm:$0xff] }
  0x9e   :  { %1732 = vmatpush1.bf16.msra.mxu0 %v2009_v4  ;;  %1773 = vmatpush1.bf16.msra.mxu1 %v2011_v5  ;;  %v257_v4 = vld [vmem:[%s3023_s1 + $0x7a8] sm:$0xff] }
  0x9f   :  { %1733 = vmatprep.subr.bf16.mxu0 %v2026_v6  ;;  %1774 = vmatprep.subr.bf16.mxu1 %v2028_v7  ;;  %v265_v5 = vld [vmem:[%s3023_s1 + $0x7e8] sm:$0xff]  ;;  %v2137_v6 = vcombine.low %v240_v58, %v248_v59  ;;  %v2139_v7 = vcombine.low %v241_v60, %v249_v61  ;;  %v114_v59 = vld [vmem:[%s3023_s1 + $0x330] sm:$0xff]  ;;  %v115_v61 = vld [vmem:[%s3023_s1 + $0x338] sm:$0xff] }
  0xa0   :  { %v2156_v9 = vcombine.high %v257_v4, %v265_v5  ;;  %v122_v60 = vld [vmem:[%s3023_s1 + $0x370] sm:$0xff] }
  0xa2   :  { %1734 = vmatpush1.bf16.msra.mxu0 %v2025_v13  ;;  %1775 = vmatpush1.bf16.msra.mxu1 %v2027_v14  ;;  %v19_v13 = vld [vmem:[%s3023_s1 + $0x38] sm:$0xff] }
  0xa3   :  { %1735 = vmatprep.subr.bf16.mxu0 %v2042_v15  ;;  %1776 = vmatprep.subr.bf16.mxu1 %v2044_v16  ;;  %v27_v14 = vld [vmem:[%s3023_s1 + $0x78] sm:$0xff]  ;;  %v2153_v15 = vcombine.low %v256_v2, %v264_v3  ;;  %v2155_v16 = vcombine.low %v257_v4, %v265_v5  ;;  %v130_v3 = vld [vmem:[%s3023_s1 + $0x3b0] sm:$0xff] }
  0xa4   :  { %v1920_v18 = vcombine.high %v19_v13, %v27_v14  ;;  %v138_v4 = vld [vmem:[%s3023_s1 + $0x3f0] sm:$0xff]  ;;  %v131_v5 = vld [vmem:[%s3023_s1 + $0x3b8] sm:$0xff] }
  0xa6   :  { %1736 = vmatpush1.bf16.msra.mxu0 %v2041_v20  ;;  %1777 = vmatpush1.bf16.msra.mxu1 %v2043_v21  ;;  %v35_v20 = vld [vmem:[%s3023_s1 + $0xb8] sm:$0xff] }
  0xa7   :  { %1737 = vmatprep.subr.bf16.mxu0 %v2058_v22  ;;  %1778 = vmatprep.subr.bf16.mxu1 %v2060_v23  ;;  %v43_v21 = vld [vmem:[%s3023_s1 + $0xf8] sm:$0xff]  ;;  %v1917_v22 = vcombine.low %v18_v10, %v26_v11  ;;  %v1919_v23 = vcombine.low %v19_v13, %v27_v14  ;;  %v146_v11 = vld [vmem:[%s3023_s1 + $0x430] sm:$0xff] }
  0xa8   :  { %v1936_v25 = vcombine.high %v35_v20, %v43_v21  ;;  %v154_v13 = vld [vmem:[%s3023_s1 + $0x470] sm:$0xff]  ;;  %v147_v14 = vld [vmem:[%s3023_s1 + $0x438] sm:$0xff] }
  0xaa   :  { %1738 = vmatpush1.bf16.msra.mxu0 %v2057_v28  ;;  %1779 = vmatpush1.bf16.msra.mxu1 %v2059_v29  ;;  %v51_v28 = vld [vmem:[%s3023_s1 + $0x138] sm:$0xff] }
  0xab   :  { %1739 = vmatprep.subr.bf16.mxu0 %v2074_v30  ;;  %1780 = vmatprep.subr.bf16.mxu1 %v2076_v31  ;;  %v59_v29 = vld [vmem:[%s3023_s1 + $0x178] sm:$0xff]  ;;  %v1933_v30 = vcombine.low %v34_v53, %v42_v19  ;;  %v1935_v31 = vcombine.low %v35_v20, %v43_v21  ;;  %v162_v19 = vld [vmem:[%s3023_s1 + $0x4b0] sm:$0xff] }
  0xac   :  { %v1952_v33 = vcombine.high %v51_v28, %v59_v29  ;;  %v170_v20 = vld [vmem:[%s3023_s1 + $0x4f0] sm:$0xff]  ;;  %v163_v21 = vld [vmem:[%s3023_s1 + $0x4b8] sm:$0xff] }
  0xae   :  { %1740 = vmatpush1.bf16.msra.mxu0 %v2073_v36  ;;  %1781 = vmatpush1.bf16.msra.mxu1 %v2075_v37  ;;  %v67_v36 = vld [vmem:[%s3023_s1 + $0x1b8] sm:$0xff] }
  0xaf   :  { %1741 = vmatprep.subr.bf16.mxu0 %v2090_v38  ;;  %1782 = vmatprep.subr.bf16.mxu1 %v2092_v39  ;;  %v75_v37 = vld [vmem:[%s3023_s1 + $0x1f8] sm:$0xff]  ;;  %v1949_v38 = vcombine.low %v50_v26, %v58_v27  ;;  %v1951_v39 = vcombine.low %v51_v28, %v59_v29  ;;  %v178_v27 = vld [vmem:[%s3023_s1 + $0x530] sm:$0xff] }
  0xb0   :  { %v1968_v41 = vcombine.high %v67_v36, %v75_v37  ;;  %v186_v28 = vld [vmem:[%s3023_s1 + $0x570] sm:$0xff]  ;;  %v179_v29 = vld [vmem:[%s3023_s1 + $0x538] sm:$0xff] }
  0xb2   :  { %1742 = vmatpush1.bf16.msra.mxu0 %v2089_v44  ;;  %1783 = vmatpush1.bf16.msra.mxu1 %v2091_v45  ;;  %v91_v44 = vld [vmem:[%s3023_s1 + $0x278] sm:$0xff]  ;;  %v1965_v45 = vcombine.low %v66_v34, %v74_v35  ;;  %v194_v35 = vld [vmem:[%s3023_s1 + $0x5b0] sm:$0xff] }
  0xb3   :  { %1743 = vmatprep.subr.bf16.mxu0 %v2106_v46  ;;  %1784 = vmatprep.subr.bf16.mxu1 %v2108_v47  ;;  %v1967_v46 = vcombine.low %v67_v36, %v75_v37  ;;  %v1982_v47 = vcombine.high %v82_v42, %v90_v43  ;;  %v202_v36 = vld [vmem:[%s3023_s1 + $0x5f0] sm:$0xff]  ;;  %v195_v37 = vld [vmem:[%s3023_s1 + $0x5b8] sm:$0xff] }
  0xb6   :  { %1744 = vmatpush1.bf16.msra.mxu0 %v2105_v52  ;;  %1785 = vmatpush1.bf16.msra.mxu1 %v2107_v54  ;;  %v107_v52 = vld [vmem:[%s3023_s1 + $0x2f8] sm:$0xff]  ;;  %v1981_v54 = vcombine.low %v82_v42, %v90_v43  ;;  %v210_v43 = vld [vmem:[%s3023_s1 + $0x630] sm:$0xff] }
  0xb7   :  { %1745 = vmatprep.subr.bf16.mxu0 %v2122_v55  ;;  %1786 = vmatprep.subr.bf16.mxu1 %v2124_v56  ;;  %v1998_v56 = vcombine.high %v98_v49, %v106_v50  ;;  %v2000_v58 = vcombine.high %v99_v51, %v107_v52 }
  0xba   :  { %1746 = vmatpush1.bf16.msra.mxu0 %v2121_v62  ;;  %1787 = vmatpush1.bf16.msra.mxu1 %v2123_v63  ;;  %v123_v62 = vld [vmem:[%s3023_s1 + $0x378] sm:$0xff]  ;;  %v1997_v63 = vcombine.low %v98_v49, %v106_v50  ;;  %v226_v50 = vld [vmem:[%s3023_s1 + $0x6b0] sm:$0xff] }
  0xbb   :  { %1747 = vmatprep.subr.bf16.mxu0 %v2138_v0  ;;  %1788 = vmatprep.subr.bf16.mxu1 %v2140_v1  ;;  %v1999_v0 = vcombine.low %v99_v51, %v107_v52  ;;  %v2014_v1 = vcombine.high %v114_v59, %v122_v60  ;;  %v2016_v2 = vcombine.high %v115_v61, %v123_v62  ;;  %v234_v51 = vld [vmem:[%s3023_s1 + $0x6f0] sm:$0xff]  ;;  %v227_v52 = vld [vmem:[%s3023_s1 + $0x6b8] sm:$0xff] }
  0xbe   :  { %1748 = vmatpush1.bf16.msra.mxu0 %v2137_v6  ;;  %1789 = vmatpush1.bf16.msra.mxu1 %v2139_v7  ;;  %v139_v6 = vld [vmem:[%s3023_s1 + $0x3f8] sm:$0xff]  ;;  %v2013_v7 = vcombine.low %v114_v59, %v122_v60  ;;  %v242_v60 = vld [vmem:[%s3023_s1 + $0x730] sm:$0xff] }
  0xbf   :  { %1749 = vmatprep.subr.bf16.mxu0 %v2154_v8  ;;  %1790 = vmatprep.subr.bf16.mxu1 %v2156_v9  ;;  %v2015_v8 = vcombine.low %v115_v61, %v123_v62  ;;  %v2030_v9 = vcombine.high %v130_v3, %v138_v4  ;;  %v2032_v10 = vcombine.high %v131_v5, %v139_v6  ;;  %v250_v61 = vld [vmem:[%s3023_s1 + $0x770] sm:$0xff]  ;;  %v243_v62 = vld [vmem:[%s3023_s1 + $0x738] sm:$0xff] }
  0xc2   :  { %1750 = vmatpush1.bf16.msra.mxu0 %v2153_v15  ;;  %1791 = vmatpush1.bf16.msra.mxu1 %v2155_v16  ;;  %v155_v15 = vld [vmem:[%s3023_s1 + $0x478] sm:$0xff]  ;;  %v2029_v16 = vcombine.low %v130_v3, %v138_v4  ;;  %v258_v4 = vld [vmem:[%s3023_s1 + $0x7b0] sm:$0xff] }
  0xc3   :  { %1801 = vmatprep.subr.bf16.mxu0 %v1918_v17  ;;  %1842 = vmatprep.subr.bf16.mxu1 %v1920_v18  ;;  %v2031_v17 = vcombine.low %v131_v5, %v139_v6  ;;  %v2046_v18 = vcombine.high %v146_v11, %v154_v13  ;;  %v2048_v53 = vcombine.high %v147_v14, %v155_v15  ;;  %v266_v5 = vld [vmem:[%s3023_s1 + $0x7f0] sm:$0xff]  ;;  %v259_v6 = vld [vmem:[%s3023_s1 + $0x7b8] sm:$0xff] }
  0xc5   :  { %1752 = vmatmul.mubr.bf16.vlgmr.msra.gmra.mrb[8].mxu0 %v2401_v12  ;;  %1793 = vmatmul.mubr.bf16.vlgmr.msra.gmra.mrb[8].mxu1 %v2401_v12 }
  0xc6   :  { %1802 = vmatpush1.bf16.msra.mxu0 %v1917_v22  ;;  %1843 = vmatpush1.bf16.msra.mxu1 %v1919_v23  ;;  %v171_v22 = vld [vmem:[%s3023_s1 + $0x4f8] sm:$0xff]  ;;  %v2045_v23 = vcombine.low %v146_v11, %v154_v13  ;;  %v2157_v13 = vcombine.low %v258_v4, %v266_v5 }
  0xc7   :  { %1803 = vmatprep.subr.bf16.mxu0 %v1934_v24  ;;  %1844 = vmatprep.subr.bf16.mxu1 %v1936_v25  ;;  %v2047_v24 = vcombine.low %v147_v14, %v155_v15  ;;  %v2062_v25 = vcombine.high %v162_v19, %v170_v20  ;;  %v2064_v26 = vcombine.high %v163_v21, %v171_v22 }
  0xc8   :  { %1833 = vmatprep.mubr.bf16.mxu0 %v2275_v57  ;;  %1874 = vmatprep.mubr.bf16.mxu1 %v2275_v57  ;;  %v83_v57 = vld [vmem:[%s3023_s1 + $0x238] sm:$0xff] }
  0xc9   :  { %v1984_v48 = vcombine.high %v83_v57, %v91_v44  ;;  %v1983_v55 = vcombine.low %v83_v57, %v91_v44  ;;  %v218_v57 = vld [vmem:[%s3023_s1 + $0x670] sm:$0xff]  ;;  %v211_v44 = vld [vmem:[%s3023_s1 + $0x638] sm:$0xff] }
  0xca   :  { %1804 = vmatpush1.bf16.msra.mxu0 %v1933_v30  ;;  %1845 = vmatpush1.bf16.msra.mxu1 %v1935_v31  ;;  %v187_v30 = vld [vmem:[%s3023_s1 + $0x578] sm:$0xff]  ;;  %v2061_v31 = vcombine.low %v162_v19, %v170_v20 }
  0xcb   :  { %1805 = vmatprep.subr.bf16.mxu0 %v1950_v32  ;;  %1846 = vmatprep.subr.bf16.mxu1 %v1952_v33  ;;  %v2063_v32 = vcombine.low %v163_v21, %v171_v22  ;;  %v2078_v33 = vcombine.high %v178_v27, %v186_v28  ;;  %v2080_v34 = vcombine.high %v179_v29, %v187_v30 }
  0xce   :  { %1806 = vmatpush1.bf16.msra.mxu0 %v1949_v38  ;;  %1847 = vmatpush1.bf16.msra.mxu1 %v1951_v39  ;;  %v203_v38 = vld [vmem:[%s3023_s1 + $0x5f8] sm:$0xff]  ;;  %v2077_v39 = vcombine.low %v178_v27, %v186_v28 }
  0xcf   :  { %1807 = vmatprep.subr.bf16.mxu0 %v1966_v40  ;;  %1848 = vmatprep.subr.bf16.mxu1 %v1968_v41  ;;  %v2079_v40 = vcombine.low %v179_v29, %v187_v30  ;;  %v2094_v41 = vcombine.high %v194_v35, %v202_v36  ;;  %v2096_v42 = vcombine.high %v195_v37, %v203_v38 }
  0xd2   :  { %1808 = vmatpush1.bf16.msra.mxu0 %v1965_v45  ;;  %1849 = vmatpush1.bf16.msra.mxu1 %v1967_v46  ;;  %v219_v45 = vld [vmem:[%s3023_s1 + $0x678] sm:$0xff]  ;;  %v2093_v46 = vcombine.low %v194_v35, %v202_v36 }
  0xd3   :  { %1809 = vmatprep.subr.bf16.mxu0 %v1982_v47  ;;  %1850 = vmatprep.subr.bf16.mxu1 %v1984_v48  ;;  %v2095_v47 = vcombine.low %v195_v37, %v203_v38  ;;  %v2110_v48 = vcombine.high %v210_v43, %v218_v57  ;;  %v2112_v49 = vcombine.high %v211_v44, %v219_v45 }
  0xd6   :  { %1810 = vmatpush1.bf16.msra.mxu0 %v1981_v54  ;;  %1851 = vmatpush1.bf16.msra.mxu1 %v1983_v55  ;;  %v235_v54 = vld [vmem:[%s3023_s1 + $0x6f8] sm:$0xff]  ;;  %v2109_v55 = vcombine.low %v210_v43, %v218_v57 }
  0xd7   :  { %1811 = vmatprep.subr.bf16.mxu0 %v1998_v56  ;;  %1852 = vmatprep.subr.bf16.mxu1 %v2000_v58  ;;  %v2111_v56 = vcombine.low %v211_v44, %v219_v45  ;;  %v2126_v58 = vcombine.high %v226_v50, %v234_v51  ;;  %v2128_v59 = vcombine.high %v227_v52, %v235_v54 }
  0xda   :  { %1812 = vmatpush1.bf16.msra.mxu0 %v1997_v63  ;;  %1853 = vmatpush1.bf16.msra.mxu1 %v1999_v0  ;;  %v251_v63 = vld [vmem:[%s3023_s1 + $0x778] sm:$0xff]  ;;  %v2125_v0 = vcombine.low %v226_v50, %v234_v51 }
  0xdb   :  { %1813 = vmatprep.subr.bf16.mxu0 %v2014_v1  ;;  %1854 = vmatprep.subr.bf16.mxu1 %v2016_v2  ;;  %v2127_v1 = vcombine.low %v227_v52, %v235_v54  ;;  %v2142_v2 = vcombine.high %v242_v60, %v250_v61  ;;  %v2144_v3 = vcombine.high %v243_v62, %v251_v63 }
  0xde   :  { %1814 = vmatpush1.bf16.msra.mxu0 %v2013_v7  ;;  %1855 = vmatpush1.bf16.msra.mxu1 %v2015_v8  ;;  %v267_v7 = vld [vmem:[%s3023_s1 + $0x7f8] sm:$0xff]  ;;  %v2141_v8 = vcombine.low %v242_v60, %v250_v61 }
  0xdf   :  { %1815 = vmatprep.subr.bf16.mxu0 %v2030_v9  ;;  %1856 = vmatprep.subr.bf16.mxu1 %v2032_v10  ;;  %v2143_v9 = vcombine.low %v243_v62, %v251_v63  ;;  %v2158_v10 = vcombine.high %v258_v4, %v266_v5  ;;  %v2160_v11 = vcombine.high %v259_v6, %v267_v7 }
  0xe0   :  { %v2159_v14 = vcombine.low %v259_v6, %v267_v7 }
  0xe2   :  { %1816 = vmatpush1.bf16.msra.mxu0 %v2029_v16  ;;  %1857 = vmatpush1.bf16.msra.mxu1 %v2031_v17 }
  0xe3   :  { %1817 = vmatprep.subr.bf16.mxu0 %v2046_v18  ;;  %1858 = vmatprep.subr.bf16.mxu1 %v2048_v53 }
  0xe6   :  { %1818 = vmatpush1.bf16.msra.mxu0 %v2045_v23  ;;  %1859 = vmatpush1.bf16.msra.mxu1 %v2047_v24 }
  0xe7   :  { %1819 = vmatprep.subr.bf16.mxu0 %v2062_v25  ;;  %1860 = vmatprep.subr.bf16.mxu1 %v2064_v26 }
  0xea   :  { %1820 = vmatpush1.bf16.msra.mxu0 %v2061_v31  ;;  %1861 = vmatpush1.bf16.msra.mxu1 %v2063_v32 }
  0xeb   :  { %1821 = vmatprep.subr.bf16.mxu0 %v2078_v33  ;;  %1862 = vmatprep.subr.bf16.mxu1 %v2080_v34 }
  0xee   :  { %1822 = vmatpush1.bf16.msra.mxu0 %v2077_v39  ;;  %1863 = vmatpush1.bf16.msra.mxu1 %v2079_v40 }
  0xef   :  { %1823 = vmatprep.subr.bf16.mxu0 %v2094_v41  ;;  %1864 = vmatprep.subr.bf16.mxu1 %v2096_v42 }
  0xf2   :  { %1824 = vmatpush1.bf16.msra.mxu0 %v2093_v46  ;;  %1865 = vmatpush1.bf16.msra.mxu1 %v2095_v47 }
  0xf3   :  { %1825 = vmatprep.subr.bf16.mxu0 %v2110_v48  ;;  %1866 = vmatprep.subr.bf16.mxu1 %v2112_v49 }
  0xf6   :  { %1826 = vmatpush1.bf16.msra.mxu0 %v2109_v55  ;;  %1867 = vmatpush1.bf16.msra.mxu1 %v2111_v56 }
  0xf7   :  { %1827 = vmatprep.subr.bf16.mxu0 %v2126_v58  ;;  %1868 = vmatprep.subr.bf16.mxu1 %v2128_v59 }
  0xfa   :  { %1828 = vmatpush1.bf16.msra.mxu0 %v2125_v0  ;;  %1869 = vmatpush1.bf16.msra.mxu1 %v2127_v1 }
  0xfb   :  { %1829 = vmatprep.subr.bf16.mxu0 %v2142_v2  ;;  %1870 = vmatprep.subr.bf16.mxu1 %v2144_v3 }
  0xfe   :  { %1830 = vmatpush1.bf16.msra.mxu0 %v2141_v8  ;;  %1871 = vmatpush1.bf16.msra.mxu1 %v2143_v9 }
  0xff   :  { %1831 = vmatprep.subr.bf16.mxu0 %v2158_v10  ;;  %1872 = vmatprep.subr.bf16.mxu1 %v2160_v11 }
 0x102   :  { %1832 = vmatpush1.bf16.msra.mxu0 %v2157_v13  ;;  %1873 = vmatpush1.bf16.msra.mxu1 %v2159_v14 }
 0x105   :  { %1834 = vmatmul.mubr.bf16.vlgmr.msra.gmra.mrb[12].mxu0 %v2401_v12  ;;  %1875 = vmatmul.mubr.bf16.vlgmr.msra.gmra.mrb[12].mxu1 %v2401_v12 }
 0x118   :  { %v1589_v15 = vpop.f32.mrb[0].mxu0  ;;  %v1630_v16 = vpop.f32.mrb[0].mxu1 }
 0x119   :  { %1883 = vst [vmem:[%s3025_s2] sm:$0xff] %v1589_v15  ;;  %v1591_v17 = vpop.f32.mrb[1].mxu0  ;;  %1885 = vst [vmem:[%s3025_s2 + $0x10] sm:$0xff] %v1630_v16  ;;  %v1632_v18 = vpop.f32.mrb[1].mxu1 }
 0x11a   :  { %1884 = vst [vmem:[%s3025_s2 + $0x8] sm:$0xff] %v1591_v17  ;;  %v1593_v53 = vpop.f32.mrb[2].mxu0  ;;  %1886 = vst [vmem:[%s3025_s2 + $0x18] sm:$0xff] %v1632_v18  ;;  %v1634_v12 = vpop.f32.mrb[2].mxu1 }
 0x11b   :  { %v1594_v19 = vpop.f32.mrb[3].mxu0  ;;  %v1635_v20 = vpop.f32.mrb[3].mxu1 }
 0x158   :  { %v1671_v21 = vpop.f32.mrb[4].mxu0  ;;  %v1712_v22 = vpop.f32.mrb[4].mxu1 }
 0x159   :  { %1887 = vst [vmem:[%s3025_s2 + $0x20] sm:$0xff] %v1671_v21  ;;  %v1673_v23 = vpop.f32.mrb[5].mxu0  ;;  %1889 = vst [vmem:[%s3025_s2 + $0x30] sm:$0xff] %v1712_v22  ;;  %v1714_v24 = vpop.f32.mrb[5].mxu1 }
 0x15a   :  { %1888 = vst [vmem:[%s3025_s2 + $0x28] sm:$0xff] %v1673_v23  ;;  %v1675_v25 = vpop.f32.mrb[6].mxu0  ;;  %1890 = vst [vmem:[%s3025_s2 + $0x38] sm:$0xff] %v1714_v24  ;;  %v1716_v26 = vpop.f32.mrb[6].mxu1 }
 0x15b   :  { %v1676_v27 = vpop.f32.mrb[7].mxu0  ;;  %v1717_v28 = vpop.f32.mrb[7].mxu1 }
 0x198   :  { %v1753_v29 = vpop.f32.mrb[8].mxu0  ;;  %v1794_v30 = vpop.f32.mrb[8].mxu1 }
 0x199   :  { %1891 = vst [vmem:[%s3025_s2 + $0x40] sm:$0xff] %v1753_v29  ;;  %v1755_v31 = vpop.f32.mrb[9].mxu0  ;;  %1893 = vst [vmem:[%s3025_s2 + $0x50] sm:$0xff] %v1794_v30  ;;  %v1796_v32 = vpop.f32.mrb[9].mxu1 }
 0x19a   :  { %1892 = vst [vmem:[%s3025_s2 + $0x48] sm:$0xff] %v1755_v31  ;;  %v1757_v33 = vpop.f32.mrb[10].mxu0  ;;  %1894 = vst [vmem:[%s3025_s2 + $0x58] sm:$0xff] %v1796_v32  ;;  %v1798_v34 = vpop.f32.mrb[10].mxu1 }
 0x19b   :  { %v1758_v35 = vpop.f32.mrb[11].mxu0  ;;  %v1799_v36 = vpop.f32.mrb[11].mxu1 }
 0x1d8   :  { %v1835_v37 = vpop.f32.mrb[12].mxu0  ;;  %v1876_v38 = vpop.f32.mrb[12].mxu1 }
 0x1d9   :  { %1895 = vst [vmem:[%s3025_s2 + $0x60] sm:$0xff] %v1835_v37  ;;  %v1837_v39 = vpop.f32.mrb[13].mxu0  ;;  %1897 = vst [vmem:[%s3025_s2 + $0x70] sm:$0xff] %v1876_v38  ;;  %v1878_v40 = vpop.f32.mrb[13].mxu1 }
 0x1da   :  { %1896 = vst [vmem:[%s3025_s2 + $0x68] sm:$0xff] %v1837_v39  ;;  %v1839_v41 = vpop.f32.mrb[14].mxu0  ;;  %1898 = vst [vmem:[%s3025_s2 + $0x78] sm:$0xff] %v1878_v40  ;;  %v1880_v42 = vpop.f32.mrb[14].mxu1 }
 0x1db   :  { %v1840_v43 = vpop.f32.mrb[15].mxu0  ;;  %v1881_v57 = vpop.f32.mrb[15].mxu1 }

// kernel: reverse.3
= control target key start
LH: loop header
LB: loop body
LE: loop exit
PB: predicated region body
PF: predicated region fallthrough
CT: control target
= control target key end

     0   :  { %v2_v0 = vlaneseq  ;;  %s318_s0 = inlined_call_operand.vmem [shape: f32[8,1,2048], index: 0, kind: input, shape index: {}]   ;;  %s319_s1 = inlined_call_operand.vmem [shape: f32[8,1,2048], index: 1, kind: output, shape index: {}]  }
   0x2   :  { %v3_v1 = vsub.s32 127, %v2_v0 }
   0x4   :  { %4 = vset.pattern.permute.xlu0 %v3_v1 }
   0x5   :  { %s281_s6 = smov 0   ;;  %s283_s7 = smov 0  }
   0x6   :  { %s285_s8 = smov 0  }
   0x7 LB: > { %s211_s9 = sadd.s32 4294967295, %s269_s8   ;;  %s22_s10 = sadd.s32 1, %s265_s7  ;;  %s269_s8 = sphi %s285_s8, %s10_s8   ;;  %s265_s7 = sphi %s283_s7, %s321_s7   ;;  %s261_s6 = sphi %s281_s6, %s320_s6  }
   0x8   : > { %p23_p0 = scmp.ge.s32.totalorder %s22_s10, 16  ;;  %p213_p1 = scmp.ge.s32.totalorder %s269_s8, 16 }
   0x9   : > { %s45_s11 = sand.u32 (!%p213_p1), 1, %s269_s8   ;;  %s48_s12 = ssub.s32 (!%p213_p1), 15, %s265_s7 }
   0xa   : > { %s323_s10 = smov (%p23_p0, %s22_s10), 0  ;;  %43 = sbr.rel (%p213_p1) target bundleno = 17 (0x11), region = 16 }
   0xb   : > { %s214_s13 = sshll.u32 (!%p213_p1), %s45_s11, 3  ;;  %s215_s14 = sshll.u32 (!%p213_p1), %s48_s12, 3 }
   0xc   : > { %s54_s17 = scalar_lea.vmem (!%p213_p1), %s318_s0, %s215_s14  ;;  %s47_s18 = scalar_lea.vmem (!%p213_p1), [#allocation0], %s214_s13 }
   0xd   : > { %v82_v2 = vld [vmem:[%s54_s17] sm:$0xff] (!%p213_p1) }
   0xe   : > { %83 = vst [vmem:[%s47_s18] sm:$0xff] (!%p213_p1), %v82_v2 }
  0x11 PF: > { %p216_p2 = scmp.ge.s32.totalorder %s269_s8, 1  ;;  %p88_p3 = scmp.lt.s32.totalorder %s269_s8, 17 }
  0x13   : > { %p89_p4 = pnand %p216_p2, %p88_p3 }
  0x14   : > { %s95_s19 = sand.u32 (!%p89_p4), 1, %s211_s9   ;;  %s220_s22 = sshll.u32 (!%p89_p4), %s261_s6, 3 }
  0x15   : > { %92 = sbr.rel (%p89_p4) target bundleno = 153 (0x99), region = 54  ;;  %s217_s20 = sshll.u32 (!%p89_p4), %s95_s19, 3 }
  0x16   : > { %s97_s21 = scalar_lea.vmem (!%p89_p4), [#allocation0], %s217_s20  ;;  %s120_s25 = scalar_lea.vmem (!%p89_p4), %s319_s1, %s220_s22 }
  0x17   : > { %v107_v3 = vld [vmem:[%s97_s21] sm:$0xff] (!%p89_p4) }
  0x18   : > { %108 = vperm.xlu0 (!%p89_p4), %4, %v107_v3  }
  0x97   : > { %v109_v4 = vpop.permute.xlu0 %108 }
  0x98   : > { %149 = vst [vmem:[%s120_s25] sm:$0xff] %v109_v4 }
  0x99 PF: > { %s10_s8 = sadd.s32 1, %s269_s8   ;;  %s320_s6 = smov %s265_s7 }
  0x9a   : > { %p7_p5 = scmp.ge.s32.totalorder %s10_s8, 18   ;;  %s321_s7 = smov %s323_s10 }
  0x9c   :  { %9 = sbr.rel (!%p7_p5) target bundleno = 7 (0x7), region = 118 }

</bundles_post_ra>
